<compile_context>
chip_gen: v7x
topology: tpu7x:2x2x1
jax: 0.10.0
libtpu: 0.0.40
codegen_flags: <defaults>
</compile_context>

<pallas_src>
import functools

import jax
import jax.numpy as jnp
from jax.experimental import pallas as pl
from jax.experimental.pallas import tpu as pltpu

ACT_DTYPE = jnp.bfloat16


# ---------------------------------------------------------------------------
# In-kernel helpers for the padded-flat layout.
# A padded-flat activation has shape (C, (H+2)*(W+2)); element
# (c, (y+1)*(W+2) + (x+1)) holds pixel (y, x); every other position is zero.
# ---------------------------------------------------------------------------
def _interior_mask(H, W, start, length):
    """(1, length) f32 mask: 1.0 where padded-flat index `start + i` is interior."""
    Wp = W + 2
    idx = jax.lax.broadcasted_iota(jnp.int32, (1, length), 1) + start
    t = idx.astype(jnp.float32)
    row = jnp.floor((t + 0.5) / Wp)     # exact integer row (robust to fp rounding)
    col = t - row * Wp                  # exact integer column
    m = (row > 0.5) & (row < H + 0.5) & (col > 0.5) & (col < W + 0.5)
    return m.astype(jnp.float32)


def _conv_flat(src_ref, w_ref, b_ref, *, H, W, mask, relu=False, residual=None):
    """K in {1,3} SAME conv on a padded-flat source ref.

    src_ref : (C_src, (H+2)*(W+2)) Ref (uses its first Cin channels)
    w_ref   : (K, K, Cout, Cin) Ref (bf16)
    b_ref   : (Cout, 1) f32 Ref
    Returns f32 (Cout, L) window (L = H*(W+2) - 2) covering padded-flat positions
    [W+3, W+3+L); padding-column positions are zeroed via `mask`.
    """
    K = w_ref.shape[0]
    cin = w_ref.shape[3]
    Wp = W + 2
    L = H * Wp - 2
    t0 = Wp + 1
    pad = K // 2
    acc = None
    for dy in range(K):
        for dx in range(K):
            off = t0 + (dy - pad) * Wp + (dx - pad)
            tap = src_ref[0:cin, off:off + L]                       # (Cin, L) lane slice
            part = jnp.dot(w_ref[dy, dx], tap,
                           preferred_element_type=jnp.float32)      # (Cout, L) on MXU
            acc = part if acc is None else acc + part
    acc = acc + b_ref[...]
    if residual is not None:
        acc = acc + residual
    if relu:
        acc = jnp.maximum(acc, 0.0)
    return acc * mask


def _store_padded(dst_ref, win, *, H, W):
    """Write a (C, L) window into a padded-flat (C, (H+2)*(W+2)) ref; zero the
    leading/trailing padding so the buffer stays a valid padded-flat map."""
    Wp = W + 2
    L = H * Wp - 2
    t0 = Wp + 1
    C = dst_ref.shape[0]
    dt = dst_ref.dtype
    dst_ref[:, t0:t0 + L] = win.astype(dt)
    dst_ref[:, 0:t0] = jnp.zeros((C, t0), dt)
    dst_ref[:, t0 + L:t0 + L + t0] = jnp.zeros((C, t0), dt)


# ---------------------------------------------------------------------------
# Fused stage kernels (one batch element per grid step).
# ---------------------------------------------------------------------------
def _head_kernel(x_ref, sms_ref, smb_ref, w1_ref, b1_ref, w2_ref, b2_ref,
                 f_ref, x0_ref, sin_ref, *, H, W):
    """sub_mean (per-channel affine) + conv1 + conv2, fused."""
    Wp = W + 2
    flat = (H + 2) * Wp
    L = H * Wp - 2
    m_full = _interior_mask(H, W, 0, flat)
    m_win = _interior_mask(H, W, Wp + 1, L)
    # MeanShift on interior pixels only; padding frame stays exactly zero.
    xin = x_ref[...].astype(jnp.float32)
    sin_ref[...] = (xin * sms_ref[...] + smb_ref[...] * m_full).astype(sin_ref.dtype)
    # conv1 -> F_minus
    f_win = _conv_flat(sin_ref, w1_ref, b1_ref, H=H, W=W, mask=m_win)
    _store_padded(f_ref, f_win, H=H, W=W)
    # conv2 reads conv1's padded-flat result straight from the output ref (VMEM).
    x0_win = _conv_flat(f_ref, w2_ref, b2_ref, H=H, W=W, mask=m_win)
    _store_padded(x0_ref, x0_win, H=H, W=W)


def _make_rdb_kernel(nf, g, nl, H, W):
    """One RDB: nl dense 3x3 convs (ReLU, dense concat in VMEM) + 1x1 LFF + residual."""
    Wp = W + 2
    flat = (H + 2) * Wp
    L = H * Wp - 2
    t0 = Wp + 1

    def kernel(*refs):
        x_ref = refs[0]
        layer_refs = refs[1:1 + 2 * nl]
        wl_ref = refs[1 + 2 * nl]
        bl_ref = refs[2 + 2 * nl]
        o_ref = refs[3 + 2 * nl]
        cat_ref = refs[4 + 2 * nl]
        m_win = _interior_mask(H, W, t0, L)
        # Dense-concat buffer lives entirely in VMEM scratch.
        cat_ref[0:nf, :] = x_ref[...]
        cat_ref[nf:nf + nl * g, :] = jnp.zeros((nl * g, flat), cat_ref.dtype)
        for i in range(nl):
            w_ref = layer_refs[2 * i]
            b_ref = layer_refs[2 * i + 1]
            y = _conv_flat(cat_ref, w_ref, b_ref, H=H, W=W, mask=m_win, relu=True)
            cat_ref[nf + i * g:nf + (i + 1) * g, t0:t0 + L] = y.astype(cat_ref.dtype)
        # 1x1 local feature fusion + local residual.
        res = x_ref[:, t0:t0 + L].astype(jnp.float32)
        out = _conv_flat(cat_ref, wl_ref, bl_ref, H=H, W=W, mask=m_win, residual=res)
        _store_padded(o_ref, out, H=H, W=W)

    return kernel


def _make_gff_kernel(nf, n_blocks, H, W):
    """gff_1 (1x1 over channel-concat of RDB outputs) + gff_3 (3x3) + global residual."""
    Wp = W + 2
    L = H * Wp - 2
    t0 = Wp + 1

    def kernel(*refs):
        rdb_refs = refs[0:n_blocks]
        f_ref = refs[n_blocks]
        wg1_ref, bg1_ref, wg3_ref, bg3_ref = refs[n_blocks + 1:n_blocks + 5]
        o_ref = refs[n_blocks + 5]
        tmp_ref = refs[n_blocks + 6]
        m_win = _interior_mask(H, W, t0, L)
        # gff_1: 1x1 conv accumulated per RDB output (no HBM concat needed).
        acc = None
        for d in range(n_blocks):
            tap = rdb_refs[d][:, t0:t0 + L]
            part = jnp.dot(wg1_ref[:, d * nf:(d + 1) * nf], tap,
                           preferred_element_type=jnp.float32)
            acc = part if acc is None else acc + part
        acc = (acc + bg1_ref[...]) * m_win
        _store_padded(tmp_ref, acc, H=H, W=W)
        # gff_3 + global residual with F_minus.
        res = f_ref[:, t0:t0 + L].astype(jnp.float32)
        out = _conv_flat(tmp_ref, wg3_ref, bg3_ref, H=H, W=W, mask=m_win, residual=res)
        _store_padded(o_ref, out, H=H, W=W)

    return kernel


def _up_kernel(x_ref, w_ref, b_ref, o_ref, *, H, W):
    """Upsampler conv (nf -> 4*nf); PixelShuffle is done by the wrapper."""
    Wp = W + 2
    L = H * Wp - 2
    m_win = _interior_mask(H, W, Wp + 1, L)
    y = _conv_flat(x_ref, w_ref, b_ref, H=H, W=W, mask=m_win)
    _store_padded(o_ref, y, H=H, W=W)


def _tail_kernel(x_ref, w_ref, b_ref, ams_ref, amb_ref, o_ref, *, H, W):
    """Final 3x3 conv with the add_mean affine fused into the epilogue."""
    Wp = W + 2
    L = H * Wp - 2
    m_win = _interior_mask(H, W, Wp + 1, L)
    y = _conv_flat(x_ref, w_ref, b_ref, H=H, W=W, mask=m_win)
    y = (y * ams_ref[...] + amb_ref[...]) * m_win
    _store_padded(o_ref, y, H=H, W=W)


# ---------------------------------------------------------------------------
# pallas_call plumbing
# ---------------------------------------------------------------------------
def _act_spec(C, flat):
    # batch dim squeezed out of the kernel Ref -> kernel sees a 2-D (C, flat) view.
    return pl.BlockSpec((None, C, flat), lambda b: (b, 0, 0))


def _param_spec(shape):
    return pl.BlockSpec(tuple(shape), lambda b, _n=len(shape): (0,) * _n)


def _call(kernel, B, ins, in_specs, out_shape, out_specs, scratch=()):
    return pl.pallas_call(
        kernel,
        out_shape=out_shape,
        grid=(B,),
        in_specs=in_specs,
        out_specs=out_specs,
        scratch_shapes=list(scratch),
        compiler_params=pltpu.CompilerParams(dimension_semantics=("parallel",)),
    )(*ins)


# ---------------------------------------------------------------------------
# Parameter construction (deterministic, synthetic)
# ---------------------------------------------------------------------------
def _init_conv(key, K, cin, cout, scale=0.05):
    kw, kb = jax.random.split(key)
    w = jax.random.normal(kw, (K, K, cin, cout), jnp.float32) * scale
    b = jax.random.normal(kb, (cout,), jnp.float32) * scale
    # kernel-ready layout: weights (K, K, Cout, Cin) bf16, bias (Cout, 1) f32
    return jnp.transpose(w, (0, 1, 3, 2)).astype(ACT_DTYPE), b.reshape(cout, 1)


def init_params(key, cfg):
    nf, g, nl = cfg["n_feats"], cfg["growth_rate"], cfg["n_layers"]
    keys = iter(jax.random.split(key, 64))
    p = {}

    # common.MeanShift: 1x1 conv with diag(1/std) weight -> per-channel affine.
    mean = jnp.array([0.4488, 0.4371, 0.404], jnp.float32)
    std = jnp.array([1.0, 1.0, 1.0], jnp.float32)
    p["sub_mean"] = ((1.0 / std).reshape(3, 1),
                     (-cfg["rgb_range"] * mean / std).reshape(3, 1))
    p["add_mean"] = ((1.0 / std).reshape(3, 1),
                     (cfg["rgb_range"] * mean / std).reshape(3, 1))

    p["conv1"] = _init_conv(next(keys), 3, cfg["n_channel_in"], nf)
    p["conv2"] = _init_conv(next(keys), 3, nf, nf)

    rdbs = []
    for _ in range(cfg["n_denseblocks"]):
        layers = [_init_conv(next(keys), 3, nf + i * g, g) for i in range(nl)]
        lff = _init_conv(next(keys), 1, nf + nl * g, nf)
        rdbs.append({"layers": layers, "lff": lff})
    p["rdbs"] = rdbs

    wg1, bg1 = _init_conv(next(keys), 1, nf * cfg["n_denseblocks"], nf)
    p["gff_1"] = (wg1[0, 0], bg1)                     # 2-D (nf, n_denseblocks*nf)
    p["gff_3"] = _init_conv(next(keys), 3, nf, nf)

    # common.Upsampler (scale = power of 2): repeat [conv nf->4nf, PixelShuffle(2)]
    up = []
    s = cfg["scale"]
    assert s >= 1 and (s & (s - 1)) == 0, "only power-of-2 scales built here"
    while s > 1:
        up.append(_init_conv(next(keys), 3, nf, 4 * nf))
        s //= 2
    p["up"] = up
    p["tail"] = _init_conv(next(keys), 3, nf, cfg["n_channel_out"])
    return p


# ---------------------------------------------------------------------------
# RDN forward (mirrors the PyTorch module's forward())
# ---------------------------------------------------------------------------
def rdn_forward(x_nchw, params, cfg):
    B, cin, H, W = x_nchw.shape
    nf, g, nl = cfg["n_feats"], cfg["growth_rate"], cfg["n_layers"]
    nd = cfg["n_denseblocks"]
    n_out = cfg["n_channel_out"]
    flat = (H + 2) * (W + 2)

    # Only wrapper-side pad: the tiny raw input -> padded-flat layout.
    x_pf = jnp.pad(x_nchw, ((0, 0), (0, 0), (1, 1), (1, 1)))
    x_pf = x_pf.reshape(B, cin, flat).astype(ACT_DTYPE)

    if cfg["is_sub_mean"]:
        sms, smb = params["sub_mean"]
        ams, amb = params["add_mean"]
    else:
        sms = jnp.ones((cin, 1), jnp.float32)
        smb = jnp.zeros((cin, 1), jnp.float32)
        ams = jnp.ones((n_out, 1), jnp.float32)
        amb = jnp.zeros((n_out, 1), jnp.float32)

    # Head: sub_mean + conv1 + conv2 fused.
    w1, b1 = params["conv1"]
    w2, b2 = params["conv2"]
    f_pf, x_cur = _call(
        functools.partial(_head_kernel, H=H, W=W), B,
        [x_pf, sms, smb, w1, b1, w2, b2],
        [_act_spec(cin, flat), _param_spec(sms.shape), _param_spec(smb.shape),
         _param_spec(w1.shape), _param_spec(b1.shape),
         _param_spec(w2.shape), _param_spec(b2.shape)],
        (jax.ShapeDtypeStruct((B, nf, flat), ACT_DTYPE),
         jax.ShapeDtypeStruct((B, nf, flat), ACT_DTYPE)),
        (_act_spec(nf, flat), _act_spec(nf, flat)),
        scratch=[pltpu.VMEM((cin, flat), ACT_DTYPE)],
    )

    # RDBs: one fused pallas_call per block.
    rdb_outs = []
    for rdb in params["rdbs"]:
        ins = [x_cur]
        specs = [_act_spec(nf, flat)]
        for (w, b) in rdb["layers"]:
            ins += [w, b]
            specs += [_param_spec(w.shape), _param_spec(b.shape)]
        wl, bl = rdb["lff"]
        ins += [wl, bl]
        specs += [_param_spec(wl.shape), _param_spec(bl.shape)]
        x_cur = _call(
            _make_rdb_kernel(nf, g, nl, H, W), B, ins, specs,
            jax.ShapeDtypeStruct((B, nf, flat), ACT_DTYPE),
            _act_spec(nf, flat),
            scratch=[pltpu.VMEM((nf + nl * g, flat), ACT_DTYPE)],
        )
        rdb_outs.append(x_cur)

    # GFF (1x1 + 3x3) + global residual, fused.
    wg1, bg1 = params["gff_1"]
    wg3, bg3 = params["gff_3"]
    body = _call(
        _make_gff_kernel(nf, nd, H, W), B,
        rdb_outs + [f_pf, wg1, bg1, wg3, bg3],
        [_act_spec(nf, flat)] * nd
        + [_act_spec(nf, flat), _param_spec(wg1.shape), _param_spec(bg1.shape),
           _param_spec(wg3.shape), _param_spec(bg3.shape)],
        jax.ShapeDtypeStruct((B, nf, flat), ACT_DTYPE),
        _act_spec(nf, flat),
        scratch=[pltpu.VMEM((nf, flat), ACT_DTYPE)],
    )

    # Tail: Upsampler (conv + PixelShuffle(2)) per factor-2 step, then final conv.
    cur = body
    curH, curW = H, W
    for (wu, bu) in params["up"]:
        flat_c = (curH + 2) * (curW + 2)
        conv_up = _call(
            functools.partial(_up_kernel, H=curH, W=curW), B,
            [cur, wu, bu],
            [_act_spec(nf, flat_c), _param_spec(wu.shape), _param_spec(bu.shape)],
            jax.ShapeDtypeStruct((B, 4 * nf, flat_c), ACT_DTYPE),
            _act_spec(4 * nf, flat_c),
        )
        # TODO(synk): PixelShuffle is a pure lane-interleave relayout; it is kept as
        # XLA reshape/transpose glue on a tiny tensor instead of in-kernel shuffles.
        xs = conv_up.reshape(B, 4 * nf, curH + 2, curW + 2)[:, :, 1:curH + 1, 1:curW + 1]
        xs = xs.reshape(B, nf, 2, 2, curH, curW).transpose(0, 1, 4, 2, 5, 3)
        curH, curW = 2 * curH, 2 * curW
        xs = xs.reshape(B, nf, curH, curW)
        xs = jnp.pad(xs, ((0, 0), (0, 0), (1, 1), (1, 1)))
        cur = xs.reshape(B, nf, (curH + 2) * (curW + 2)).astype(ACT_DTYPE)

    flat_f = (curH + 2) * (curW + 2)
    wt, bt = params["tail"]
    out_pf = _call(
        functools.partial(_tail_kernel, H=curH, W=curW), B,
        [cur, wt, bt, ams, amb],
        [_act_spec(nf, flat_f), _param_spec(wt.shape), _param_spec(bt.shape),
         _param_spec(ams.shape), _param_spec(amb.shape)],
        jax.ShapeDtypeStruct((B, n_out, flat_f), jnp.float32),
        _act_spec(n_out, flat_f),
    )
    out = out_pf.reshape(B, n_out, curH + 2, curW + 2)[:, :, 1:curH + 1, 1:curW + 1]
    return out


# TODO(synk): load_state_dict checkpoint-loading logic is not applicable
# (weights are synthesized deterministically in-script).

if __name__ == "__main__":
    cfg = dict(
        n_channel_in=3,
        n_channel_out=3,
        n_feats=8,
        n_denseblocks=2,
        n_layers=3,
        growth_rate=8,
        scale=2,
        rgb_range=255.0,
        is_sub_mean=True,
    )

    key = jax.random.PRNGKey(0)
    k_params, k_input = jax.random.split(key)
    params = init_params(k_params, cfg)

    x = jax.random.uniform(k_input, (2, 3, 16, 16), jnp.float32) * cfg["rgb_range"]

    fwd = jax.jit(lambda inp: rdn_forward(inp, params, cfg))
    out = jax.block_until_ready(fwd(x))

    expected = (2, cfg["n_channel_out"], 16 * cfg["scale"], 16 * cfg["scale"])
    assert out.shape == expected, (out.shape, expected)
    assert out.dtype == jnp.float32
    assert bool(jnp.all(jnp.isfinite(out)))
    print("KERNEL_OK")
</pallas_src>

<mosaic_0001>
module attributes {stable_mosaic.version = 11 : i64} {
  func.func @_up_kernel(%arg0: i32, %arg1: memref<1x8x324xbf16, #tpu.memory_space<vmem>>, %arg2: memref<3x3x32x8xbf16, #tpu.memory_space<vmem>>, %arg3: memref<32x1xf32, #tpu.memory_space<vmem>>, %arg4: memref<1x32x324xbf16, #tpu.memory_space<vmem>>) attributes {dimension_semantics = [#tpu.dimension_semantics<parallel>], iteration_bounds = array<i64: 2>, scalar_prefetch = 0 : i64, scratch_operands = 0 : i64, tpu.core_type = #tpu.core_type<tc>, window_params = [{transform_indices = @transform_0, window_bounds = array<i64: 1, 8, 324>}, {pipeline_mode = #tpu.pipeline_mode<synchronous>, transform_indices = @transform_1, window_bounds = array<i64: 3, 3, 32, 8>}, {pipeline_mode = #tpu.pipeline_mode<synchronous>, transform_indices = @transform_2, window_bounds = array<i64: 32, 1>}, {transform_indices = @transform_3, window_bounds = array<i64: 1, 32, 324>}]} {
    %0 = tpu.iota {dimensions = array<i32: 1>} : vector<1x286xi32>
    %c19_i32 = arith.constant 19 : i32
    %1 = vector.broadcast %c19_i32 : i32 to vector<1x286xi32>
    %2 = arith.addi %0, %1 : vector<1x286xi32>
    %3 = arith.sitofp %2 : vector<1x286xi32> to vector<1x286xf32>
    %cst = arith.constant 5.000000e-01 : f32
    %4 = vector.broadcast %cst : f32 to vector<1x286xf32>
    %5 = arith.addf %3, %4 : vector<1x286xf32>
    %cst_0 = arith.constant 1.800000e+01 : f32
    %6 = vector.broadcast %cst_0 : f32 to vector<1x286xf32>
    %7 = arith.divf %5, %6 : vector<1x286xf32>
    %8 = math.floor %7 : vector<1x286xf32>
    %cst_1 = arith.constant 1.800000e+01 : f32
    %9 = vector.broadcast %cst_1 : f32 to vector<1x286xf32>
    %10 = arith.mulf %8, %9 : vector<1x286xf32>
    %11 = arith.subf %3, %10 : vector<1x286xf32>
    %cst_2 = arith.constant 5.000000e-01 : f32
    %12 = vector.broadcast %cst_2 : f32 to vector<1x286xf32>
    %13 = arith.cmpf ogt, %8, %12 : vector<1x286xf32>
    %cst_3 = arith.constant 1.650000e+01 : f32
    %14 = vector.broadcast %cst_3 : f32 to vector<1x286xf32>
    %15 = arith.cmpf olt, %8, %14 : vector<1x286xf32>
    %16 = arith.andi %13, %15 : vector<1x286xi1>
    %cst_4 = arith.constant 5.000000e-01 : f32
    %17 = vector.broadcast %cst_4 : f32 to vector<1x286xf32>
    %18 = arith.cmpf ogt, %11, %17 : vector<1x286xf32>
    %19 = arith.andi %16, %18 : vector<1x286xi1>
    %cst_5 = arith.constant 1.650000e+01 : f32
    %20 = vector.broadcast %cst_5 : f32 to vector<1x286xf32>
    %21 = arith.cmpf olt, %11, %20 : vector<1x286xf32>
    %22 = arith.andi %19, %21 : vector<1x286xi1>
    %23 = arith.extui %22 : vector<1x286xi1> to vector<1x286xi32>
    %24 = arith.sitofp %23 : vector<1x286xi32> to vector<1x286xf32>
    %c0 = arith.constant 0 : index
    %c0_6 = arith.constant 0 : index
    %c0_7 = arith.constant 0 : index
    %25 = vector.load %arg1[%c0, %c0_6, %c0_7] : memref<1x8x324xbf16, #tpu.memory_space<vmem>>, vector<1x8x286xbf16>
    %26 = vector.shape_cast %25 : vector<1x8x286xbf16> to vector<8x286xbf16>
    %c0_8 = arith.constant 0 : index
    %c0_9 = arith.constant 0 : index
    %c0_10 = arith.constant 0 : index
    %c0_11 = arith.constant 0 : index
    %27 = vector.load %arg2[%c0_8, %c0_9, %c0_10, %c0_11] : memref<3x3x32x8xbf16, #tpu.memory_space<vmem>>, vector<1x1x32x8xbf16>
    %28 = vector.shape_cast %27 : vector<1x1x32x8xbf16> to vector<32x8xbf16>
    %cst_12 = arith.constant dense<0.000000e+00> : vector<32x286xf32>
    %29 = tpu.matmul %28, %26, %cst_12 {dimension_numbers = #tpu.dot_dimension_numbers<[1], [0], [0], [1], [0, 0, 1, 1], [], []>} : vector<32x8xbf16>, vector<8x286xbf16>, vector<32x286xf32> -> vector<32x286xf32>
    %c0_13 = arith.constant 0 : index
    %c0_14 = arith.constant 0 : index
    %c1 = arith.constant 1 : index
    %30 = vector.load %arg1[%c0_13, %c0_14, %c1] : memref<1x8x324xbf16, #tpu.memory_space<vmem>>, vector<1x8x286xbf16>
    %31 = vector.shape_cast %30 : vector<1x8x286xbf16> to vector<8x286xbf16>
    %c0_15 = arith.constant 0 : index
    %c1_16 = arith.constant 1 : index
    %c0_17 = arith.constant 0 : index
    %c0_18 = arith.constant 0 : index
    %32 = vector.load %arg2[%c0_15, %c1_16, %c0_17, %c0_18] : memref<3x3x32x8xbf16, #tpu.memory_space<vmem>>, vector<1x1x32x8xbf16>
    %33 = vector.shape_cast %32 : vector<1x1x32x8xbf16> to vector<32x8xbf16>
    %cst_19 = arith.constant dense<0.000000e+00> : vector<32x286xf32>
    %34 = tpu.matmul %33, %31, %cst_19 {dimension_numbers = #tpu.dot_dimension_numbers<[1], [0], [0], [1], [0, 0, 1, 1], [], []>} : vector<32x8xbf16>, vector<8x286xbf16>, vector<32x286xf32> -> vector<32x286xf32>
    %35 = arith.addf %29, %34 : vector<32x286xf32>
    %c0_20 = arith.constant 0 : index
    %c0_21 = arith.constant 0 : index
    %c2 = arith.constant 2 : index
    %36 = vector.load %arg1[%c0_20, %c0_21, %c2] : memref<1x8x324xbf16, #tpu.memory_space<vmem>>, vector<1x8x286xbf16>
    %37 = vector.shape_cast %36 : vector<1x8x286xbf16> to vector<8x286xbf16>
    %c0_22 = arith.constant 0 : index
    %c2_23 = arith.constant 2 : index
    %c0_24 = arith.constant 0 : index
    %c0_25 = arith.constant 0 : index
    %38 = vector.load %arg2[%c0_22, %c2_23, %c0_24, %c0_25] : memref<3x3x32x8xbf16, #tpu.memory_space<vmem>>, vector<1x1x32x8xbf16>
    %39 = vector.shape_cast %38 : vector<1x1x32x8xbf16> to vector<32x8xbf16>
    %cst_26 = arith.constant dense<0.000000e+00> : vector<32x286xf32>
    %40 = tpu.matmul %39, %37, %cst_26 {dimension_numbers = #tpu.dot_dimension_numbers<[1], [0], [0], [1], [0, 0, 1, 1], [], []>} : vector<32x8xbf16>, vector<8x286xbf16>, vector<32x286xf32> -> vector<32x286xf32>
    %41 = arith.addf %35, %40 : vector<32x286xf32>
    %c0_27 = arith.constant 0 : index
    %c0_28 = arith.constant 0 : index
    %c18 = arith.constant 18 : index
    %42 = vector.load %arg1[%c0_27, %c0_28, %c18] : memref<1x8x324xbf16, #tpu.memory_space<vmem>>, vector<1x8x286xbf16>
    %43 = vector.shape_cast %42 : vector<1x8x286xbf16> to vector<8x286xbf16>
    %c1_29 = arith.constant 1 : index
    %c0_30 = arith.constant 0 : index
    %c0_31 = arith.constant 0 : index
    %c0_32 = arith.constant 0 : index
    %44 = vector.load %arg2[%c1_29, %c0_30, %c0_31, %c0_32] : memref<3x3x32x8xbf16, #tpu.memory_space<vmem>>, vector<1x1x32x8xbf16>
    %45 = vector.shape_cast %44 : vector<1x1x32x8xbf16> to vector<32x8xbf16>
    %cst_33 = arith.constant dense<0.000000e+00> : vector<32x286xf32>
    %46 = tpu.matmul %45, %43, %cst_33 {dimension_numbers = #tpu.dot_dimension_numbers<[1], [0], [0], [1], [0, 0, 1, 1], [], []>} : vector<32x8xbf16>, vector<8x286xbf16>, vector<32x286xf32> -> vector<32x286xf32>
    %47 = arith.addf %41, %46 : vector<32x286xf32>
    %c0_34 = arith.constant 0 : index
    %c0_35 = arith.constant 0 : index
    %c19 = arith.constant 19 : index
    %48 = vector.load %arg1[%c0_34, %c0_35, %c19] : memref<1x8x324xbf16, #tpu.memory_space<vmem>>, vector<1x8x286xbf16>
    %49 = vector.shape_cast %48 : vector<1x8x286xbf16> to vector<8x286xbf16>
    %c1_36 = arith.constant 1 : index
    %c1_37 = arith.constant 1 : index
    %c0_38 = arith.constant 0 : index
    %c0_39 = arith.constant 0 : index
    %50 = vector.load %arg2[%c1_36, %c1_37, %c0_38, %c0_39] : memref<3x3x32x8xbf16, #tpu.memory_space<vmem>>, vector<1x1x32x8xbf16>
    %51 = vector.shape_cast %50 : vector<1x1x32x8xbf16> to vector<32x8xbf16>
    %cst_40 = arith.constant dense<0.000000e+00> : vector<32x286xf32>
    %52 = tpu.matmul %51, %49, %cst_40 {dimension_numbers = #tpu.dot_dimension_numbers<[1], [0], [0], [1], [0, 0, 1, 1], [], []>} : vector<32x8xbf16>, vector<8x286xbf16>, vector<32x286xf32> -> vector<32x286xf32>
    %53 = arith.addf %47, %52 : vector<32x286xf32>
    %c0_41 = arith.constant 0 : index
    %c0_42 = arith.constant 0 : index
    %c20 = arith.constant 20 : index
    %54 = vector.load %arg1[%c0_41, %c0_42, %c20] : memref<1x8x324xbf16, #tpu.memory_space<vmem>>, vector<1x8x286xbf16>
    %55 = vector.shape_cast %54 : vector<1x8x286xbf16> to vector<8x286xbf16>
    %c1_43 = arith.constant 1 : index
    %c2_44 = arith.constant 2 : index
    %c0_45 = arith.constant 0 : index
    %c0_46 = arith.constant 0 : index
    %56 = vector.load %arg2[%c1_43, %c2_44, %c0_45, %c0_46] : memref<3x3x32x8xbf16, #tpu.memory_space<vmem>>, vector<1x1x32x8xbf16>
    %57 = vector.shape_cast %56 : vector<1x1x32x8xbf16> to vector<32x8xbf16>
    %cst_47 = arith.constant dense<0.000000e+00> : vector<32x286xf32>
    %58 = tpu.matmul %57, %55, %cst_47 {dimension_numbers = #tpu.dot_dimension_numbers<[1], [0], [0], [1], [0, 0, 1, 1], [], []>} : vector<32x8xbf16>, vector<8x286xbf16>, vector<32x286xf32> -> vector<32x286xf32>
    %59 = arith.addf %53, %58 : vector<32x286xf32>
    %c0_48 = arith.constant 0 : index
    %c0_49 = arith.constant 0 : index
    %c36 = arith.constant 36 : index
    %60 = vector.load %arg1[%c0_48, %c0_49, %c36] : memref<1x8x324xbf16, #tpu.memory_space<vmem>>, vector<1x8x286xbf16>
    %61 = vector.shape_cast %60 : vector<1x8x286xbf16> to vector<8x286xbf16>
    %c2_50 = arith.constant 2 : index
    %c0_51 = arith.constant 0 : index
    %c0_52 = arith.constant 0 : index
    %c0_53 = arith.constant 0 : index
    %62 = vector.load %arg2[%c2_50, %c0_51, %c0_52, %c0_53] : memref<3x3x32x8xbf16, #tpu.memory_space<vmem>>, vector<1x1x32x8xbf16>
    %63 = vector.shape_cast %62 : vector<1x1x32x8xbf16> to vector<32x8xbf16>
    %cst_54 = arith.constant dense<0.000000e+00> : vector<32x286xf32>
    %64 = tpu.matmul %63, %61, %cst_54 {dimension_numbers = #tpu.dot_dimension_numbers<[1], [0], [0], [1], [0, 0, 1, 1], [], []>} : vector<32x8xbf16>, vector<8x286xbf16>, vector<32x286xf32> -> vector<32x286xf32>
    %65 = arith.addf %59, %64 : vector<32x286xf32>
    %c0_55 = arith.constant 0 : index
    %c0_56 = arith.constant 0 : index
    %c37 = arith.constant 37 : index
    %66 = vector.load %arg1[%c0_55, %c0_56, %c37] : memref<1x8x324xbf16, #tpu.memory_space<vmem>>, vector<1x8x286xbf16>
    %67 = vector.shape_cast %66 : vector<1x8x286xbf16> to vector<8x286xbf16>
    %c2_57 = arith.constant 2 : index
    %c1_58 = arith.constant 1 : index
    %c0_59 = arith.constant 0 : index
    %c0_60 = arith.constant 0 : index
    %68 = vector.load %arg2[%c2_57, %c1_58, %c0_59, %c0_60] : memref<3x3x32x8xbf16, #tpu.memory_space<vmem>>, vector<1x1x32x8xbf16>
    %69 = vector.shape_cast %68 : vector<1x1x32x8xbf16> to vector<32x8xbf16>
    %cst_61 = arith.constant dense<0.000000e+00> : vector<32x286xf32>
    %70 = tpu.matmul %69, %67, %cst_61 {dimension_numbers = #tpu.dot_dimension_numbers<[1], [0], [0], [1], [0, 0, 1, 1], [], []>} : vector<32x8xbf16>, vector<8x286xbf16>, vector<32x286xf32> -> vector<32x286xf32>
    %71 = arith.addf %65, %70 : vector<32x286xf32>
    %c0_62 = arith.constant 0 : index
    %c0_63 = arith.constant 0 : index
    %c38 = arith.constant 38 : index
    %72 = vector.load %arg1[%c0_62, %c0_63, %c38] : memref<1x8x324xbf16, #tpu.memory_space<vmem>>, vector<1x8x286xbf16>
    %73 = vector.shape_cast %72 : vector<1x8x286xbf16> to vector<8x286xbf16>
    %c2_64 = arith.constant 2 : index
    %c2_65 = arith.constant 2 : index
    %c0_66 = arith.constant 0 : index
    %c0_67 = arith.constant 0 : index
    %74 = vector.load %arg2[%c2_64, %c2_65, %c0_66, %c0_67] : memref<3x3x32x8xbf16, #tpu.memory_space<vmem>>, vector<1x1x32x8xbf16>
    %75 = vector.shape_cast %74 : vector<1x1x32x8xbf16> to vector<32x8xbf16>
    %cst_68 = arith.constant dense<0.000000e+00> : vector<32x286xf32>
    %76 = tpu.matmul %75, %73, %cst_68 {dimension_numbers = #tpu.dot_dimension_numbers<[1], [0], [0], [1], [0, 0, 1, 1], [], []>} : vector<32x8xbf16>, vector<8x286xbf16>, vector<32x286xf32> -> vector<32x286xf32>
    %77 = arith.addf %71, %76 : vector<32x286xf32>
    %c0_69 = arith.constant 0 : index
    %c0_70 = arith.constant 0 : index
    %78 = vector.load %arg3[%c0_69, %c0_70] : memref<32x1xf32, #tpu.memory_space<vmem>>, vector<32x1xf32>
    %79 = vector.broadcast %78 : vector<32x1xf32> to vector<32x286xf32>
    %80 = arith.addf %77, %79 : vector<32x286xf32>
    %81 = vector.broadcast %24 : vector<1x286xf32> to vector<32x286xf32>
    %82 = arith.mulf %80, %81 : vector<32x286xf32>
    %83 = arith.truncf %82 : vector<32x286xf32> to vector<32x286xbf16>
    %c0_71 = arith.constant 0 : index
    %c0_72 = arith.constant 0 : index
    %c19_73 = arith.constant 19 : index
    %84 = vector.load %arg4[%c0_71, %c0_72, %c19_73] : memref<1x32x324xbf16, #tpu.memory_space<vmem>>, vector<1x32x286xbf16>
    %85 = vector.shape_cast %84 : vector<1x32x286xbf16> to vector<32x286xbf16>
    %86 = vector.shape_cast %83 : vector<32x286xbf16> to vector<1x32x286xbf16>
    tpu.vector_store %arg4[%c0_71, %c0_72, %c19_73], %86 {strides = array<i32>} : memref<1x32x324xbf16, #tpu.memory_space<vmem>>, vector<1x32x286xbf16>,
    %cst_74 = arith.constant 0.000000e+00 : bf16
    %87 = vector.broadcast %cst_74 : bf16 to vector<32x19xbf16>
    %c0_75 = arith.constant 0 : index
    %c0_76 = arith.constant 0 : index
    %c0_77 = arith.constant 0 : index
    %88 = vector.load %arg4[%c0_75, %c0_76, %c0_77] : memref<1x32x324xbf16, #tpu.memory_space<vmem>>, vector<1x32x19xbf16>
    %89 = vector.shape_cast %88 : vector<1x32x19xbf16> to vector<32x19xbf16>
    %90 = vector.shape_cast %87 : vector<32x19xbf16> to vector<1x32x19xbf16>
    tpu.vector_store %arg4[%c0_75, %c0_76, %c0_77], %90 {strides = array<i32>} : memref<1x32x324xbf16, #tpu.memory_space<vmem>>, vector<1x32x19xbf16>,
    %cst_78 = arith.constant 0.000000e+00 : bf16
    %91 = vector.broadcast %cst_78 : bf16 to vector<32x19xbf16>
    %c0_79 = arith.constant 0 : index
    %c0_80 = arith.constant 0 : index
    %c305 = arith.constant 305 : index
    %92 = vector.load %arg4[%c0_79, %c0_80, %c305] : memref<1x32x324xbf16, #tpu.memory_space<vmem>>, vector<1x32x19xbf16>
    %93 = vector.shape_cast %92 : vector<1x32x19xbf16> to vector<32x19xbf16>
    %94 = vector.shape_cast %91 : vector<32x19xbf16> to vector<1x32x19xbf16>
    tpu.vector_store %arg4[%c0_79, %c0_80, %c305], %94 {strides = array<i32>} : memref<1x32x324xbf16, #tpu.memory_space<vmem>>, vector<1x32x19xbf16>,
    return
  }
  func.func @transform_0(%arg0: i32) -> (i32, i32, i32) {
    %c0_i32 = arith.constant 0 : i32
    %c0_i32_0 = arith.constant 0 : i32
    %c0_i32_1 = arith.constant 0 : i32
    return %arg0, %c0_i32, %c0_i32_0 : i32, i32, i32
  }
  func.func @transform_1(%arg0: i32) -> (i32, i32, i32, i32) {
    %c0_i32 = arith.constant 0 : i32
    %c0_i32_0 = arith.constant 0 : i32
    %c0_i32_1 = arith.constant 0 : i32
    %c0_i32_2 = arith.constant 0 : i32
    %c0_i32_3 = arith.constant 0 : i32
    return %c0_i32, %c0_i32_0, %c0_i32_1, %c0_i32_2 : i32, i32, i32, i32
  }
  func.func @transform_2(%arg0: i32) -> (i32, i32) {
    %c0_i32 = arith.constant 0 : i32
    %c0_i32_0 = arith.constant 0 : i32
    %c0_i32_1 = arith.constant 0 : i32
    return %c0_i32, %c0_i32_0 : i32, i32
  }
  func.func @transform_3(%arg0: i32) -> (i32, i32, i32) {
    %c0_i32 = arith.constant 0 : i32
    %c0_i32_0 = arith.constant 0 : i32
    %c0_i32_1 = arith.constant 0 : i32
    return %arg0, %c0_i32, %c0_i32_0 : i32, i32, i32
  }
}

module attributes {stable_mosaic.version = 11 : i64} {
  func.func @kernel(%arg0: i32, %arg1: memref<1x8x324xbf16, #tpu.memory_space<vmem>>, %arg2: memref<1x8x324xbf16, #tpu.memory_space<vmem>>, %arg3: memref<1x8x324xbf16, #tpu.memory_space<vmem>>, %arg4: memref<8x16xbf16, #tpu.memory_space<vmem>>, %arg5: memref<8x1xf32, #tpu.memory_space<vmem>>, %arg6: memref<3x3x8x8xbf16, #tpu.memory_space<vmem>>, %arg7: memref<8x1xf32, #tpu.memory_space<vmem>>, %arg8: memref<1x8x324xbf16, #tpu.memory_space<vmem>>, %arg9: memref<8x324xbf16, #tpu.memory_space<vmem>>) attributes {dimension_semantics = [#tpu.dimension_semantics<parallel>], iteration_bounds = array<i64: 2>, scalar_prefetch = 0 : i64, scratch_operands = 1 : i64, tpu.core_type = #tpu.core_type<tc>, window_params = [{transform_indices = @transform_0, window_bounds = array<i64: 1, 8, 324>}, {transform_indices = @transform_1, window_bounds = array<i64: 1, 8, 324>}, {transform_indices = @transform_2, window_bounds = array<i64: 1, 8, 324>}, {pipeline_mode = #tpu.pipeline_mode<synchronous>, transform_indices = @transform_3, window_bounds = array<i64: 8, 16>}, {pipeline_mode = #tpu.pipeline_mode<synchronous>, transform_indices = @transform_4, window_bounds = array<i64: 8, 1>}, {pipeline_mode = #tpu.pipeline_mode<synchronous>, transform_indices = @transform_5, window_bounds = array<i64: 3, 3, 8, 8>}, {pipeline_mode = #tpu.pipeline_mode<synchronous>, transform_indices = @transform_6, window_bounds = array<i64: 8, 1>}, {transform_indices = @transform_7, window_bounds = array<i64: 1, 8, 324>}]} {
    %0 = tpu.iota {dimensions = array<i32: 1>} : vector<1x286xi32>
    %c19_i32 = arith.constant 19 : i32
    %1 = vector.broadcast %c19_i32 : i32 to vector<1x286xi32>
    %2 = arith.addi %0, %1 : vector<1x286xi32>
    %3 = arith.sitofp %2 : vector<1x286xi32> to vector<1x286xf32>
    %cst = arith.constant 5.000000e-01 : f32
    %4 = vector.broadcast %cst : f32 to vector<1x286xf32>
    %5 = arith.addf %3, %4 : vector<1x286xf32>
    %cst_0 = arith.constant 1.800000e+01 : f32
    %6 = vector.broadcast %cst_0 : f32 to vector<1x286xf32>
    %7 = arith.divf %5, %6 : vector<1x286xf32>
    %8 = math.floor %7 : vector<1x286xf32>
    %cst_1 = arith.constant 1.800000e+01 : f32
    %9 = vector.broadcast %cst_1 : f32 to vector<1x286xf32>
    %10 = arith.mulf %8, %9 : vector<1x286xf32>
    %11 = arith.subf %3, %10 : vector<1x286xf32>
    %cst_2 = arith.constant 5.000000e-01 : f32
    %12 = vector.broadcast %cst_2 : f32 to vector<1x286xf32>
    %13 = arith.cmpf ogt, %8, %12 : vector<1x286xf32>
    %cst_3 = arith.constant 1.650000e+01 : f32
    %14 = vector.broadcast %cst_3 : f32 to vector<1x286xf32>
    %15 = arith.cmpf olt, %8, %14 : vector<1x286xf32>
    %16 = arith.andi %13, %15 : vector<1x286xi1>
    %cst_4 = arith.constant 5.000000e-01 : f32
    %17 = vector.broadcast %cst_4 : f32 to vector<1x286xf32>
    %18 = arith.cmpf ogt, %11, %17 : vector<1x286xf32>
    %19 = arith.andi %16, %18 : vector<1x286xi1>
    %cst_5 = arith.constant 1.650000e+01 : f32
    %20 = vector.broadcast %cst_5 : f32 to vector<1x286xf32>
    %21 = arith.cmpf olt, %11, %20 : vector<1x286xf32>
    %22 = arith.andi %19, %21 : vector<1x286xi1>
    %23 = arith.extui %22 : vector<1x286xi1> to vector<1x286xi32>
    %24 = arith.sitofp %23 : vector<1x286xi32> to vector<1x286xf32>
    %c0 = arith.constant 0 : index
    %c0_6 = arith.constant 0 : index
    %c19 = arith.constant 19 : index
    %25 = vector.load %arg1[%c0, %c0_6, %c19] : memref<1x8x324xbf16, #tpu.memory_space<vmem>>, vector<1x8x286xbf16>
    %26 = vector.shape_cast %25 : vector<1x8x286xbf16> to vector<8x286xbf16>
    %c0_7 = arith.constant 0 : index
    %c0_8 = arith.constant 0 : index
    %27 = vector.load %arg4[%c0_7, %c0_8] : memref<8x16xbf16, #tpu.memory_space<vmem>>, vector<8x8xbf16>
    %cst_9 = arith.constant dense<0.000000e+00> : vector<8x286xf32>
    %28 = tpu.matmul %27, %26, %cst_9 {dimension_numbers = #tpu.dot_dimension_numbers<[1], [0], [0], [1], [0, 0, 1, 1], [], []>} : vector<8x8xbf16>, vector<8x286xbf16>, vector<8x286xf32> -> vector<8x286xf32>
    %c0_10 = arith.constant 0 : index
    %c0_11 = arith.constant 0 : index
    %c19_12 = arith.constant 19 : index
    %29 = vector.load %arg2[%c0_10, %c0_11, %c19_12] : memref<1x8x324xbf16, #tpu.memory_space<vmem>>, vector<1x8x286xbf16>
    %30 = vector.shape_cast %29 : vector<1x8x286xbf16> to vector<8x286xbf16>
    %c0_13 = arith.constant 0 : index
    %c8 = arith.constant 8 : index
    %31 = vector.load %arg4[%c0_13, %c8] : memref<8x16xbf16, #tpu.memory_space<vmem>>, vector<8x8xbf16>
    %cst_14 = arith.constant dense<0.000000e+00> : vector<8x286xf32>
    %32 = tpu.matmul %31, %30, %cst_14 {dimension_numbers = #tpu.dot_dimension_numbers<[1], [0], [0], [1], [0, 0, 1, 1], [], []>} : vector<8x8xbf16>, vector<8x286xbf16>, vector<8x286xf32> -> vector<8x286xf32>
    %33 = arith.addf %28, %32 : vector<8x286xf32>
    %c0_15 = arith.constant 0 : index
    %c0_16 = arith.constant 0 : index
    %34 = vector.load %arg5[%c0_15, %c0_16] : memref<8x1xf32, #tpu.memory_space<vmem>>, vector<8x1xf32>
    %35 = vector.broadcast %34 : vector<8x1xf32> to vector<8x286xf32>
    %36 = arith.addf %33, %35 : vector<8x286xf32>
    %37 = vector.broadcast %24 : vector<1x286xf32> to vector<8x286xf32>
    %38 = arith.mulf %36, %37 : vector<8x286xf32>
    %39 = arith.truncf %38 : vector<8x286xf32> to vector<8x286xbf16>
    %c0_17 = arith.constant 0 : index
    %c19_18 = arith.constant 19 : index
    %40 = vector.load %arg9[%c0_17, %c19_18] : memref<8x324xbf16, #tpu.memory_space<vmem>>, vector<8x286xbf16>
    tpu.vector_store %arg9[%c0_17, %c19_18], %39 {strides = array<i32>} : memref<8x324xbf16, #tpu.memory_space<vmem>>, vector<8x286xbf16>,
    %cst_19 = arith.constant 0.000000e+00 : bf16
    %41 = vector.broadcast %cst_19 : bf16 to vector<8x19xbf16>
    %c0_20 = arith.constant 0 : index
    %c0_21 = arith.constant 0 : index
    %42 = vector.load %arg9[%c0_20, %c0_21] : memref<8x324xbf16, #tpu.memory_space<vmem>>, vector<8x19xbf16>
    tpu.vector_store %arg9[%c0_20, %c0_21], %41 {strides = array<i32>} : memref<8x324xbf16, #tpu.memory_space<vmem>>, vector<8x19xbf16>,
    %cst_22 = arith.constant 0.000000e+00 : bf16
    %43 = vector.broadcast %cst_22 : bf16 to vector<8x19xbf16>
    %c0_23 = arith.constant 0 : index
    %c305 = arith.constant 305 : index
    %44 = vector.load %arg9[%c0_23, %c305] : memref<8x324xbf16, #tpu.memory_space<vmem>>, vector<8x19xbf16>
    tpu.vector_store %arg9[%c0_23, %c305], %43 {strides = array<i32>} : memref<8x324xbf16, #tpu.memory_space<vmem>>, vector<8x19xbf16>,
    %c0_24 = arith.constant 0 : index
    %c0_25 = arith.constant 0 : index
    %c19_26 = arith.constant 19 : index
    %45 = vector.load %arg3[%c0_24, %c0_25, %c19_26] : memref<1x8x324xbf16, #tpu.memory_space<vmem>>, vector<1x8x286xbf16>
    %46 = vector.shape_cast %45 : vector<1x8x286xbf16> to vector<8x286xbf16>
    %47 = arith.extf %46 : vector<8x286xbf16> to vector<8x286xf32>
    %c0_27 = arith.constant 0 : index
    %c0_28 = arith.constant 0 : index
    %48 = vector.load %arg9[%c0_27, %c0_28] : memref<8x324xbf16, #tpu.memory_space<vmem>>, vector<8x286xbf16>
    %c0_29 = arith.constant 0 : index
    %c0_30 = arith.constant 0 : index
    %c0_31 = arith.constant 0 : index
    %c0_32 = arith.constant 0 : index
    %49 = vector.load %arg6[%c0_29, %c0_30, %c0_31, %c0_32] : memref<3x3x8x8xbf16, #tpu.memory_space<vmem>>, vector<1x1x8x8xbf16>
    %50 = vector.shape_cast %49 : vector<1x1x8x8xbf16> to vector<8x8xbf16>
    %cst_33 = arith.constant dense<0.000000e+00> : vector<8x286xf32>
    %51 = tpu.matmul %50, %48, %cst_33 {dimension_numbers = #tpu.dot_dimension_numbers<[1], [0], [0], [1], [0, 0, 1, 1], [], []>} : vector<8x8xbf16>, vector<8x286xbf16>, vector<8x286xf32> -> vector<8x286xf32>
    %c0_34 = arith.constant 0 : index
    %c1 = arith.constant 1 : index
    %52 = vector.load %arg9[%c0_34, %c1] : memref<8x324xbf16, #tpu.memory_space<vmem>>, vector<8x286xbf16>
    %c0_35 = arith.constant 0 : index
    %c1_36 = arith.constant 1 : index
    %c0_37 = arith.constant 0 : index
    %c0_38 = arith.constant 0 : index
    %53 = vector.load %arg6[%c0_35, %c1_36, %c0_37, %c0_38] : memref<3x3x8x8xbf16, #tpu.memory_space<vmem>>, vector<1x1x8x8xbf16>
    %54 = vector.shape_cast %53 : vector<1x1x8x8xbf16> to vector<8x8xbf16>
    %cst_39 = arith.constant dense<0.000000e+00> : vector<8x286xf32>
    %55 = tpu.matmul %54, %52, %cst_39 {dimension_numbers = #tpu.dot_dimension_numbers<[1], [0], [0], [1], [0, 0, 1, 1], [], []>} : vector<8x8xbf16>, vector<8x286xbf16>, vector<8x286xf32> -> vector<8x286xf32>
    %56 = arith.addf %51, %55 : vector<8x286xf32>
    %c0_40 = arith.constant 0 : index
    %c2 = arith.constant 2 : index
    %57 = vector.load %arg9[%c0_40, %c2] : memref<8x324xbf16, #tpu.memory_space<vmem>>, vector<8x286xbf16>
    %c0_41 = arith.constant 0 : index
    %c2_42 = arith.constant 2 : index
    %c0_43 = arith.constant 0 : index
    %c0_44 = arith.constant 0 : index
    %58 = vector.load %arg6[%c0_41, %c2_42, %c0_43, %c0_44] : memref<3x3x8x8xbf16, #tpu.memory_space<vmem>>, vector<1x1x8x8xbf16>
    %59 = vector.shape_cast %58 : vector<1x1x8x8xbf16> to vector<8x8xbf16>
    %cst_45 = arith.constant dense<0.000000e+00> : vector<8x286xf32>
    %60 = tpu.matmul %59, %57, %cst_45 {dimension_numbers = #tpu.dot_dimension_numbers<[1], [0], [0], [1], [0, 0, 1, 1], [], []>} : vector<8x8xbf16>, vector<8x286xbf16>, vector<8x286xf32> -> vector<8x286xf32>
    %61 = arith.addf %56, %60 : vector<8x286xf32>
    %c0_46 = arith.constant 0 : index
    %c18 = arith.constant 18 : index
    %62 = vector.load %arg9[%c0_46, %c18] : memref<8x324xbf16, #tpu.memory_space<vmem>>, vector<8x286xbf16>
    %c1_47 = arith.constant 1 : index
    %c0_48 = arith.constant 0 : index
    %c0_49 = arith.constant 0 : index
    %c0_50 = arith.constant 0 : index
    %63 = vector.load %arg6[%c1_47, %c0_48, %c0_49, %c0_50] : memref<3x3x8x8xbf16, #tpu.memory_space<vmem>>, vector<1x1x8x8xbf16>
    %64 = vector.shape_cast %63 : vector<1x1x8x8xbf16> to vector<8x8xbf16>
    %cst_51 = arith.constant dense<0.000000e+00> : vector<8x286xf32>
    %65 = tpu.matmul %64, %62, %cst_51 {dimension_numbers = #tpu.dot_dimension_numbers<[1], [0], [0], [1], [0, 0, 1, 1], [], []>} : vector<8x8xbf16>, vector<8x286xbf16>, vector<8x286xf32> -> vector<8x286xf32>
    %66 = arith.addf %61, %65 : vector<8x286xf32>
    %c0_52 = arith.constant 0 : index
    %c19_53 = arith.constant 19 : index
    %67 = vector.load %arg9[%c0_52, %c19_53] : memref<8x324xbf16, #tpu.memory_space<vmem>>, vector<8x286xbf16>
    %c1_54 = arith.constant 1 : index
    %c1_55 = arith.constant 1 : index
    %c0_56 = arith.constant 0 : index
    %c0_57 = arith.constant 0 : index
    %68 = vector.load %arg6[%c1_54, %c1_55, %c0_56, %c0_57] : memref<3x3x8x8xbf16, #tpu.memory_space<vmem>>, vector<1x1x8x8xbf16>
    %69 = vector.shape_cast %68 : vector<1x1x8x8xbf16> to vector<8x8xbf16>
    %cst_58 = arith.constant dense<0.000000e+00> : vector<8x286xf32>
    %70 = tpu.matmul %69, %67, %cst_58 {dimension_numbers = #tpu.dot_dimension_numbers<[1], [0], [0], [1], [0, 0, 1, 1], [], []>} : vector<8x8xbf16>, vector<8x286xbf16>, vector<8x286xf32> -> vector<8x286xf32>
    %71 = arith.addf %66, %70 : vector<8x286xf32>
    %c0_59 = arith.constant 0 : index
    %c20 = arith.constant 20 : index
    %72 = vector.load %arg9[%c0_59, %c20] : memref<8x324xbf16, #tpu.memory_space<vmem>>, vector<8x286xbf16>
    %c1_60 = arith.constant 1 : index
    %c2_61 = arith.constant 2 : index
    %c0_62 = arith.constant 0 : index
    %c0_63 = arith.constant 0 : index
    %73 = vector.load %arg6[%c1_60, %c2_61, %c0_62, %c0_63] : memref<3x3x8x8xbf16, #tpu.memory_space<vmem>>, vector<1x1x8x8xbf16>
    %74 = vector.shape_cast %73 : vector<1x1x8x8xbf16> to vector<8x8xbf16>
    %cst_64 = arith.constant dense<0.000000e+00> : vector<8x286xf32>
    %75 = tpu.matmul %74, %72, %cst_64 {dimension_numbers = #tpu.dot_dimension_numbers<[1], [0], [0], [1], [0, 0, 1, 1], [], []>} : vector<8x8xbf16>, vector<8x286xbf16>, vector<8x286xf32> -> vector<8x286xf32>
    %76 = arith.addf %71, %75 : vector<8x286xf32>
    %c0_65 = arith.constant 0 : index
    %c36 = arith.constant 36 : index
    %77 = vector.load %arg9[%c0_65, %c36] : memref<8x324xbf16, #tpu.memory_space<vmem>>, vector<8x286xbf16>
    %c2_66 = arith.constant 2 : index
    %c0_67 = arith.constant 0 : index
    %c0_68 = arith.constant 0 : index
    %c0_69 = arith.constant 0 : index
    %78 = vector.load %arg6[%c2_66, %c0_67, %c0_68, %c0_69] : memref<3x3x8x8xbf16, #tpu.memory_space<vmem>>, vector<1x1x8x8xbf16>
    %79 = vector.shape_cast %78 : vector<1x1x8x8xbf16> to vector<8x8xbf16>
    %cst_70 = arith.constant dense<0.000000e+00> : vector<8x286xf32>
    %80 = tpu.matmul %79, %77, %cst_70 {dimension_numbers = #tpu.dot_dimension_numbers<[1], [0], [0], [1], [0, 0, 1, 1], [], []>} : vector<8x8xbf16>, vector<8x286xbf16>, vector<8x286xf32> -> vector<8x286xf32>
    %81 = arith.addf %76, %80 : vector<8x286xf32>
    %c0_71 = arith.constant 0 : index
    %c37 = arith.constant 37 : index
    %82 = vector.load %arg9[%c0_71, %c37] : memref<8x324xbf16, #tpu.memory_space<vmem>>, vector<8x286xbf16>
    %c2_72 = arith.constant 2 : index
    %c1_73 = arith.constant 1 : index
    %c0_74 = arith.constant 0 : index
    %c0_75 = arith.constant 0 : index
    %83 = vector.load %arg6[%c2_72, %c1_73, %c0_74, %c0_75] : memref<3x3x8x8xbf16, #tpu.memory_space<vmem>>, vector<1x1x8x8xbf16>
    %84 = vector.shape_cast %83 : vector<1x1x8x8xbf16> to vector<8x8xbf16>
    %cst_76 = arith.constant dense<0.000000e+00> : vector<8x286xf32>
    %85 = tpu.matmul %84, %82, %cst_76 {dimension_numbers = #tpu.dot_dimension_numbers<[1], [0], [0], [1], [0, 0, 1, 1], [], []>} : vector<8x8xbf16>, vector<8x286xbf16>, vector<8x286xf32> -> vector<8x286xf32>
    %86 = arith.addf %81, %85 : vector<8x286xf32>
    %c0_77 = arith.constant 0 : index
    %c38 = arith.constant 38 : index
    %87 = vector.load %arg9[%c0_77, %c38] : memref<8x324xbf16, #tpu.memory_space<vmem>>, vector<8x286xbf16>
    %c2_78 = arith.constant 2 : index
    %c2_79 = arith.constant 2 : index
    %c0_80 = arith.constant 0 : index
    %c0_81 = arith.constant 0 : index
    %88 = vector.load %arg6[%c2_78, %c2_79, %c0_80, %c0_81] : memref<3x3x8x8xbf16, #tpu.memory_space<vmem>>, vector<1x1x8x8xbf16>
    %89 = vector.shape_cast %88 : vector<1x1x8x8xbf16> to vector<8x8xbf16>
    %cst_82 = arith.constant dense<0.000000e+00> : vector<8x286xf32>
    %90 = tpu.matmul %89, %87, %cst_82 {dimension_numbers = #tpu.dot_dimension_numbers<[1], [0], [0], [1], [0, 0, 1, 1], [], []>} : vector<8x8xbf16>, vector<8x286xbf16>, vector<8x286xf32> -> vector<8x286xf32>
    %91 = arith.addf %86, %90 : vector<8x286xf32>
    %c0_83 = arith.constant 0 : index
    %c0_84 = arith.constant 0 : index
    %92 = vector.load %arg7[%c0_83, %c0_84] : memref<8x1xf32, #tpu.memory_space<vmem>>, vector<8x1xf32>
    %93 = vector.broadcast %92 : vector<8x1xf32> to vector<8x286xf32>
    %94 = arith.addf %91, %93 : vector<8x286xf32>
    %95 = arith.addf %94, %47 : vector<8x286xf32>
    %96 = vector.broadcast %24 : vector<1x286xf32> to vector<8x286xf32>
    %97 = arith.mulf %95, %96 : vector<8x286xf32>
    %98 = arith.truncf %97 : vector<8x286xf32> to vector<8x286xbf16>
    %c0_85 = arith.constant 0 : index
    %c0_86 = arith.constant 0 : index
    %c19_87 = arith.constant 19 : index
    %99 = vector.load %arg8[%c0_85, %c0_86, %c19_87] : memref<1x8x324xbf16, #tpu.memory_space<vmem>>, vector<1x8x286xbf16>
    %100 = vector.shape_cast %99 : vector<1x8x286xbf16> to vector<8x286xbf16>
    %101 = vector.shape_cast %98 : vector<8x286xbf16> to vector<1x8x286xbf16>
    tpu.vector_store %arg8[%c0_85, %c0_86, %c19_87], %101 {strides = array<i32>} : memref<1x8x324xbf16, #tpu.memory_space<vmem>>, vector<1x8x286xbf16>,
    %cst_88 = arith.constant 0.000000e+00 : bf16
    %102 = vector.broadcast %cst_88 : bf16 to vector<8x19xbf16>
    %c0_89 = arith.constant 0 : index
    %c0_90 = arith.constant 0 : index
    %c0_91 = arith.constant 0 : index
    %103 = vector.load %arg8[%c0_89, %c0_90, %c0_91] : memref<1x8x324xbf16, #tpu.memory_space<vmem>>, vector<1x8x19xbf16>
    %104 = vector.shape_cast %103 : vector<1x8x19xbf16> to vector<8x19xbf16>
    %105 = vector.shape_cast %102 : vector<8x19xbf16> to vector<1x8x19xbf16>
    tpu.vector_store %arg8[%c0_89, %c0_90, %c0_91], %105 {strides = array<i32>} : memref<1x8x324xbf16, #tpu.memory_space<vmem>>, vector<1x8x19xbf16>,
    %cst_92 = arith.constant 0.000000e+00 : bf16
    %106 = vector.broadcast %cst_92 : bf16 to vector<8x19xbf16>
    %c0_93 = arith.constant 0 : index
    %c0_94 = arith.constant 0 : index
    %c305_95 = arith.constant 305 : index
    %107 = vector.load %arg8[%c0_93, %c0_94, %c305_95] : memref<1x8x324xbf16, #tpu.memory_space<vmem>>, vector<1x8x19xbf16>
    %108 = vector.shape_cast %107 : vector<1x8x19xbf16> to vector<8x19xbf16>
    %109 = vector.shape_cast %106 : vector<8x19xbf16> to vector<1x8x19xbf16>
    tpu.vector_store %arg8[%c0_93, %c0_94, %c305_95], %109 {strides = array<i32>} : memref<1x8x324xbf16, #tpu.memory_space<vmem>>, vector<1x8x19xbf16>,
    return
  }
  func.func @transform_0(%arg0: i32) -> (i32, i32, i32) {
    %c0_i32 = arith.constant 0 : i32
    %c0_i32_0 = arith.constant 0 : i32
    %c0_i32_1 = arith.constant 0 : i32
    return %arg0, %c0_i32, %c0_i32_0 : i32, i32, i32
  }
  func.func @transform_1(%arg0: i32) -> (i32, i32, i32) {
    %c0_i32 = arith.constant 0 : i32
    %c0_i32_0 = arith.constant 0 : i32
    %c0_i32_1 = arith.constant 0 : i32
    return %arg0, %c0_i32, %c0_i32_0 : i32, i32, i32
  }
  func.func @transform_2(%arg0: i32) -> (i32, i32, i32) {
    %c0_i32 = arith.constant 0 : i32
    %c0_i32_0 = arith.constant 0 : i32
    %c0_i32_1 = arith.constant 0 : i32
    return %arg0, %c0_i32, %c0_i32_0 : i32, i32, i32
  }
  func.func @transform_3(%arg0: i32) -> (i32, i32) {
    %c0_i32 = arith.constant 0 : i32
    %c0_i32_0 = arith.constant 0 : i32
    %c0_i32_1 = arith.constant 0 : i32
    return %c0_i32, %c0_i32_0 : i32, i32
  }
  func.func @transform_4(%arg0: i32) -> (i32, i32) {
    %c0_i32 = arith.constant 0 : i32
    %c0_i32_0 = arith.constant 0 : i32
    %c0_i32_1 = arith.constant 0 : i32
    return %c0_i32, %c0_i32_0 : i32, i32
  }
  func.func @transform_5(%arg0: i32) -> (i32, i32, i32, i32) {
    %c0_i32 = arith.constant 0 : i32
    %c0_i32_0 = arith.constant 0 : i32
    %c0_i32_1 = arith.constant 0 : i32
    %c0_i32_2 = arith.constant 0 : i32
    %c0_i32_3 = arith.constant 0 : i32
    return %c0_i32, %c0_i32_0, %c0_i32_1, %c0_i32_2 : i32, i32, i32, i32
  }
  func.func @transform_6(%arg0: i32) -> (i32, i32) {
    %c0_i32 = arith.constant 0 : i32
    %c0_i32_0 = arith.constant 0 : i32
    %c0_i32_1 = arith.constant 0 : i32
    return %c0_i32, %c0_i32_0 : i32, i32
  }
  func.func @transform_7(%arg0: i32) -> (i32, i32, i32) {
    %c0_i32 = arith.constant 0 : i32
    %c0_i32_0 = arith.constant 0 : i32
    %c0_i32_1 = arith.constant 0 : i32
    return %arg0, %c0_i32, %c0_i32_0 : i32, i32, i32
  }
}

module attributes {stable_mosaic.version = 11 : i64} {
  func.func @kernel(%arg0: i32, %arg1: memref<1x8x324xbf16, #tpu.memory_space<vmem>>, %arg2: memref<3x3x8x8xbf16, #tpu.memory_space<vmem>>, %arg3: memref<8x1xf32, #tpu.memory_space<vmem>>, %arg4: memref<3x3x8x16xbf16, #tpu.memory_space<vmem>>, %arg5: memref<8x1xf32, #tpu.memory_space<vmem>>, %arg6: memref<3x3x8x24xbf16, #tpu.memory_space<vmem>>, %arg7: memref<8x1xf32, #tpu.memory_space<vmem>>, %arg8: memref<1x1x8x32xbf16, #tpu.memory_space<vmem>>, %arg9: memref<8x1xf32, #tpu.memory_space<vmem>>, %arg10: memref<1x8x324xbf16, #tpu.memory_space<vmem>>, %arg11: memref<32x324xbf16, #tpu.memory_space<vmem>>) attributes {dimension_semantics = [#tpu.dimension_semantics<parallel>], iteration_bounds = array<i64: 2>, scalar_prefetch = 0 : i64, scratch_operands = 1 : i64, tpu.core_type = #tpu.core_type<tc>, window_params = [{transform_indices = @transform_0, window_bounds = array<i64: 1, 8, 324>}, {pipeline_mode = #tpu.pipeline_mode<synchronous>, transform_indices = @transform_1, window_bounds = array<i64: 3, 3, 8, 8>}, {pipeline_mode = #tpu.pipeline_mode<synchronous>, transform_indices = @transform_2, window_bounds = array<i64: 8, 1>}, {pipeline_mode = #tpu.pipeline_mode<synchronous>, transform_indices = @transform_3, window_bounds = array<i64: 3, 3, 8, 16>}, {pipeline_mode = #tpu.pipeline_mode<synchronous>, transform_indices = @transform_4, window_bounds = array<i64: 8, 1>}, {pipeline_mode = #tpu.pipeline_mode<synchronous>, transform_indices = @transform_5, window_bounds = array<i64: 3, 3, 8, 24>}, {pipeline_mode = #tpu.pipeline_mode<synchronous>, transform_indices = @transform_6, window_bounds = array<i64: 8, 1>}, {pipeline_mode = #tpu.pipeline_mode<synchronous>, transform_indices = @transform_7, window_bounds = array<i64: 1, 1, 8, 32>}, {pipeline_mode = #tpu.pipeline_mode<synchronous>, transform_indices = @transform_8, window_bounds = array<i64: 8, 1>}, {transform_indices = @transform_9, window_bounds = array<i64: 1, 8, 324>}]} {
    %0 = tpu.iota {dimensions = array<i32: 1>} : vector<1x286xi32>
    %c19_i32 = arith.constant 19 : i32
    %1 = vector.broadcast %c19_i32 : i32 to vector<1x286xi32>
    %2 = arith.addi %0, %1 : vector<1x286xi32>
    %3 = arith.sitofp %2 : vector<1x286xi32> to vector<1x286xf32>
    %cst = arith.constant 5.000000e-01 : f32
    %4 = vector.broadcast %cst : f32 to vector<1x286xf32>
    %5 = arith.addf %3, %4 : vector<1x286xf32>
    %cst_0 = arith.constant 1.800000e+01 : f32
    %6 = vector.broadcast %cst_0 : f32 to vector<1x286xf32>
    %7 = arith.divf %5, %6 : vector<1x286xf32>
    %8 = math.floor %7 : vector<1x286xf32>
    %cst_1 = arith.constant 1.800000e+01 : f32
    %9 = vector.broadcast %cst_1 : f32 to vector<1x286xf32>
    %10 = arith.mulf %8, %9 : vector<1x286xf32>
    %11 = arith.subf %3, %10 : vector<1x286xf32>
    %cst_2 = arith.constant 5.000000e-01 : f32
    %12 = vector.broadcast %cst_2 : f32 to vector<1x286xf32>
    %13 = arith.cmpf ogt, %8, %12 : vector<1x286xf32>
    %cst_3 = arith.constant 1.650000e+01 : f32
    %14 = vector.broadcast %cst_3 : f32 to vector<1x286xf32>
    %15 = arith.cmpf olt, %8, %14 : vector<1x286xf32>
    %16 = arith.andi %13, %15 : vector<1x286xi1>
    %cst_4 = arith.constant 5.000000e-01 : f32
    %17 = vector.broadcast %cst_4 : f32 to vector<1x286xf32>
    %18 = arith.cmpf ogt, %11, %17 : vector<1x286xf32>
    %19 = arith.andi %16, %18 : vector<1x286xi1>
    %cst_5 = arith.constant 1.650000e+01 : f32
    %20 = vector.broadcast %cst_5 : f32 to vector<1x286xf32>
    %21 = arith.cmpf olt, %11, %20 : vector<1x286xf32>
    %22 = arith.andi %19, %21 : vector<1x286xi1>
    %23 = arith.extui %22 : vector<1x286xi1> to vector<1x286xi32>
    %24 = arith.sitofp %23 : vector<1x286xi32> to vector<1x286xf32>
    %c0 = arith.constant 0 : index
    %c0_6 = arith.constant 0 : index
    %c0_7 = arith.constant 0 : index
    %25 = vector.load %arg1[%c0, %c0_6, %c0_7] : memref<1x8x324xbf16, #tpu.memory_space<vmem>>, vector<1x8x324xbf16>
    %26 = vector.shape_cast %25 : vector<1x8x324xbf16> to vector<8x324xbf16>
    %c0_8 = arith.constant 0 : index
    %c0_9 = arith.constant 0 : index
    %27 = vector.load %arg11[%c0_8, %c0_9] : memref<32x324xbf16, #tpu.memory_space<vmem>>, vector<8x324xbf16>
    tpu.vector_store %arg11[%c0_8, %c0_9], %26 {strides = array<i32>} : memref<32x324xbf16, #tpu.memory_space<vmem>>, vector<8x324xbf16>,
    %cst_10 = arith.constant 0.000000e+00 : bf16
    %28 = vector.broadcast %cst_10 : bf16 to vector<24x324xbf16>
    %c8 = arith.constant 8 : index
    %c0_11 = arith.constant 0 : index
    %29 = vector.load %arg11[%c8, %c0_11] : memref<32x324xbf16, #tpu.memory_space<vmem>>, vector<24x324xbf16>
    tpu.vector_store %arg11[%c8, %c0_11], %28 {strides = array<i32>} : memref<32x324xbf16, #tpu.memory_space<vmem>>, vector<24x324xbf16>,
    %c0_12 = arith.constant 0 : index
    %c0_13 = arith.constant 0 : index
    %30 = vector.load %arg11[%c0_12, %c0_13] : memref<32x324xbf16, #tpu.memory_space<vmem>>, vector<8x286xbf16>
    %c0_14 = arith.constant 0 : index
    %c0_15 = arith.constant 0 : index
    %c0_16 = arith.constant 0 : index
    %c0_17 = arith.constant 0 : index
    %31 = vector.load %arg2[%c0_14, %c0_15, %c0_16, %c0_17] : memref<3x3x8x8xbf16, #tpu.memory_space<vmem>>, vector<1x1x8x8xbf16>
    %32 = vector.shape_cast %31 : vector<1x1x8x8xbf16> to vector<8x8xbf16>
    %cst_18 = arith.constant dense<0.000000e+00> : vector<8x286xf32>
    %33 = tpu.matmul %32, %30, %cst_18 {dimension_numbers = #tpu.dot_dimension_numbers<[1], [0], [0], [1], [0, 0, 1, 1], [], []>} : vector<8x8xbf16>, vector<8x286xbf16>, vector<8x286xf32> -> vector<8x286xf32>
    %c0_19 = arith.constant 0 : index
    %c1 = arith.constant 1 : index
    %34 = vector.load %arg11[%c0_19, %c1] : memref<32x324xbf16, #tpu.memory_space<vmem>>, vector<8x286xbf16>
    %c0_20 = arith.constant 0 : index
    %c1_21 = arith.constant 1 : index
    %c0_22 = arith.constant 0 : index
    %c0_23 = arith.constant 0 : index
    %35 = vector.load %arg2[%c0_20, %c1_21, %c0_22, %c0_23] : memref<3x3x8x8xbf16, #tpu.memory_space<vmem>>, vector<1x1x8x8xbf16>
    %36 = vector.shape_cast %35 : vector<1x1x8x8xbf16> to vector<8x8xbf16>
    %cst_24 = arith.constant dense<0.000000e+00> : vector<8x286xf32>
    %37 = tpu.matmul %36, %34, %cst_24 {dimension_numbers = #tpu.dot_dimension_numbers<[1], [0], [0], [1], [0, 0, 1, 1], [], []>} : vector<8x8xbf16>, vector<8x286xbf16>, vector<8x286xf32> -> vector<8x286xf32>
    %38 = arith.addf %33, %37 : vector<8x286xf32>
    %c0_25 = arith.constant 0 : index
    %c2 = arith.constant 2 : index
    %39 = vector.load %arg11[%c0_25, %c2] : memref<32x324xbf16, #tpu.memory_space<vmem>>, vector<8x286xbf16>
    %c0_26 = arith.constant 0 : index
    %c2_27 = arith.constant 2 : index
    %c0_28 = arith.constant 0 : index
    %c0_29 = arith.constant 0 : index
    %40 = vector.load %arg2[%c0_26, %c2_27, %c0_28, %c0_29] : memref<3x3x8x8xbf16, #tpu.memory_space<vmem>>, vector<1x1x8x8xbf16>
    %41 = vector.shape_cast %40 : vector<1x1x8x8xbf16> to vector<8x8xbf16>
    %cst_30 = arith.constant dense<0.000000e+00> : vector<8x286xf32>
    %42 = tpu.matmul %41, %39, %cst_30 {dimension_numbers = #tpu.dot_dimension_numbers<[1], [0], [0], [1], [0, 0, 1, 1], [], []>} : vector<8x8xbf16>, vector<8x286xbf16>, vector<8x286xf32> -> vector<8x286xf32>
    %43 = arith.addf %38, %42 : vector<8x286xf32>
    %c0_31 = arith.constant 0 : index
    %c18 = arith.constant 18 : index
    %44 = vector.load %arg11[%c0_31, %c18] : memref<32x324xbf16, #tpu.memory_space<vmem>>, vector<8x286xbf16>
    %c1_32 = arith.constant 1 : index
    %c0_33 = arith.constant 0 : index
    %c0_34 = arith.constant 0 : index
    %c0_35 = arith.constant 0 : index
    %45 = vector.load %arg2[%c1_32, %c0_33, %c0_34, %c0_35] : memref<3x3x8x8xbf16, #tpu.memory_space<vmem>>, vector<1x1x8x8xbf16>
    %46 = vector.shape_cast %45 : vector<1x1x8x8xbf16> to vector<8x8xbf16>
    %cst_36 = arith.constant dense<0.000000e+00> : vector<8x286xf32>
    %47 = tpu.matmul %46, %44, %cst_36 {dimension_numbers = #tpu.dot_dimension_numbers<[1], [0], [0], [1], [0, 0, 1, 1], [], []>} : vector<8x8xbf16>, vector<8x286xbf16>, vector<8x286xf32> -> vector<8x286xf32>
    %48 = arith.addf %43, %47 : vector<8x286xf32>
    %c0_37 = arith.constant 0 : index
    %c19 = arith.constant 19 : index
    %49 = vector.load %arg11[%c0_37, %c19] : memref<32x324xbf16, #tpu.memory_space<vmem>>, vector<8x286xbf16>
    %c1_38 = arith.constant 1 : index
    %c1_39 = arith.constant 1 : index
    %c0_40 = arith.constant 0 : index
    %c0_41 = arith.constant 0 : index
    %50 = vector.load %arg2[%c1_38, %c1_39, %c0_40, %c0_41] : memref<3x3x8x8xbf16, #tpu.memory_space<vmem>>, vector<1x1x8x8xbf16>
    %51 = vector.shape_cast %50 : vector<1x1x8x8xbf16> to vector<8x8xbf16>
    %cst_42 = arith.constant dense<0.000000e+00> : vector<8x286xf32>
    %52 = tpu.matmul %51, %49, %cst_42 {dimension_numbers = #tpu.dot_dimension_numbers<[1], [0], [0], [1], [0, 0, 1, 1], [], []>} : vector<8x8xbf16>, vector<8x286xbf16>, vector<8x286xf32> -> vector<8x286xf32>
    %53 = arith.addf %48, %52 : vector<8x286xf32>
    %c0_43 = arith.constant 0 : index
    %c20 = arith.constant 20 : index
    %54 = vector.load %arg11[%c0_43, %c20] : memref<32x324xbf16, #tpu.memory_space<vmem>>, vector<8x286xbf16>
    %c1_44 = arith.constant 1 : index
    %c2_45 = arith.constant 2 : index
    %c0_46 = arith.constant 0 : index
    %c0_47 = arith.constant 0 : index
    %55 = vector.load %arg2[%c1_44, %c2_45, %c0_46, %c0_47] : memref<3x3x8x8xbf16, #tpu.memory_space<vmem>>, vector<1x1x8x8xbf16>
    %56 = vector.shape_cast %55 : vector<1x1x8x8xbf16> to vector<8x8xbf16>
    %cst_48 = arith.constant dense<0.000000e+00> : vector<8x286xf32>
    %57 = tpu.matmul %56, %54, %cst_48 {dimension_numbers = #tpu.dot_dimension_numbers<[1], [0], [0], [1], [0, 0, 1, 1], [], []>} : vector<8x8xbf16>, vector<8x286xbf16>, vector<8x286xf32> -> vector<8x286xf32>
    %58 = arith.addf %53, %57 : vector<8x286xf32>
    %c0_49 = arith.constant 0 : index
    %c36 = arith.constant 36 : index
    %59 = vector.load %arg11[%c0_49, %c36] : memref<32x324xbf16, #tpu.memory_space<vmem>>, vector<8x286xbf16>
    %c2_50 = arith.constant 2 : index
    %c0_51 = arith.constant 0 : index
    %c0_52 = arith.constant 0 : index
    %c0_53 = arith.constant 0 : index
    %60 = vector.load %arg2[%c2_50, %c0_51, %c0_52, %c0_53] : memref<3x3x8x8xbf16, #tpu.memory_space<vmem>>, vector<1x1x8x8xbf16>
    %61 = vector.shape_cast %60 : vector<1x1x8x8xbf16> to vector<8x8xbf16>
    %cst_54 = arith.constant dense<0.000000e+00> : vector<8x286xf32>
    %62 = tpu.matmul %61, %59, %cst_54 {dimension_numbers = #tpu.dot_dimension_numbers<[1], [0], [0], [1], [0, 0, 1, 1], [], []>} : vector<8x8xbf16>, vector<8x286xbf16>, vector<8x286xf32> -> vector<8x286xf32>
    %63 = arith.addf %58, %62 : vector<8x286xf32>
    %c0_55 = arith.constant 0 : index
    %c37 = arith.constant 37 : index
    %64 = vector.load %arg11[%c0_55, %c37] : memref<32x324xbf16, #tpu.memory_space<vmem>>, vector<8x286xbf16>
    %c2_56 = arith.constant 2 : index
    %c1_57 = arith.constant 1 : index
    %c0_58 = arith.constant 0 : index
    %c0_59 = arith.constant 0 : index
    %65 = vector.load %arg2[%c2_56, %c1_57, %c0_58, %c0_59] : memref<3x3x8x8xbf16, #tpu.memory_space<vmem>>, vector<1x1x8x8xbf16>
    %66 = vector.shape_cast %65 : vector<1x1x8x8xbf16> to vector<8x8xbf16>
    %cst_60 = arith.constant dense<0.000000e+00> : vector<8x286xf32>
    %67 = tpu.matmul %66, %64, %cst_60 {dimension_numbers = #tpu.dot_dimension_numbers<[1], [0], [0], [1], [0, 0, 1, 1], [], []>} : vector<8x8xbf16>, vector<8x286xbf16>, vector<8x286xf32> -> vector<8x286xf32>
    %68 = arith.addf %63, %67 : vector<8x286xf32>
    %c0_61 = arith.constant 0 : index
    %c38 = arith.constant 38 : index
    %69 = vector.load %arg11[%c0_61, %c38] : memref<32x324xbf16, #tpu.memory_space<vmem>>, vector<8x286xbf16>
    %c2_62 = arith.constant 2 : index
    %c2_63 = arith.constant 2 : index
    %c0_64 = arith.constant 0 : index
    %c0_65 = arith.constant 0 : index
    %70 = vector.load %arg2[%c2_62, %c2_63, %c0_64, %c0_65] : memref<3x3x8x8xbf16, #tpu.memory_space<vmem>>, vector<1x1x8x8xbf16>
    %71 = vector.shape_cast %70 : vector<1x1x8x8xbf16> to vector<8x8xbf16>
    %cst_66 = arith.constant dense<0.000000e+00> : vector<8x286xf32>
    %72 = tpu.matmul %71, %69, %cst_66 {dimension_numbers = #tpu.dot_dimension_numbers<[1], [0], [0], [1], [0, 0, 1, 1], [], []>} : vector<8x8xbf16>, vector<8x286xbf16>, vector<8x286xf32> -> vector<8x286xf32>
    %73 = arith.addf %68, %72 : vector<8x286xf32>
    %c0_67 = arith.constant 0 : index
    %c0_68 = arith.constant 0 : index
    %74 = vector.load %arg3[%c0_67, %c0_68] : memref<8x1xf32, #tpu.memory_space<vmem>>, vector<8x1xf32>
    %75 = vector.broadcast %74 : vector<8x1xf32> to vector<8x286xf32>
    %76 = arith.addf %73, %75 : vector<8x286xf32>
    %cst_69 = arith.constant 0.000000e+00 : f32
    %77 = vector.broadcast %cst_69 : f32 to vector<8x286xf32>
    %78 = arith.maximumf %76, %77 : vector<8x286xf32>
    %79 = vector.broadcast %24 : vector<1x286xf32> to vector<8x286xf32>
    %80 = arith.mulf %78, %79 : vector<8x286xf32>
    %81 = arith.truncf %80 : vector<8x286xf32> to vector<8x286xbf16>
    %c8_70 = arith.constant 8 : index
    %c19_71 = arith.constant 19 : index
    %82 = vector.load %arg11[%c8_70, %c19_71] : memref<32x324xbf16, #tpu.memory_space<vmem>>, vector<8x286xbf16>
    tpu.vector_store %arg11[%c8_70, %c19_71], %81 {strides = array<i32>} : memref<32x324xbf16, #tpu.memory_space<vmem>>, vector<8x286xbf16>,
    %c0_72 = arith.constant 0 : index
    %c0_73 = arith.constant 0 : index
    %83 = vector.load %arg11[%c0_72, %c0_73] : memref<32x324xbf16, #tpu.memory_space<vmem>>, vector<16x286xbf16>
    %c0_74 = arith.constant 0 : index
    %c0_75 = arith.constant 0 : index
    %c0_76 = arith.constant 0 : index
    %c0_77 = arith.constant 0 : index
    %84 = vector.load %arg4[%c0_74, %c0_75, %c0_76, %c0_77] : memref<3x3x8x16xbf16, #tpu.memory_space<vmem>>, vector<1x1x8x16xbf16>
    %85 = vector.shape_cast %84 : vector<1x1x8x16xbf16> to vector<8x16xbf16>
    %cst_78 = arith.constant dense<0.000000e+00> : vector<8x286xf32>
    %86 = tpu.matmul %85, %83, %cst_78 {dimension_numbers = #tpu.dot_dimension_numbers<[1], [0], [0], [1], [0, 0, 1, 1], [], []>} : vector<8x16xbf16>, vector<16x286xbf16>, vector<8x286xf32> -> vector<8x286xf32>
    %c0_79 = arith.constant 0 : index
    %c1_80 = arith.constant 1 : index
    %87 = vector.load %arg11[%c0_79, %c1_80] : memref<32x324xbf16, #tpu.memory_space<vmem>>, vector<16x286xbf16>
    %c0_81 = arith.constant 0 : index
    %c1_82 = arith.constant 1 : index
    %c0_83 = arith.constant 0 : index
    %c0_84 = arith.constant 0 : index
    %88 = vector.load %arg4[%c0_81, %c1_82, %c0_83, %c0_84] : memref<3x3x8x16xbf16, #tpu.memory_space<vmem>>, vector<1x1x8x16xbf16>
    %89 = vector.shape_cast %88 : vector<1x1x8x16xbf16> to vector<8x16xbf16>
    %cst_85 = arith.constant dense<0.000000e+00> : vector<8x286xf32>
    %90 = tpu.matmul %89, %87, %cst_85 {dimension_numbers = #tpu.dot_dimension_numbers<[1], [0], [0], [1], [0, 0, 1, 1], [], []>} : vector<8x16xbf16>, vector<16x286xbf16>, vector<8x286xf32> -> vector<8x286xf32>
    %91 = arith.addf %86, %90 : vector<8x286xf32>
    %c0_86 = arith.constant 0 : index
    %c2_87 = arith.constant 2 : index
    %92 = vector.load %arg11[%c0_86, %c2_87] : memref<32x324xbf16, #tpu.memory_space<vmem>>, vector<16x286xbf16>
    %c0_88 = arith.constant 0 : index
    %c2_89 = arith.constant 2 : index
    %c0_90 = arith.constant 0 : index
    %c0_91 = arith.constant 0 : index
    %93 = vector.load %arg4[%c0_88, %c2_89, %c0_90, %c0_91] : memref<3x3x8x16xbf16, #tpu.memory_space<vmem>>, vector<1x1x8x16xbf16>
    %94 = vector.shape_cast %93 : vector<1x1x8x16xbf16> to vector<8x16xbf16>
    %cst_92 = arith.constant dense<0.000000e+00> : vector<8x286xf32>
    %95 = tpu.matmul %94, %92, %cst_92 {dimension_numbers = #tpu.dot_dimension_numbers<[1], [0], [0], [1], [0, 0, 1, 1], [], []>} : vector<8x16xbf16>, vector<16x286xbf16>, vector<8x286xf32> -> vector<8x286xf32>
    %96 = arith.addf %91, %95 : vector<8x286xf32>
    %c0_93 = arith.constant 0 : index
    %c18_94 = arith.constant 18 : index
    %97 = vector.load %arg11[%c0_93, %c18_94] : memref<32x324xbf16, #tpu.memory_space<vmem>>, vector<16x286xbf16>
    %c1_95 = arith.constant 1 : index
    %c0_96 = arith.constant 0 : index
    %c0_97 = arith.constant 0 : index
    %c0_98 = arith.constant 0 : index
    %98 = vector.load %arg4[%c1_95, %c0_96, %c0_97, %c0_98] : memref<3x3x8x16xbf16, #tpu.memory_space<vmem>>, vector<1x1x8x16xbf16>
    %99 = vector.shape_cast %98 : vector<1x1x8x16xbf16> to vector<8x16xbf16>
    %cst_99 = arith.constant dense<0.000000e+00> : vector<8x286xf32>
    %100 = tpu.matmul %99, %97, %cst_99 {dimension_numbers = #tpu.dot_dimension_numbers<[1], [0], [0], [1], [0, 0, 1, 1], [], []>} : vector<8x16xbf16>, vector<16x286xbf16>, vector<8x286xf32> -> vector<8x286xf32>
    %101 = arith.addf %96, %100 : vector<8x286xf32>
    %c0_100 = arith.constant 0 : index
    %c19_101 = arith.constant 19 : index
    %102 = vector.load %arg11[%c0_100, %c19_101] : memref<32x324xbf16, #tpu.memory_space<vmem>>, vector<16x286xbf16>
    %c1_102 = arith.constant 1 : index
    %c1_103 = arith.constant 1 : index
    %c0_104 = arith.constant 0 : index
    %c0_105 = arith.constant 0 : index
    %103 = vector.load %arg4[%c1_102, %c1_103, %c0_104, %c0_105] : memref<3x3x8x16xbf16, #tpu.memory_space<vmem>>, vector<1x1x8x16xbf16>
    %104 = vector.shape_cast %103 : vector<1x1x8x16xbf16> to vector<8x16xbf16>
    %cst_106 = arith.constant dense<0.000000e+00> : vector<8x286xf32>
    %105 = tpu.matmul %104, %102, %cst_106 {dimension_numbers = #tpu.dot_dimension_numbers<[1], [0], [0], [1], [0, 0, 1, 1], [], []>} : vector<8x16xbf16>, vector<16x286xbf16>, vector<8x286xf32> -> vector<8x286xf32>
    %106 = arith.addf %101, %105 : vector<8x286xf32>
    %c0_107 = arith.constant 0 : index
    %c20_108 = arith.constant 20 : index
    %107 = vector.load %arg11[%c0_107, %c20_108] : memref<32x324xbf16, #tpu.memory_space<vmem>>, vector<16x286xbf16>
    %c1_109 = arith.constant 1 : index
    %c2_110 = arith.constant 2 : index
    %c0_111 = arith.constant 0 : index
    %c0_112 = arith.constant 0 : index
    %108 = vector.load %arg4[%c1_109, %c2_110, %c0_111, %c0_112] : memref<3x3x8x16xbf16, #tpu.memory_space<vmem>>, vector<1x1x8x16xbf16>
    %109 = vector.shape_cast %108 : vector<1x1x8x16xbf16> to vector<8x16xbf16>
    %cst_113 = arith.constant dense<0.000000e+00> : vector<8x286xf32>
    %110 = tpu.matmul %109, %107, %cst_113 {dimension_numbers = #tpu.dot_dimension_numbers<[1], [0], [0], [1], [0, 0, 1, 1], [], []>} : vector<8x16xbf16>, vector<16x286xbf16>, vector<8x286xf32> -> vector<8x286xf32>
    %111 = arith.addf %106, %110 : vector<8x286xf32>
    %c0_114 = arith.constant 0 : index
    %c36_115 = arith.constant 36 : index
    %112 = vector.load %arg11[%c0_114, %c36_115] : memref<32x324xbf16, #tpu.memory_space<vmem>>, vector<16x286xbf16>
    %c2_116 = arith.constant 2 : index
    %c0_117 = arith.constant 0 : index
    %c0_118 = arith.constant 0 : index
    %c0_119 = arith.constant 0 : index
    %113 = vector.load %arg4[%c2_116, %c0_117, %c0_118, %c0_119] : memref<3x3x8x16xbf16, #tpu.memory_space<vmem>>, vector<1x1x8x16xbf16>
    %114 = vector.shape_cast %113 : vector<1x1x8x16xbf16> to vector<8x16xbf16>
    %cst_120 = arith.constant dense<0.000000e+00> : vector<8x286xf32>
    %115 = tpu.matmul %114, %112, %cst_120 {dimension_numbers = #tpu.dot_dimension_numbers<[1], [0], [0], [1], [0, 0, 1, 1], [], []>} : vector<8x16xbf16>, vector<16x286xbf16>, vector<8x286xf32> -> vector<8x286xf32>
    %116 = arith.addf %111, %115 : vector<8x286xf32>
    %c0_121 = arith.constant 0 : index
    %c37_122 = arith.constant 37 : index
    %117 = vector.load %arg11[%c0_121, %c37_122] : memref<32x324xbf16, #tpu.memory_space<vmem>>, vector<16x286xbf16>
    %c2_123 = arith.constant 2 : index
    %c1_124 = arith.constant 1 : index
    %c0_125 = arith.constant 0 : index
    %c0_126 = arith.constant 0 : index
    %118 = vector.load %arg4[%c2_123, %c1_124, %c0_125, %c0_126] : memref<3x3x8x16xbf16, #tpu.memory_space<vmem>>, vector<1x1x8x16xbf16>
    %119 = vector.shape_cast %118 : vector<1x1x8x16xbf16> to vector<8x16xbf16>
    %cst_127 = arith.constant dense<0.000000e+00> : vector<8x286xf32>
    %120 = tpu.matmul %119, %117, %cst_127 {dimension_numbers = #tpu.dot_dimension_numbers<[1], [0], [0], [1], [0, 0, 1, 1], [], []>} : vector<8x16xbf16>, vector<16x286xbf16>, vector<8x286xf32> -> vector<8x286xf32>
    %121 = arith.addf %116, %120 : vector<8x286xf32>
    %c0_128 = arith.constant 0 : index
    %c38_129 = arith.constant 38 : index
    %122 = vector.load %arg11[%c0_128, %c38_129] : memref<32x324xbf16, #tpu.memory_space<vmem>>, vector<16x286xbf16>
    %c2_130 = arith.constant 2 : index
    %c2_131 = arith.constant 2 : index
    %c0_132 = arith.constant 0 : index
    %c0_133 = arith.constant 0 : index
    %123 = vector.load %arg4[%c2_130, %c2_131, %c0_132, %c0_133] : memref<3x3x8x16xbf16, #tpu.memory_space<vmem>>, vector<1x1x8x16xbf16>
    %124 = vector.shape_cast %123 : vector<1x1x8x16xbf16> to vector<8x16xbf16>
    %cst_134 = arith.constant dense<0.000000e+00> : vector<8x286xf32>
    %125 = tpu.matmul %124, %122, %cst_134 {dimension_numbers = #tpu.dot_dimension_numbers<[1], [0], [0], [1], [0, 0, 1, 1], [], []>} : vector<8x16xbf16>, vector<16x286xbf16>, vector<8x286xf32> -> vector<8x286xf32>
    %126 = arith.addf %121, %125 : vector<8x286xf32>
    %c0_135 = arith.constant 0 : index
    %c0_136 = arith.constant 0 : index
    %127 = vector.load %arg5[%c0_135, %c0_136] : memref<8x1xf32, #tpu.memory_space<vmem>>, vector<8x1xf32>
    %128 = vector.broadcast %127 : vector<8x1xf32> to vector<8x286xf32>
    %129 = arith.addf %126, %128 : vector<8x286xf32>
    %cst_137 = arith.constant 0.000000e+00 : f32
    %130 = vector.broadcast %cst_137 : f32 to vector<8x286xf32>
    %131 = arith.maximumf %129, %130 : vector<8x286xf32>
    %132 = vector.broadcast %24 : vector<1x286xf32> to vector<8x286xf32>
    %133 = arith.mulf %131, %132 : vector<8x286xf32>
    %134 = arith.truncf %133 : vector<8x286xf32> to vector<8x286xbf16>
    %c16 = arith.constant 16 : index
    %c19_138 = arith.constant 19 : index
    %135 = vector.load %arg11[%c16, %c19_138] : memref<32x324xbf16, #tpu.memory_space<vmem>>, vector<8x286xbf16>
    tpu.vector_store %arg11[%c16, %c19_138], %134 {strides = array<i32>} : memref<32x324xbf16, #tpu.memory_space<vmem>>, vector<8x286xbf16>,
    %c0_139 = arith.constant 0 : index
    %c0_140 = arith.constant 0 : index
    %136 = vector.load %arg11[%c0_139, %c0_140] : memref<32x324xbf16, #tpu.memory_space<vmem>>, vector<24x286xbf16>
    %c0_141 = arith.constant 0 : index
    %c0_142 = arith.constant 0 : index
    %c0_143 = arith.constant 0 : index
    %c0_144 = arith.constant 0 : index
    %137 = vector.load %arg6[%c0_141, %c0_142, %c0_143, %c0_144] : memref<3x3x8x24xbf16, #tpu.memory_space<vmem>>, vector<1x1x8x24xbf16>
    %138 = vector.shape_cast %137 : vector<1x1x8x24xbf16> to vector<8x24xbf16>
    %cst_145 = arith.constant dense<0.000000e+00> : vector<8x286xf32>
    %139 = tpu.matmul %138, %136, %cst_145 {dimension_numbers = #tpu.dot_dimension_numbers<[1], [0], [0], [1], [0, 0, 1, 1], [], []>} : vector<8x24xbf16>, vector<24x286xbf16>, vector<8x286xf32> -> vector<8x286xf32>
    %c0_146 = arith.constant 0 : index
    %c1_147 = arith.constant 1 : index
    %140 = vector.load %arg11[%c0_146, %c1_147] : memref<32x324xbf16, #tpu.memory_space<vmem>>, vector<24x286xbf16>
    %c0_148 = arith.constant 0 : index
    %c1_149 = arith.constant 1 : index
    %c0_150 = arith.constant 0 : index
    %c0_151 = arith.constant 0 : index
    %141 = vector.load %arg6[%c0_148, %c1_149, %c0_150, %c0_151] : memref<3x3x8x24xbf16, #tpu.memory_space<vmem>>, vector<1x1x8x24xbf16>
    %142 = vector.shape_cast %141 : vector<1x1x8x24xbf16> to vector<8x24xbf16>
    %cst_152 = arith.constant dense<0.000000e+00> : vector<8x286xf32>
    %143 = tpu.matmul %142, %140, %cst_152 {dimension_numbers = #tpu.dot_dimension_numbers<[1], [0], [0], [1], [0, 0, 1, 1], [], []>} : vector<8x24xbf16>, vector<24x286xbf16>, vector<8x286xf32> -> vector<8x286xf32>
    %144 = arith.addf %139, %143 : vector<8x286xf32>
    %c0_153 = arith.constant 0 : index
    %c2_154 = arith.constant 2 : index
    %145 = vector.load %arg11[%c0_153, %c2_154] : memref<32x324xbf16, #tpu.memory_space<vmem>>, vector<24x286xbf16>
    %c0_155 = arith.constant 0 : index
    %c2_156 = arith.constant 2 : index
    %c0_157 = arith.constant 0 : index
    %c0_158 = arith.constant 0 : index
    %146 = vector.load %arg6[%c0_155, %c2_156, %c0_157, %c0_158] : memref<3x3x8x24xbf16, #tpu.memory_space<vmem>>, vector<1x1x8x24xbf16>
    %147 = vector.shape_cast %146 : vector<1x1x8x24xbf16> to vector<8x24xbf16>
    %cst_159 = arith.constant dense<0.000000e+00> : vector<8x286xf32>
    %148 = tpu.matmul %147, %145, %cst_159 {dimension_numbers = #tpu.dot_dimension_numbers<[1], [0], [0], [1], [0, 0, 1, 1], [], []>} : vector<8x24xbf16>, vector<24x286xbf16>, vector<8x286xf32> -> vector<8x286xf32>
    %149 = arith.addf %144, %148 : vector<8x286xf32>
    %c0_160 = arith.constant 0 : index
    %c18_161 = arith.constant 18 : index
    %150 = vector.load %arg11[%c0_160, %c18_161] : memref<32x324xbf16, #tpu.memory_space<vmem>>, vector<24x286xbf16>
    %c1_162 = arith.constant 1 : index
    %c0_163 = arith.constant 0 : index
    %c0_164 = arith.constant 0 : index
    %c0_165 = arith.constant 0 : index
    %151 = vector.load %arg6[%c1_162, %c0_163, %c0_164, %c0_165] : memref<3x3x8x24xbf16, #tpu.memory_space<vmem>>, vector<1x1x8x24xbf16>
    %152 = vector.shape_cast %151 : vector<1x1x8x24xbf16> to vector<8x24xbf16>
    %cst_166 = arith.constant dense<0.000000e+00> : vector<8x286xf32>
    %153 = tpu.matmul %152, %150, %cst_166 {dimension_numbers = #tpu.dot_dimension_numbers<[1], [0], [0], [1], [0, 0, 1, 1], [], []>} : vector<8x24xbf16>, vector<24x286xbf16>, vector<8x286xf32> -> vector<8x286xf32>
    %154 = arith.addf %149, %153 : vector<8x286xf32>
    %c0_167 = arith.constant 0 : index
    %c19_168 = arith.constant 19 : index
    %155 = vector.load %arg11[%c0_167, %c19_168] : memref<32x324xbf16, #tpu.memory_space<vmem>>, vector<24x286xbf16>
    %c1_169 = arith.constant 1 : index
    %c1_170 = arith.constant 1 : index
    %c0_171 = arith.constant 0 : index
    %c0_172 = arith.constant 0 : index
    %156 = vector.load %arg6[%c1_169, %c1_170, %c0_171, %c0_172] : memref<3x3x8x24xbf16, #tpu.memory_space<vmem>>, vector<1x1x8x24xbf16>
    %157 = vector.shape_cast %156 : vector<1x1x8x24xbf16> to vector<8x24xbf16>
    %cst_173 = arith.constant dense<0.000000e+00> : vector<8x286xf32>
    %158 = tpu.matmul %157, %155, %cst_173 {dimension_numbers = #tpu.dot_dimension_numbers<[1], [0], [0], [1], [0, 0, 1, 1], [], []>} : vector<8x24xbf16>, vector<24x286xbf16>, vector<8x286xf32> -> vector<8x286xf32>
    %159 = arith.addf %154, %158 : vector<8x286xf32>
    %c0_174 = arith.constant 0 : index
    %c20_175 = arith.constant 20 : index
    %160 = vector.load %arg11[%c0_174, %c20_175] : memref<32x324xbf16, #tpu.memory_space<vmem>>, vector<24x286xbf16>
    %c1_176 = arith.constant 1 : index
    %c2_177 = arith.constant 2 : index
    %c0_178 = arith.constant 0 : index
    %c0_179 = arith.constant 0 : index
    %161 = vector.load %arg6[%c1_176, %c2_177, %c0_178, %c0_179] : memref<3x3x8x24xbf16, #tpu.memory_space<vmem>>, vector<1x1x8x24xbf16>
    %162 = vector.shape_cast %161 : vector<1x1x8x24xbf16> to vector<8x24xbf16>
    %cst_180 = arith.constant dense<0.000000e+00> : vector<8x286xf32>
    %163 = tpu.matmul %162, %160, %cst_180 {dimension_numbers = #tpu.dot_dimension_numbers<[1], [0], [0], [1], [0, 0, 1, 1], [], []>} : vector<8x24xbf16>, vector<24x286xbf16>, vector<8x286xf32> -> vector<8x286xf32>
    %164 = arith.addf %159, %163 : vector<8x286xf32>
    %c0_181 = arith.constant 0 : index
    %c36_182 = arith.constant 36 : index
    %165 = vector.load %arg11[%c0_181, %c36_182] : memref<32x324xbf16, #tpu.memory_space<vmem>>, vector<24x286xbf16>
    %c2_183 = arith.constant 2 : index
    %c0_184 = arith.constant 0 : index
    %c0_185 = arith.constant 0 : index
    %c0_186 = arith.constant 0 : index
    %166 = vector.load %arg6[%c2_183, %c0_184, %c0_185, %c0_186] : memref<3x3x8x24xbf16, #tpu.memory_space<vmem>>, vector<1x1x8x24xbf16>
    %167 = vector.shape_cast %166 : vector<1x1x8x24xbf16> to vector<8x24xbf16>
    %cst_187 = arith.constant dense<0.000000e+00> : vector<8x286xf32>
    %168 = tpu.matmul %167, %165, %cst_187 {dimension_numbers = #tpu.dot_dimension_numbers<[1], [0], [0], [1], [0, 0, 1, 1], [], []>} : vector<8x24xbf16>, vector<24x286xbf16>, vector<8x286xf32> -> vector<8x286xf32>
    %169 = arith.addf %164, %168 : vector<8x286xf32>
    %c0_188 = arith.constant 0 : index
    %c37_189 = arith.constant 37 : index
    %170 = vector.load %arg11[%c0_188, %c37_189] : memref<32x324xbf16, #tpu.memory_space<vmem>>, vector<24x286xbf16>
    %c2_190 = arith.constant 2 : index
    %c1_191 = arith.constant 1 : index
    %c0_192 = arith.constant 0 : index
    %c0_193 = arith.constant 0 : index
    %171 = vector.load %arg6[%c2_190, %c1_191, %c0_192, %c0_193] : memref<3x3x8x24xbf16, #tpu.memory_space<vmem>>, vector<1x1x8x24xbf16>
    %172 = vector.shape_cast %171 : vector<1x1x8x24xbf16> to vector<8x24xbf16>
    %cst_194 = arith.constant dense<0.000000e+00> : vector<8x286xf32>
    %173 = tpu.matmul %172, %170, %cst_194 {dimension_numbers = #tpu.dot_dimension_numbers<[1], [0], [0], [1], [0, 0, 1, 1], [], []>} : vector<8x24xbf16>, vector<24x286xbf16>, vector<8x286xf32> -> vector<8x286xf32>
    %174 = arith.addf %169, %173 : vector<8x286xf32>
    %c0_195 = arith.constant 0 : index
    %c38_196 = arith.constant 38 : index
    %175 = vector.load %arg11[%c0_195, %c38_196] : memref<32x324xbf16, #tpu.memory_space<vmem>>, vector<24x286xbf16>
    %c2_197 = arith.constant 2 : index
    %c2_198 = arith.constant 2 : index
    %c0_199 = arith.constant 0 : index
    %c0_200 = arith.constant 0 : index
    %176 = vector.load %arg6[%c2_197, %c2_198, %c0_199, %c0_200] : memref<3x3x8x24xbf16, #tpu.memory_space<vmem>>, vector<1x1x8x24xbf16>
    %177 = vector.shape_cast %176 : vector<1x1x8x24xbf16> to vector<8x24xbf16>
    %cst_201 = arith.constant dense<0.000000e+00> : vector<8x286xf32>
    %178 = tpu.matmul %177, %175, %cst_201 {dimension_numbers = #tpu.dot_dimension_numbers<[1], [0], [0], [1], [0, 0, 1, 1], [], []>} : vector<8x24xbf16>, vector<24x286xbf16>, vector<8x286xf32> -> vector<8x286xf32>
    %179 = arith.addf %174, %178 : vector<8x286xf32>
    %c0_202 = arith.constant 0 : index
    %c0_203 = arith.constant 0 : index
    %180 = vector.load %arg7[%c0_202, %c0_203] : memref<8x1xf32, #tpu.memory_space<vmem>>, vector<8x1xf32>
    %181 = vector.broadcast %180 : vector<8x1xf32> to vector<8x286xf32>
    %182 = arith.addf %179, %181 : vector<8x286xf32>
    %cst_204 = arith.constant 0.000000e+00 : f32
    %183 = vector.broadcast %cst_204 : f32 to vector<8x286xf32>
    %184 = arith.maximumf %182, %183 : vector<8x286xf32>
    %185 = vector.broadcast %24 : vector<1x286xf32> to vector<8x286xf32>
    %186 = arith.mulf %184, %185 : vector<8x286xf32>
    %187 = arith.truncf %186 : vector<8x286xf32> to vector<8x286xbf16>
    %c24 = arith.constant 24 : index
    %c19_205 = arith.constant 19 : index
    %188 = vector.load %arg11[%c24, %c19_205] : memref<32x324xbf16, #tpu.memory_space<vmem>>, vector<8x286xbf16>
    tpu.vector_store %arg11[%c24, %c19_205], %187 {strides = array<i32>} : memref<32x324xbf16, #tpu.memory_space<vmem>>, vector<8x286xbf16>,
    %c0_206 = arith.constant 0 : index
    %c0_207 = arith.constant 0 : index
    %c19_208 = arith.constant 19 : index
    %189 = vector.load %arg1[%c0_206, %c0_207, %c19_208] : memref<1x8x324xbf16, #tpu.memory_space<vmem>>, vector<1x8x286xbf16>
    %190 = vector.shape_cast %189 : vector<1x8x286xbf16> to vector<8x286xbf16>
    %191 = arith.extf %190 : vector<8x286xbf16> to vector<8x286xf32>
    %c0_209 = arith.constant 0 : index
    %c19_210 = arith.constant 19 : index
    %192 = vector.load %arg11[%c0_209, %c19_210] : memref<32x324xbf16, #tpu.memory_space<vmem>>, vector<32x286xbf16>
    %c0_211 = arith.constant 0 : index
    %c0_212 = arith.constant 0 : index
    %c0_213 = arith.constant 0 : index
    %c0_214 = arith.constant 0 : index
    %193 = vector.load %arg8[%c0_211, %c0_212, %c0_213, %c0_214] : memref<1x1x8x32xbf16, #tpu.memory_space<vmem>>, vector<1x1x8x32xbf16>
    %194 = vector.shape_cast %193 : vector<1x1x8x32xbf16> to vector<8x32xbf16>
    %cst_215 = arith.constant dense<0.000000e+00> : vector<8x286xf32>
    %195 = tpu.matmul %194, %192, %cst_215 {dimension_numbers = #tpu.dot_dimension_numbers<[1], [0], [0], [1], [0, 0, 1, 1], [], []>} : vector<8x32xbf16>, vector<32x286xbf16>, vector<8x286xf32> -> vector<8x286xf32>
    %c0_216 = arith.constant 0 : index
    %c0_217 = arith.constant 0 : index
    %196 = vector.load %arg9[%c0_216, %c0_217] : memref<8x1xf32, #tpu.memory_space<vmem>>, vector<8x1xf32>
    %197 = vector.broadcast %196 : vector<8x1xf32> to vector<8x286xf32>
    %198 = arith.addf %195, %197 : vector<8x286xf32>
    %199 = arith.addf %198, %191 : vector<8x286xf32>
    %200 = vector.broadcast %24 : vector<1x286xf32> to vector<8x286xf32>
    %201 = arith.mulf %199, %200 : vector<8x286xf32>
    %202 = arith.truncf %201 : vector<8x286xf32> to vector<8x286xbf16>
    %c0_218 = arith.constant 0 : index
    %c0_219 = arith.constant 0 : index
    %c19_220 = arith.constant 19 : index
    %203 = vector.load %arg10[%c0_218, %c0_219, %c19_220] : memref<1x8x324xbf16, #tpu.memory_space<vmem>>, vector<1x8x286xbf16>
    %204 = vector.shape_cast %203 : vector<1x8x286xbf16> to vector<8x286xbf16>
    %205 = vector.shape_cast %202 : vector<8x286xbf16> to vector<1x8x286xbf16>
    tpu.vector_store %arg10[%c0_218, %c0_219, %c19_220], %205 {strides = array<i32>} : memref<1x8x324xbf16, #tpu.memory_space<vmem>>, vector<1x8x286xbf16>,
    %cst_221 = arith.constant 0.000000e+00 : bf16
    %206 = vector.broadcast %cst_221 : bf16 to vector<8x19xbf16>
    %c0_222 = arith.constant 0 : index
    %c0_223 = arith.constant 0 : index
    %c0_224 = arith.constant 0 : index
    %207 = vector.load %arg10[%c0_222, %c0_223, %c0_224] : memref<1x8x324xbf16, #tpu.memory_space<vmem>>, vector<1x8x19xbf16>
    %208 = vector.shape_cast %207 : vector<1x8x19xbf16> to vector<8x19xbf16>
    %209 = vector.shape_cast %206 : vector<8x19xbf16> to vector<1x8x19xbf16>
    tpu.vector_store %arg10[%c0_222, %c0_223, %c0_224], %209 {strides = array<i32>} : memref<1x8x324xbf16, #tpu.memory_space<vmem>>, vector<1x8x19xbf16>,
    %cst_225 = arith.constant 0.000000e+00 : bf16
    %210 = vector.broadcast %cst_225 : bf16 to vector<8x19xbf16>
    %c0_226 = arith.constant 0 : index
    %c0_227 = arith.constant 0 : index
    %c305 = arith.constant 305 : index
    %211 = vector.load %arg10[%c0_226, %c0_227, %c305] : memref<1x8x324xbf16, #tpu.memory_space<vmem>>, vector<1x8x19xbf16>
    %212 = vector.shape_cast %211 : vector<1x8x19xbf16> to vector<8x19xbf16>
    %213 = vector.shape_cast %210 : vector<8x19xbf16> to vector<1x8x19xbf16>
    tpu.vector_store %arg10[%c0_226, %c0_227, %c305], %213 {strides = array<i32>} : memref<1x8x324xbf16, #tpu.memory_space<vmem>>, vector<1x8x19xbf16>,
    return
  }
  func.func @transform_0(%arg0: i32) -> (i32, i32, i32) {
    %c0_i32 = arith.constant 0 : i32
    %c0_i32_0 = arith.constant 0 : i32
    %c0_i32_1 = arith.constant 0 : i32
    return %arg0, %c0_i32, %c0_i32_0 : i32, i32, i32
  }
  func.func @transform_1(%arg0: i32) -> (i32, i32, i32, i32) {
    %c0_i32 = arith.constant 0 : i32
    %c0_i32_0 = arith.constant 0 : i32
    %c0_i32_1 = arith.constant 0 : i32
    %c0_i32_2 = arith.constant 0 : i32
    %c0_i32_3 = arith.constant 0 : i32
    return %c0_i32, %c0_i32_0, %c0_i32_1, %c0_i32_2 : i32, i32, i32, i32
  }
  func.func @transform_2(%arg0: i32) -> (i32, i32) {
    %c0_i32 = arith.constant 0 : i32
    %c0_i32_0 = arith.constant 0 : i32
    %c0_i32_1 = arith.constant 0 : i32
    return %c0_i32, %c0_i32_0 : i32, i32
  }
  func.func @transform_3(%arg0: i32) -> (i32, i32, i32, i32) {
    %c0_i32 = arith.constant 0 : i32
    %c0_i32_0 = arith.constant 0 : i32
    %c0_i32_1 = arith.constant 0 : i32
    %c0_i32_2 = arith.constant 0 : i32
    %c0_i32_3 = arith.constant 0 : i32
    return %c0_i32, %c0_i32_0, %c0_i32_1, %c0_i32_2 : i32, i32, i32, i32
  }
  func.func @transform_4(%arg0: i32) -> (i32, i32) {
    %c0_i32 = arith.constant 0 : i32
    %c0_i32_0 = arith.constant 0 : i32
    %c0_i32_1 = arith.constant 0 : i32
    return %c0_i32, %c0_i32_0 : i32, i32
  }
  func.func @transform_5(%arg0: i32) -> (i32, i32, i32, i32) {
    %c0_i32 = arith.constant 0 : i32
    %c0_i32_0 = arith.constant 0 : i32
    %c0_i32_1 = arith.constant 0 : i32
    %c0_i32_2 = arith.constant 0 : i32
    %c0_i32_3 = arith.constant 0 : i32
    return %c0_i32, %c0_i32_0, %c0_i32_1, %c0_i32_2 : i32, i32, i32, i32
  }
  func.func @transform_6(%arg0: i32) -> (i32, i32) {
    %c0_i32 = arith.constant 0 : i32
    %c0_i32_0 = arith.constant 0 : i32
    %c0_i32_1 = arith.constant 0 : i32
    return %c0_i32, %c0_i32_0 : i32, i32
  }
  func.func @transform_7(%arg0: i32) -> (i32, i32, i32, i32) {
    %c0_i32 = arith.constant 0 : i32
    %c0_i32_0 = arith.constant 0 : i32
    %c0_i32_1 = arith.constant 0 : i32
    %c0_i32_2 = arith.constant 0 : i32
    %c0_i32_3 = arith.constant 0 : i32
    return %c0_i32, %c0_i32_0, %c0_i32_1, %c0_i32_2 : i32, i32, i32, i32
  }
  func.func @transform_8(%arg0: i32) -> (i32, i32) {
    %c0_i32 = arith.constant 0 : i32
    %c0_i32_0 = arith.constant 0 : i32
    %c0_i32_1 = arith.constant 0 : i32
    return %c0_i32, %c0_i32_0 : i32, i32
  }
  func.func @transform_9(%arg0: i32) -> (i32, i32, i32) {
    %c0_i32 = arith.constant 0 : i32
    %c0_i32_0 = arith.constant 0 : i32
    %c0_i32_1 = arith.constant 0 : i32
    return %arg0, %c0_i32, %c0_i32_0 : i32, i32, i32
  }
}

module attributes {stable_mosaic.version = 11 : i64} {
  func.func @_head_kernel(%arg0: i32, %arg1: memref<1x3x324xbf16, #tpu.memory_space<vmem>>, %arg2: memref<3x1xf32, #tpu.memory_space<vmem>>, %arg3: memref<3x1xf32, #tpu.memory_space<vmem>>, %arg4: memref<3x3x8x3xbf16, #tpu.memory_space<vmem>>, %arg5: memref<8x1xf32, #tpu.memory_space<vmem>>, %arg6: memref<3x3x8x8xbf16, #tpu.memory_space<vmem>>, %arg7: memref<8x1xf32, #tpu.memory_space<vmem>>, %arg8: memref<1x8x324xbf16, #tpu.memory_space<vmem>>, %arg9: memref<1x8x324xbf16, #tpu.memory_space<vmem>>, %arg10: memref<3x324xbf16, #tpu.memory_space<vmem>>) attributes {dimension_semantics = [#tpu.dimension_semantics<parallel>], iteration_bounds = array<i64: 2>, scalar_prefetch = 0 : i64, scratch_operands = 1 : i64, tpu.core_type = #tpu.core_type<tc>, window_params = [{transform_indices = @transform_0, window_bounds = array<i64: 1, 3, 324>}, {pipeline_mode = #tpu.pipeline_mode<synchronous>, transform_indices = @transform_1, window_bounds = array<i64: 3, 1>}, {pipeline_mode = #tpu.pipeline_mode<synchronous>, transform_indices = @transform_2, window_bounds = array<i64: 3, 1>}, {pipeline_mode = #tpu.pipeline_mode<synchronous>, transform_indices = @transform_3, window_bounds = array<i64: 3, 3, 8, 3>}, {pipeline_mode = #tpu.pipeline_mode<synchronous>, transform_indices = @transform_4, window_bounds = array<i64: 8, 1>}, {pipeline_mode = #tpu.pipeline_mode<synchronous>, transform_indices = @transform_5, window_bounds = array<i64: 3, 3, 8, 8>}, {pipeline_mode = #tpu.pipeline_mode<synchronous>, transform_indices = @transform_6, window_bounds = array<i64: 8, 1>}, {transform_indices = @transform_7, window_bounds = array<i64: 1, 8, 324>}, {transform_indices = @transform_8, window_bounds = array<i64: 1, 8, 324>}]} {
    %0 = tpu.iota {dimensions = array<i32: 1>} : vector<1x324xi32>
    %c0_i32 = arith.constant 0 : i32
    %1 = vector.broadcast %c0_i32 : i32 to vector<1x324xi32>
    %2 = arith.addi %0, %1 : vector<1x324xi32>
    %3 = arith.sitofp %2 : vector<1x324xi32> to vector<1x324xf32>
    %cst = arith.constant 5.000000e-01 : f32
    %4 = vector.broadcast %cst : f32 to vector<1x324xf32>
    %5 = arith.addf %3, %4 : vector<1x324xf32>
    %cst_0 = arith.constant 1.800000e+01 : f32
    %6 = vector.broadcast %cst_0 : f32 to vector<1x324xf32>
    %7 = arith.divf %5, %6 : vector<1x324xf32>
    %8 = math.floor %7 : vector<1x324xf32>
    %cst_1 = arith.constant 1.800000e+01 : f32
    %9 = vector.broadcast %cst_1 : f32 to vector<1x324xf32>
    %10 = arith.mulf %8, %9 : vector<1x324xf32>
    %11 = arith.subf %3, %10 : vector<1x324xf32>
    %cst_2 = arith.constant 5.000000e-01 : f32
    %12 = vector.broadcast %cst_2 : f32 to vector<1x324xf32>
    %13 = arith.cmpf ogt, %8, %12 : vector<1x324xf32>
    %cst_3 = arith.constant 1.650000e+01 : f32
    %14 = vector.broadcast %cst_3 : f32 to vector<1x324xf32>
    %15 = arith.cmpf olt, %8, %14 : vector<1x324xf32>
    %16 = arith.andi %13, %15 : vector<1x324xi1>
    %cst_4 = arith.constant 5.000000e-01 : f32
    %17 = vector.broadcast %cst_4 : f32 to vector<1x324xf32>
    %18 = arith.cmpf ogt, %11, %17 : vector<1x324xf32>
    %19 = arith.andi %16, %18 : vector<1x324xi1>
    %cst_5 = arith.constant 1.650000e+01 : f32
    %20 = vector.broadcast %cst_5 : f32 to vector<1x324xf32>
    %21 = arith.cmpf olt, %11, %20 : vector<1x324xf32>
    %22 = arith.andi %19, %21 : vector<1x324xi1>
    %23 = arith.extui %22 : vector<1x324xi1> to vector<1x324xi32>
    %24 = arith.sitofp %23 : vector<1x324xi32> to vector<1x324xf32>
    %25 = tpu.iota {dimensions = array<i32: 1>} : vector<1x286xi32>
    %c19_i32 = arith.constant 19 : i32
    %26 = vector.broadcast %c19_i32 : i32 to vector<1x286xi32>
    %27 = arith.addi %25, %26 : vector<1x286xi32>
    %28 = arith.sitofp %27 : vector<1x286xi32> to vector<1x286xf32>
    %cst_6 = arith.constant 5.000000e-01 : f32
    %29 = vector.broadcast %cst_6 : f32 to vector<1x286xf32>
    %30 = arith.addf %28, %29 : vector<1x286xf32>
    %cst_7 = arith.constant 1.800000e+01 : f32
    %31 = vector.broadcast %cst_7 : f32 to vector<1x286xf32>
    %32 = arith.divf %30, %31 : vector<1x286xf32>
    %33 = math.floor %32 : vector<1x286xf32>
    %cst_8 = arith.constant 1.800000e+01 : f32
    %34 = vector.broadcast %cst_8 : f32 to vector<1x286xf32>
    %35 = arith.mulf %33, %34 : vector<1x286xf32>
    %36 = arith.subf %28, %35 : vector<1x286xf32>
    %cst_9 = arith.constant 5.000000e-01 : f32
    %37 = vector.broadcast %cst_9 : f32 to vector<1x286xf32>
    %38 = arith.cmpf ogt, %33, %37 : vector<1x286xf32>
    %cst_10 = arith.constant 1.650000e+01 : f32
    %39 = vector.broadcast %cst_10 : f32 to vector<1x286xf32>
    %40 = arith.cmpf olt, %33, %39 : vector<1x286xf32>
    %41 = arith.andi %38, %40 : vector<1x286xi1>
    %cst_11 = arith.constant 5.000000e-01 : f32
    %42 = vector.broadcast %cst_11 : f32 to vector<1x286xf32>
    %43 = arith.cmpf ogt, %36, %42 : vector<1x286xf32>
    %44 = arith.andi %41, %43 : vector<1x286xi1>
    %cst_12 = arith.constant 1.650000e+01 : f32
    %45 = vector.broadcast %cst_12 : f32 to vector<1x286xf32>
    %46 = arith.cmpf olt, %36, %45 : vector<1x286xf32>
    %47 = arith.andi %44, %46 : vector<1x286xi1>
    %48 = arith.extui %47 : vector<1x286xi1> to vector<1x286xi32>
    %49 = arith.sitofp %48 : vector<1x286xi32> to vector<1x286xf32>
    %c0 = arith.constant 0 : index
    %c0_13 = arith.constant 0 : index
    %c0_14 = arith.constant 0 : index
    %50 = vector.load %arg1[%c0, %c0_13, %c0_14] : memref<1x3x324xbf16, #tpu.memory_space<vmem>>, vector<1x3x324xbf16>
    %51 = vector.shape_cast %50 : vector<1x3x324xbf16> to vector<3x324xbf16>
    %52 = arith.extf %51 : vector<3x324xbf16> to vector<3x324xf32>
    %c0_15 = arith.constant 0 : index
    %c0_16 = arith.constant 0 : index
    %53 = vector.load %arg2[%c0_15, %c0_16] : memref<3x1xf32, #tpu.memory_space<vmem>>, vector<3x1xf32>
    %54 = vector.broadcast %53 : vector<3x1xf32> to vector<3x324xf32>
    %55 = arith.mulf %52, %54 : vector<3x324xf32>
    %c0_17 = arith.constant 0 : index
    %c0_18 = arith.constant 0 : index
    %56 = vector.load %arg3[%c0_17, %c0_18] : memref<3x1xf32, #tpu.memory_space<vmem>>, vector<3x1xf32>
    %57 = vector.broadcast %56 : vector<3x1xf32> to vector<3x324xf32>
    %58 = vector.broadcast %24 : vector<1x324xf32> to vector<3x324xf32>
    %59 = arith.mulf %57, %58 : vector<3x324xf32>
    %60 = arith.addf %55, %59 : vector<3x324xf32>
    %61 = arith.truncf %60 : vector<3x324xf32> to vector<3x324xbf16>
    %c0_19 = arith.constant 0 : index
    %c0_20 = arith.constant 0 : index
    %62 = vector.load %arg10[%c0_19, %c0_20] : memref<3x324xbf16, #tpu.memory_space<vmem>>, vector<3x324xbf16>
    tpu.vector_store %arg10[%c0_19, %c0_20], %61 {strides = array<i32>} : memref<3x324xbf16, #tpu.memory_space<vmem>>, vector<3x324xbf16>,
    %c0_21 = arith.constant 0 : index
    %c0_22 = arith.constant 0 : index
    %63 = vector.load %arg10[%c0_21, %c0_22] : memref<3x324xbf16, #tpu.memory_space<vmem>>, vector<3x286xbf16>
    %c0_23 = arith.constant 0 : index
    %c0_24 = arith.constant 0 : index
    %c0_25 = arith.constant 0 : index
    %c0_26 = arith.constant 0 : index
    %64 = vector.load %arg4[%c0_23, %c0_24, %c0_25, %c0_26] : memref<3x3x8x3xbf16, #tpu.memory_space<vmem>>, vector<1x1x8x3xbf16>
    %65 = vector.shape_cast %64 : vector<1x1x8x3xbf16> to vector<8x3xbf16>
    %cst_27 = arith.constant dense<0.000000e+00> : vector<8x286xf32>
    %66 = tpu.matmul %65, %63, %cst_27 {dimension_numbers = #tpu.dot_dimension_numbers<[1], [0], [0], [1], [0, 0, 1, 1], [], []>} : vector<8x3xbf16>, vector<3x286xbf16>, vector<8x286xf32> -> vector<8x286xf32>
    %c0_28 = arith.constant 0 : index
    %c1 = arith.constant 1 : index
    %67 = vector.load %arg10[%c0_28, %c1] : memref<3x324xbf16, #tpu.memory_space<vmem>>, vector<3x286xbf16>
    %c0_29 = arith.constant 0 : index
    %c1_30 = arith.constant 1 : index
    %c0_31 = arith.constant 0 : index
    %c0_32 = arith.constant 0 : index
    %68 = vector.load %arg4[%c0_29, %c1_30, %c0_31, %c0_32] : memref<3x3x8x3xbf16, #tpu.memory_space<vmem>>, vector<1x1x8x3xbf16>
    %69 = vector.shape_cast %68 : vector<1x1x8x3xbf16> to vector<8x3xbf16>
    %cst_33 = arith.constant dense<0.000000e+00> : vector<8x286xf32>
    %70 = tpu.matmul %69, %67, %cst_33 {dimension_numbers = #tpu.dot_dimension_numbers<[1], [0], [0], [1], [0, 0, 1, 1], [], []>} : vector<8x3xbf16>, vector<3x286xbf16>, vector<8x286xf32> -> vector<8x286xf32>
    %71 = arith.addf %66, %70 : vector<8x286xf32>
    %c0_34 = arith.constant 0 : index
    %c2 = arith.constant 2 : index
    %72 = vector.load %arg10[%c0_34, %c2] : memref<3x324xbf16, #tpu.memory_space<vmem>>, vector<3x286xbf16>
    %c0_35 = arith.constant 0 : index
    %c2_36 = arith.constant 2 : index
    %c0_37 = arith.constant 0 : index
    %c0_38 = arith.constant 0 : index
    %73 = vector.load %arg4[%c0_35, %c2_36, %c0_37, %c0_38] : memref<3x3x8x3xbf16, #tpu.memory_space<vmem>>, vector<1x1x8x3xbf16>
    %74 = vector.shape_cast %73 : vector<1x1x8x3xbf16> to vector<8x3xbf16>
    %cst_39 = arith.constant dense<0.000000e+00> : vector<8x286xf32>
    %75 = tpu.matmul %74, %72, %cst_39 {dimension_numbers = #tpu.dot_dimension_numbers<[1], [0], [0], [1], [0, 0, 1, 1], [], []>} : vector<8x3xbf16>, vector<3x286xbf16>, vector<8x286xf32> -> vector<8x286xf32>
    %76 = arith.addf %71, %75 : vector<8x286xf32>
    %c0_40 = arith.constant 0 : index
    %c18 = arith.constant 18 : index
    %77 = vector.load %arg10[%c0_40, %c18] : memref<3x324xbf16, #tpu.memory_space<vmem>>, vector<3x286xbf16>
    %c1_41 = arith.constant 1 : index
    %c0_42 = arith.constant 0 : index
    %c0_43 = arith.constant 0 : index
    %c0_44 = arith.constant 0 : index
    %78 = vector.load %arg4[%c1_41, %c0_42, %c0_43, %c0_44] : memref<3x3x8x3xbf16, #tpu.memory_space<vmem>>, vector<1x1x8x3xbf16>
    %79 = vector.shape_cast %78 : vector<1x1x8x3xbf16> to vector<8x3xbf16>
    %cst_45 = arith.constant dense<0.000000e+00> : vector<8x286xf32>
    %80 = tpu.matmul %79, %77, %cst_45 {dimension_numbers = #tpu.dot_dimension_numbers<[1], [0], [0], [1], [0, 0, 1, 1], [], []>} : vector<8x3xbf16>, vector<3x286xbf16>, vector<8x286xf32> -> vector<8x286xf32>
    %81 = arith.addf %76, %80 : vector<8x286xf32>
    %c0_46 = arith.constant 0 : index
    %c19 = arith.constant 19 : index
    %82 = vector.load %arg10[%c0_46, %c19] : memref<3x324xbf16, #tpu.memory_space<vmem>>, vector<3x286xbf16>
    %c1_47 = arith.constant 1 : index
    %c1_48 = arith.constant 1 : index
    %c0_49 = arith.constant 0 : index
    %c0_50 = arith.constant 0 : index
    %83 = vector.load %arg4[%c1_47, %c1_48, %c0_49, %c0_50] : memref<3x3x8x3xbf16, #tpu.memory_space<vmem>>, vector<1x1x8x3xbf16>
    %84 = vector.shape_cast %83 : vector<1x1x8x3xbf16> to vector<8x3xbf16>
    %cst_51 = arith.constant dense<0.000000e+00> : vector<8x286xf32>
    %85 = tpu.matmul %84, %82, %cst_51 {dimension_numbers = #tpu.dot_dimension_numbers<[1], [0], [0], [1], [0, 0, 1, 1], [], []>} : vector<8x3xbf16>, vector<3x286xbf16>, vector<8x286xf32> -> vector<8x286xf32>
    %86 = arith.addf %81, %85 : vector<8x286xf32>
    %c0_52 = arith.constant 0 : index
    %c20 = arith.constant 20 : index
    %87 = vector.load %arg10[%c0_52, %c20] : memref<3x324xbf16, #tpu.memory_space<vmem>>, vector<3x286xbf16>
    %c1_53 = arith.constant 1 : index
    %c2_54 = arith.constant 2 : index
    %c0_55 = arith.constant 0 : index
    %c0_56 = arith.constant 0 : index
    %88 = vector.load %arg4[%c1_53, %c2_54, %c0_55, %c0_56] : memref<3x3x8x3xbf16, #tpu.memory_space<vmem>>, vector<1x1x8x3xbf16>
    %89 = vector.shape_cast %88 : vector<1x1x8x3xbf16> to vector<8x3xbf16>
    %cst_57 = arith.constant dense<0.000000e+00> : vector<8x286xf32>
    %90 = tpu.matmul %89, %87, %cst_57 {dimension_numbers = #tpu.dot_dimension_numbers<[1], [0], [0], [1], [0, 0, 1, 1], [], []>} : vector<8x3xbf16>, vector<3x286xbf16>, vector<8x286xf32> -> vector<8x286xf32>
    %91 = arith.addf %86, %90 : vector<8x286xf32>
    %c0_58 = arith.constant 0 : index
    %c36 = arith.constant 36 : index
    %92 = vector.load %arg10[%c0_58, %c36] : memref<3x324xbf16, #tpu.memory_space<vmem>>, vector<3x286xbf16>
    %c2_59 = arith.constant 2 : index
    %c0_60 = arith.constant 0 : index
    %c0_61 = arith.constant 0 : index
    %c0_62 = arith.constant 0 : index
    %93 = vector.load %arg4[%c2_59, %c0_60, %c0_61, %c0_62] : memref<3x3x8x3xbf16, #tpu.memory_space<vmem>>, vector<1x1x8x3xbf16>
    %94 = vector.shape_cast %93 : vector<1x1x8x3xbf16> to vector<8x3xbf16>
    %cst_63 = arith.constant dense<0.000000e+00> : vector<8x286xf32>
    %95 = tpu.matmul %94, %92, %cst_63 {dimension_numbers = #tpu.dot_dimension_numbers<[1], [0], [0], [1], [0, 0, 1, 1], [], []>} : vector<8x3xbf16>, vector<3x286xbf16>, vector<8x286xf32> -> vector<8x286xf32>
    %96 = arith.addf %91, %95 : vector<8x286xf32>
    %c0_64 = arith.constant 0 : index
    %c37 = arith.constant 37 : index
    %97 = vector.load %arg10[%c0_64, %c37] : memref<3x324xbf16, #tpu.memory_space<vmem>>, vector<3x286xbf16>
    %c2_65 = arith.constant 2 : index
    %c1_66 = arith.constant 1 : index
    %c0_67 = arith.constant 0 : index
    %c0_68 = arith.constant 0 : index
    %98 = vector.load %arg4[%c2_65, %c1_66, %c0_67, %c0_68] : memref<3x3x8x3xbf16, #tpu.memory_space<vmem>>, vector<1x1x8x3xbf16>
    %99 = vector.shape_cast %98 : vector<1x1x8x3xbf16> to vector<8x3xbf16>
    %cst_69 = arith.constant dense<0.000000e+00> : vector<8x286xf32>
    %100 = tpu.matmul %99, %97, %cst_69 {dimension_numbers = #tpu.dot_dimension_numbers<[1], [0], [0], [1], [0, 0, 1, 1], [], []>} : vector<8x3xbf16>, vector<3x286xbf16>, vector<8x286xf32> -> vector<8x286xf32>
    %101 = arith.addf %96, %100 : vector<8x286xf32>
    %c0_70 = arith.constant 0 : index
    %c38 = arith.constant 38 : index
    %102 = vector.load %arg10[%c0_70, %c38] : memref<3x324xbf16, #tpu.memory_space<vmem>>, vector<3x286xbf16>
    %c2_71 = arith.constant 2 : index
    %c2_72 = arith.constant 2 : index
    %c0_73 = arith.constant 0 : index
    %c0_74 = arith.constant 0 : index
    %103 = vector.load %arg4[%c2_71, %c2_72, %c0_73, %c0_74] : memref<3x3x8x3xbf16, #tpu.memory_space<vmem>>, vector<1x1x8x3xbf16>
    %104 = vector.shape_cast %103 : vector<1x1x8x3xbf16> to vector<8x3xbf16>
    %cst_75 = arith.constant dense<0.000000e+00> : vector<8x286xf32>
    %105 = tpu.matmul %104, %102, %cst_75 {dimension_numbers = #tpu.dot_dimension_numbers<[1], [0], [0], [1], [0, 0, 1, 1], [], []>} : vector<8x3xbf16>, vector<3x286xbf16>, vector<8x286xf32> -> vector<8x286xf32>
    %106 = arith.addf %101, %105 : vector<8x286xf32>
    %c0_76 = arith.constant 0 : index
    %c0_77 = arith.constant 0 : index
    %107 = vector.load %arg5[%c0_76, %c0_77] : memref<8x1xf32, #tpu.memory_space<vmem>>, vector<8x1xf32>
    %108 = vector.broadcast %107 : vector<8x1xf32> to vector<8x286xf32>
    %109 = arith.addf %106, %108 : vector<8x286xf32>
    %110 = vector.broadcast %49 : vector<1x286xf32> to vector<8x286xf32>
    %111 = arith.mulf %109, %110 : vector<8x286xf32>
    %112 = arith.truncf %111 : vector<8x286xf32> to vector<8x286xbf16>
    %c0_78 = arith.constant 0 : index
    %c0_79 = arith.constant 0 : index
    %c19_80 = arith.constant 19 : index
    %113 = vector.load %arg8[%c0_78, %c0_79, %c19_80] : memref<1x8x324xbf16, #tpu.memory_space<vmem>>, vector<1x8x286xbf16>
    %114 = vector.shape_cast %113 : vector<1x8x286xbf16> to vector<8x286xbf16>
    %115 = vector.shape_cast %112 : vector<8x286xbf16> to vector<1x8x286xbf16>
    tpu.vector_store %arg8[%c0_78, %c0_79, %c19_80], %115 {strides = array<i32>} : memref<1x8x324xbf16, #tpu.memory_space<vmem>>, vector<1x8x286xbf16>,
    %cst_81 = arith.constant 0.000000e+00 : bf16
    %116 = vector.broadcast %cst_81 : bf16 to vector<8x19xbf16>
    %c0_82 = arith.constant 0 : index
    %c0_83 = arith.constant 0 : index
    %c0_84 = arith.constant 0 : index
    %117 = vector.load %arg8[%c0_82, %c0_83, %c0_84] : memref<1x8x324xbf16, #tpu.memory_space<vmem>>, vector<1x8x19xbf16>
    %118 = vector.shape_cast %117 : vector<1x8x19xbf16> to vector<8x19xbf16>
    %119 = vector.shape_cast %116 : vector<8x19xbf16> to vector<1x8x19xbf16>
    tpu.vector_store %arg8[%c0_82, %c0_83, %c0_84], %119 {strides = array<i32>} : memref<1x8x324xbf16, #tpu.memory_space<vmem>>, vector<1x8x19xbf16>,
    %cst_85 = arith.constant 0.000000e+00 : bf16
    %120 = vector.broadcast %cst_85 : bf16 to vector<8x19xbf16>
    %c0_86 = arith.constant 0 : index
    %c0_87 = arith.constant 0 : index
    %c305 = arith.constant 305 : index
    %121 = vector.load %arg8[%c0_86, %c0_87, %c305] : memref<1x8x324xbf16, #tpu.memory_space<vmem>>, vector<1x8x19xbf16>
    %122 = vector.shape_cast %121 : vector<1x8x19xbf16> to vector<8x19xbf16>
    %123 = vector.shape_cast %120 : vector<8x19xbf16> to vector<1x8x19xbf16>
    tpu.vector_store %arg8[%c0_86, %c0_87, %c305], %123 {strides = array<i32>} : memref<1x8x324xbf16, #tpu.memory_space<vmem>>, vector<1x8x19xbf16>,
    %c0_88 = arith.constant 0 : index
    %c0_89 = arith.constant 0 : index
    %c0_90 = arith.constant 0 : index
    %124 = vector.load %arg8[%c0_88, %c0_89, %c0_90] : memref<1x8x324xbf16, #tpu.memory_space<vmem>>, vector<1x8x286xbf16>
    %125 = vector.shape_cast %124 : vector<1x8x286xbf16> to vector<8x286xbf16>
    %c0_91 = arith.constant 0 : index
    %c0_92 = arith.constant 0 : index
    %c0_93 = arith.constant 0 : index
    %c0_94 = arith.constant 0 : index
    %126 = vector.load %arg6[%c0_91, %c0_92, %c0_93, %c0_94] : memref<3x3x8x8xbf16, #tpu.memory_space<vmem>>, vector<1x1x8x8xbf16>
    %127 = vector.shape_cast %126 : vector<1x1x8x8xbf16> to vector<8x8xbf16>
    %cst_95 = arith.constant dense<0.000000e+00> : vector<8x286xf32>
    %128 = tpu.matmul %127, %125, %cst_95 {dimension_numbers = #tpu.dot_dimension_numbers<[1], [0], [0], [1], [0, 0, 1, 1], [], []>} : vector<8x8xbf16>, vector<8x286xbf16>, vector<8x286xf32> -> vector<8x286xf32>
    %c0_96 = arith.constant 0 : index
    %c0_97 = arith.constant 0 : index
    %c1_98 = arith.constant 1 : index
    %129 = vector.load %arg8[%c0_96, %c0_97, %c1_98] : memref<1x8x324xbf16, #tpu.memory_space<vmem>>, vector<1x8x286xbf16>
    %130 = vector.shape_cast %129 : vector<1x8x286xbf16> to vector<8x286xbf16>
    %c0_99 = arith.constant 0 : index
    %c1_100 = arith.constant 1 : index
    %c0_101 = arith.constant 0 : index
    %c0_102 = arith.constant 0 : index
    %131 = vector.load %arg6[%c0_99, %c1_100, %c0_101, %c0_102] : memref<3x3x8x8xbf16, #tpu.memory_space<vmem>>, vector<1x1x8x8xbf16>
    %132 = vector.shape_cast %131 : vector<1x1x8x8xbf16> to vector<8x8xbf16>
    %cst_103 = arith.constant dense<0.000000e+00> : vector<8x286xf32>
    %133 = tpu.matmul %132, %130, %cst_103 {dimension_numbers = #tpu.dot_dimension_numbers<[1], [0], [0], [1], [0, 0, 1, 1], [], []>} : vector<8x8xbf16>, vector<8x286xbf16>, vector<8x286xf32> -> vector<8x286xf32>
    %134 = arith.addf %128, %133 : vector<8x286xf32>
    %c0_104 = arith.constant 0 : index
    %c0_105 = arith.constant 0 : index
    %c2_106 = arith.constant 2 : index
    %135 = vector.load %arg8[%c0_104, %c0_105, %c2_106] : memref<1x8x324xbf16, #tpu.memory_space<vmem>>, vector<1x8x286xbf16>
    %136 = vector.shape_cast %135 : vector<1x8x286xbf16> to vector<8x286xbf16>
    %c0_107 = arith.constant 0 : index
    %c2_108 = arith.constant 2 : index
    %c0_109 = arith.constant 0 : index
    %c0_110 = arith.constant 0 : index
    %137 = vector.load %arg6[%c0_107, %c2_108, %c0_109, %c0_110] : memref<3x3x8x8xbf16, #tpu.memory_space<vmem>>, vector<1x1x8x8xbf16>
    %138 = vector.shape_cast %137 : vector<1x1x8x8xbf16> to vector<8x8xbf16>
    %cst_111 = arith.constant dense<0.000000e+00> : vector<8x286xf32>
    %139 = tpu.matmul %138, %136, %cst_111 {dimension_numbers = #tpu.dot_dimension_numbers<[1], [0], [0], [1], [0, 0, 1, 1], [], []>} : vector<8x8xbf16>, vector<8x286xbf16>, vector<8x286xf32> -> vector<8x286xf32>
    %140 = arith.addf %134, %139 : vector<8x286xf32>
    %c0_112 = arith.constant 0 : index
    %c0_113 = arith.constant 0 : index
    %c18_114 = arith.constant 18 : index
    %141 = vector.load %arg8[%c0_112, %c0_113, %c18_114] : memref<1x8x324xbf16, #tpu.memory_space<vmem>>, vector<1x8x286xbf16>
    %142 = vector.shape_cast %141 : vector<1x8x286xbf16> to vector<8x286xbf16>
    %c1_115 = arith.constant 1 : index
    %c0_116 = arith.constant 0 : index
    %c0_117 = arith.constant 0 : index
    %c0_118 = arith.constant 0 : index
    %143 = vector.load %arg6[%c1_115, %c0_116, %c0_117, %c0_118] : memref<3x3x8x8xbf16, #tpu.memory_space<vmem>>, vector<1x1x8x8xbf16>
    %144 = vector.shape_cast %143 : vector<1x1x8x8xbf16> to vector<8x8xbf16>
    %cst_119 = arith.constant dense<0.000000e+00> : vector<8x286xf32>
    %145 = tpu.matmul %144, %142, %cst_119 {dimension_numbers = #tpu.dot_dimension_numbers<[1], [0], [0], [1], [0, 0, 1, 1], [], []>} : vector<8x8xbf16>, vector<8x286xbf16>, vector<8x286xf32> -> vector<8x286xf32>
    %146 = arith.addf %140, %145 : vector<8x286xf32>
    %c0_120 = arith.constant 0 : index
    %c0_121 = arith.constant 0 : index
    %c19_122 = arith.constant 19 : index
    %147 = vector.load %arg8[%c0_120, %c0_121, %c19_122] : memref<1x8x324xbf16, #tpu.memory_space<vmem>>, vector<1x8x286xbf16>
    %148 = vector.shape_cast %147 : vector<1x8x286xbf16> to vector<8x286xbf16>
    %c1_123 = arith.constant 1 : index
    %c1_124 = arith.constant 1 : index
    %c0_125 = arith.constant 0 : index
    %c0_126 = arith.constant 0 : index
    %149 = vector.load %arg6[%c1_123, %c1_124, %c0_125, %c0_126] : memref<3x3x8x8xbf16, #tpu.memory_space<vmem>>, vector<1x1x8x8xbf16>
    %150 = vector.shape_cast %149 : vector<1x1x8x8xbf16> to vector<8x8xbf16>
    %cst_127 = arith.constant dense<0.000000e+00> : vector<8x286xf32>
    %151 = tpu.matmul %150, %148, %cst_127 {dimension_numbers = #tpu.dot_dimension_numbers<[1], [0], [0], [1], [0, 0, 1, 1], [], []>} : vector<8x8xbf16>, vector<8x286xbf16>, vector<8x286xf32> -> vector<8x286xf32>
    %152 = arith.addf %146, %151 : vector<8x286xf32>
    %c0_128 = arith.constant 0 : index
    %c0_129 = arith.constant 0 : index
    %c20_130 = arith.constant 20 : index
    %153 = vector.load %arg8[%c0_128, %c0_129, %c20_130] : memref<1x8x324xbf16, #tpu.memory_space<vmem>>, vector<1x8x286xbf16>
    %154 = vector.shape_cast %153 : vector<1x8x286xbf16> to vector<8x286xbf16>
    %c1_131 = arith.constant 1 : index
    %c2_132 = arith.constant 2 : index
    %c0_133 = arith.constant 0 : index
    %c0_134 = arith.constant 0 : index
    %155 = vector.load %arg6[%c1_131, %c2_132, %c0_133, %c0_134] : memref<3x3x8x8xbf16, #tpu.memory_space<vmem>>, vector<1x1x8x8xbf16>
    %156 = vector.shape_cast %155 : vector<1x1x8x8xbf16> to vector<8x8xbf16>
    %cst_135 = arith.constant dense<0.000000e+00> : vector<8x286xf32>
    %157 = tpu.matmul %156, %154, %cst_135 {dimension_numbers = #tpu.dot_dimension_numbers<[1], [0], [0], [1], [0, 0, 1, 1], [], []>} : vector<8x8xbf16>, vector<8x286xbf16>, vector<8x286xf32> -> vector<8x286xf32>
    %158 = arith.addf %152, %157 : vector<8x286xf32>
    %c0_136 = arith.constant 0 : index
    %c0_137 = arith.constant 0 : index
    %c36_138 = arith.constant 36 : index
    %159 = vector.load %arg8[%c0_136, %c0_137, %c36_138] : memref<1x8x324xbf16, #tpu.memory_space<vmem>>, vector<1x8x286xbf16>
    %160 = vector.shape_cast %159 : vector<1x8x286xbf16> to vector<8x286xbf16>
    %c2_139 = arith.constant 2 : index
    %c0_140 = arith.constant 0 : index
    %c0_141 = arith.constant 0 : index
    %c0_142 = arith.constant 0 : index
    %161 = vector.load %arg6[%c2_139, %c0_140, %c0_141, %c0_142] : memref<3x3x8x8xbf16, #tpu.memory_space<vmem>>, vector<1x1x8x8xbf16>
    %162 = vector.shape_cast %161 : vector<1x1x8x8xbf16> to vector<8x8xbf16>
    %cst_143 = arith.constant dense<0.000000e+00> : vector<8x286xf32>
    %163 = tpu.matmul %162, %160, %cst_143 {dimension_numbers = #tpu.dot_dimension_numbers<[1], [0], [0], [1], [0, 0, 1, 1], [], []>} : vector<8x8xbf16>, vector<8x286xbf16>, vector<8x286xf32> -> vector<8x286xf32>
    %164 = arith.addf %158, %163 : vector<8x286xf32>
    %c0_144 = arith.constant 0 : index
    %c0_145 = arith.constant 0 : index
    %c37_146 = arith.constant 37 : index
    %165 = vector.load %arg8[%c0_144, %c0_145, %c37_146] : memref<1x8x324xbf16, #tpu.memory_space<vmem>>, vector<1x8x286xbf16>
    %166 = vector.shape_cast %165 : vector<1x8x286xbf16> to vector<8x286xbf16>
    %c2_147 = arith.constant 2 : index
    %c1_148 = arith.constant 1 : index
    %c0_149 = arith.constant 0 : index
    %c0_150 = arith.constant 0 : index
    %167 = vector.load %arg6[%c2_147, %c1_148, %c0_149, %c0_150] : memref<3x3x8x8xbf16, #tpu.memory_space<vmem>>, vector<1x1x8x8xbf16>
    %168 = vector.shape_cast %167 : vector<1x1x8x8xbf16> to vector<8x8xbf16>
    %cst_151 = arith.constant dense<0.000000e+00> : vector<8x286xf32>
    %169 = tpu.matmul %168, %166, %cst_151 {dimension_numbers = #tpu.dot_dimension_numbers<[1], [0], [0], [1], [0, 0, 1, 1], [], []>} : vector<8x8xbf16>, vector<8x286xbf16>, vector<8x286xf32> -> vector<8x286xf32>
    %170 = arith.addf %164, %169 : vector<8x286xf32>
    %c0_152 = arith.constant 0 : index
    %c0_153 = arith.constant 0 : index
    %c38_154 = arith.constant 38 : index
    %171 = vector.load %arg8[%c0_152, %c0_153, %c38_154] : memref<1x8x324xbf16, #tpu.memory_space<vmem>>, vector<1x8x286xbf16>
    %172 = vector.shape_cast %171 : vector<1x8x286xbf16> to vector<8x286xbf16>
    %c2_155 = arith.constant 2 : index
    %c2_156 = arith.constant 2 : index
    %c0_157 = arith.constant 0 : index
    %c0_158 = arith.constant 0 : index
    %173 = vector.load %arg6[%c2_155, %c2_156, %c0_157, %c0_158] : memref<3x3x8x8xbf16, #tpu.memory_space<vmem>>, vector<1x1x8x8xbf16>
    %174 = vector.shape_cast %173 : vector<1x1x8x8xbf16> to vector<8x8xbf16>
    %cst_159 = arith.constant dense<0.000000e+00> : vector<8x286xf32>
    %175 = tpu.matmul %174, %172, %cst_159 {dimension_numbers = #tpu.dot_dimension_numbers<[1], [0], [0], [1], [0, 0, 1, 1], [], []>} : vector<8x8xbf16>, vector<8x286xbf16>, vector<8x286xf32> -> vector<8x286xf32>
    %176 = arith.addf %170, %175 : vector<8x286xf32>
    %c0_160 = arith.constant 0 : index
    %c0_161 = arith.constant 0 : index
    %177 = vector.load %arg7[%c0_160, %c0_161] : memref<8x1xf32, #tpu.memory_space<vmem>>, vector<8x1xf32>
    %178 = vector.broadcast %177 : vector<8x1xf32> to vector<8x286xf32>
    %179 = arith.addf %176, %178 : vector<8x286xf32>
    %180 = vector.broadcast %49 : vector<1x286xf32> to vector<8x286xf32>
    %181 = arith.mulf %179, %180 : vector<8x286xf32>
    %182 = arith.truncf %181 : vector<8x286xf32> to vector<8x286xbf16>
    %c0_162 = arith.constant 0 : index
    %c0_163 = arith.constant 0 : index
    %c19_164 = arith.constant 19 : index
    %183 = vector.load %arg9[%c0_162, %c0_163, %c19_164] : memref<1x8x324xbf16, #tpu.memory_space<vmem>>, vector<1x8x286xbf16>
    %184 = vector.shape_cast %183 : vector<1x8x286xbf16> to vector<8x286xbf16>
    %185 = vector.shape_cast %182 : vector<8x286xbf16> to vector<1x8x286xbf16>
    tpu.vector_store %arg9[%c0_162, %c0_163, %c19_164], %185 {strides = array<i32>} : memref<1x8x324xbf16, #tpu.memory_space<vmem>>, vector<1x8x286xbf16>,
    %cst_165 = arith.constant 0.000000e+00 : bf16
    %186 = vector.broadcast %cst_165 : bf16 to vector<8x19xbf16>
    %c0_166 = arith.constant 0 : index
    %c0_167 = arith.constant 0 : index
    %c0_168 = arith.constant 0 : index
    %187 = vector.load %arg9[%c0_166, %c0_167, %c0_168] : memref<1x8x324xbf16, #tpu.memory_space<vmem>>, vector<1x8x19xbf16>
    %188 = vector.shape_cast %187 : vector<1x8x19xbf16> to vector<8x19xbf16>
    %189 = vector.shape_cast %186 : vector<8x19xbf16> to vector<1x8x19xbf16>
    tpu.vector_store %arg9[%c0_166, %c0_167, %c0_168], %189 {strides = array<i32>} : memref<1x8x324xbf16, #tpu.memory_space<vmem>>, vector<1x8x19xbf16>,
    %cst_169 = arith.constant 0.000000e+00 : bf16
    %190 = vector.broadcast %cst_169 : bf16 to vector<8x19xbf16>
    %c0_170 = arith.constant 0 : index
    %c0_171 = arith.constant 0 : index
    %c305_172 = arith.constant 305 : index
    %191 = vector.load %arg9[%c0_170, %c0_171, %c305_172] : memref<1x8x324xbf16, #tpu.memory_space<vmem>>, vector<1x8x19xbf16>
    %192 = vector.shape_cast %191 : vector<1x8x19xbf16> to vector<8x19xbf16>
    %193 = vector.shape_cast %190 : vector<8x19xbf16> to vector<1x8x19xbf16>
    tpu.vector_store %arg9[%c0_170, %c0_171, %c305_172], %193 {strides = array<i32>} : memref<1x8x324xbf16, #tpu.memory_space<vmem>>, vector<1x8x19xbf16>,
    return
  }
  func.func @transform_0(%arg0: i32) -> (i32, i32, i32) {
    %c0_i32 = arith.constant 0 : i32
    %c0_i32_0 = arith.constant 0 : i32
    %c0_i32_1 = arith.constant 0 : i32
    return %arg0, %c0_i32, %c0_i32_0 : i32, i32, i32
  }
  func.func @transform_1(%arg0: i32) -> (i32, i32) {
    %c0_i32 = arith.constant 0 : i32
    %c0_i32_0 = arith.constant 0 : i32
    %c0_i32_1 = arith.constant 0 : i32
    return %c0_i32, %c0_i32_0 : i32, i32
  }
  func.func @transform_2(%arg0: i32) -> (i32, i32) {
    %c0_i32 = arith.constant 0 : i32
    %c0_i32_0 = arith.constant 0 : i32
    %c0_i32_1 = arith.constant 0 : i32
    return %c0_i32, %c0_i32_0 : i32, i32
  }
  func.func @transform_3(%arg0: i32) -> (i32, i32, i32, i32) {
    %c0_i32 = arith.constant 0 : i32
    %c0_i32_0 = arith.constant 0 : i32
    %c0_i32_1 = arith.constant 0 : i32
    %c0_i32_2 = arith.constant 0 : i32
    %c0_i32_3 = arith.constant 0 : i32
    return %c0_i32, %c0_i32_0, %c0_i32_1, %c0_i32_2 : i32, i32, i32, i32
  }
  func.func @transform_4(%arg0: i32) -> (i32, i32) {
    %c0_i32 = arith.constant 0 : i32
    %c0_i32_0 = arith.constant 0 : i32
    %c0_i32_1 = arith.constant 0 : i32
    return %c0_i32, %c0_i32_0 : i32, i32
  }
  func.func @transform_5(%arg0: i32) -> (i32, i32, i32, i32) {
    %c0_i32 = arith.constant 0 : i32
    %c0_i32_0 = arith.constant 0 : i32
    %c0_i32_1 = arith.constant 0 : i32
    %c0_i32_2 = arith.constant 0 : i32
    %c0_i32_3 = arith.constant 0 : i32
    return %c0_i32, %c0_i32_0, %c0_i32_1, %c0_i32_2 : i32, i32, i32, i32
  }
  func.func @transform_6(%arg0: i32) -> (i32, i32) {
    %c0_i32 = arith.constant 0 : i32
    %c0_i32_0 = arith.constant 0 : i32
    %c0_i32_1 = arith.constant 0 : i32
    return %c0_i32, %c0_i32_0 : i32, i32
  }
  func.func @transform_7(%arg0: i32) -> (i32, i32, i32) {
    %c0_i32 = arith.constant 0 : i32
    %c0_i32_0 = arith.constant 0 : i32
    %c0_i32_1 = arith.constant 0 : i32
    return %arg0, %c0_i32, %c0_i32_0 : i32, i32, i32
  }
  func.func @transform_8(%arg0: i32) -> (i32, i32, i32) {
    %c0_i32 = arith.constant 0 : i32
    %c0_i32_0 = arith.constant 0 : i32
    %c0_i32_1 = arith.constant 0 : i32
    return %arg0, %c0_i32, %c0_i32_0 : i32, i32, i32
  }
}

module attributes {stable_mosaic.version = 11 : i64} {
  func.func @_tail_kernel(%arg0: i32, %arg1: memref<1x8x1156xbf16, #tpu.memory_space<vmem>>, %arg2: memref<3x3x3x8xbf16, #tpu.memory_space<vmem>>, %arg3: memref<3x1xf32, #tpu.memory_space<vmem>>, %arg4: memref<3x1xf32, #tpu.memory_space<vmem>>, %arg5: memref<3x1xf32, #tpu.memory_space<vmem>>, %arg6: memref<1x3x1156xf32, #tpu.memory_space<vmem>>) attributes {dimension_semantics = [#tpu.dimension_semantics<parallel>], iteration_bounds = array<i64: 2>, scalar_prefetch = 0 : i64, scratch_operands = 0 : i64, tpu.core_type = #tpu.core_type<tc>, window_params = [{transform_indices = @transform_0, window_bounds = array<i64: 1, 8, 1156>}, {pipeline_mode = #tpu.pipeline_mode<synchronous>, transform_indices = @transform_1, window_bounds = array<i64: 3, 3, 3, 8>}, {pipeline_mode = #tpu.pipeline_mode<synchronous>, transform_indices = @transform_2, window_bounds = array<i64: 3, 1>}, {pipeline_mode = #tpu.pipeline_mode<synchronous>, transform_indices = @transform_3, window_bounds = array<i64: 3, 1>}, {pipeline_mode = #tpu.pipeline_mode<synchronous>, transform_indices = @transform_4, window_bounds = array<i64: 3, 1>}, {transform_indices = @transform_5, window_bounds = array<i64: 1, 3, 1156>}]} {
    %0 = tpu.iota {dimensions = array<i32: 1>} : vector<1x1086xi32>
    %c35_i32 = arith.constant 35 : i32
    %1 = vector.broadcast %c35_i32 : i32 to vector<1x1086xi32>
    %2 = arith.addi %0, %1 : vector<1x1086xi32>
    %3 = arith.sitofp %2 : vector<1x1086xi32> to vector<1x1086xf32>
    %cst = arith.constant 5.000000e-01 : f32
    %4 = vector.broadcast %cst : f32 to vector<1x1086xf32>
    %5 = arith.addf %3, %4 : vector<1x1086xf32>
    %cst_0 = arith.constant 3.400000e+01 : f32
    %6 = vector.broadcast %cst_0 : f32 to vector<1x1086xf32>
    %7 = arith.divf %5, %6 : vector<1x1086xf32>
    %8 = math.floor %7 : vector<1x1086xf32>
    %cst_1 = arith.constant 3.400000e+01 : f32
    %9 = vector.broadcast %cst_1 : f32 to vector<1x1086xf32>
    %10 = arith.mulf %8, %9 : vector<1x1086xf32>
    %11 = arith.subf %3, %10 : vector<1x1086xf32>
    %cst_2 = arith.constant 5.000000e-01 : f32
    %12 = vector.broadcast %cst_2 : f32 to vector<1x1086xf32>
    %13 = arith.cmpf ogt, %8, %12 : vector<1x1086xf32>
    %cst_3 = arith.constant 3.250000e+01 : f32
    %14 = vector.broadcast %cst_3 : f32 to vector<1x1086xf32>
    %15 = arith.cmpf olt, %8, %14 : vector<1x1086xf32>
    %16 = arith.andi %13, %15 : vector<1x1086xi1>
    %cst_4 = arith.constant 5.000000e-01 : f32
    %17 = vector.broadcast %cst_4 : f32 to vector<1x1086xf32>
    %18 = arith.cmpf ogt, %11, %17 : vector<1x1086xf32>
    %19 = arith.andi %16, %18 : vector<1x1086xi1>
    %cst_5 = arith.constant 3.250000e+01 : f32
    %20 = vector.broadcast %cst_5 : f32 to vector<1x1086xf32>
    %21 = arith.cmpf olt, %11, %20 : vector<1x1086xf32>
    %22 = arith.andi %19, %21 : vector<1x1086xi1>
    %23 = arith.extui %22 : vector<1x1086xi1> to vector<1x1086xi32>
    %24 = arith.sitofp %23 : vector<1x1086xi32> to vector<1x1086xf32>
    %c0 = arith.constant 0 : index
    %c0_6 = arith.constant 0 : index
    %c0_7 = arith.constant 0 : index
    %25 = vector.load %arg1[%c0, %c0_6, %c0_7] : memref<1x8x1156xbf16, #tpu.memory_space<vmem>>, vector<1x8x1086xbf16>
    %26 = vector.shape_cast %25 : vector<1x8x1086xbf16> to vector<8x1086xbf16>
    %c0_8 = arith.constant 0 : index
    %c0_9 = arith.constant 0 : index
    %c0_10 = arith.constant 0 : index
    %c0_11 = arith.constant 0 : index
    %27 = vector.load %arg2[%c0_8, %c0_9, %c0_10, %c0_11] : memref<3x3x3x8xbf16, #tpu.memory_space<vmem>>, vector<1x1x3x8xbf16>
    %28 = vector.shape_cast %27 : vector<1x1x3x8xbf16> to vector<3x8xbf16>
    %cst_12 = arith.constant dense<0.000000e+00> : vector<3x1086xf32>
    %29 = tpu.matmul %28, %26, %cst_12 {dimension_numbers = #tpu.dot_dimension_numbers<[1], [0], [0], [1], [0, 0, 1, 1], [], []>} : vector<3x8xbf16>, vector<8x1086xbf16>, vector<3x1086xf32> -> vector<3x1086xf32>
    %c0_13 = arith.constant 0 : index
    %c0_14 = arith.constant 0 : index
    %c1 = arith.constant 1 : index
    %30 = vector.load %arg1[%c0_13, %c0_14, %c1] : memref<1x8x1156xbf16, #tpu.memory_space<vmem>>, vector<1x8x1086xbf16>
    %31 = vector.shape_cast %30 : vector<1x8x1086xbf16> to vector<8x1086xbf16>
    %c0_15 = arith.constant 0 : index
    %c1_16 = arith.constant 1 : index
    %c0_17 = arith.constant 0 : index
    %c0_18 = arith.constant 0 : index
    %32 = vector.load %arg2[%c0_15, %c1_16, %c0_17, %c0_18] : memref<3x3x3x8xbf16, #tpu.memory_space<vmem>>, vector<1x1x3x8xbf16>
    %33 = vector.shape_cast %32 : vector<1x1x3x8xbf16> to vector<3x8xbf16>
    %cst_19 = arith.constant dense<0.000000e+00> : vector<3x1086xf32>
    %34 = tpu.matmul %33, %31, %cst_19 {dimension_numbers = #tpu.dot_dimension_numbers<[1], [0], [0], [1], [0, 0, 1, 1], [], []>} : vector<3x8xbf16>, vector<8x1086xbf16>, vector<3x1086xf32> -> vector<3x1086xf32>
    %35 = arith.addf %29, %34 : vector<3x1086xf32>
    %c0_20 = arith.constant 0 : index
    %c0_21 = arith.constant 0 : index
    %c2 = arith.constant 2 : index
    %36 = vector.load %arg1[%c0_20, %c0_21, %c2] : memref<1x8x1156xbf16, #tpu.memory_space<vmem>>, vector<1x8x1086xbf16>
    %37 = vector.shape_cast %36 : vector<1x8x1086xbf16> to vector<8x1086xbf16>
    %c0_22 = arith.constant 0 : index
    %c2_23 = arith.constant 2 : index
    %c0_24 = arith.constant 0 : index
    %c0_25 = arith.constant 0 : index
    %38 = vector.load %arg2[%c0_22, %c2_23, %c0_24, %c0_25] : memref<3x3x3x8xbf16, #tpu.memory_space<vmem>>, vector<1x1x3x8xbf16>
    %39 = vector.shape_cast %38 : vector<1x1x3x8xbf16> to vector<3x8xbf16>
    %cst_26 = arith.constant dense<0.000000e+00> : vector<3x1086xf32>
    %40 = tpu.matmul %39, %37, %cst_26 {dimension_numbers = #tpu.dot_dimension_numbers<[1], [0], [0], [1], [0, 0, 1, 1], [], []>} : vector<3x8xbf16>, vector<8x1086xbf16>, vector<3x1086xf32> -> vector<3x1086xf32>
    %41 = arith.addf %35, %40 : vector<3x1086xf32>
    %c0_27 = arith.constant 0 : index
    %c0_28 = arith.constant 0 : index
    %c34 = arith.constant 34 : index
    %42 = vector.load %arg1[%c0_27, %c0_28, %c34] : memref<1x8x1156xbf16, #tpu.memory_space<vmem>>, vector<1x8x1086xbf16>
    %43 = vector.shape_cast %42 : vector<1x8x1086xbf16> to vector<8x1086xbf16>
    %c1_29 = arith.constant 1 : index
    %c0_30 = arith.constant 0 : index
    %c0_31 = arith.constant 0 : index
    %c0_32 = arith.constant 0 : index
    %44 = vector.load %arg2[%c1_29, %c0_30, %c0_31, %c0_32] : memref<3x3x3x8xbf16, #tpu.memory_space<vmem>>, vector<1x1x3x8xbf16>
    %45 = vector.shape_cast %44 : vector<1x1x3x8xbf16> to vector<3x8xbf16>
    %cst_33 = arith.constant dense<0.000000e+00> : vector<3x1086xf32>
    %46 = tpu.matmul %45, %43, %cst_33 {dimension_numbers = #tpu.dot_dimension_numbers<[1], [0], [0], [1], [0, 0, 1, 1], [], []>} : vector<3x8xbf16>, vector<8x1086xbf16>, vector<3x1086xf32> -> vector<3x1086xf32>
    %47 = arith.addf %41, %46 : vector<3x1086xf32>
    %c0_34 = arith.constant 0 : index
    %c0_35 = arith.constant 0 : index
    %c35 = arith.constant 35 : index
    %48 = vector.load %arg1[%c0_34, %c0_35, %c35] : memref<1x8x1156xbf16, #tpu.memory_space<vmem>>, vector<1x8x1086xbf16>
    %49 = vector.shape_cast %48 : vector<1x8x1086xbf16> to vector<8x1086xbf16>
    %c1_36 = arith.constant 1 : index
    %c1_37 = arith.constant 1 : index
    %c0_38 = arith.constant 0 : index
    %c0_39 = arith.constant 0 : index
    %50 = vector.load %arg2[%c1_36, %c1_37, %c0_38, %c0_39] : memref<3x3x3x8xbf16, #tpu.memory_space<vmem>>, vector<1x1x3x8xbf16>
    %51 = vector.shape_cast %50 : vector<1x1x3x8xbf16> to vector<3x8xbf16>
    %cst_40 = arith.constant dense<0.000000e+00> : vector<3x1086xf32>
    %52 = tpu.matmul %51, %49, %cst_40 {dimension_numbers = #tpu.dot_dimension_numbers<[1], [0], [0], [1], [0, 0, 1, 1], [], []>} : vector<3x8xbf16>, vector<8x1086xbf16>, vector<3x1086xf32> -> vector<3x1086xf32>
    %53 = arith.addf %47, %52 : vector<3x1086xf32>
    %c0_41 = arith.constant 0 : index
    %c0_42 = arith.constant 0 : index
    %c36 = arith.constant 36 : index
    %54 = vector.load %arg1[%c0_41, %c0_42, %c36] : memref<1x8x1156xbf16, #tpu.memory_space<vmem>>, vector<1x8x1086xbf16>
    %55 = vector.shape_cast %54 : vector<1x8x1086xbf16> to vector<8x1086xbf16>
    %c1_43 = arith.constant 1 : index
    %c2_44 = arith.constant 2 : index
    %c0_45 = arith.constant 0 : index
    %c0_46 = arith.constant 0 : index
    %56 = vector.load %arg2[%c1_43, %c2_44, %c0_45, %c0_46] : memref<3x3x3x8xbf16, #tpu.memory_space<vmem>>, vector<1x1x3x8xbf16>
    %57 = vector.shape_cast %56 : vector<1x1x3x8xbf16> to vector<3x8xbf16>
    %cst_47 = arith.constant dense<0.000000e+00> : vector<3x1086xf32>
    %58 = tpu.matmul %57, %55, %cst_47 {dimension_numbers = #tpu.dot_dimension_numbers<[1], [0], [0], [1], [0, 0, 1, 1], [], []>} : vector<3x8xbf16>, vector<8x1086xbf16>, vector<3x1086xf32> -> vector<3x1086xf32>
    %59 = arith.addf %53, %58 : vector<3x1086xf32>
    %c0_48 = arith.constant 0 : index
    %c0_49 = arith.constant 0 : index
    %c68 = arith.constant 68 : index
    %60 = vector.load %arg1[%c0_48, %c0_49, %c68] : memref<1x8x1156xbf16, #tpu.memory_space<vmem>>, vector<1x8x1086xbf16>
    %61 = vector.shape_cast %60 : vector<1x8x1086xbf16> to vector<8x1086xbf16>
    %c2_50 = arith.constant 2 : index
    %c0_51 = arith.constant 0 : index
    %c0_52 = arith.constant 0 : index
    %c0_53 = arith.constant 0 : index
    %62 = vector.load %arg2[%c2_50, %c0_51, %c0_52, %c0_53] : memref<3x3x3x8xbf16, #tpu.memory_space<vmem>>, vector<1x1x3x8xbf16>
    %63 = vector.shape_cast %62 : vector<1x1x3x8xbf16> to vector<3x8xbf16>
    %cst_54 = arith.constant dense<0.000000e+00> : vector<3x1086xf32>
    %64 = tpu.matmul %63, %61, %cst_54 {dimension_numbers = #tpu.dot_dimension_numbers<[1], [0], [0], [1], [0, 0, 1, 1], [], []>} : vector<3x8xbf16>, vector<8x1086xbf16>, vector<3x1086xf32> -> vector<3x1086xf32>
    %65 = arith.addf %59, %64 : vector<3x1086xf32>
    %c0_55 = arith.constant 0 : index
    %c0_56 = arith.constant 0 : index
    %c69 = arith.constant 69 : index
    %66 = vector.load %arg1[%c0_55, %c0_56, %c69] : memref<1x8x1156xbf16, #tpu.memory_space<vmem>>, vector<1x8x1086xbf16>
    %67 = vector.shape_cast %66 : vector<1x8x1086xbf16> to vector<8x1086xbf16>
    %c2_57 = arith.constant 2 : index
    %c1_58 = arith.constant 1 : index
    %c0_59 = arith.constant 0 : index
    %c0_60 = arith.constant 0 : index
    %68 = vector.load %arg2[%c2_57, %c1_58, %c0_59, %c0_60] : memref<3x3x3x8xbf16, #tpu.memory_space<vmem>>, vector<1x1x3x8xbf16>
    %69 = vector.shape_cast %68 : vector<1x1x3x8xbf16> to vector<3x8xbf16>
    %cst_61 = arith.constant dense<0.000000e+00> : vector<3x1086xf32>
    %70 = tpu.matmul %69, %67, %cst_61 {dimension_numbers = #tpu.dot_dimension_numbers<[1], [0], [0], [1], [0, 0, 1, 1], [], []>} : vector<3x8xbf16>, vector<8x1086xbf16>, vector<3x1086xf32> -> vector<3x1086xf32>
    %71 = arith.addf %65, %70 : vector<3x1086xf32>
    %c0_62 = arith.constant 0 : index
    %c0_63 = arith.constant 0 : index
    %c70 = arith.constant 70 : index
    %72 = vector.load %arg1[%c0_62, %c0_63, %c70] : memref<1x8x1156xbf16, #tpu.memory_space<vmem>>, vector<1x8x1086xbf16>
    %73 = vector.shape_cast %72 : vector<1x8x1086xbf16> to vector<8x1086xbf16>
    %c2_64 = arith.constant 2 : index
    %c2_65 = arith.constant 2 : index
    %c0_66 = arith.constant 0 : index
    %c0_67 = arith.constant 0 : index
    %74 = vector.load %arg2[%c2_64, %c2_65, %c0_66, %c0_67] : memref<3x3x3x8xbf16, #tpu.memory_space<vmem>>, vector<1x1x3x8xbf16>
    %75 = vector.shape_cast %74 : vector<1x1x3x8xbf16> to vector<3x8xbf16>
    %cst_68 = arith.constant dense<0.000000e+00> : vector<3x1086xf32>
    %76 = tpu.matmul %75, %73, %cst_68 {dimension_numbers = #tpu.dot_dimension_numbers<[1], [0], [0], [1], [0, 0, 1, 1], [], []>} : vector<3x8xbf16>, vector<8x1086xbf16>, vector<3x1086xf32> -> vector<3x1086xf32>
    %77 = arith.addf %71, %76 : vector<3x1086xf32>
    %c0_69 = arith.constant 0 : index
    %c0_70 = arith.constant 0 : index
    %78 = vector.load %arg3[%c0_69, %c0_70] : memref<3x1xf32, #tpu.memory_space<vmem>>, vector<3x1xf32>
    %79 = vector.broadcast %78 : vector<3x1xf32> to vector<3x1086xf32>
    %80 = arith.addf %77, %79 : vector<3x1086xf32>
    %81 = vector.broadcast %24 : vector<1x1086xf32> to vector<3x1086xf32>
    %82 = arith.mulf %80, %81 : vector<3x1086xf32>
    %c0_71 = arith.constant 0 : index
    %c0_72 = arith.constant 0 : index
    %83 = vector.load %arg4[%c0_71, %c0_72] : memref<3x1xf32, #tpu.memory_space<vmem>>, vector<3x1xf32>
    %84 = vector.broadcast %83 : vector<3x1xf32> to vector<3x1086xf32>
    %85 = arith.mulf %82, %84 : vector<3x1086xf32>
    %c0_73 = arith.constant 0 : index
    %c0_74 = arith.constant 0 : index
    %86 = vector.load %arg5[%c0_73, %c0_74] : memref<3x1xf32, #tpu.memory_space<vmem>>, vector<3x1xf32>
    %87 = vector.broadcast %86 : vector<3x1xf32> to vector<3x1086xf32>
    %88 = arith.addf %85, %87 : vector<3x1086xf32>
    %89 = vector.broadcast %24 : vector<1x1086xf32> to vector<3x1086xf32>
    %90 = arith.mulf %88, %89 : vector<3x1086xf32>
    %c0_75 = arith.constant 0 : index
    %c0_76 = arith.constant 0 : index
    %c35_77 = arith.constant 35 : index
    %91 = vector.load %arg6[%c0_75, %c0_76, %c35_77] : memref<1x3x1156xf32, #tpu.memory_space<vmem>>, vector<1x3x1086xf32>
    %92 = vector.shape_cast %91 : vector<1x3x1086xf32> to vector<3x1086xf32>
    %93 = vector.shape_cast %90 : vector<3x1086xf32> to vector<1x3x1086xf32>
    tpu.vector_store %arg6[%c0_75, %c0_76, %c35_77], %93 {strides = array<i32>} : memref<1x3x1156xf32, #tpu.memory_space<vmem>>, vector<1x3x1086xf32>,
    %cst_78 = arith.constant 0.000000e+00 : f32
    %94 = vector.broadcast %cst_78 : f32 to vector<3x35xf32>
    %c0_79 = arith.constant 0 : index
    %c0_80 = arith.constant 0 : index
    %c0_81 = arith.constant 0 : index
    %95 = vector.load %arg6[%c0_79, %c0_80, %c0_81] : memref<1x3x1156xf32, #tpu.memory_space<vmem>>, vector<1x3x35xf32>
    %96 = vector.shape_cast %95 : vector<1x3x35xf32> to vector<3x35xf32>
    %97 = vector.shape_cast %94 : vector<3x35xf32> to vector<1x3x35xf32>
    tpu.vector_store %arg6[%c0_79, %c0_80, %c0_81], %97 {strides = array<i32>} : memref<1x3x1156xf32, #tpu.memory_space<vmem>>, vector<1x3x35xf32>,
    %cst_82 = arith.constant 0.000000e+00 : f32
    %98 = vector.broadcast %cst_82 : f32 to vector<3x35xf32>
    %c0_83 = arith.constant 0 : index
    %c0_84 = arith.constant 0 : index
    %c1121 = arith.constant 1121 : index
    %99 = vector.load %arg6[%c0_83, %c0_84, %c1121] : memref<1x3x1156xf32, #tpu.memory_space<vmem>>, vector<1x3x35xf32>
    %100 = vector.shape_cast %99 : vector<1x3x35xf32> to vector<3x35xf32>
    %101 = vector.shape_cast %98 : vector<3x35xf32> to vector<1x3x35xf32>
    tpu.vector_store %arg6[%c0_83, %c0_84, %c1121], %101 {strides = array<i32>} : memref<1x3x1156xf32, #tpu.memory_space<vmem>>, vector<1x3x35xf32>,
    return
  }
  func.func @transform_0(%arg0: i32) -> (i32, i32, i32) {
    %c0_i32 = arith.constant 0 : i32
    %c0_i32_0 = arith.constant 0 : i32
    %c0_i32_1 = arith.constant 0 : i32
    return %arg0, %c0_i32, %c0_i32_0 : i32, i32, i32
  }
  func.func @transform_1(%arg0: i32) -> (i32, i32, i32, i32) {
    %c0_i32 = arith.constant 0 : i32
    %c0_i32_0 = arith.constant 0 : i32
    %c0_i32_1 = arith.constant 0 : i32
    %c0_i32_2 = arith.constant 0 : i32
    %c0_i32_3 = arith.constant 0 : i32
    return %c0_i32, %c0_i32_0, %c0_i32_1, %c0_i32_2 : i32, i32, i32, i32
  }
  func.func @transform_2(%arg0: i32) -> (i32, i32) {
    %c0_i32 = arith.constant 0 : i32
    %c0_i32_0 = arith.constant 0 : i32
    %c0_i32_1 = arith.constant 0 : i32
    return %c0_i32, %c0_i32_0 : i32, i32
  }
  func.func @transform_3(%arg0: i32) -> (i32, i32) {
    %c0_i32 = arith.constant 0 : i32
    %c0_i32_0 = arith.constant 0 : i32
    %c0_i32_1 = arith.constant 0 : i32
    return %c0_i32, %c0_i32_0 : i32, i32
  }
  func.func @transform_4(%arg0: i32) -> (i32, i32) {
    %c0_i32 = arith.constant 0 : i32
    %c0_i32_0 = arith.constant 0 : i32
    %c0_i32_1 = arith.constant 0 : i32
    return %c0_i32, %c0_i32_0 : i32, i32
  }
  func.func @transform_5(%arg0: i32) -> (i32, i32, i32) {
    %c0_i32 = arith.constant 0 : i32
    %c0_i32_0 = arith.constant 0 : i32
    %c0_i32_1 = arith.constant 0 : i32
    return %arg0, %c0_i32, %c0_i32_0 : i32, i32, i32
  }
}

</mosaic_0001>

<bundles_post_ra>
// kernel: _lambda_.9
= control target key start
LH: loop header
LB: loop body
LE: loop exit
PB: predicated region body
PF: predicated region fallthrough
CT: control target
= control target key end

     0   :  { %s2002_s24 = smov 0   ;;  %s2243_s0 = inlined_call_operand.vmem [shape: bf16[2,8,324], index: 0, kind: input, shape index: {}]   ;;  %s2244_s1 = inlined_call_operand.vmem [shape: bf16[2,8,324], index: 1, kind: input, shape index: {}]   ;;  %s2245_s2 = inlined_call_operand.vmem [shape: bf16[2,8,324], index: 2, kind: input, shape index: {}]   ;;  %s2246_s3 = inlined_call_operand.vmem [shape: bf16[8,16], index: 3, kind: input, shape index: {}]   ;;  %s2247_s4 = inlined_call_operand.vmem [shape: f32[8,1], index: 4, kind: input, shape index: {}]   ;;  %s2248_s5 = inlined_call_operand.vmem [shape: bf16[3,3,8,8], index: 5, kind: input, shape index: {}]   ;;  %s2249_s6 = inlined_call_operand.vmem [shape: f32[8,1], index: 6, kind: input, shape index: {}]   ;;  %s2250_s7 = inlined_call_operand.vmem [shape: bf16[2,8,324], index: 7, kind: output, shape index: {}]  }
   0x1 LB: > { %s1741_s25 = sadd.s32 4294967295, %s1947_s24   ;;  %p1745_p0 = scmp.ge.s32.totalorder %s1947_s24, 1  ;;  %s1947_s24 = sphi %s2002_s24, %s17_s24  }
   0x2   : > { %p257_p1 = scmp.lt.s32.totalorder %s1947_s24, 3 }
   0x4   : > { %p258_p2 = pnand %p1745_p0, %p257_p1 }
   0x5   : > { %p299_p3 = scmp.lt.s32.totalorder (!%p258_p2), %s1741_s25, 1  ;;  %v1949_v0 = vmov (!%p258_p2), 0.0   ;;  %vm2252_vm0 = vmmov (!%p258_p2), 0   ;;  %v1951_v1 = vmov (!%p258_p2), 0   ;;  %v375_v2 = vld [vmem:[%s2246_s3] sm:$0xf] (!%p258_p2)  ;;  %v320_v28 = vlaneseq (!%p258_p2) }
   0x6   : > { %261 = sbr.rel (%p258_p2) target bundleno = 1036 (0x40c), region = 48  ;;  %1836 = vmatprep.subr.bf16.mxu1 (!%p258_p2), %v1949_v0  ;;  %1838 = vmatprep.mubr.msk.bf16.mxu1 (!%p258_p2), %vm2252_vm0, %v1949_v0  ;;  %s1952_s12 = smov (!%p258_p2), 109   ;;  %v1753_v6 = vcombine.low (!%p258_p2), %v375_v2, %v375_v2  ;;  %v604_v12 = vld [vmem:[%s2247_s4] sm:$0xff] (!%p258_p2)  ;;  %vm2255_vm1 = vcmask (!%p258_p2), 1043456   ;;  %vm2254_vm2 = vcmask (!%p258_p2), 64512   ;;  %vm2251_vm3 = vcmask (!%p258_p2), 891904  }
   0x7   : > { %446 = vmatprep.mubr.bf16.mxu0 (!%p258_p2), %v1951_v1  ;;  %1924 = vset.pattern.permute.xlu1 (!%p258_p2), %v1951_v1  ;;  %s1953_s13 = smov (!%p258_p2), 120   ;;  %v321_v29 = vand.u32 (!%p258_p2), 127, %v320_v28  ;;  %s1954_s16 = smov (!%p258_p2), 19  }
   0x8   : > { %1925 = vset.pattern.permute.xlu0 (!%p258_p2), %v1951_v1  ;;  %s1955_s17 = smov (!%p258_p2), 127   ;;  %s1956_s18 = smov (!%p258_p2), 126  }
   0x9   : > { %v323_v30 = vadd.s32 (!%p258_p2), 256, %v321_v29  ;;  %v322_v31 = vadd.s32 (!%p258_p2), 128, %v321_v29  ;;  %v324_v33 = vadd.s32 (!%p258_p2), 19, %v321_v29  ;;  %s1957_s19 = smov (!%p258_p2), 110   ;;  %s1958_s20 = smov (!%p258_p2), 108  }
   0xa   : > { %s1959_s21 = smov (!%p258_p2), 92   ;;  %s1960_s22 = smov (!%p258_p2), 91  }
   0xb   : > { %v326_v32 = vadd.s32 (!%p258_p2), 19, %v323_v30  ;;  %v325_v34 = vadd.s32 (!%p258_p2), 19, %v322_v31  ;;  %v327_v36 = vcvt.s32.f32 (!%p258_p2), %v324_v33  ;;  %s1961_s23 = smov (!%p258_p2), 90  }
   0xd   : > { %s2304_s25 = smov (!%p299_p3, %s1741_s25), 1  ;;  %v329_v35 = vcvt.s32.f32 %v326_v32  ;;  %v328_v37 = vcvt.s32.f32 %v325_v34  ;;  %v330_v39 = vadd.f32 0.5, %v327_v36  ;;  %v1608_v32 = vld [vmem:[%s2249_s6] sm:$0xff] }
   0xe   : > { %s2013_s26 = smul.u32 12, %s2304_s25 }
   0xf   : > { %v332_v38 = vadd.f32 0.5, %v329_v35  ;;  %v331_v40 = vadd.f32 0.5, %v328_v37  ;;  %v334_v42 = vmul.f32 0.055555556, %v330_v39 }
  0x10   : > { %s308_s29 = scalar_lea.vmem %s2244_s1, %s2013_s26  ;;  %s303_s11 = scalar_lea.vmem %s2243_s0, %s2013_s26 }
  0x11   : > { %v1931_v3 = vld [vmem:[%s308_s29 + $0x8] ss:$0 sps:$4 sm:$0xff]   ;;  %v376_v4 = vld [vmem:[%s308_s29] sm:$0xff]  ;;  %v336_v41 = vmul.f32 0.055555556, %v332_v38  ;;  %v337_v45 = vfloor.f32 %v334_v42  ;;  %s313_s30 = scalar_lea.vmem %s2245_s2, %s2013_s26  ;;  %s318_s8 = scalar_lea.vmem %s2250_s7, %s2013_s26 }
  0x12   : > { %v1754_v5 = vcombine.low %v376_v4, %v376_v4  ;;  %395 = vrot.lane.b32.xlu1 %v1931_v3, %s1952_s12  ;;  %v1755_v7 = vcombine.high %v376_v4, %v376_v4  ;;  %v373_v8 = vld [vmem:[%s303_s11] sm:$0xff]  ;;  %v1937_v11 = vld [vmem:[%s303_s11 + $0x8] ss:$0 sps:$4 sm:$0xff]   ;;  %v335_v43 = vmul.f32 0.055555556, %v331_v40 }
  0x13   : > { %v1761_v9 = vcombine.high %v373_v8, %v373_v8  ;;  %v1760_v10 = vcombine.low %v373_v8, %v373_v8  ;;  %v339_v44 = vfloor.f32 %v336_v41  ;;  %v340_v48 = vmul.f32 18.0, %v337_v45  ;;  %v647_v33 = vld [vmem:[%s313_s30] sm:$0xff] }
  0x14   : > { %391 = vrot.lane.b32.xlu0 %v1754_v5, %s1952_s12  ;;  %v338_v46 = vfloor.f32 %v335_v43  ;;  %vm346_vm6 = vcmp.gt.f32.partialorder %v337_v45, 0.5  ;;  %vm349_vm7 = vcmp.lt.f32.partialorder %v337_v45, 16.5  ;;  %v649_v34 = vunpack.c.l.bf16 %v647_v33 }
  0x15   : > { %v342_v47 = vmul.f32 18.0, %v339_v44  ;;  %v343_v55 = vsub.f32 %v327_v36, %v340_v48  ;;  %vm348_vm4 = vcmp.gt.f32.partialorder %v339_v44, 0.5  ;;  %vm351_vm5 = vcmp.lt.f32.partialorder %v339_v44, 16.5  ;;  %vm352_vm12 = vmand %vm346_vm6, %vm349_vm7  ;;  %v648_v36 = vld [vmem:[%s313_s30 + $0x8] sm:$0xf] }
  0x16   : > { %381 = vrot.lane.b32.xlu1 %v1753_v6, %s1953_s13  ;;  %v341_v50 = vmul.f32 18.0, %v338_v46  ;;  %vm347_vm8 = vcmp.gt.f32.partialorder %v338_v46, 0.5  ;;  %vm350_vm9 = vcmp.lt.f32.partialorder %v338_v46, 16.5  ;;  %vm354_vm10 = vmand %vm348_vm4, %vm351_vm5  ;;  %v651_v38 = vunpack.c.l.bf16 %v648_v36  ;;  %v1794_v36 = vld [vmem:[%s2248_s5 + $0x18] sm:$0xf] }
  0x17   : > { %v345_v53 = vsub.f32 %v329_v35, %v342_v47  ;;  %vm355_vm13 = vcmp.gt.f32.partialorder %v343_v55, 0.5  ;;  %vm353_vm14 = vmand %vm347_vm8, %vm350_vm9  ;;  %vm641_vm9 = vcmask 396288   ;;  %v650_v35 = vunpack.c.h.bf16 %v647_v33  ;;  %v1768_v47 = vld [vmem:[%s2248_s5 + $0x4] sm:$0xf] }
  0x18   : > { %393 = vrot.lane.b32.xlu0 %v1755_v7, %s1952_s12  ;;  %v344_v56 = vsub.f32 %v328_v37, %v341_v50 }
  0x19   : > { %vm357_vm11 = vcmp.gt.f32.partialorder %v345_v53, 0.5  ;;  %v1926_v37 = vpack.i.bf16 %v650_v35, %v649_v34 }
  0x1a   : > { %505 = vrot.lane.b32.xlu1 %v1761_v9, %s1952_s12  ;;  %vm356_vm15 = vcmp.gt.f32.partialorder %v344_v56, 0.5  ;;  %vm362_vm5 = vcmp.lt.f32.partialorder %v344_v56, 16.5 }
  0x1b   : > { %vm359_vm4 = vmand %vm353_vm14, %vm356_vm15 }
  0x1c   : > { %503 = vrot.lane.b32.xlu0 %v1760_v10, %s1952_s12  ;;  %vm365_vm8 = vmand %vm359_vm4, %vm362_vm5 }
  0x1e   : > { %607 = vperm.xlu1 %1924, %v604_v12  }
  0x20   : > { %507 = vrot.lane.b32.xlu0 %v1937_v11, %s1952_s12 }
  0x84   : > { %v396_v13 = vpop.permute.xlu1 %395 }
  0x85   : > { %v412_v15 = vsel %vm2255_vm1, %v396_v13, 0 }
  0x86   : > { %v392_v14 = vpop.permute.xlu0 %391  ;;  %1837 = vmatpush3.bf16.msra.mxu1 %v412_v15 }
  0x87   : > { %1842 = vmatprep.subr.bf16.mxu1 %v1949_v0 }
  0x88   : > { %v382_v16 = vpop.permute.xlu1 %381 }
  0x89   : > { %1839 = vmatmul.mubr.msk.bf16.vlgmr.msra.gmra.mrb[0].mxu1 %vm2254_vm2, %v382_v16 }
  0x8a   : > { %v394_v17 = vpop.permute.xlu0 %393  ;;  %1844 = vmatprep.mubr.msk.bf16.mxu1 %vm2252_vm0, %v1949_v0 }
  0x8b   : > { %v399_v18 = vsel %vm2251_vm3, %v394_v17, %v396_v13  ;;  %v398_v19 = vsel %vm2251_vm3, %v392_v14, %v394_v17  ;;  %v2067_v14 = vsel %vm365_vm8, 1.0, %v1949_v0 }
  0x8c   : > { %1757 = vmatprep.subr.msk.bf16.mxu0 %vm2255_vm1, %v399_v18  ;;  %v406_v20 = vsel %vm2255_vm1, %v398_v19, 0  ;;  %v506_v21 = vpop.permute.xlu1 %505 }
  0x8d   : > { %415 = vmatpush1.bf16.msra.mxu0 %v406_v20 }
  0x8e   : > { %v504_v22 = vpop.permute.xlu0 %503 }
  0x8f   : > { %v509_v23 = vsel %vm2251_vm3, %v504_v22, %v506_v21 }
  0x90   : > { %1758 = vmatmul.mubr.msk.bf16.vlgmr.msra.gmra.mrb[0].mxu0 %vm2254_vm2, %v382_v16  ;;  %v515_v27 = vsel %vm2255_vm1, %v509_v23, 0 }
  0x91   : > { %555 = vmatprep.mubr.bf16.mxu0 %v1951_v1 }
  0x92   : > { %v508_v24 = vpop.permute.xlu0 %507 }
  0x93   : > { %v510_v25 = vsel %vm2251_vm3, %v506_v21, %v508_v24  ;;  %v521_v26 = vsel %vm2255_vm1, %v508_v24, 0  ;;  %vm360_vm3 = vmand %vm354_vm10, %vm357_vm11  ;;  %vm643_vm10 = vcmask 150528   ;;  %vm645_vm11 = vcmask 552328  }
  0x94   : > { %1763 = vmatprep.subr.msk.bf16.mxu0 %vm2255_vm1, %v510_v25  ;;  %1843 = vmatpush3.bf16.msra.mxu1 %v521_v26  ;;  %vm361_vm1 = vcmp.lt.f32.partialorder %v343_v55, 16.5  ;;  %v654_v55 = vld [vmem:[%s2248_s5] sm:$0xf] }
  0x95   : > { %524 = vmatpush1.bf16.msra.mxu0 %v515_v27  ;;  %1848 = vmatprep.subr.bf16.mxu1 %v1949_v0 }
  0x97   : > { %1845 = vmatmul.mubr.msk.bf16.vlgmr.msra.gmra.mrb[4].mxu1 %vm2254_vm2, %v375_v2 }
  0x98   : > { %1764 = vmatmul.mubr.msk.bf16.vlgmr.msra.gmra.mrb[4].mxu0 %vm2254_vm2, %v375_v2  ;;  %1850 = vmatprep.mubr.msk.bf16.mxu1 %vm2252_vm0, %v1949_v0  ;;  %vm363_vm0 = vcmp.lt.f32.partialorder %v345_v53, 16.5  ;;  %vm358_vm2 = vmand %vm352_vm12, %vm355_vm13  ;;  %vm671_vm12 = vcmask 1039360   ;;  %vm2258_vm13 = vcmask 1043456  }
  0x99   : > { %718 = vmatprep.mubr.bf16.mxu0 %v1951_v1  ;;  %vm366_vm6 = vmand %vm360_vm3, %vm363_vm0  ;;  %vm637_vm0 = vcmask 1043608  }
  0x9a   : > { %vm364_vm7 = vmand %vm358_vm2, %vm361_vm1  ;;  %v2061_v7 = vsel %vm366_vm6, 1.0, %v1949_v0  ;;  %vm638_vm1 = vcmask 1047556   ;;  %vm632_vm2 = vcmask 154624   ;;  %vm868_vm6 = vcmask 1031168  }
  0x9b   : > { %v2064_v8 = vsel %vm364_vm7, 1.0, %v1949_v0  ;;  %vm2074_vm3 = vmor %vm638_vm1, %vm637_vm0  ;;  %vm2263_vm7 = vcmask 64512   ;;  %vm2266_vm1 = vmmov 0  }
  0x9c   : > { %vm2259_vm14 = vmmov %vm2258_vm13 }
  0x9d   : > { %v608_v62 = vpop.permute.xlu1 %607  ;;  %vm2260_vm15 = vmmov %vm2258_vm13 }
  0x9e   : > { %vm2261_vm4 = vmmov %vm2258_vm13 }
  0x9f   : > { %vm2262_vm5 = vmmov %vm2261_vm4 }
  0xa0   : > { %vm2264_vm8 = vmmov %vm2263_vm7 }
  0xa1   : > { %vm2265_vm0 = vmmov %vm2261_vm4 }
 0x15c   : > { %v489_v49 = vpop.f32.mrb[0].mxu1 }
 0x15d   : > { %v1840_v51 = vpop.f32.mrb[1].mxu1 }
 0x15e   : > { %v492_v52 = vpop.f32.mrb[2].mxu1 }
 0x15f   : > { %v1841_v54 = vpop.f32.mrb[3].mxu1 }
 0x163   : > { %v448_v57 = vpop.f32.mrb[0].mxu0 }
 0x164   : > { %v450_v58 = vpop.f32.mrb[1].mxu0 }
 0x165   : > { %v452_v59 = vpop.f32.mrb[2].mxu0 }
 0x166   : > { %v453_v60 = vpop.f32.mrb[3].mxu0 }
 0x16a   : > { %v598_v61 = vpop.f32.mrb[4].mxu1 }
 0x16b   : > { %v599_v63 = vadd.f32 %v598_v61, %v489_v49  ;;  %v557_v2 = vpop.f32.mrb[4].mxu0  ;;  %v1846_v3 = vpop.f32.mrb[5].mxu1 }
 0x16c   : > { %v558_v4 = vadd.f32 %v557_v2, %v448_v57  ;;  %v559_v5 = vpop.f32.mrb[5].mxu0  ;;  %v601_v6 = vpop.f32.mrb[6].mxu1  ;;  %v1778_v2 = vld [vmem:[%s2248_s5 + $0x8] sm:$0xf] }
 0x16d   : > { %v612_v9 = vadd.f32 %v608_v62, %v599_v63  ;;  %v560_v10 = vadd.f32 %v559_v5, %v450_v58  ;;  %v561_v11 = vpop.f32.mrb[6].mxu0  ;;  %v1847_v12 = vpop.f32.mrb[7].mxu1 }
 0x16e   : > { %v610_v13 = vadd.f32 %v608_v62, %v558_v4  ;;  %v562_v15 = vpop.f32.mrb[7].mxu0  ;;  %v1782_v12 = vld [vmem:[%s2248_s5 + $0xc] sm:$0xf] }
 0x16f   : > { %v611_v16 = vadd.f32 %v608_v62, %v560_v10  ;;  %v615_v17 = vmul.f32 %v2061_v7, %v612_v9 }
 0x170   : > { %v613_v18 = vmul.f32 %v2064_v8, %v610_v13 }
 0x171   : > { %v614_v19 = vmul.f32 %v2067_v14, %v611_v16  ;;  %v1811_v20 = vpack.c.bf16 %v615_v17, %v615_v17 }
 0x173   : > { %629 = vrot.lane.b32.xlu1 %v1811_v20, %s1954_s16  ;;  %v1810_v21 = vpack.c.bf16 %v614_v19, %v613_v18 }
 0x175   : > { %627 = vrot.lane.b32.xlu0 %v1810_v21, %s1954_s16  ;;  %v1786_v21 = vld [vmem:[%s2248_s5 + $0x10] sm:$0xf] }
 0x1e5   : > { %v630_v25 = vpop.permute.xlu1 %629 }
 0x1e7   : > { %v628_v22 = vpop.permute.xlu0 %627 }
 0x1e8   : > { %v631_v24 = vrot.slane %v628_v22, 4 }
 0x1ea   : > { %v633_v26 = vsel %vm632_vm2, %v631_v24, %v628_v22  ;;  %v634_v27 = vsel %vm632_vm2, %v631_v24, %v630_v25 }
 0x1eb   : > { %640 = vst.msk [vmem:[#allocation2] sm:$0xff] %vm2074_vm3, %v633_v26 }
 0x1ec   : > { %642 = vst.msk [vmem:[#allocation2 + $0x8] sm:$0xf] %vm641_vm9, %v634_v27 }
 0x1ed   : > { %644 = vst.msk [vmem:[#allocation2] sm:$0xf] %vm643_vm10, %v1951_v1 }
 0x1ee   : > { %646 = vst.msk [vmem:[#allocation2 + $0x8] sm:$0xf] %vm645_vm11, %v1951_v1 }
 0x1f4   : > { %v652_v28 = vld [vmem:[#allocation2] sm:$0xff] }
 0x1f5   : > { %v2087_v29 = vcombine.low %v652_v28, %v652_v28  ;;  %v1770_v30 = vcombine.high %v652_v28, %v652_v28  ;;  %v1940_v31 = vld [vmem:[#allocation2 + $0x8] ss:$0 sps:$4 sm:$0xff]  }
 0x1f6   : > { %v777_v48 = vsel %vm2261_vm4, %v1940_v31, 0  ;;  %vm2270_vm4 = vmmov %vm2265_vm0 }
 0x1f7   : > { %667 = vrot.lane.b32.xlu1 %v1770_v30, %s1955_s17  ;;  %665 = vrot.lane.b32.xlu0 %v2087_v29, %s1955_s17  ;;  %v771_v51 = vsel %vm2265_vm0, %v2087_v29, 0 }
 0x1fb   : > { %862 = vrot.lane.b32.xlu1 %v2087_v29, %s1956_s18  ;;  %669 = vrot.lane.b32.xlu0 %v1940_v31, %s1955_s17 }
 0x1ff   : > { %866 = vrot.lane.b32.xlu1 %v1940_v31, %s1956_s18  ;;  %864 = vrot.lane.b32.xlu0 %v1770_v30, %s1956_s18 }
 0x203   : > { %971 = vrot.lane.b32.xlu1 %v1770_v30, %s1957_s19  ;;  %969 = vrot.lane.b32.xlu0 %v2087_v29, %s1957_s19 }
 0x207   : > { %1076 = vrot.lane.b32.xlu1 %v2087_v29, %s1952_s12  ;;  %973 = vrot.lane.b32.xlu0 %v1940_v31, %s1957_s19 }
 0x20b   : > { %1080 = vrot.lane.b32.xlu1 %v1940_v31, %s1952_s12  ;;  %1078 = vrot.lane.b32.xlu0 %v1770_v30, %s1952_s12 }
 0x20f   : > { %1184 = vrot.lane.b32.xlu1 %v1770_v30, %s1958_s20  ;;  %1182 = vrot.lane.b32.xlu0 %v2087_v29, %s1958_s20 }
 0x213   : > { %1289 = vrot.lane.b32.xlu1 %v2087_v29, %s1959_s21  ;;  %1186 = vrot.lane.b32.xlu0 %v1940_v31, %s1958_s20 }
 0x217   : > { %1293 = vrot.lane.b32.xlu1 %v1940_v31, %s1959_s21  ;;  %1291 = vrot.lane.b32.xlu0 %v1770_v30, %s1959_s21 }
 0x21b   : > { %1398 = vrot.lane.b32.xlu1 %v1770_v30, %s1960_s22  ;;  %1396 = vrot.lane.b32.xlu0 %v2087_v29, %s1960_s22 }
 0x21f   : > { %1503 = vrot.lane.b32.xlu1 %v2087_v29, %s1961_s23  ;;  %1400 = vrot.lane.b32.xlu0 %v1940_v31, %s1960_s22  ;;  %v1790_v29 = vld [vmem:[%s2248_s5 + $0x14] sm:$0xf] }
 0x223   : > { %1507 = vrot.lane.b32.xlu1 %v1940_v31, %s1961_s23  ;;  %1505 = vrot.lane.b32.xlu0 %v1770_v30, %s1961_s23 }
 0x227   : > { %1611 = vperm.xlu0 %1925, %v1608_v32   ;;  %1927 = vrot.lane.b32.xlu1 %v1926_v37, %s1952_s12 }
 0x22b   : > { %1624 = vrot.lane.b32.xlu1 %v651_v38, %s1952_s12 }
 0x269   : > { %v668_v39 = vpop.permute.xlu1 %667  ;;  %v666_v40 = vpop.permute.xlu0 %665 }
 0x26a   : > { %v672_v41 = vsel %vm671_vm12, %v666_v40, %v668_v39 }
 0x26b   : > { %v678_v46 = vsel %vm2259_vm14, %v672_v41, 0  ;;  %vm975_vm14 = vcmask 900096  }
 0x26d   : > { %v863_v42 = vpop.permute.xlu1 %862  ;;  %v670_v43 = vpop.permute.xlu0 %669 }
 0x26e   : > { %v673_v44 = vsel %vm671_vm12, %v668_v39, %v670_v43  ;;  %v684_v45 = vsel %vm2258_vm13, %v670_v43, 0  ;;  %vm2267_vm12 = vmmov %vm2265_vm0  ;;  %v1798_v43 = vld [vmem:[%s2248_s5 + $0x1c] sm:$0xf] }
 0x26f   : > { %1772 = vmatprep.subr.msk.bf16.mxu0 %vm2260_vm15, %v673_v44  ;;  %1849 = vmatpush3.bf16.msra.mxu1 %v684_v45  ;;  %vm2268_vm13 = vmmov %vm2265_vm0 }
 0x270   : > { %687 = vmatpush1.bf16.msra.mxu0 %v678_v46  ;;  %1854 = vmatprep.subr.bf16.mxu1 %v1949_v0  ;;  %vm2269_vm15 = vmmov %vm2263_vm7 }
 0x271   : > { %v867_v49 = vpop.permute.xlu1 %866  ;;  %1775 = vmatprep.subr.msk.bf16.mxu0 %vm2262_vm5, %v1770_v30  ;;  %v865_v50 = vpop.permute.xlu0 %864  ;;  %vm2271_vm5 = vmmov %vm2263_vm7 }
 0x272   : > { %1851 = vmatmul.mubr.msk.bf16.vlgmr.msra.gmra.mrb[8].mxu1 %vm2263_vm7, %v1768_v47  ;;  %v870_v52 = vsel %vm868_vm6, %v865_v50, %v867_v49  ;;  %v881_v56 = vsel %vm2268_vm13, %v867_v49, 0  ;;  %v869_v57 = vsel %vm868_vm6, %v863_v42, %v865_v50  ;;  %vm2272_vm7 = vmmov %vm2265_vm0  ;;  %vm2276_vm13 = vcmask 891904  }
 0x273   : > { %1773 = vmatmul.mubr.msk.bf16.vlgmr.msra.gmra.mrb[8].mxu0 %vm2264_vm8, %v1768_v47  ;;  %1855 = vmatpush3.bf16.msra.mxu1 %v777_v48  ;;  %v875_v61 = vsel %vm2270_vm4, %v869_v57, 0  ;;  %vm2273_vm6 = vmmov %vm2265_vm0  ;;  %v1802_v47 = vld [vmem:[%s2248_s5 + $0x20] sm:$0xf] }
 0x274   : > { %780 = vmatpush1.bf16.msra.mxu0 %v771_v51  ;;  %1856 = vmatprep.mubr.msk.bf16.mxu1 %vm2266_vm1, %v1949_v0  ;;  %vm2274_vm8 = vmmov %vm2271_vm5 }
 0x275   : > { %v972_v53 = vpop.permute.xlu1 %971  ;;  %v970_v54 = vpop.permute.xlu0 %969  ;;  %1779 = vmatprep.subr.msk.bf16.mxu0 %vm2267_vm12, %v870_v52  ;;  %811 = vmatprep.mubr.bf16.mxu0 %v1951_v1  ;;  %vm2275_vm12 = vmmov %vm2271_vm5 }
 0x276   : > { %1860 = vmatprep.subr.bf16.mxu1 %v1949_v0  ;;  %v976_v3 = vsel %vm975_vm14, %v970_v54, %v972_v53  ;;  %vm2279_vm4 = vmmov %vm2276_vm13 }
 0x277   : > { %v982_v6 = vsel %vm2265_vm0, %v976_v3, 0 }
 0x279   : > { %v1077_v58 = vpop.permute.xlu1 %1076  ;;  %v974_v59 = vpop.permute.xlu0 %973 }
 0x27a   : > { %v977_v60 = vsel %vm975_vm14, %v972_v53, %v974_v59  ;;  %1857 = vmatmul.mubr.msk.bf16.vlgmr.msra.gmra.mrb[12].mxu1 %vm2269_vm15, %v654_v55  ;;  %v988_v4 = vsel %vm2273_vm6, %v974_v59, 0  ;;  %vm2277_vm15 = vmmov %vm2265_vm0  ;;  %vm1188_vm6 = vcmask 883712  }
 0x27b   : > { %1776 = vmatmul.mubr.msk.bf16.vlgmr.msra.gmra.mrb[12].mxu0 %vm2271_vm5, %v654_v55  ;;  %1861 = vmatpush3.bf16.msra.mxu1 %v881_v56  ;;  %vm2278_vm14 = vmmov %vm2265_vm0 }
 0x27c   : > { %884 = vmatpush1.bf16.msra.mxu0 %v875_v61  ;;  %1862 = vmatprep.mubr.msk.bf16.mxu1 %vm2266_vm1, %v1949_v0 }
 0x27d   : > { %1783 = vmatprep.subr.msk.bf16.mxu0 %vm2272_vm7, %v977_v60  ;;  %v1081_v62 = vpop.permute.xlu1 %1080  ;;  %v1079_v63 = vpop.permute.xlu0 %1078  ;;  %915 = vmatprep.mubr.bf16.mxu0 %v1951_v1  ;;  %vm2280_vm7 = vmmov %vm2265_vm0 }
 0x27e   : > { %1866 = vmatprep.subr.bf16.mxu1 %v1949_v0  ;;  %v1083_v10 = vsel %vm2276_vm13, %v1079_v63, %v1081_v62  ;;  %v1094_v13 = vsel %vm2278_vm14, %v1081_v62, 0  ;;  %v1082_v15 = vsel %vm2279_vm4, %v1077_v58, %v1079_v63  ;;  %vm1295_vm13 = vcmask 752640   ;;  %vm2284_vm14 = vmmov %vm2265_vm0 }
 0x27f   : > { %v1088_v17 = vsel %vm2280_vm7, %v1082_v15, 0  ;;  %vm2285_vm4 = vmmov %vm2271_vm5 }
 0x280   : > { %vm2287_vm7 = vmmov %vm2265_vm0 }
 0x281   : > { %v1183_v5 = vpop.permute.xlu0 %1182  ;;  %v1185_v9 = vpop.permute.xlu1 %1184 }
 0x282   : > { %1863 = vmatmul.mubr.msk.bf16.vlgmr.msra.gmra.mrb[16].mxu1 %vm2274_vm8, %v1778_v2  ;;  %vm2281_vm8 = vmmov %vm2271_vm5  ;;  %v1189_v22 = vsel %vm1188_vm6, %v1183_v5, %v1185_v9 }
 0x283   : > { %1780 = vmatmul.mubr.msk.bf16.vlgmr.msra.gmra.mrb[16].mxu0 %vm2275_vm12, %v1778_v2  ;;  %1867 = vmatpush3.bf16.msra.mxu1 %v988_v4  ;;  %vm2282_vm12 = vmmov %vm2265_vm0  ;;  %v1195_v25 = vsel %vm2284_vm14, %v1189_v22, 0  ;;  %vm1509_vm14 = vcmask 736256  }
 0x284   : > { %991 = vmatpush1.bf16.msra.mxu0 %v982_v6  ;;  %1868 = vmatprep.mubr.msk.bf16.mxu1 %vm2266_vm1, %v1949_v0 }
 0x285   : > { %1787 = vmatprep.subr.msk.bf16.mxu0 %vm2277_vm15, %v1083_v10  ;;  %1022 = vmatprep.mubr.bf16.mxu0 %v1951_v1  ;;  %v1187_v11 = vpop.permute.xlu0 %1186  ;;  %v1290_v16 = vpop.permute.xlu1 %1289  ;;  %vm2283_vm15 = vmmov %vm2271_vm5 }
 0x286   : > { %1872 = vmatprep.subr.bf16.mxu1 %v1949_v0  ;;  %v1190_v18 = vsel %vm1188_vm6, %v1185_v9, %v1187_v11  ;;  %v1201_v24 = vsel %vm2282_vm12, %v1187_v11, 0  ;;  %vm2288_vm6 = vmmov %vm2285_vm4 }
 0x287   : > { %vm2290_vm12 = vmmov %vm2285_vm4 }
 0x289   : > { %v1292_v19 = vpop.permute.xlu0 %1291  ;;  %v1294_v20 = vpop.permute.xlu1 %1293 }
 0x28a   : > { %1869 = vmatmul.mubr.msk.bf16.vlgmr.msra.gmra.mrb[20].mxu1 %vm2271_vm5, %v1782_v12  ;;  %v1297_v27 = vsel %vm1295_vm13, %v1292_v19, %v1294_v20  ;;  %vm2286_vm5 = vmmov %vm2265_vm0  ;;  %v1308_v30 = vsel %vm2287_vm7, %v1294_v20, 0  ;;  %v1296_v31 = vsel %vm1295_vm13, %v1290_v16, %v1292_v19 }
 0x28b   : > { %1784 = vmatmul.mubr.msk.bf16.vlgmr.msra.gmra.mrb[20].mxu0 %vm2281_vm8, %v1782_v12  ;;  %1873 = vmatpush3.bf16.msra.mxu1 %v1094_v13  ;;  %vm2289_vm8 = vmmov %vm2265_vm0 }
 0x28c   : > { %1097 = vmatpush1.bf16.msra.mxu0 %v1088_v17  ;;  %1874 = vmatprep.mubr.msk.bf16.mxu1 %vm2266_vm1, %v1949_v0  ;;  %v1302_v33 = vsel %vm2289_vm8, %v1296_v31, 0  ;;  %vm2292_vm13 = vmmov %vm2286_vm5 }
 0x28d   : > { %1791 = vmatprep.subr.msk.bf16.mxu0 %vm2265_vm0, %v1190_v18  ;;  %1128 = vmatprep.mubr.bf16.mxu0 %v1951_v1  ;;  %v1397_v26 = vpop.permute.xlu0 %1396  ;;  %v1399_v28 = vpop.permute.xlu1 %1398  ;;  %vm1402_vm0 = vcmask 744448   ;;  %vm2293_vm7 = vmmov %vm2285_vm4 }
 0x28e   : > { %1878 = vmatprep.subr.bf16.mxu1 %v1949_v0  ;;  %v1403_v37 = vsel %vm1402_vm0, %v1397_v26, %v1399_v28  ;;  %vm2295_vm8 = vmmov %vm2286_vm5 }
 0x28f   : > { %v1409_v41 = vsel %vm2286_vm5, %v1403_v37, 0 }
 0x291   : > { %v1401_v32 = vpop.permute.xlu0 %1400  ;;  %v1504_v34 = vpop.permute.xlu1 %1503 }
 0x292   : > { %1875 = vmatmul.mubr.msk.bf16.vlgmr.msra.gmra.mrb[24].mxu1 %vm2283_vm15, %v1786_v21  ;;  %v1404_v35 = vsel %vm1402_vm0, %v1399_v28, %v1401_v32  ;;  %vm2291_vm15 = vmmov %vm2286_vm5  ;;  %v1415_v38 = vsel %vm2292_vm13, %v1401_v32, 0 }
 0x293   : > { %1788 = vmatmul.mubr.msk.bf16.vlgmr.msra.gmra.mrb[24].mxu0 %vm2285_vm4, %v1786_v21  ;;  %1879 = vmatpush3.bf16.msra.mxu1 %v1201_v24  ;;  %vm2296_vm0 = vmmov %vm2285_vm4 }
 0x294   : > { %1204 = vmatpush1.bf16.msra.mxu0 %v1195_v25  ;;  %1880 = vmatprep.mubr.msk.bf16.mxu1 %vm2266_vm1, %v1949_v0  ;;  %vm2299_vm13 = vmmov %vm2296_vm0 }
 0x295   : > { %1795 = vmatprep.subr.msk.bf16.mxu0 %vm2286_vm5, %v1297_v27  ;;  %1235 = vmatprep.mubr.bf16.mxu0 %v1951_v1  ;;  %v1508_v39 = vpop.permute.xlu1 %1507  ;;  %v1506_v40 = vpop.permute.xlu0 %1505 }
 0x296   : > { %1884 = vmatprep.subr.bf16.mxu1 %v1949_v0  ;;  %v1511_v42 = vsel %vm1509_vm14, %v1506_v40, %v1508_v39  ;;  %v1522_v44 = vsel %vm2295_vm8, %v1508_v39, 0  ;;  %v1510_v45 = vsel %vm1509_vm14, %v1504_v34, %v1506_v40  ;;  %vm2300_vm14 = vmmov %vm2296_vm0 }
 0x29a   : > { %1881 = vmatmul.mubr.msk.bf16.vlgmr.msra.gmra.mrb[28].mxu1 %vm2288_vm6, %v1790_v29  ;;  %vm2294_vm6 = vmmov %vm2286_vm5 }
 0x29b   : > { %1792 = vmatmul.mubr.msk.bf16.vlgmr.msra.gmra.mrb[28].mxu0 %vm2290_vm12, %v1790_v29  ;;  %1885 = vmatpush3.bf16.msra.mxu1 %v1308_v30  ;;  %vm2297_vm12 = vmmov %vm2286_vm5 }
 0x29c   : > { %1311 = vmatpush1.bf16.msra.mxu0 %v1302_v33  ;;  %1886 = vmatprep.mubr.msk.bf16.mxu1 %vm2266_vm1, %v1949_v0  ;;  %v1516_v46 = vsel %vm2297_vm12, %v1510_v45, 0 }
 0x29d   : > { %1799 = vmatprep.subr.msk.bf16.mxu0 %vm2291_vm15, %v1404_v35  ;;  %1342 = vmatprep.mubr.bf16.mxu0 %v1951_v1  ;;  %vm2298_vm15 = vmmov %vm2296_vm0 }
 0x29e   : > { %1890 = vmatprep.subr.bf16.mxu1 %v1949_v0 }
 0x2a2   : > { %1887 = vmatmul.mubr.msk.bf16.vlgmr.msra.gmra.mrb[32].mxu1 %vm2285_vm4, %v1794_v36 }
 0x2a3   : > { %1796 = vmatmul.mubr.msk.bf16.vlgmr.msra.gmra.mrb[32].mxu0 %vm2293_vm7, %v1794_v36  ;;  %1891 = vmatpush3.bf16.msra.mxu1 %v1415_v38 }
 0x2a4   : > { %1418 = vmatpush1.bf16.msra.mxu0 %v1409_v41  ;;  %1892 = vmatprep.mubr.msk.bf16.mxu1 %vm2266_vm1, %v1949_v0 }
 0x2a5   : > { %1803 = vmatprep.subr.msk.bf16.mxu0 %vm2294_vm6, %v1511_v42  ;;  %1449 = vmatprep.mubr.bf16.mxu0 %v1951_v1 }
 0x2a6   : > { %1896 = vmatprep.subr.bf16.mxu1 %v1949_v0 }
 0x2aa   : > { %1893 = vmatmul.mubr.msk.bf16.vlgmr.msra.gmra.mrb[36].mxu1 %vm2296_vm0, %v1798_v43 }
 0x2ab   : > { %1800 = vmatmul.mubr.msk.bf16.vlgmr.msra.gmra.mrb[36].mxu0 %vm2298_vm15, %v1798_v43  ;;  %1897 = vmatpush3.bf16.msra.mxu1 %v1522_v44 }
 0x2ac   : > { %1525 = vmatpush1.bf16.msra.mxu0 %v1516_v46  ;;  %1898 = vmatprep.mubr.msk.bf16.mxu1 %vm2266_vm1, %v1949_v0  ;;  %vm2301_vm1 = vcmask 891904  }
 0x2ad   : > { %1556 = vmatprep.mubr.bf16.mxu0 %v1951_v1  ;;  %vm2302_vm4 = vmmov %vm2301_vm1 }
 0x2b2   : > { %1899 = vmatmul.mubr.msk.bf16.vlgmr.msra.gmra.mrb[40].mxu1 %vm2299_vm13, %v1802_v47 }
 0x2b3   : > { %1804 = vmatmul.mubr.msk.bf16.vlgmr.msra.gmra.mrb[40].mxu0 %vm2300_vm14, %v1802_v47 }
 0x345   : > { %v761_v48 = vpop.f32.mrb[8].mxu1 }
 0x346   : > { %v720_v49 = vpop.f32.mrb[8].mxu0  ;;  %v1852_v50 = vpop.f32.mrb[9].mxu1 }
 0x347   : > { %v722_v51 = vpop.f32.mrb[9].mxu0  ;;  %v764_v52 = vpop.f32.mrb[10].mxu1 }
 0x348   : > { %v724_v53 = vpop.f32.mrb[10].mxu0  ;;  %v1853_v54 = vpop.f32.mrb[11].mxu1 }
 0x349   : > { %v725_v55 = vpop.f32.mrb[11].mxu0 }
 0x34d   : > { %v854_v56 = vpop.f32.mrb[12].mxu1 }
 0x34e   : > { %v813_v0 = vpop.f32.mrb[12].mxu0  ;;  %v855_v57 = vadd.f32 %v854_v56, %v761_v48  ;;  %v1858_v58 = vpop.f32.mrb[13].mxu1 }
 0x34f   : > { %v814_v59 = vadd.f32 %v813_v0, %v720_v49  ;;  %v815_v60 = vpop.f32.mrb[13].mxu0  ;;  %v857_v61 = vpop.f32.mrb[14].mxu1 }
 0x350   : > { %v816_v62 = vadd.f32 %v815_v60, %v722_v51  ;;  %v817_v63 = vpop.f32.mrb[14].mxu0  ;;  %v1859_v2 = vpop.f32.mrb[15].mxu1 }
 0x351   : > { %v818_v3 = vpop.f32.mrb[15].mxu0  ;;  %v1928_v63 = vpop.permute.xlu1 %1927 }
 0x355   : > { %v958_v4 = vpop.f32.mrb[16].mxu1 }
 0x356   : > { %v966_v5 = vadd.f32 %v958_v4, %v855_v57  ;;  %v917_v6 = vpop.f32.mrb[16].mxu0  ;;  %v1864_v9 = vpop.f32.mrb[17].mxu1 }
 0x357   : > { %v964_v10 = vadd.f32 %v917_v6, %v814_v59  ;;  %v919_v11 = vpop.f32.mrb[17].mxu0  ;;  %v961_v12 = vpop.f32.mrb[18].mxu1 }
 0x358   : > { %v965_v13 = vadd.f32 %v919_v11, %v816_v62  ;;  %v921_v15 = vpop.f32.mrb[18].mxu0  ;;  %v1865_v16 = vpop.f32.mrb[19].mxu1 }
 0x359   : > { %v922_v17 = vpop.f32.mrb[19].mxu0  ;;  %v1930_v15 = vunpack.i.h.bf16 %v1928_v63  ;;  %v1929_v16 = vunpack.i.l.bf16 %v1928_v63 }
 0x35a   : > { %v1612_v17 = vpop.permute.xlu0 %1611 }
 0x35d   : > { %v1065_v18 = vpop.f32.mrb[20].mxu1 }
 0x35e   : > { %v1073_v19 = vadd.f32 %v1065_v18, %v966_v5  ;;  %v1024_v20 = vpop.f32.mrb[20].mxu0  ;;  %v1870_v21 = vpop.f32.mrb[21].mxu1 }
 0x35f   : > { %v1071_v22 = vadd.f32 %v1024_v20, %v964_v10  ;;  %v1026_v24 = vpop.f32.mrb[21].mxu0  ;;  %v1068_v25 = vpop.f32.mrb[22].mxu1 }
 0x360   : > { %v1072_v26 = vadd.f32 %v1026_v24, %v965_v13  ;;  %v1028_v27 = vpop.f32.mrb[22].mxu0  ;;  %v1871_v28 = vpop.f32.mrb[23].mxu1 }
 0x361   : > { %v1029_v29 = vpop.f32.mrb[23].mxu0  ;;  %v1627_v27 = vsel %vm2301_vm1, %v1929_v16, %v1930_v15 }
 0x365   : > { %v1171_v30 = vpop.f32.mrb[24].mxu1 }
 0x366   : > { %v1179_v31 = vadd.f32 %v1171_v30, %v1073_v19  ;;  %v1130_v32 = vpop.f32.mrb[24].mxu0  ;;  %v1876_v33 = vpop.f32.mrb[25].mxu1 }
 0x367   : > { %v1177_v34 = vadd.f32 %v1130_v32, %v1071_v22  ;;  %v1132_v35 = vpop.f32.mrb[25].mxu0  ;;  %v1174_v36 = vpop.f32.mrb[26].mxu1 }
 0x368   : > { %v1178_v37 = vadd.f32 %v1132_v35, %v1072_v26  ;;  %v1134_v38 = vpop.f32.mrb[26].mxu0  ;;  %v1877_v39 = vpop.f32.mrb[27].mxu1 }
 0x369   : > { %v1135_v40 = vpop.f32.mrb[27].mxu0  ;;  %v1625_v19 = vpop.permute.xlu1 %1624 }
 0x36d   : > { %v1278_v41 = vpop.f32.mrb[28].mxu1 }
 0x36e   : > { %v1286_v42 = vadd.f32 %v1278_v41, %v1179_v31  ;;  %v1237_v43 = vpop.f32.mrb[28].mxu0  ;;  %v1882_v44 = vpop.f32.mrb[29].mxu1 }
 0x36f   : > { %v1284_v45 = vadd.f32 %v1237_v43, %v1177_v34  ;;  %v1239_v46 = vpop.f32.mrb[29].mxu0  ;;  %v1281_v47 = vpop.f32.mrb[30].mxu1 }
 0x370   : > { %v1285_v48 = vadd.f32 %v1239_v46, %v1178_v37  ;;  %v1241_v49 = vpop.f32.mrb[30].mxu0  ;;  %v1883_v50 = vpop.f32.mrb[31].mxu1  ;;  %v1628_v37 = vsel %vm2302_vm4, %v1930_v15, %v1625_v19 }
 0x371   : > { %v1242_v51 = vpop.f32.mrb[31].mxu0 }
 0x375   : > { %v1385_v52 = vpop.f32.mrb[32].mxu1 }
 0x376   : > { %v1393_v53 = vadd.f32 %v1385_v52, %v1286_v42  ;;  %v1344_v54 = vpop.f32.mrb[32].mxu0  ;;  %v1888_v55 = vpop.f32.mrb[33].mxu1 }
 0x377   : > { %v1391_v56 = vadd.f32 %v1344_v54, %v1284_v45  ;;  %v1346_v0 = vpop.f32.mrb[33].mxu0  ;;  %v1388_v57 = vpop.f32.mrb[34].mxu1 }
 0x378   : > { %v1392_v58 = vadd.f32 %v1346_v0, %v1285_v48  ;;  %v1348_v59 = vpop.f32.mrb[34].mxu0  ;;  %v1889_v60 = vpop.f32.mrb[35].mxu1 }
 0x379   : > { %v1349_v61 = vpop.f32.mrb[35].mxu0 }
 0x37d   : > { %v1492_v62 = vpop.f32.mrb[36].mxu1 }
 0x37e   : > { %v1500_v2 = vadd.f32 %v1492_v62, %v1393_v53  ;;  %v1451_v3 = vpop.f32.mrb[36].mxu0  ;;  %v1894_v4 = vpop.f32.mrb[37].mxu1 }
 0x37f   : > { %v1498_v5 = vadd.f32 %v1451_v3, %v1391_v56  ;;  %v1453_v6 = vpop.f32.mrb[37].mxu0  ;;  %v1495_v9 = vpop.f32.mrb[38].mxu1 }
 0x380   : > { %v1499_v10 = vadd.f32 %v1453_v6, %v1392_v58  ;;  %v1455_v11 = vpop.f32.mrb[38].mxu0  ;;  %v1895_v12 = vpop.f32.mrb[39].mxu1 }
 0x381   : > { %v1456_v13 = vpop.f32.mrb[39].mxu0 }
 0x385   : > { %v1599_v18 = vpop.f32.mrb[40].mxu1 }
 0x386   : > { %v1607_v20 = vadd.f32 %v1599_v18, %v1500_v2  ;;  %v1558_v21 = vpop.f32.mrb[40].mxu0  ;;  %v1900_v22 = vpop.f32.mrb[41].mxu1 }
 0x387   : > { %v1605_v24 = vadd.f32 %v1558_v21, %v1498_v5  ;;  %v1560_v25 = vpop.f32.mrb[41].mxu0  ;;  %v1602_v26 = vpop.f32.mrb[42].mxu1 }
 0x388   : > { %v1616_v28 = vadd.f32 %v1612_v17, %v1607_v20  ;;  %v1606_v29 = vadd.f32 %v1560_v25, %v1499_v10  ;;  %v1562_v30 = vpop.f32.mrb[42].mxu0  ;;  %v1901_v31 = vpop.f32.mrb[43].mxu1 }
 0x389   : > { %v1614_v32 = vadd.f32 %v1612_v17, %v1605_v24  ;;  %v1563_v33 = vpop.f32.mrb[43].mxu0 }
 0x38a   : > { %v1615_v34 = vadd.f32 %v1612_v17, %v1606_v29  ;;  %v1634_v35 = vadd.f32 %v1625_v19, %v1616_v28 }
 0x38b   : > { %v1632_v36 = vadd.f32 %v1627_v27, %v1614_v32 }
 0x38c   : > { %v1633_v38 = vadd.f32 %v1628_v37, %v1615_v34  ;;  %v1637_v39 = vmul.f32 %v2061_v7, %v1634_v35 }
 0x38d   : > { %v1635_v40 = vmul.f32 %v2064_v8, %v1632_v36 }
 0x38e   : > { %v1636_v41 = vmul.f32 %v2067_v14, %v1633_v38  ;;  %v1813_v42 = vpack.c.bf16 %v1637_v39, %v1637_v39 }
 0x390   : > { %1651 = vrot.lane.b32.xlu1 %v1813_v42, %s1954_s16  ;;  %v1812_v43 = vpack.c.bf16 %v1636_v41, %v1635_v40 }
 0x392   : > { %1649 = vrot.lane.b32.xlu0 %v1812_v43, %s1954_s16 }
 0x402   : > { %v1652_v46 = vpop.permute.xlu1 %1651 }
 0x404   : > { %v1650_v44 = vpop.permute.xlu0 %1649 }
 0x405   : > { %v1653_v45 = vrot.slane %v1650_v44, 4 }
 0x407   : > { %v1654_v47 = vsel %vm632_vm2, %v1653_v45, %v1650_v44  ;;  %v1655_v7 = vsel %vm632_vm2, %v1653_v45, %v1652_v46 }
 0x408   : > { %1658 = vst.msk [vmem:[%s318_s8] sm:$0xff] %vm2074_vm3, %v1654_v47 }
 0x409   : > { %1659 = vst.msk [vmem:[%s318_s8 + $0x8] sm:$0xf] %vm641_vm9, %v1655_v7 }
 0x40a   : > { %1660 = vst.msk [vmem:[%s318_s8] sm:$0xf] %vm643_vm10, %v1951_v1 }
 0x40b   : > { %1661 = vst.msk [vmem:[%s318_s8 + $0x8] sm:$0xf] %vm645_vm11, %v1951_v1 }
 0x40c PF: > { %s17_s24 = sadd.s32 1, %s1947_s24  }
 0x40d   : > { %p14_p4 = scmp.ge.s32.totalorder %s17_s24, 4  }
 0x40f   :  { %16 = sbr.rel (!%p14_p4) target bundleno = 1 (0x1), region = 92 }

// kernel: _lambda_.10
= control target key start
LH: loop header
LB: loop body
LE: loop exit
PB: predicated region body
PF: predicated region fallthrough
CT: control target
= control target key end

     0   :  { %s2169_s12 = smov 0   ;;  %s2503_s0 = inlined_call_operand.vmem [shape: bf16[2,8,324], index: 0, kind: input, shape index: {}]   ;;  %s2504_s1 = inlined_call_operand.vmem [shape: bf16[3,3,32,8], index: 1, kind: input, shape index: {}]   ;;  %s2505_s2 = inlined_call_operand.vmem [shape: f32[32,1], index: 2, kind: input, shape index: {}]   ;;  %s2506_s3 = inlined_call_operand.vmem [shape: bf16[2,32,324], index: 3, kind: output, shape index: {}]  }
   0x1 LB: > { %s1774_s13 = sadd.s32 4294967295, %s2136_s12   ;;  %p1778_p0 = scmp.ge.s32.totalorder %s2136_s12, 1  ;;  %s2136_s12 = sphi %s2169_s12, %s13_s12  }
   0x2   : > { %p137_p1 = scmp.lt.s32.totalorder %s2136_s12, 3 }
   0x4   : > { %p138_p2 = pnand %p1778_p0, %p137_p1 }
   0x5   : > { %p161_p3 = scmp.lt.s32.totalorder (!%p138_p2), %s1774_s13, 1  ;;  %v2138_v0 = vmov (!%p138_p2), 0   ;;  %s2139_s18 = smov (!%p138_p2), 127   ;;  %vm260_vm0 = vcmask (!%p138_p2), 1039360   ;;  %vm270_vm1 = vcmask (!%p138_p2), 1043456   ;;  %v2112_v12 = vld [vmem:[%s2504_s1 + $0x10] sm:$0xff] (!%p138_p2)  }
   0x6   : > { %141 = sbr.rel (%p138_p2) target bundleno = 611 (0x263), region = 32  ;;  %312 = vmatprep.mubr.bf16.mxu1 (!%p138_p2), %v2138_v0  ;;  %580 = vmatprep.mubr.bf16.mxu0 (!%p138_p2), %v2138_v0  ;;  %s2140_s19 = smov (!%p138_p2), 126   ;;  %vm530_vm2 = vcmask (!%p138_p2), 1031168   ;;  %v1580_v13 = vld [vmem:[%s2505_s2] sm:$0xff] (!%p138_p2)  ;;  %v1581_v14 = vld [vmem:[%s2505_s2 + $0x8] sm:$0xff] (!%p138_p2)  ;;  %vm263_vm3 = vcmask (!%p138_p2), 64512  }
   0x7   : > { %2107 = vset.pattern.permute.xlu0 (!%p138_p2), %v2138_v0  ;;  %2108 = vset.pattern.permute.xlu1 (!%p138_p2), %v2138_v0  ;;  %s2141_s20 = smov (!%p138_p2), 110   ;;  %s2142_s21 = smov (!%p138_p2), 109   ;;  %v2239_v21 = vld [vmem:[%s2504_s1 + $0x20] sm:$0xff] (!%p138_p2)   ;;  %vm683_vm4 = vcmask (!%p138_p2), 900096   ;;  %v1582_v22 = vld [vmem:[%s2505_s2 + $0x10] sm:$0xff] (!%p138_p2)  ;;  %v1583_v23 = vld [vmem:[%s2505_s2 + $0x18] sm:$0xff] (!%p138_p2) }
   0x8   : > { %s2143_s22 = smov (!%p138_p2), 108   ;;  %s2144_s23 = smov (!%p138_p2), 92   ;;  %v2114_v27 = vld [vmem:[%s2504_s1 + $0x18] sm:$0xff] (!%p138_p2)   ;;  %v2267_v32 = vld [vmem:[%s2504_s1 + $0x28] sm:$0xff] (!%p138_p2)   ;;  %vm836_vm5 = vcmask (!%p138_p2), 891904   ;;  %v2116_v39 = vld [vmem:[%s2504_s1 + $0x30] sm:$0xff] (!%p138_p2)  }
   0x9   : > { %s2145_s24 = smov (!%p138_p2), 91   ;;  %s2146_s25 = smov (!%p138_p2), 90   ;;  %vm989_vm6 = vcmask (!%p138_p2), 883712   ;;  %v2117_v44 = vld [vmem:[%s2504_s1] sm:$0xff] (!%p138_p2)   ;;  %v2118_v46 = vld [vmem:[%s2504_s1 + $0x38] sm:$0xff] (!%p138_p2)   ;;  %v2119_v48 = vld [vmem:[%s2504_s1 + $0x8] sm:$0xff] (!%p138_p2)  }
   0xa   : > { %v2120_v50 = vld [vmem:[%s2504_s1 + $0x40] sm:$0xff] (!%p138_p2)   ;;  %vm1142_vm7 = vcmask (!%p138_p2), 752640   ;;  %v2121_v56 = vld [vmem:[%s2504_s1 + $0x48] sm:$0xff] (!%p138_p2)   ;;  %v2122_v58 = vld [vmem:[%s2504_s1 + $0x50] sm:$0xff] (!%p138_p2)   ;;  %vm1295_vm8 = vcmask (!%p138_p2), 744448   ;;  %vm1448_vm9 = vcmask (!%p138_p2), 736256  }
   0xd   : > { %s2510_s13 = smov (!%p161_p3, %s1774_s13), 1 }
   0xe   : > { %s2086_s14 = smul.u32 12, %s2510_s13 }
  0x10   : > { %s165_s17 = scalar_lea.vmem %s2503_s0, %s2086_s14 }
  0x11   : > { %v2187_v1 = vld [vmem:[%s165_s17 + $0x8] ss:$0 sps:$4 sm:$0xff]   ;;  %v225_v2 = vld [vmem:[%s165_s17] sm:$0xff] }
  0x12   : > { %v2189_v3 = vcombine.low %v225_v2, %v225_v2  ;;  %258 = vrot.lane.b32.xlu1 %v2187_v1, %s2139_s18  ;;  %v2193_v4 = vcombine.high %v225_v2, %v225_v2  ;;  %v405_v45 = vsel %vm270_vm1, %v2187_v1, 0  ;;  %v2123_v2 = vld [vmem:[%s2504_s1 + $0x58] sm:$0xff]  }
  0x14   : > { %254 = vrot.lane.b32.xlu0 %v2189_v3, %s2139_s18  ;;  %v399_v36 = vsel %vm270_vm1, %v2189_v3, 0 }
  0x16   : > { %524 = vrot.lane.b32.xlu1 %v2189_v3, %s2140_s19 }
  0x18   : > { %256 = vrot.lane.b32.xlu0 %v2193_v4, %s2139_s18 }
  0x1a   : > { %528 = vrot.lane.b32.xlu1 %v2187_v1, %s2140_s19 }
  0x1c   : > { %526 = vrot.lane.b32.xlu0 %v2193_v4, %s2140_s19 }
  0x1e   : > { %679 = vrot.lane.b32.xlu1 %v2193_v4, %s2141_s20 }
  0x20   : > { %677 = vrot.lane.b32.xlu0 %v2189_v3, %s2141_s20 }
  0x22   : > { %830 = vrot.lane.b32.xlu1 %v2189_v3, %s2142_s21 }
  0x24   : > { %681 = vrot.lane.b32.xlu0 %v2187_v1, %s2141_s20  ;;  %s2148_s20 = smov 19  }
  0x26   : > { %834 = vrot.lane.b32.xlu1 %v2187_v1, %s2142_s21 }
  0x28   : > { %832 = vrot.lane.b32.xlu0 %v2193_v4, %s2142_s21  ;;  %s2087_s21 = smul.u32 48, %s2510_s13 }
  0x2a   : > { %985 = vrot.lane.b32.xlu1 %v2193_v4, %s2143_s22 }
  0x2c   : > { %983 = vrot.lane.b32.xlu0 %v2189_v3, %s2143_s22 }
  0x2e   : > { %1136 = vrot.lane.b32.xlu1 %v2189_v3, %s2144_s23 }
  0x30   : > { %987 = vrot.lane.b32.xlu0 %v2187_v1, %s2143_s22 }
  0x32   : > { %1140 = vrot.lane.b32.xlu1 %v2187_v1, %s2144_s23 }
  0x34   : > { %1138 = vrot.lane.b32.xlu0 %v2193_v4, %s2144_s23 }
  0x36   : > { %1291 = vrot.lane.b32.xlu1 %v2193_v4, %s2145_s24 }
  0x38   : > { %1289 = vrot.lane.b32.xlu0 %v2189_v3, %s2145_s24 }
  0x3a   : > { %1442 = vrot.lane.b32.xlu1 %v2189_v3, %s2146_s25 }
  0x3c   : > { %1293 = vrot.lane.b32.xlu0 %v2187_v1, %s2145_s24  ;;  %s2442_s24 = scalar_lea.vmem %s2506_s3, %s2087_s21 }
  0x3e   : > { %1446 = vrot.lane.b32.xlu1 %v2187_v1, %s2146_s25 }
  0x40   : > { %1444 = vrot.lane.b32.xlu0 %v2193_v4, %s2146_s25 }
  0x42   : > { %1591 = vperm.xlu1 %2108, %v1581_v14   ;;  %v2126_v14 = vld [vmem:[%s2504_s1 + $0x70] sm:$0xff]  }
  0x44   : > { %1586 = vperm.xlu0 %2107, %v1580_v13  }
  0x46   : > { %1596 = vperm.xlu1 %2108, %v1582_v22  }
  0x48   : > { %1601 = vperm.xlu0 %2107, %v1583_v23  }
  0x84   : > { %v259_v5 = vpop.permute.xlu1 %258 }
  0x85   : > { %v278_v19 = vsel %vm270_vm1, %v259_v5, 0 }
  0x86   : > { %v255_v6 = vpop.permute.xlu0 %254 }
  0x88   : > { %v525_v7 = vpop.permute.xlu1 %524 }
  0x8a   : > { %v257_v8 = vpop.permute.xlu0 %256 }
  0x8b   : > { %v262_v9 = vsel %vm260_vm0, %v257_v8, %v259_v5  ;;  %v261_v10 = vsel %vm260_vm0, %v255_v6, %v257_v8  ;;  %v2124_v6 = vld [vmem:[%s2504_s1 + $0x60] sm:$0xff]  }
  0x8c   : > { %1793 = vmatprep.subr.msk.bf16.mxu1 %vm270_vm1, %v262_v9  ;;  %v272_v11 = vsel %vm270_vm1, %v261_v10, 0  ;;  %v2228_v15 = vpop.permute.xlu1 %528 }
  0x8d   : > { %281 = vmatpush1.bf16.msra.mxu1 %v272_v11  ;;  %v546_v55 = vsel %vm270_vm1, %v2228_v15, 0  ;;  %v2125_v11 = vld [vmem:[%s2504_s1 + $0x68] sm:$0xff]  }
  0x8e   : > { %2077 = vmatprep.subr.msk.bf16.mxu1 %vm270_vm1, %v259_v5  ;;  %v527_v16 = vpop.permute.xlu0 %526 }
  0x8f   : > { %v532_v17 = vsel %vm530_vm2, %v527_v16, %v2228_v15  ;;  %v531_v18 = vsel %vm530_vm2, %v525_v7, %v527_v16 }
  0x90   : > { %1794 = vmatmul.mubr.msk.bf16.vlgmr.msra.gmra.mrb[0].mxu1 %vm263_vm3, %v2112_v12  ;;  %1811 = vmatprep.subr.msk.bf16.mxu0 %vm270_vm1, %v532_v17  ;;  %v540_v20 = vsel %vm270_vm1, %v531_v18, 0  ;;  %v680_v24 = vpop.permute.xlu1 %679  ;;  %v2127_v17 = vld [vmem:[%s2504_s1 + $0x78] sm:$0xff]   ;;  %v2128_v18 = vld [vmem:[%s2504_s1 + $0x80] sm:$0xff]  }
  0x91   : > { %1928 = vmatpush3.bf16.msra.mxu1 %v278_v19  ;;  %549 = vmatpush1.bf16.msra.mxu0 %v540_v20  ;;  %v2129_v20 = vld [vmem:[%s2504_s1 + $0x88] sm:$0xff]  }
  0x92   : > { %v678_v25 = vpop.permute.xlu0 %677  ;;  %322 = vmatprep.mubr.bf16.mxu1 %v2138_v0  ;;  %1800 = vmatprep.subr.msk.bf16.mxu1 %vm270_vm1, %v2193_v4 }
  0x93   : > { %v684_v26 = vsel %vm683_vm4, %v678_v25, %v680_v24 }
  0x94   : > { %1812 = vmatmul.mubr.msk.bf16.vlgmr.msra.gmra.mrb[0].mxu0 %vm263_vm3, %v2239_v21  ;;  %v831_v28 = vpop.permute.xlu1 %830  ;;  %v693_v29 = vsel %vm270_vm1, %v684_v26, 0 }
  0x95   : > { %590 = vmatprep.mubr.bf16.mxu0 %v2138_v0 }
  0x96   : > { %v2258_v30 = vpop.permute.xlu0 %681 }
  0x97   : > { %v685_v31 = vsel %vm683_vm4, %v680_v24, %v2258_v30  ;;  %v699_v63 = vsel %vm270_vm1, %v2258_v30, 0 }
  0x98   : > { %1795 = vmatmul.mubr.msk.bf16.gmra.mrb[4].mxu1 %vm263_vm3, %v2114_v27  ;;  %1822 = vmatprep.subr.msk.bf16.mxu0 %vm270_vm1, %v685_v31  ;;  %v2270_v33 = vpop.permute.xlu1 %834 }
  0x99   : > { %702 = vmatpush1.bf16.msra.mxu0 %v693_v29  ;;  %1929 = vmatprep.mubr.msk.bf16.mxu1 %vm263_vm3, %v2112_v12  ;;  %v852_v5 = vsel %vm270_vm1, %v2270_v33, 0 }
  0x9a   : > { %v833_v34 = vpop.permute.xlu0 %832 }
  0x9b   : > { %v838_v35 = vsel %vm836_vm5, %v833_v34, %v2270_v33  ;;  %v837_v38 = vsel %vm836_vm5, %v831_v28, %v833_v34 }
  0x9c   : > { %1813 = vmatmul.mubr.msk.bf16.gmra.mrb[4].mxu0 %vm263_vm3, %v2267_v32  ;;  %1833 = vmatprep.subr.msk.bf16.mxu0 %vm270_vm1, %v838_v35  ;;  %v986_v40 = vpop.permute.xlu1 %985  ;;  %v846_v41 = vsel %vm270_vm1, %v837_v38, 0 }
  0x9d   : > { %733 = vmatprep.mubr.bf16.mxu0 %v2138_v0 }
  0x9e   : > { %v984_v37 = vpop.permute.xlu0 %983 }
  0x9f   : > { %v990_v49 = vsel %vm989_vm6, %v984_v37, %v986_v40 }
  0xa0   : > { %1930 = vmatmul.mubr.msk.bf16.vlgmr.msra.gmra.mrb[8].mxu1 %vm263_vm3, %v2114_v27  ;;  %v1137_v47 = vpop.permute.xlu1 %1136  ;;  %v999_v53 = vsel %vm270_vm1, %v990_v49, 0 }
  0xa1   : > { %408 = vmatpush1.bf16.msra.mxu1 %v399_v36  ;;  %439 = vmatprep.mubr.bf16.mxu1 %v2138_v0 }
  0xa2   : > { %2078 = vmatprep.subr.msk.bf16.mxu1 %vm270_vm1, %v2187_v1  ;;  %v2287_v42 = vpop.permute.xlu0 %987 }
  0xa3   : > { %v991_v43 = vsel %vm989_vm6, %v986_v40, %v2287_v42  ;;  %v1005_v12 = vsel %vm270_vm1, %v2287_v42, 0 }
  0xa4   : > { %1823 = vmatmul.mubr.msk.bf16.vlgmr.msra.gmra.mrb[0].mxu0 %vm263_vm3, %v2116_v39  ;;  %v2316_v51 = vpop.permute.xlu1 %1140 }
  0xa5   : > { %743 = vmatprep.mubr.bf16.mxu0 %v2138_v0  ;;  %855 = vmatpush1.bf16.msra.mxu0 %v846_v41  ;;  %v1158_v16 = vsel %vm270_vm1, %v2316_v51, 0 }
  0xa6   : > { %1844 = vmatprep.subr.msk.bf16.mxu0 %vm270_vm1, %v991_v43  ;;  %v1139_v52 = vpop.permute.xlu0 %1138 }
  0xa7   : > { %v1144_v54 = vsel %vm1142_vm7, %v1139_v52, %v2316_v51  ;;  %v1143_v59 = vsel %vm1142_vm7, %v1137_v47, %v1139_v52 }
  0xa8   : > { %1801 = vmatmul.mubr.msk.bf16.vlgmr.msra.gmra.mrb[0].mxu1 %vm263_vm3, %v2117_v44  ;;  %v1292_v60 = vpop.permute.xlu1 %1291  ;;  %v1152_v62 = vsel %vm270_vm1, %v1143_v59, 0 }
  0xa9   : > { %1934 = vmatpush3.bf16.msra.mxu1 %v405_v45  ;;  %449 = vmatprep.mubr.bf16.mxu1 %v2138_v0 }
  0xaa   : > { %2079 = vmatprep.subr.msk.bf16.mxu1 %vm270_vm1, %v2228_v15  ;;  %v1290_v57 = vpop.permute.xlu0 %1289 }
  0xab   : > { %v1296_v4 = vsel %vm1295_vm8, %v1290_v57, %v1292_v60 }
  0xac   : > { %1824 = vmatmul.mubr.msk.bf16.gmra.mrb[4].mxu0 %vm263_vm3, %v2118_v46  ;;  %v1443_v3 = vpop.permute.xlu1 %1442  ;;  %v1305_v9 = vsel %vm270_vm1, %v1296_v4, 0 }
  0xad   : > { %886 = vmatprep.mubr.bf16.mxu0 %v2138_v0 }
  0xae   : > { %v1294_v61 = vpop.permute.xlu0 %1293 }
  0xaf   : > { %v1297_v1 = vsel %vm1295_vm8, %v1292_v60, %v1294_v61  ;;  %v1311_v19 = vsel %vm270_vm1, %v1294_v61, 0 }
  0xb0   : > { %1802 = vmatmul.mubr.msk.bf16.gmra.mrb[4].mxu1 %vm263_vm3, %v2119_v48  ;;  %v1447_v7 = vpop.permute.xlu1 %1446 }
  0xb1   : > { %1935 = vmatprep.mubr.msk.bf16.mxu1 %vm263_vm3, %v2117_v44 }
  0xb2   : > { %v1445_v8 = vpop.permute.xlu0 %1444 }
  0xb3   : > { %v1450_v10 = vsel %vm1448_vm9, %v1445_v8, %v1447_v7  ;;  %v1449_v13 = vsel %vm1448_vm9, %v1443_v3, %v1445_v8 }
  0xb4   : > { %1834 = vmatmul.mubr.msk.bf16.vlgmr.msra.gmra.mrb[0].mxu0 %vm263_vm3, %v2120_v50  ;;  %v1458_v15 = vsel %vm270_vm1, %v1449_v13, 0 }
  0xb5   : > { %896 = vmatprep.mubr.bf16.mxu0 %v2138_v0  ;;  %1008 = vmatpush1.bf16.msra.mxu0 %v999_v53 }
  0xb6   : > { %1855 = vmatprep.subr.msk.bf16.mxu0 %vm270_vm1, %v1144_v54 }
  0xb8   : > { %1936 = vmatmul.mubr.msk.bf16.vlgmr.msra.gmra.mrb[8].mxu1 %vm263_vm3, %v2119_v48 }
  0xb9   : > { %1940 = vmatpush3.bf16.msra.mxu1 %v546_v55  ;;  %1941 = vmatprep.mubr.msk.bf16.mxu1 %vm263_vm3, %v2239_v21  ;;  %v1464_v21 = vsel %vm270_vm1, %v1447_v7, 0 }
  0xba   : > { %2080 = vmatprep.subr.msk.bf16.mxu1 %vm270_vm1, %v2258_v30  ;;  %v172_v30 = vlaneseq }
  0xbc   : > { %1835 = vmatmul.mubr.msk.bf16.gmra.mrb[4].mxu0 %vm263_vm3, %v2121_v56  ;;  %v173_v31 = vand.u32 127, %v172_v30 }
  0xbd   : > { %1039 = vmatprep.mubr.bf16.mxu0 %v2138_v0 }
  0xbe   : > { %v175_v43 = vadd.s32 256, %v173_v31 }
  0xc1   : > { %v1592_v60 = vpop.permute.xlu1 %1591 }
  0xc3   : > { %v1587_v52 = vpop.permute.xlu0 %1586 }
  0xc4   : > { %1942 = vmatmul.mubr.msk.bf16.vlgmr.msra.gmra.mrb[8].mxu1 %vm263_vm3, %v2267_v32  ;;  %1845 = vmatmul.mubr.msk.bf16.vlgmr.msra.gmra.mrb[0].mxu0 %vm263_vm3, %v2122_v58  ;;  %v174_v32 = vadd.s32 128, %v173_v31 }
  0xc5   : > { %1946 = vmatpush3.bf16.msra.mxu1 %v699_v63  ;;  %1049 = vmatprep.mubr.bf16.mxu0 %v2138_v0 }
  0xc6   : > { %2081 = vmatprep.subr.msk.bf16.mxu1 %vm270_vm1, %v2270_v33  ;;  %1161 = vmatpush1.bf16.msra.mxu0 %v1152_v62  ;;  %v176_v33 = vadd.s32 19, %v173_v31  ;;  %v177_v34 = vadd.s32 19, %v174_v32 }
  0xc7   : > { %1947 = vmatprep.mubr.msk.bf16.mxu1 %vm263_vm3, %v2116_v39  ;;  %1866 = vmatprep.subr.msk.bf16.mxu0 %vm270_vm1, %v1297_v1 }
  0xc8   : > { %v179_v35 = vcvt.s32.f32 %v176_v33  ;;  %v180_v36 = vcvt.s32.f32 %v177_v34 }
  0xca   : > { %v182_v37 = vadd.f32 0.5, %v179_v35  ;;  %v183_v38 = vadd.f32 0.5, %v180_v36 }
  0xcc   : > { %1846 = vmatmul.mubr.msk.bf16.gmra.mrb[4].mxu0 %vm263_vm3, %v2123_v2  ;;  %v186_v39 = vmul.f32 0.055555556, %v182_v37  ;;  %v187_v40 = vmul.f32 0.055555556, %v183_v38 }
  0xcd   : > { %1192 = vmatprep.mubr.bf16.mxu0 %v2138_v0 }
  0xce   : > { %v189_v41 = vfloor.f32 %v186_v39 }
  0xd0   : > { %1948 = vmatmul.mubr.msk.bf16.vlgmr.msra.gmra.mrb[8].mxu1 %vm263_vm3, %v2118_v46  ;;  %v192_v44 = vmul.f32 18.0, %v189_v41  ;;  %v178_v46 = vadd.s32 19, %v175_v43  ;;  %vm198_vm10 = vcmp.gt.f32.partialorder %v189_v41, 0.5  ;;  %vm201_vm11 = vcmp.lt.f32.partialorder %v189_v41, 16.5 }
  0xd1   : > { %1952 = vmatpush3.bf16.msra.mxu1 %v852_v5  ;;  %1953 = vmatprep.mubr.msk.bf16.mxu1 %vm263_vm3, %v2120_v50  ;;  %vm204_vm14 = vmand %vm198_vm10, %vm201_vm11 }
  0xd2   : > { %2082 = vmatprep.subr.msk.bf16.mxu1 %vm270_vm1, %v2287_v42  ;;  %v190_v42 = vfloor.f32 %v187_v40  ;;  %v195_v47 = vsub.f32 %v179_v35, %v192_v44  ;;  %v181_v49 = vcvt.s32.f32 %v178_v46 }
  0xd4   : > { %1856 = vmatmul.mubr.msk.bf16.vlgmr.msra.gmra.mrb[0].mxu0 %vm263_vm3, %v2124_v6  ;;  %v193_v45 = vmul.f32 18.0, %v190_v42  ;;  %vm199_vm12 = vcmp.gt.f32.partialorder %v190_v42, 0.5  ;;  %vm202_vm13 = vcmp.lt.f32.partialorder %v190_v42, 16.5  ;;  %vm207_vm15 = vcmp.gt.f32.partialorder %v195_v47, 0.5 }
  0xd5   : > { %1202 = vmatprep.mubr.bf16.mxu0 %v2138_v0  ;;  %1314 = vmatpush1.bf16.msra.mxu0 %v1305_v9  ;;  %vm205_vm0 = vmand %vm199_vm12, %vm202_vm13  ;;  %v184_v50 = vadd.f32 0.5, %v181_v49 }
  0xd6   : > { %1877 = vmatprep.subr.msk.bf16.mxu0 %vm270_vm1, %v1450_v10  ;;  %v196_v48 = vsub.f32 %v180_v36, %v193_v45  ;;  %vm210_vm2 = vmand %vm204_vm14, %vm207_vm15  ;;  %vm1697_vm15 = vcmask 1043608  }
  0xd7   : > { %v188_v53 = vmul.f32 0.055555556, %v184_v50 }
  0xd8   : > { %vm214_vm5 = vcmp.lt.f32.partialorder %v196_v48, 16.5 }
  0xd9   : > { %v191_v4 = vfloor.f32 %v188_v53 }
  0xdb   : > { %vm200_vm8 = vcmp.gt.f32.partialorder %v191_v4, 0.5  ;;  %vm203_vm9 = vcmp.lt.f32.partialorder %v191_v4, 16.5 }
  0xdc   : > { %1954 = vmatmul.mubr.msk.bf16.vlgmr.msra.gmra.mrb[8].mxu1 %vm263_vm3, %v2121_v56  ;;  %1857 = vmatmul.mubr.msk.bf16.gmra.mrb[4].mxu0 %vm263_vm3, %v2125_v11  ;;  %vm206_vm10 = vmand %vm200_vm8, %vm203_vm9 }
  0xdd   : > { %1958 = vmatpush3.bf16.msra.mxu1 %v1005_v12  ;;  %1345 = vmatprep.mubr.bf16.mxu0 %v2138_v0  ;;  %v1597_v12 = vpop.permute.xlu1 %1596 }
  0xde   : > { %2083 = vmatprep.subr.msk.bf16.mxu1 %vm270_vm1, %v2316_v51  ;;  %1959 = vmatprep.mubr.msk.bf16.mxu1 %vm263_vm3, %v2122_v58  ;;  %v2147_v58 = vmov 0.0  }
  0xe4   : > { %1867 = vmatmul.mubr.msk.bf16.vlgmr.msra.gmra.mrb[0].mxu0 %vm263_vm3, %v2126_v14 }
  0xe5   : > { %1355 = vmatprep.mubr.bf16.mxu0 %v2138_v0  ;;  %1467 = vmatpush1.bf16.msra.mxu0 %v1458_v15 }
  0xe8   : > { %1960 = vmatmul.mubr.msk.bf16.vlgmr.msra.gmra.mrb[8].mxu1 %vm263_vm3, %v2123_v2 }
  0xe9   : > { %1964 = vmatpush3.bf16.msra.mxu1 %v1158_v16  ;;  %1965 = vmatprep.mubr.msk.bf16.mxu1 %vm263_vm3, %v2124_v6 }
  0xea   : > { %2084 = vmatprep.subr.msk.bf16.mxu1 %vm270_vm1, %v1294_v61 }
  0xec   : > { %1868 = vmatmul.mubr.msk.bf16.gmra.mrb[4].mxu0 %vm263_vm3, %v2127_v17 }
  0xed   : > { %1498 = vmatprep.mubr.bf16.mxu0 %v2138_v0 }
  0xf4   : > { %1966 = vmatmul.mubr.msk.bf16.vlgmr.msra.gmra.mrb[8].mxu1 %vm263_vm3, %v2125_v11  ;;  %1878 = vmatmul.mubr.msk.bf16.vlgmr.msra.gmra.mrb[0].mxu0 %vm263_vm3, %v2128_v18 }
  0xf5   : > { %1970 = vmatpush3.bf16.msra.mxu1 %v1311_v19  ;;  %1508 = vmatprep.mubr.bf16.mxu0 %v2138_v0  ;;  %v1602_v19 = vpop.permute.xlu0 %1601 }
  0xf6   : > { %2085 = vmatprep.subr.msk.bf16.mxu1 %vm270_vm1, %v1447_v7  ;;  %1971 = vmatprep.mubr.msk.bf16.mxu1 %vm263_vm3, %v2126_v14  ;;  %vm208_vm1 = vcmp.gt.f32.partialorder %v196_v48, 0.5  ;;  %v194_v14 = vmul.f32 18.0, %v191_v4 }
  0xf7   : > { %vm211_vm4 = vmand %vm205_vm0, %vm208_vm1  ;;  %vm1698_vm0 = vcmask 1047556   ;;  %vm1680_vm1 = vcmask 154624  }
  0xf8   : > { %vm217_vm7 = vmand %vm211_vm4, %vm214_vm5  ;;  %v197_v30 = vsub.f32 %v181_v49, %v194_v14  ;;  %vm1701_vm4 = vcmask 396288   ;;  %vm1714_vm5 = vcmask 552328  }
  0xf9   : > { %v1782_v62 = vsel %vm217_vm7, 1.0, %v2147_v58 }
  0xfa   : > { %vm209_vm11 = vcmp.gt.f32.partialorder %v197_v30, 0.5  ;;  %vm215_vm13 = vcmp.lt.f32.partialorder %v197_v30, 16.5 }
  0xfb   : > { %vm212_vm12 = vmand %vm206_vm10, %vm209_vm11 }
  0xfc   : > { %1879 = vmatmul.mubr.msk.bf16.gmra.mrb[4].mxu0 %vm263_vm3, %v2129_v20  ;;  %vm218_vm14 = vmand %vm212_vm12, %vm215_vm13 }
  0xfd   : > { %v1783_v36 = vsel %vm218_vm14, 1.0, %v2147_v58 }
 0x100   : > { %1972 = vmatmul.mubr.msk.bf16.vlgmr.msra.gmra.mrb[8].mxu1 %vm263_vm3, %v2127_v17 }
 0x101   : > { %1976 = vmatpush3.bf16.msra.mxu1 %v1464_v21  ;;  %1977 = vmatprep.mubr.msk.bf16.mxu1 %vm263_vm3, %v2128_v18 }
 0x10c   : > { %1978 = vmatmul.mubr.msk.bf16.vlgmr.msra.gmra.mrb[8].mxu1 %vm263_vm3, %v2129_v20  ;;  %vm213_vm3 = vcmp.lt.f32.partialorder %v195_v47, 16.5 }
 0x10d   : > { %vm216_vm6 = vmand %vm210_vm2, %vm213_vm3  ;;  %vm1709_vm3 = vcmask 150528  }
 0x10e   : > { %v1781_v59 = vsel %vm216_vm6, 1.0, %v2147_v58  ;;  %vm2444_vm2 = vmor %vm1698_vm0, %vm1697_vm15 }
 0x17b   : > { %v441_v22 = vpop.f32.mrb[0].mxu1 }
 0x17c   : > { %v443_v23 = vpop.f32.mrb[1].mxu1 }
 0x17d   : > { %v445_v24 = vpop.f32.mrb[2].mxu1 }
 0x17e   : > { %v447_v25 = vpop.f32.mrb[3].mxu1 }
 0x183   : > { %v2418_v26 = vpop.f32.mrb[4].mxu1 }
 0x184   : > { %v2420_v27 = vpop.f32.mrb[5].mxu1 }
 0x185   : > { %v2422_v28 = vpop.f32.mrb[6].mxu1 }
 0x186   : > { %v2424_v29 = vpop.f32.mrb[7].mxu1 }
 0x1c7   : > { %v1500_v51 = vpop.f32.mrb[0].mxu0 }
 0x1c8   : > { %v1981_v54 = vadd.f32 %v1500_v51, %v441_v22  ;;  %v1502_v55 = vpop.f32.mrb[1].mxu0 }
 0x1c9   : > { %v1982_v56 = vadd.f32 %v1502_v55, %v443_v23  ;;  %v1504_v57 = vpop.f32.mrb[2].mxu0 }
 0x1ca   : > { %v1983_v61 = vadd.f32 %v1504_v57, %v445_v24  ;;  %v1604_v63 = vadd.f32 %v1981_v54, %v1587_v52  ;;  %v1506_v1 = vpop.f32.mrb[3].mxu0 }
 0x1cb   : > { %v1605_v2 = vadd.f32 %v1982_v56, %v1587_v52  ;;  %v1984_v3 = vadd.f32 %v1506_v1, %v447_v25 }
 0x1cc   : > { %v1616_v5 = vmul.f32 %v1781_v59, %v1604_v63  ;;  %v1607_v6 = vadd.f32 %v1983_v61, %v1592_v60 }
 0x1cd   : > { %v1617_v7 = vmul.f32 %v1782_v62, %v1605_v2  ;;  %v1608_v8 = vadd.f32 %v1984_v3, %v1592_v60 }
 0x1ce   : > { %v1619_v9 = vmul.f32 %v1781_v59, %v1607_v6 }
 0x1cf   : > { %v1620_v10 = vmul.f32 %v1782_v62, %v1608_v8  ;;  %v1510_v11 = vpop.f32.mrb[4].mxu0  ;;  %v1892_v13 = vpack.c.bf16 %v1617_v7, %v1616_v5 }
 0x1d0   : > { %v1985_v15 = vadd.f32 %v1510_v11, %v2418_v26  ;;  %v1512_v16 = vpop.f32.mrb[5].mxu0 }
 0x1d1   : > { %v1986_v17 = vadd.f32 %v1512_v16, %v2420_v27  ;;  %v1514_v18 = vpop.f32.mrb[6].mxu0  ;;  %1660 = vrot.lane.b32.xlu1 %v1892_v13, %s2148_s20  ;;  %v1894_v20 = vpack.c.bf16 %v1620_v10, %v1619_v9 }
 0x1d2   : > { %v1610_v21 = vadd.f32 %v1985_v15, %v1597_v12  ;;  %v1987_v22 = vadd.f32 %v1514_v18, %v2422_v28  ;;  %v1516_v23 = vpop.f32.mrb[7].mxu0 }
 0x1d3   : > { %v1611_v24 = vadd.f32 %v1986_v17, %v1597_v12  ;;  %v1988_v25 = vadd.f32 %v1516_v23, %v2424_v29  ;;  %1664 = vrot.lane.b32.xlu0 %v1894_v20, %s2148_s20 }
 0x1d4   : > { %v1622_v26 = vmul.f32 %v1781_v59, %v1610_v21  ;;  %v1613_v31 = vadd.f32 %v1987_v22, %v1602_v19 }
 0x1d5   : > { %v1623_v27 = vmul.f32 %v1782_v62, %v1611_v24  ;;  %v1614_v32 = vadd.f32 %v1988_v25, %v1602_v19 }
 0x1d6   : > { %v1625_v33 = vmul.f32 %v1781_v59, %v1613_v31 }
 0x1d7   : > { %v1626_v34 = vmul.f32 %v1782_v62, %v1614_v32  ;;  %v1896_v35 = vpack.c.bf16 %v1623_v27, %v1622_v26 }
 0x1d9   : > { %1668 = vrot.lane.b32.xlu1 %v1896_v35, %s2148_s20  ;;  %v1898_v28 = vpack.c.bf16 %v1626_v34, %v1625_v33 }
 0x1db   : > { %1672 = vrot.lane.b32.xlu0 %v1898_v28, %s2148_s20 }
 0x1df   : > { %v1979_v29 = vpop.f32.mrb[8].mxu1 }
 0x1e0   : > { %v1553_v37 = vpop.f32.mrb[9].mxu1  ;;  %v1612_v38 = vadd.f32 %v1979_v29, %v1597_v12 }
 0x1e1   : > { %v1606_v39 = vadd.f32 %v1587_v52, %v1553_v37  ;;  %v1980_v40 = vpop.f32.mrb[10].mxu1 }
 0x1e2   : > { %v1556_v41 = vpop.f32.mrb[11].mxu1  ;;  %v1615_v43 = vadd.f32 %v1980_v40, %v1602_v19  ;;  %v1624_v45 = vmul.f32 %v1783_v36, %v1612_v38 }
 0x1e3   : > { %v1618_v42 = vmul.f32 %v1783_v36, %v1606_v39  ;;  %v1609_v44 = vadd.f32 %v1592_v60, %v1556_v41 }
 0x1e4   : > { %v1627_v48 = vmul.f32 %v1783_v36, %v1615_v43  ;;  %v1897_v50 = vpack.c.bf16 %v1624_v45, %v1624_v45 }
 0x1e5   : > { %v1893_v46 = vpack.c.bf16 %v1618_v42, %v1618_v42  ;;  %v1621_v47 = vmul.f32 %v1783_v36, %v1609_v44 }
 0x1e6   : > { %v1899_v51 = vpack.c.bf16 %v1627_v48, %v1627_v48 }
 0x1e7   : > { %v1895_v49 = vpack.c.bf16 %v1621_v47, %v1621_v47  ;;  %1662 = vrot.lane.b32.xlu1 %v1893_v46, %s2148_s20 }
 0x1e9   : > { %1666 = vrot.lane.b32.xlu0 %v1895_v49, %s2148_s20 }
 0x1eb   : > { %1670 = vrot.lane.b32.xlu1 %v1897_v50, %s2148_s20 }
 0x1ed   : > { %1674 = vrot.lane.b32.xlu0 %v1899_v51, %s2148_s20 }
 0x243   : > { %v1661_v52 = vpop.permute.xlu1 %1660 }
 0x244   : > { %v1676_v54 = vrot.slane %v1661_v52, 4 }
 0x245   : > { %v1665_v55 = vpop.permute.xlu0 %1664 }
 0x246   : > { %v1681_v56 = vsel %vm1680_vm1, %v1676_v54, %v1661_v52  ;;  %v1677_v57 = vrot.slane %v1665_v55, 4 }
 0x247   : > { %1700 = vst.msk [vmem:[%s2442_s24] sm:$0xff] %vm2444_vm2, %v1681_v56 }
 0x248   : > { %1710 = vst.msk [vmem:[%s2442_s24] sm:$0xf] %vm1709_vm3, %v2138_v0  ;;  %v1683_v58 = vsel %vm1680_vm1, %v1677_v57, %v1665_v55 }
 0x249   : > { %1703 = vst.msk [vmem:[%s2442_s24 + $0xc] sm:$0xff] %vm2444_vm2, %v1683_v58 }
 0x24a   : > { %1711 = vst.msk [vmem:[%s2442_s24 + $0xc] sm:$0xf] %vm1709_vm3, %v2138_v0 }
 0x24b   : > { %v1669_v59 = vpop.permute.xlu1 %1668 }
 0x24c   : > { %v1678_v60 = vrot.slane %v1669_v59, 4 }
 0x24d   : > { %v1673_v61 = vpop.permute.xlu0 %1672 }
 0x24e   : > { %v1685_v62 = vsel %vm1680_vm1, %v1678_v60, %v1669_v59  ;;  %v1679_v63 = vrot.slane %v1673_v61, 4 }
 0x24f   : > { %1705 = vst.msk [vmem:[%s2442_s24 + $0x18] sm:$0xff] %vm2444_vm2, %v1685_v62 }
 0x250   : > { %1712 = vst.msk [vmem:[%s2442_s24 + $0x18] sm:$0xf] %vm1709_vm3, %v2138_v0  ;;  %v1687_v1 = vsel %vm1680_vm1, %v1679_v63, %v1673_v61 }
 0x251   : > { %1707 = vst.msk [vmem:[%s2442_s24 + $0x24] sm:$0xff] %vm2444_vm2, %v1687_v1 }
 0x252   : > { %1713 = vst.msk [vmem:[%s2442_s24 + $0x24] sm:$0xf] %vm1709_vm3, %v2138_v0 }
 0x259   : > { %v1663_v2 = vpop.permute.xlu1 %1662 }
 0x25a   : > { %v1682_v3 = vsel %vm1680_vm1, %v1676_v54, %v1663_v2 }
 0x25b   : > { %1702 = vst.msk [vmem:[%s2442_s24 + $0x8] sm:$0xf] %vm1701_vm4, %v1682_v3  ;;  %v1667_v4 = vpop.permute.xlu0 %1666 }
 0x25c   : > { %1715 = vst.msk [vmem:[%s2442_s24 + $0x8] sm:$0xf] %vm1714_vm5, %v2138_v0  ;;  %v1684_v5 = vsel %vm1680_vm1, %v1677_v57, %v1667_v4 }
 0x25d   : > { %1704 = vst.msk [vmem:[%s2442_s24 + $0x14] sm:$0xf] %vm1701_vm4, %v1684_v5  ;;  %v1671_v6 = vpop.permute.xlu1 %1670 }
 0x25e   : > { %1716 = vst.msk [vmem:[%s2442_s24 + $0x14] sm:$0xf] %vm1714_vm5, %v2138_v0  ;;  %v1686_v7 = vsel %vm1680_vm1, %v1678_v60, %v1671_v6 }
 0x25f   : > { %1706 = vst.msk [vmem:[%s2442_s24 + $0x20] sm:$0xf] %vm1701_vm4, %v1686_v7  ;;  %v1675_v8 = vpop.permute.xlu0 %1674 }
 0x260   : > { %1717 = vst.msk [vmem:[%s2442_s24 + $0x20] sm:$0xf] %vm1714_vm5, %v2138_v0  ;;  %v1688_v9 = vsel %vm1680_vm1, %v1679_v63, %v1675_v8 }
 0x261   : > { %1708 = vst.msk [vmem:[%s2442_s24 + $0x2c] sm:$0xf] %vm1701_vm4, %v1688_v9 }
 0x262   : > { %1718 = vst.msk [vmem:[%s2442_s24 + $0x2c] sm:$0xf] %vm1714_vm5, %v2138_v0 }
 0x263 PF: > { %s13_s12 = sadd.s32 1, %s2136_s12  }
 0x264   : > { %p10_p4 = scmp.ge.s32.totalorder %s13_s12, 4  }
 0x266   :  { %12 = sbr.rel (!%p10_p4) target bundleno = 1 (0x1), region = 70 }

// kernel: _lambda_.6
= control target key start
LH: loop header
LB: loop body
LE: loop exit
PB: predicated region body
PF: predicated region fallthrough
CT: control target
= control target key end

     0   :  { %s3044_s27 = smov 0   ;;  %s3491_s0 = inlined_call_operand.vmem [shape: bf16[2,3,324], index: 0, kind: input, shape index: {}]   ;;  %s3492_s1 = inlined_call_operand.vmem [shape: f32[3,1], index: 1, kind: input, shape index: {}]   ;;  %s3493_s2 = inlined_call_operand.vmem [shape: f32[3,1], index: 2, kind: input, shape index: {}]   ;;  %s3494_s3 = inlined_call_operand.vmem [shape: bf16[3,3,8,3], index: 3, kind: input, shape index: {}]   ;;  %s3495_s4 = inlined_call_operand.vmem [shape: f32[8,1], index: 4, kind: input, shape index: {}]   ;;  %s3496_s5 = inlined_call_operand.vmem [shape: bf16[3,3,8,8], index: 5, kind: input, shape index: {}]   ;;  %s3497_s6 = inlined_call_operand.vmem [shape: f32[8,1], index: 6, kind: input, shape index: {}]   ;;  %s3498_s7 = inlined_call_operand.vmem [shape: bf16[2,8,324], index: 7, kind: output, shape index: {0}]   ;;  %s3499_s8 = inlined_call_operand.vmem [shape: bf16[2,8,324], index: 8, kind: output, shape index: {1}]  }
   0x1 LB: > { %s2705_s28 = sadd.s32 4294967295, %s2982_s27   ;;  %p2709_p0 = scmp.ge.s32.totalorder %s2982_s27, 1  ;;  %s2982_s27 = sphi %s3044_s27, %s19_s27  }
   0x2   : > { %p265_p1 = scmp.lt.s32.totalorder %s2982_s27, 3 }
   0x4   : > { %p266_p2 = pnand %p2709_p0, %p265_p1 }
   0x5   : > { %v421_v0 = vld [vmem:[%s3492_s1] sm:$0x7] (!%p266_p2)  ;;  %v2984_v1 = vmov (!%p266_p2), 0   ;;  %v2985_v3 = vmov (!%p266_p2), 0.0   ;;  %v320_v4 = vlaneseq (!%p266_p2)  ;;  %p304_p3 = scmp.lt.s32.totalorder (!%p266_p2), %s2705_s28, 1  ;;  %v2988_v62 = vmov (!%p266_p2), 65535  }
   0x6   : > { %269 = sbr.rel (%p266_p2) target bundleno = 1238 (0x4d6), region = 48  ;;  %2963 = vset.pattern.permute.xlu0 (!%p266_p2), %v2984_v1  ;;  %570 = vmatprep.mubr.bf16.mxu0 (!%p266_p2), %v2984_v1  ;;  %v436_v2 = vld [vmem:[%s3493_s2] sm:$0x7] (!%p266_p2)  ;;  %v2986_v25 = vmov (!%p266_p2), 839922192   ;;  %s2989_s15 = smov (!%p266_p2), 127  }
   0x7   : > { %424 = vperm.xlu0 (!%p266_p2), %2963, %v421_v0   ;;  %2964 = vset.pattern.permute.xlu1 (!%p266_p2), %v2984_v1  ;;  %v3062_v5 = vand.u32 (!%p266_p2), 127, %v320_v4  ;;  %v427_v26 = vunpack.c.l.s4 (!%p266_p2), %v2986_v25  ;;  %v430_v29 = vshrl.u32 (!%p266_p2), %v320_v4, 7  ;;  %v2987_v38 = vmov (!%p266_p2), 1983009808   ;;  %v488_v57 = vld [vmem:[#allocation2] sm:$0x3f] (!%p266_p2) }
   0x8   : > { %2830 = vmatprep.subr.bf16.mxu1 (!%p266_p2), %v2985_v3  ;;  %v462_v39 = vunpack.c.l.s4 (!%p266_p2), %v2987_v38  ;;  %s2990_s16 = smov (!%p266_p2), 126   ;;  %s2992_s17 = smov (!%p266_p2), 110  }
   0x9   : > { %v3065_v6 = vadd.s32 (!%p266_p2), 128, %v3062_v5  ;;  %v3068_v7 = vadd.s32 (!%p266_p2), 256, %v3062_v5  ;;  %v324_v8 = vcvt.s32.f32 (!%p266_p2), %v3062_v5  ;;  %v428_v28 = vunpack.c.0.s8 (!%p266_p2), %v427_v26  ;;  %s2993_s18 = smov (!%p266_p2), 109   ;;  %s2994_s19 = smov (!%p266_p2), 108  }
   0xa   : > { %v463_v46 = vunpack.c.0.s8 (!%p266_p2), %v462_v39  ;;  %s2995_s20 = smov (!%p266_p2), 92   ;;  %s2996_s21 = smov (!%p266_p2), 91  }
   0xb   : > { %439 = vperm.xlu0 (!%p266_p2), %2963, %v436_v2   ;;  %v325_v9 = vcvt.s32.f32 (!%p266_p2), %v3065_v6  ;;  %v326_v10 = vcvt.s32.f32 (!%p266_p2), %v3068_v7  ;;  %v327_v11 = vadd.f32 (!%p266_p2), 0.5, %v324_v8  ;;  %v431_v30 = vsub.s32 (!%p266_p2), %v428_v28, %v430_v29  ;;  %s2997_s22 = smov (!%p266_p2), 90  }
   0xc   : > { %v3087_v51 = vsub.s32 (!%p266_p2), %v463_v46, %v430_v29  ;;  %v1587_v46 = vld [vmem:[%s3495_s4] sm:$0xff] (!%p266_p2) }
   0xd   : > { %v328_v12 = vadd.f32 0.5, %v325_v9  ;;  %v329_v13 = vadd.f32 0.5, %v326_v10  ;;  %v331_v14 = vmul.f32 0.055555556, %v327_v11  ;;  %s3530_s28 = smov (!%p304_p3, %s2705_s28), 1 }
   0xe   : > { %s2938_s11 = smul.u32 6, %s3530_s28 }
   0xf   : > { %v332_v15 = vmul.f32 0.055555556, %v328_v12  ;;  %v333_v16 = vmul.f32 0.055555556, %v329_v13  ;;  %v334_v17 = vfloor.f32 %v331_v14  ;;  %s2939_s12 = smul.u32 12, %s3530_s28 }
  0x10   : > { %s308_s14 = scalar_lea.vmem %s3491_s0, %s2938_s11  ;;  %s2998_s11 = smov 19  }
  0x11   : > { %v335_v18 = vfloor.f32 %v332_v15  ;;  %v336_v19 = vfloor.f32 %v333_v16  ;;  %v337_v20 = vmul.f32 18.0, %v334_v17  ;;  %vm343_vm0 = vcmp.gt.f32.partialorder %v334_v17, 0.5  ;;  %v418_v31 = vld [vmem:[%s308_s14] sm:$0x3f]  ;;  %s313_s23 = scalar_lea.vmem %s3498_s7, %s2939_s12 }
  0x12   : > { %vm346_vm1 = vcmp.lt.f32.partialorder %v334_v17, 16.5  ;;  %v420_v33 = vunpack.c.h.bf16 %v418_v31  ;;  %v419_v40 = vunpack.c.l.bf16 %v418_v31 }
  0x13   : > { %v338_v21 = vmul.f32 18.0, %v335_v18  ;;  %v339_v22 = vmul.f32 18.0, %v336_v19  ;;  %v340_v23 = vsub.f32 %v324_v8, %v337_v20  ;;  %vm344_vm2 = vcmp.gt.f32.partialorder %v335_v18, 0.5  ;;  %vm349_vm6 = vmand %vm343_vm0, %vm346_vm1 }
  0x14   : > { %vm347_vm3 = vcmp.lt.f32.partialorder %v335_v18, 16.5  ;;  %vm345_vm4 = vcmp.gt.f32.partialorder %v336_v19, 0.5  ;;  %vm348_vm5 = vcmp.lt.f32.partialorder %v336_v19, 16.5 }
  0x15   : > { %v341_v24 = vsub.f32 %v325_v9, %v338_v21  ;;  %v342_v27 = vsub.f32 %v326_v10, %v339_v22  ;;  %vm352_vm7 = vcmp.gt.f32.partialorder %v340_v23, 0.5  ;;  %vm350_vm8 = vmand %vm344_vm2, %vm347_vm3  ;;  %vm358_vm13 = vcmp.lt.f32.partialorder %v340_v23, 16.5 }
  0x16   : > { %vm351_vm10 = vmand %vm345_vm4, %vm348_vm5  ;;  %vm477_vm5 = vcmask 1041408  }
  0x17   : > { %vm353_vm9 = vcmp.gt.f32.partialorder %v341_v24, 0.5  ;;  %vm354_vm11 = vcmp.gt.f32.partialorder %v342_v27, 0.5  ;;  %vm355_vm12 = vmand %vm349_vm6, %vm352_vm7  ;;  %vm359_vm15 = vcmp.lt.f32.partialorder %v341_v24, 16.5  ;;  %vm360_vm1 = vcmp.lt.f32.partialorder %v342_v27, 16.5 }
  0x18   : > { %vm356_vm14 = vmand %vm350_vm8, %vm353_vm9  ;;  %vm478_vm6 = vsmask.f32 1280  ;;  %vm480_vm7 = vcmask 1043458   ;;  %vm481_vm8 = vsmask.f32 3328 }
  0x19   : > { %vm357_vm0 = vmand %vm351_vm10, %vm354_vm11  ;;  %vm484_vm11 = vcmask 553988  }
  0x1a   : > { %vm361_vm2 = vmand %vm355_vm12, %vm358_vm13  ;;  %vm485_vm12 = vsmask.f32 5376 }
  0x1b   : > { %vm362_vm3 = vmand %vm356_vm14, %vm359_vm15  ;;  %v2713_v35 = vsel %vm361_vm2, 1.0, %v2985_v3  ;;  %vm3509_vm2 = vcmask 1039360  }
  0x1c   : > { %vm363_vm4 = vmand %vm357_vm0, %vm360_vm1  ;;  %v2714_v36 = vsel %vm362_vm3, 1.0, %v2985_v3  ;;  %vm525_vm0 = vcmask 1040384   ;;  %vm3506_vm1 = vmmov 0   ;;  %vm3508_vm3 = vcmask 1031168  }
  0x1d   : > { %v2715_v37 = vsel %vm363_vm4, 1.0, %v2985_v3  ;;  %vm479_vm9 = vmand %vm477_vm5, %vm478_vm6  ;;  %v527_v63 = vsel %vm525_vm0, 4294967295, %v2988_v62  ;;  %2832 = vmatprep.mubr.msk.bf16.mxu1 %vm3506_vm1, %v2985_v3  ;;  %vm521_vm4 = vcmask 23552   ;;  %vm3504_vm6 = vcmask 891904  }
  0x1e   : > { %vm482_vm10 = vmand %vm480_vm7, %vm481_vm8  ;;  %v3104_v11 = vsel %vm477_vm5, %v527_v63, 0  ;;  %vm3505_vm5 = vcmask 900096   ;;  %vm3503_vm7 = vcmask 883712   ;;  %vm3502_vm8 = vcmask 752640  }
  0x1f   : > { %vm483_vm13 = vmor %vm482_vm10, %vm479_vm9  ;;  %vm3501_vm9 = vcmask 744448   ;;  %vm3500_vm10 = vcmask 736256  }
  0x20   : > { %vm486_vm14 = vmand %vm484_vm11, %vm485_vm12 }
  0x21   : > { %vm487_vm15 = vmor %vm486_vm14, %vm483_vm13 }
  0x86   : > { %v425_v32 = vpop.permute.xlu0 %424 }
  0x87   : > { %v432_v34 = vrot.slane %v425_v32, %v431_v30 }
  0x89   : > { %v435_v42 = vmul.f32 %v432_v34, %v420_v33  ;;  %v434_v47 = vmul.f32 %v432_v34, %v419_v40 }
  0x8a   : > { %v440_v41 = vpop.permute.xlu0 %439 }
  0x8b   : > { %v442_v43 = vmul.f32 %v2713_v35, %v440_v41  ;;  %v443_v44 = vmul.f32 %v2714_v36, %v440_v41  ;;  %v444_v45 = vmul.f32 %v2715_v37, %v440_v41 }
  0x8d   : > { %v447_v48 = vcombine.low %v442_v43, %v443_v44  ;;  %v450_v49 = vadd.f32 %v444_v45, %v435_v42 }
  0x8f   : > { %v449_v50 = vadd.f32 %v447_v48, %v434_v47  ;;  %v456_v53 = vpack.c.bf16 %v450_v49, %v450_v49 }
  0x91   : > { %v452_v52 = vcombine.high %v449_v50, %v449_v50  ;;  %v474_v56 = vrot.slane %v456_v53, %v3087_v51 }
  0x93   : > { %v2719_v54 = vpack.c.bf16 %v452_v52, %v449_v50 }
  0x95   : > { %v467_v55 = vrot.slane %v2719_v54, %v3087_v51 }
  0x97   : > { %v475_v58 = vcombine.low %v467_v55, %v474_v56 }
  0x99   : > { %v489_v59 = vsel %vm487_vm15, %v475_v58, %v488_v57  ;;  %v2720_v57 = vld [vmem:[%s3494_s3 + $0x4] sm:$0xf] }
  0x9a   : > { %490 = vst [vmem:[#allocation2] sm:$0x3f] %v489_v59 }
  0xa1   : > { %v491_v60 = vld [vmem:[#allocation2] sm:$0x3f] }
  0xa2   : > { %v712_v61 = vld [vmem:[#allocation2] sm:$0x3f]  ;;  %v3092_v0 = vrot.slane %v491_v60, %v3087_v51  ;;  %v496_v4 = vcombine.high %v491_v60, %v491_v60 }
  0xa3   : > { %v716_v2 = vcombine.high %v712_v61, %v712_v61  ;;  %v837_v8 = vld [vmem:[#allocation2] sm:$0x3f]  ;;  %v723_v16 = vrot.slane %v712_v61, %v3087_v51 }
  0xa4   : > { %512 = vrot.lane.b32.xlu0 %v3092_v0, %s2989_s15  ;;  %v3098_v9 = vcombine.high %v3092_v0, %v3092_v0  ;;  %v3101_v10 = vrot.slane %v496_v4, %v3087_v51  ;;  %v848_v15 = vrot.slane %v837_v8, %v3087_v51  ;;  %v962_v18 = vld [vmem:[#allocation2] sm:$0x3f]  ;;  %v623_v19 = vand.u32 %v3104_v11, %v3092_v0 }
  0xa5   : > { %v730_v13 = vrot.slane %v716_v2, %v3087_v51  ;;  %v731_v20 = vcombine.high %v723_v16, %v723_v16  ;;  %v966_v21 = vcombine.high %v962_v18, %v962_v18  ;;  %v1087_v22 = vld [vmem:[#allocation2] sm:$0x3f]  ;;  %v841_v23 = vcombine.high %v837_v8, %v837_v8 }
  0xa6   : > { %514 = vrot.lane.b32.xlu1 %v3098_v9, %s2989_s15  ;;  %v626_v12 = vand.u32 %v3104_v11, %v3098_v9  ;;  %v629_v14 = vand.u32 %v3104_v11, %v3101_v10  ;;  %v856_v17 = vcombine.high %v848_v15, %v848_v15  ;;  %v1098_v25 = vrot.slane %v1087_v22, %v3087_v51  ;;  %v1212_v29 = vld [vmem:[#allocation2] sm:$0x3f] }
  0xa7   : > { %v980_v24 = vrot.slane %v966_v21, %v3087_v51  ;;  %v855_v26 = vrot.slane %v841_v23, %v3087_v51  ;;  %v973_v27 = vrot.slane %v962_v18, %v3087_v51  ;;  %v1216_v31 = vcombine.high %v1212_v29, %v1212_v29  ;;  %v1337_v32 = vld [vmem:[#allocation2] sm:$0x3f] }
  0xa8   : > { %736 = vrot.lane.b32.xlu0 %v730_v13, %s2990_s16  ;;  %v1106_v28 = vcombine.high %v1098_v25, %v1098_v25  ;;  %v1091_v33 = vcombine.high %v1087_v22, %v1087_v22  ;;  %v1348_v35 = vrot.slane %v1337_v32, %v3087_v51  ;;  %v1223_v37 = vrot.slane %v1212_v29, %v3087_v51  ;;  %v1462_v39 = vld [vmem:[#allocation2] sm:$0x3f] }
  0xa9   : > { %v981_v30 = vcombine.high %v973_v27, %v973_v27  ;;  %v1230_v34 = vrot.slane %v1216_v31, %v3087_v51  ;;  %v1466_v41 = vcombine.high %v1462_v39, %v1462_v39  ;;  %v1341_v42 = vcombine.high %v1337_v32, %v1337_v32  ;;  %v492_v2 = vld [vmem:[%s3494_s3] sm:$0xf] }
  0xaa   : > { %516 = vrot.lane.b32.xlu1 %v3101_v10, %s2989_s15  ;;  %v1105_v36 = vrot.slane %v1091_v33, %v3087_v51  ;;  %v1356_v38 = vcombine.high %v1348_v35, %v1348_v35  ;;  %v1231_v40 = vcombine.high %v1223_v37, %v1223_v37  ;;  %v1473_v45 = vrot.slane %v1462_v39, %v3087_v51  ;;  %v2731_v33 = vld [vmem:[%s3494_s3 + $0x10] sm:$0xf] }
  0xab   : > { %v1480_v43 = vrot.slane %v1466_v41, %v3087_v51  ;;  %v1355_v44 = vrot.slane %v1341_v42, %v3087_v51  ;;  %v2734_v42 = vld [vmem:[%s3494_s3 + $0x14] sm:$0xf] }
  0xac   : > { %859 = vrot.lane.b32.xlu0 %v856_v17, %s2992_s17  ;;  %v1481_v47 = vcombine.high %v1473_v45, %v1473_v45 }
  0xae   : > { %734 = vrot.lane.b32.xlu1 %v731_v20, %s2990_s16 }
  0xb0   : > { %857 = vrot.lane.b32.xlu0 %v848_v15, %s2992_s17  ;;  %v2725_v15 = vld [vmem:[%s3494_s3 + $0x8] sm:$0xf] }
  0xb2   : > { %732 = vrot.lane.b32.xlu1 %v723_v16, %s2990_s16 }
  0xb4   : > { %986 = vrot.lane.b32.xlu0 %v980_v24, %s2993_s18  ;;  %v2728_v24 = vld [vmem:[%s3494_s3 + $0xc] sm:$0xf] }
  0xb6   : > { %861 = vrot.lane.b32.xlu1 %v855_v26, %s2992_s17 }
  0xb8   : > { %1109 = vrot.lane.b32.xlu0 %v1106_v28, %s2994_s19 }
  0xba   : > { %984 = vrot.lane.b32.xlu1 %v981_v30, %s2993_s18 }
  0xbc   : > { %1107 = vrot.lane.b32.xlu0 %v1098_v25, %s2994_s19 }
  0xbe   : > { %982 = vrot.lane.b32.xlu1 %v973_v27, %s2993_s18 }
  0xc0   : > { %1236 = vrot.lane.b32.xlu0 %v1230_v34, %s2995_s20 }
  0xc2   : > { %1111 = vrot.lane.b32.xlu1 %v1105_v36, %s2994_s19 }
  0xc4   : > { %1359 = vrot.lane.b32.xlu0 %v1356_v38, %s2996_s21 }
  0xc6   : > { %1234 = vrot.lane.b32.xlu1 %v1231_v40, %s2995_s20 }
  0xc8   : > { %1357 = vrot.lane.b32.xlu0 %v1348_v35, %s2996_s21 }
  0xca   : > { %1232 = vrot.lane.b32.xlu1 %v1223_v37, %s2995_s20 }
  0xcc   : > { %1486 = vrot.lane.b32.xlu0 %v1480_v43, %s2997_s22 }
  0xce   : > { %1361 = vrot.lane.b32.xlu1 %v1355_v44, %s2996_s21 }
  0xd0   : > { %1590 = vperm.xlu0 %2963, %v1587_v46  }
  0xd2   : > { %1484 = vrot.lane.b32.xlu1 %v1481_v47, %s2997_s22 }
  0xd6   : > { %1482 = vrot.lane.b32.xlu1 %v1473_v45, %s2997_s22 }
 0x116   : > { %v513_v48 = vpop.permute.xlu0 %512 }
 0x118   : > { %v515_v49 = vpop.permute.xlu1 %514 }
 0x119   : > { %v519_v52 = vsel %vm3509_vm2, %v513_v48, %v515_v49 }
 0x11a   : > { %v737_v50 = vpop.permute.xlu0 %736  ;;  %v530_v56 = vand.u32 %v3104_v11, %v519_v52 }
 0x11b   : > { %v751_v9 = vand.u32 %v737_v50, %v3104_v11 }
 0x11c   : > { %v517_v53 = vpop.permute.xlu1 %516 }
 0x11d   : > { %v536_v51 = vand.u32 %v3104_v11, %v517_v53  ;;  %v520_v54 = vsel %vm3509_vm2, %v515_v49, %v517_v53 }
 0x11e   : > { %v533_v55 = vand.u32 %v3104_v11, %v520_v54  ;;  %v860_v58 = vpop.permute.xlu0 %859 }
 0x11f   : > { %2831 = vmatpush3.bf16.msra.mxu1 %v536_v51 }
 0x120   : > { %538 = vmatprep.subr.bf16.mxu0 %v533_v55  ;;  %v735_v59 = vpop.permute.xlu1 %734  ;;  %2836 = vmatprep.subr.bf16.mxu1 %v2985_v3 }
 0x121   : > { %v740_v60 = vsel %vm3508_vm3, %v735_v59, %v737_v50  ;;  %539 = vmatpush1.bf16.msra.mxu0 %v530_v56  ;;  %v2737_v50 = vld [vmem:[%s3494_s3 + $0x18] sm:$0xf] }
 0x122   : > { %2833 = vmatmul.mubr.msk.bf16.vlgmr.msra.gmra.mrb[0].mxu1 %vm521_vm4, %v2720_v57  ;;  %631 = vmatprep.subr.bf16.mxu0 %v626_v12  ;;  %v748_v61 = vand.u32 %v740_v60, %v3104_v11  ;;  %v858_v63 = vpop.permute.xlu0 %857 }
 0x123   : > { %2837 = vmatpush3.bf16.msra.mxu1 %v629_v14  ;;  %2838 = vmatprep.mubr.msk.bf16.mxu1 %vm3506_vm1, %v2985_v3  ;;  %v864_v16 = vsel %vm3505_vm5, %v858_v63, %v860_v58 }
 0x124   : > { %2721 = vmatmul.mubr.msk.bf16.vlgmr.msra.gmra.mrb[0].mxu0 %vm521_vm4, %v2720_v57  ;;  %v733_v62 = vpop.permute.xlu1 %732  ;;  %2842 = vmatprep.subr.bf16.mxu1 %v2985_v3  ;;  %v870_v21 = vand.u32 %v864_v16, %v3104_v11 }
 0x125   : > { %632 = vmatpush1.bf16.msra.mxu0 %v623_v19  ;;  %663 = vmatprep.mubr.bf16.mxu0 %v2984_v1  ;;  %v739_v4 = vsel %vm3508_vm3, %v733_v62, %v735_v59  ;;  %v2743_v62 = vld [vmem:[%s3494_s3 + $0x20] sm:$0xf] }
 0x126   : > { %753 = vmatprep.subr.bf16.mxu0 %v748_v61  ;;  %v745_v0 = vand.u32 %v739_v4, %v3104_v11  ;;  %v987_v13 = vpop.permute.xlu0 %986 }
 0x127   : > { %v1001_v27 = vand.u32 %v987_v13, %v3104_v11 }
 0x128   : > { %v862_v8 = vpop.permute.xlu1 %861 }
 0x129   : > { %v865_v10 = vsel %vm3505_vm5, %v860_v58, %v862_v8  ;;  %v876_v18 = vand.u32 %v862_v8, %v3104_v11  ;;  %v2740_v58 = vld [vmem:[%s3494_s3 + $0x1c] sm:$0xf] }
 0x12a   : > { %v873_v12 = vand.u32 %v865_v10, %v3104_v11  ;;  %2839 = vmatmul.mubr.msk.bf16.vlgmr.msra.gmra.mrb[4].mxu1 %vm521_vm4, %v492_v2  ;;  %v1110_v20 = vpop.permute.xlu0 %1109 }
 0x12b   : > { %2843 = vmatpush3.bf16.msra.mxu1 %v751_v9  ;;  %2844 = vmatprep.mubr.msk.bf16.mxu1 %vm3506_vm1, %v2985_v3 }
 0x12c   : > { %2723 = vmatmul.mubr.msk.bf16.vlgmr.msra.gmra.mrb[4].mxu0 %vm521_vm4, %v492_v2  ;;  %v985_v14 = vpop.permute.xlu1 %984  ;;  %2848 = vmatprep.subr.bf16.mxu1 %v2985_v3 }
 0x12d   : > { %754 = vmatpush1.bf16.msra.mxu0 %v745_v0  ;;  %785 = vmatprep.mubr.bf16.mxu0 %v2984_v1  ;;  %v990_v19 = vsel %vm3504_vm6, %v985_v14, %v987_v13 }
 0x12e   : > { %878 = vmatprep.subr.bf16.mxu0 %v873_v12  ;;  %v998_v22 = vand.u32 %v990_v19, %v3104_v11  ;;  %v1108_v25 = vpop.permute.xlu0 %1107 }
 0x12f   : > { %v1114_v34 = vsel %vm3503_vm7, %v1108_v25, %v1110_v20 }
 0x130   : > { %v983_v17 = vpop.permute.xlu1 %982  ;;  %v1120_v38 = vand.u32 %v1114_v34, %v3104_v11 }
 0x131   : > { %v989_v26 = vsel %vm3504_vm6, %v983_v17, %v985_v14 }
 0x132   : > { %2845 = vmatmul.mubr.msk.bf16.vlgmr.msra.gmra.mrb[8].mxu1 %vm521_vm4, %v2725_v15  ;;  %v995_v30 = vand.u32 %v989_v26, %v3104_v11  ;;  %v1237_v32 = vpop.permute.xlu0 %1236 }
 0x133   : > { %2849 = vmatpush3.bf16.msra.mxu1 %v876_v18  ;;  %2850 = vmatprep.mubr.msk.bf16.mxu1 %vm3506_vm1, %v2985_v3  ;;  %v1251_v44 = vand.u32 %v1237_v32, %v3104_v11 }
 0x134   : > { %2726 = vmatmul.mubr.msk.bf16.vlgmr.msra.gmra.mrb[8].mxu0 %vm521_vm4, %v2725_v15  ;;  %v1112_v23 = vpop.permute.xlu1 %1111  ;;  %2854 = vmatprep.subr.bf16.mxu1 %v2985_v3 }
 0x135   : > { %879 = vmatpush1.bf16.msra.mxu0 %v870_v21  ;;  %910 = vmatprep.mubr.bf16.mxu0 %v2984_v1  ;;  %v1115_v28 = vsel %vm3503_vm7, %v1110_v20, %v1112_v23  ;;  %v1126_v36 = vand.u32 %v1112_v23, %v3104_v11 }
 0x136   : > { %1003 = vmatprep.subr.bf16.mxu0 %v998_v22  ;;  %v1123_v31 = vand.u32 %v1115_v28, %v3104_v11  ;;  %v1360_v39 = vpop.permute.xlu0 %1359 }
 0x138   : > { %v1235_v29 = vpop.permute.xlu1 %1234 }
 0x139   : > { %v1240_v37 = vsel %vm3502_vm8, %v1235_v29, %v1237_v32 }
 0x13a   : > { %2851 = vmatmul.mubr.msk.bf16.vlgmr.msra.gmra.mrb[12].mxu1 %vm521_vm4, %v2728_v24  ;;  %v1248_v40 = vand.u32 %v1240_v37, %v3104_v11  ;;  %v1358_v46 = vpop.permute.xlu0 %1357 }
 0x13b   : > { %2855 = vmatpush3.bf16.msra.mxu1 %v1001_v27  ;;  %2856 = vmatprep.mubr.msk.bf16.mxu1 %vm3506_vm1, %v2985_v3  ;;  %v1364_v52 = vsel %vm3501_vm9, %v1358_v46, %v1360_v39  ;;  %v370_v46 = vadd.s32 19, %v3062_v5 }
 0x13c   : > { %2729 = vmatmul.mubr.msk.bf16.vlgmr.msra.gmra.mrb[12].mxu0 %vm521_vm4, %v2728_v24  ;;  %2860 = vmatprep.subr.bf16.mxu1 %v2985_v3  ;;  %v1233_v35 = vpop.permute.xlu1 %1232  ;;  %v1370_v55 = vand.u32 %v1364_v52, %v3104_v11 }
 0x13d   : > { %1004 = vmatpush1.bf16.msra.mxu0 %v995_v30  ;;  %1035 = vmatprep.mubr.bf16.mxu0 %v2984_v1  ;;  %v1239_v43 = vsel %vm3502_vm8, %v1233_v35, %v1235_v29 }
 0x13e   : > { %1128 = vmatprep.subr.bf16.mxu0 %v1123_v31  ;;  %v1245_v47 = vand.u32 %v1239_v43, %v3104_v11  ;;  %v1487_v53 = vpop.permute.xlu0 %1486 }
 0x13f   : > { %v1501_v60 = vand.u32 %v1487_v53, %v3104_v11 }
 0x140   : > { %v1362_v41 = vpop.permute.xlu1 %1361 }
 0x141   : > { %v1365_v45 = vsel %vm3501_vm9, %v1360_v39, %v1362_v41  ;;  %v1376_v51 = vand.u32 %v1362_v41, %v3104_v11 }
 0x142   : > { %2857 = vmatmul.mubr.msk.bf16.vlgmr.msra.gmra.mrb[16].mxu1 %vm521_vm4, %v2731_v33  ;;  %v1373_v48 = vand.u32 %v1365_v45, %v3104_v11  ;;  %v372_v45 = vadd.s32 19, %v3068_v7 }
 0x143   : > { %2861 = vmatpush3.bf16.msra.mxu1 %v1126_v36  ;;  %2862 = vmatprep.mubr.msk.bf16.mxu1 %vm3506_vm1, %v2985_v3 }
 0x144   : > { %2732 = vmatmul.mubr.msk.bf16.vlgmr.msra.gmra.mrb[16].mxu0 %vm521_vm4, %v2731_v33  ;;  %2866 = vmatprep.subr.bf16.mxu1 %v2985_v3  ;;  %v1485_v49 = vpop.permute.xlu1 %1484  ;;  %v375_v52 = vcvt.s32.f32 %v372_v45 }
 0x145   : > { %1129 = vmatpush1.bf16.msra.mxu0 %v1120_v38  ;;  %1160 = vmatprep.mubr.bf16.mxu0 %v2984_v1  ;;  %v1490_v54 = vsel %vm3500_vm10, %v1485_v49, %v1487_v53 }
 0x146   : > { %1253 = vmatprep.subr.bf16.mxu0 %v1248_v40  ;;  %v1498_v56 = vand.u32 %v1490_v54, %v3104_v11  ;;  %v373_v54 = vcvt.s32.f32 %v370_v46 }
 0x148   : > { %v1483_v57 = vpop.permute.xlu1 %1482  ;;  %v376_v7 = vadd.f32 0.5, %v373_v54 }
 0x149   : > { %v1489_v59 = vsel %vm3500_vm10, %v1483_v57, %v1485_v49 }
 0x14a   : > { %2863 = vmatmul.mubr.msk.bf16.vlgmr.msra.gmra.mrb[20].mxu1 %vm521_vm4, %v2734_v42  ;;  %v1495_v61 = vand.u32 %v1489_v59, %v3104_v11 }
 0x14b   : > { %2867 = vmatpush3.bf16.msra.mxu1 %v1251_v44  ;;  %2868 = vmatprep.mubr.msk.bf16.mxu1 %vm3506_vm1, %v2985_v3 }
 0x14c   : > { %2735 = vmatmul.mubr.msk.bf16.vlgmr.msra.gmra.mrb[20].mxu0 %vm521_vm4, %v2734_v42  ;;  %2872 = vmatprep.subr.bf16.mxu1 %v2985_v3 }
 0x14d   : > { %1254 = vmatpush1.bf16.msra.mxu0 %v1245_v47  ;;  %1285 = vmatprep.mubr.bf16.mxu0 %v2984_v1  ;;  %v371_v47 = vadd.s32 19, %v3065_v6 }
 0x14e   : > { %1378 = vmatprep.subr.bf16.mxu0 %v1373_v48 }
 0x152   : > { %2869 = vmatmul.mubr.msk.bf16.vlgmr.msra.gmra.mrb[24].mxu1 %vm521_vm4, %v2737_v50 }
 0x153   : > { %2873 = vmatpush3.bf16.msra.mxu1 %v1376_v51  ;;  %2874 = vmatprep.mubr.msk.bf16.mxu1 %vm3506_vm1, %v2985_v3 }
 0x154   : > { %2738 = vmatmul.mubr.msk.bf16.vlgmr.msra.gmra.mrb[24].mxu0 %vm521_vm4, %v2737_v50  ;;  %2878 = vmatprep.subr.bf16.mxu1 %v2985_v3 }
 0x155   : > { %1379 = vmatpush1.bf16.msra.mxu0 %v1370_v55  ;;  %1410 = vmatprep.mubr.bf16.mxu0 %v2984_v1 }
 0x156   : > { %1503 = vmatprep.subr.bf16.mxu0 %v1498_v56 }
 0x15a   : > { %2875 = vmatmul.mubr.msk.bf16.vlgmr.msra.gmra.mrb[28].mxu1 %vm521_vm4, %v2740_v58 }
 0x15b   : > { %2879 = vmatpush3.bf16.msra.mxu1 %v1501_v60  ;;  %2880 = vmatprep.mubr.msk.bf16.mxu1 %vm3506_vm1, %v2985_v3 }
 0x15c   : > { %2741 = vmatmul.mubr.msk.bf16.vlgmr.msra.gmra.mrb[28].mxu0 %vm521_vm4, %v2740_v58  ;;  %2884 = vmatprep.subr.bf16.mxu1 %v2985_v3  ;;  %v374_v58 = vcvt.s32.f32 %v371_v47 }
 0x15d   : > { %1504 = vmatpush1.bf16.msra.mxu0 %v1495_v61  ;;  %1535 = vmatprep.mubr.bf16.mxu0 %v2984_v1 }
 0x162   : > { %2881 = vmatmul.mubr.msk.bf16.vlgmr.msra.gmra.mrb[32].mxu1 %vm521_vm4, %v2743_v62 }
 0x163   : > { %2886 = vmatprep.mubr.msk.bf16.mxu1 %vm3506_vm1, %v2985_v3 }
 0x164   : > { %2744 = vmatmul.mubr.msk.bf16.vlgmr.msra.gmra.mrb[32].mxu0 %vm521_vm4, %v2743_v62  ;;  %v378_v62 = vadd.f32 0.5, %v375_v52 }
 0x165   : > { %1697 = vmatprep.mubr.bf16.mxu0 %v2984_v1 }
 0x1f5   : > { %v613_v11 = vpop.f32.mrb[0].mxu1 }
 0x1f6   : > { %v2834_v63 = vpop.f32.mrb[1].mxu1 }
 0x1f7   : > { %v572_v2 = vpop.f32.mrb[0].mxu0  ;;  %v616_v4 = vpop.f32.mrb[2].mxu1 }
 0x1f8   : > { %v574_v8 = vpop.f32.mrb[1].mxu0  ;;  %v2835_v9 = vpop.f32.mrb[3].mxu1 }
 0x1f9   : > { %v576_v10 = vpop.f32.mrb[2].mxu0  ;;  %v379_v9 = vmul.f32 0.055555556, %v376_v7 }
 0x1fa   : > { %v577_v12 = vpop.f32.mrb[3].mxu0 }
 0x1fd   : > { %v706_v0 = vpop.f32.mrb[4].mxu1 }
 0x1fe   : > { %v707_v13 = vadd.f32 %v706_v0, %v613_v11  ;;  %v2840_v14 = vpop.f32.mrb[5].mxu1  ;;  %v377_v11 = vadd.f32 0.5, %v374_v58 }
 0x1ff   : > { %v665_v15 = vpop.f32.mrb[4].mxu0  ;;  %v709_v16 = vpop.f32.mrb[6].mxu1 }
 0x200   : > { %v666_v17 = vadd.f32 %v665_v15, %v572_v2  ;;  %v667_v18 = vpop.f32.mrb[5].mxu0  ;;  %v2841_v19 = vpop.f32.mrb[7].mxu1  ;;  %v381_v2 = vmul.f32 0.055555556, %v378_v62 }
 0x201   : > { %v668_v20 = vadd.f32 %v667_v18, %v574_v8  ;;  %v669_v21 = vpop.f32.mrb[6].mxu0  ;;  %v382_v18 = vfloor.f32 %v379_v9 }
 0x202   : > { %v670_v22 = vpop.f32.mrb[7].mxu0 }
 0x203   : > { %vm391_vm13 = vcmp.gt.f32.partialorder %v382_v18, 0.5  ;;  %vm394_vm14 = vcmp.lt.f32.partialorder %v382_v18, 16.5 }
 0x204   : > { %vm397_vm9 = vmand %vm391_vm13, %vm394_vm14 }
 0x205   : > { %v828_v23 = vpop.f32.mrb[8].mxu1 }
 0x206   : > { %v836_v24 = vadd.f32 %v828_v23, %v707_v13  ;;  %v2846_v25 = vpop.f32.mrb[9].mxu1  ;;  %v380_v13 = vmul.f32 0.055555556, %v377_v11 }
 0x207   : > { %v787_v26 = vpop.f32.mrb[8].mxu0  ;;  %v831_v27 = vpop.f32.mrb[10].mxu1 }
 0x208   : > { %v834_v28 = vadd.f32 %v787_v26, %v666_v17  ;;  %v789_v29 = vpop.f32.mrb[9].mxu0  ;;  %v2847_v30 = vpop.f32.mrb[11].mxu1  ;;  %v384_v17 = vfloor.f32 %v381_v2  ;;  %v383_v19 = vfloor.f32 %v380_v13  ;;  %v385_v26 = vmul.f32 18.0, %v382_v18 }
 0x209   : > { %v835_v31 = vadd.f32 %v789_v29, %v668_v20  ;;  %v791_v32 = vpop.f32.mrb[10].mxu0 }
 0x20a   : > { %v792_v33 = vpop.f32.mrb[11].mxu0  ;;  %v387_v23 = vmul.f32 18.0, %v384_v17  ;;  %v386_v30 = vmul.f32 18.0, %v383_v19  ;;  %vm393_vm11 = vcmp.gt.f32.partialorder %v384_v17, 0.5  ;;  %vm396_vm12 = vcmp.lt.f32.partialorder %v384_v17, 16.5 }
 0x20b   : > { %vm392_vm15 = vcmp.gt.f32.partialorder %v383_v19, 0.5  ;;  %vm395_vm0 = vcmp.lt.f32.partialorder %v383_v19, 16.5  ;;  %vm399_vm4 = vmand %vm393_vm11, %vm396_vm12  ;;  %v2581_v19 = vld [vmem:[%s3497_s6] sm:$0xff] }
 0x20c   : > { %vm398_vm7 = vmand %vm392_vm15, %vm395_vm0 }
 0x20d   : > { %v953_v34 = vpop.f32.mrb[12].mxu1 }
 0x20e   : > { %v961_v35 = vadd.f32 %v953_v34, %v836_v24  ;;  %v2852_v36 = vpop.f32.mrb[13].mxu1  ;;  %v390_v34 = vsub.f32 %v375_v52, %v387_v23 }
 0x20f   : > { %v912_v37 = vpop.f32.mrb[12].mxu0  ;;  %v956_v38 = vpop.f32.mrb[14].mxu1  ;;  %v389_v36 = vsub.f32 %v374_v58, %v386_v30 }
 0x210   : > { %v959_v39 = vadd.f32 %v912_v37, %v834_v28  ;;  %v914_v40 = vpop.f32.mrb[13].mxu0  ;;  %v2853_v41 = vpop.f32.mrb[15].mxu1  ;;  %vm402_vm10 = vcmp.gt.f32.partialorder %v390_v34, 0.5  ;;  %vm408_vm1 = vcmp.lt.f32.partialorder %v390_v34, 16.5 }
 0x211   : > { %v960_v42 = vadd.f32 %v914_v40, %v835_v31  ;;  %v916_v43 = vpop.f32.mrb[14].mxu0  ;;  %vm401_vm6 = vcmp.gt.f32.partialorder %v389_v36, 0.5  ;;  %vm405_vm5 = vmand %vm399_vm4, %vm402_vm10  ;;  %vm407_vm12 = vcmp.lt.f32.partialorder %v389_v36, 16.5  ;;  %vm1655_vm10 = vcmask 1043456   ;;  %v1632_v36 = vld [vmem:[%s3496_s5] sm:$0xf] }
 0x212   : > { %v917_v44 = vpop.f32.mrb[15].mxu0  ;;  %vm404_vm11 = vmand %vm398_vm7, %vm401_vm6  ;;  %vm1624_vm6 = vcmask 396288   ;;  %vm1626_vm7 = vcmask 150528   ;;  %vm1651_vm4 = vcmask 64512  }
 0x213   : > { %vm411_vm13 = vmand %vm405_vm5, %vm408_vm1  ;;  %vm1620_vm1 = vcmask 1043608  }
 0x214   : > { %vm410_vm0 = vmand %vm404_vm11, %vm407_vm12  ;;  %vm3514_vm11 = vcmask 1031168   ;;  %vm3515_vm12 = vmmov 0  }
 0x215   : > { %v1078_v48 = vpop.f32.mrb[16].mxu1  ;;  %v3296_v7 = vsel %vm410_vm0, 1.0, %v2985_v3 }
 0x216   : > { %v1086_v49 = vadd.f32 %v1078_v48, %v961_v35  ;;  %v2858_v50 = vpop.f32.mrb[17].mxu1  ;;  %v388_v35 = vsub.f32 %v373_v54, %v385_v26  ;;  %v3290_v54 = vsel %vm411_vm13, 1.0, %v2985_v3  ;;  %vm3516_vm13 = vmmov %vm3514_vm11 }
 0x217   : > { %v1037_v53 = vpop.f32.mrb[16].mxu0  ;;  %v1081_v51 = vpop.f32.mrb[18].mxu1 }
 0x218   : > { %v1084_v55 = vadd.f32 %v1037_v53, %v959_v39  ;;  %v1039_v56 = vpop.f32.mrb[17].mxu0  ;;  %v2859_v57 = vpop.f32.mrb[19].mxu1  ;;  %vm400_vm8 = vcmp.gt.f32.partialorder %v388_v35, 0.5  ;;  %vm406_vm2 = vcmp.lt.f32.partialorder %v388_v35, 16.5 }
 0x219   : > { %v1085_v59 = vadd.f32 %v1039_v56, %v960_v42  ;;  %v1041_v60 = vpop.f32.mrb[18].mxu0  ;;  %vm403_vm3 = vmand %vm397_vm9, %vm400_vm8  ;;  %vm1628_vm8 = vcmask 552328   ;;  %vm3512_vm9 = vcmask 1039360  }
 0x21a   : > { %v1042_v61 = vpop.f32.mrb[19].mxu0  ;;  %vm409_vm14 = vmand %vm403_vm3, %vm406_vm2  ;;  %vm1621_vm2 = vcmask 1047556   ;;  %vm1615_vm3 = vcmask 154624  }
 0x21b   : > { %vm3309_vm5 = vmor %vm1621_vm2, %vm1620_vm1  ;;  %vm3519_vm1 = vcmask 891904  }
 0x21c   : > { %vm3513_vm15 = vmmov %vm3512_vm9 }
 0x21d   : > { %v1203_v5 = vpop.f32.mrb[20].mxu1  ;;  %vm3520_vm2 = vmmov %vm3519_vm1 }
 0x21e   : > { %v1211_v63 = vadd.f32 %v1203_v5, %v1086_v49  ;;  %v2864_v6 = vpop.f32.mrb[21].mxu1  ;;  %v1591_v49 = vpop.permute.xlu0 %1590 }
 0x21f   : > { %v1162_v4 = vpop.f32.mrb[20].mxu0  ;;  %v1206_v8 = vpop.f32.mrb[22].mxu1 }
 0x220   : > { %v1209_v10 = vadd.f32 %v1162_v4, %v1084_v55  ;;  %v1164_v12 = vpop.f32.mrb[21].mxu0  ;;  %v2865_v0 = vpop.f32.mrb[23].mxu1 }
 0x221   : > { %v1210_v14 = vadd.f32 %v1164_v12, %v1085_v59  ;;  %v1166_v15 = vpop.f32.mrb[22].mxu0  ;;  %v3293_v59 = vsel %vm409_vm14, 1.0, %v2985_v3  ;;  %vm3517_vm14 = vcmask 900096  }
 0x222   : > { %v1167_v16 = vpop.f32.mrb[23].mxu0  ;;  %vm3518_vm0 = vmmov %vm3517_vm14 }
 0x225   : > { %v1328_v20 = vpop.f32.mrb[24].mxu1 }
 0x226   : > { %v1336_v21 = vadd.f32 %v1328_v20, %v1211_v63  ;;  %v2870_v22 = vpop.f32.mrb[25].mxu1 }
 0x227   : > { %v1287_v24 = vpop.f32.mrb[24].mxu0  ;;  %v1331_v25 = vpop.f32.mrb[26].mxu1 }
 0x228   : > { %v1334_v27 = vadd.f32 %v1287_v24, %v1209_v10  ;;  %v1289_v28 = vpop.f32.mrb[25].mxu0  ;;  %v2871_v29 = vpop.f32.mrb[27].mxu1 }
 0x229   : > { %v1335_v31 = vadd.f32 %v1289_v28, %v1210_v14  ;;  %v1291_v32 = vpop.f32.mrb[26].mxu0  ;;  %v2748_v28 = vld [vmem:[%s3496_s5 + $0x4] sm:$0xf] }
 0x22a   : > { %v1292_v33 = vpop.f32.mrb[27].mxu0 }
 0x22d   : > { %v1453_v37 = vpop.f32.mrb[28].mxu1 }
 0x22e   : > { %v1461_v38 = vadd.f32 %v1453_v37, %v1336_v21  ;;  %v2876_v39 = vpop.f32.mrb[29].mxu1 }
 0x22f   : > { %v1412_v40 = vpop.f32.mrb[28].mxu0  ;;  %v1456_v41 = vpop.f32.mrb[30].mxu1 }
 0x230   : > { %v1459_v42 = vadd.f32 %v1412_v40, %v1334_v27  ;;  %v1414_v43 = vpop.f32.mrb[29].mxu0  ;;  %v2877_v44 = vpop.f32.mrb[31].mxu1 }
 0x231   : > { %v1460_v45 = vadd.f32 %v1414_v43, %v1335_v31  ;;  %v1416_v46 = vpop.f32.mrb[30].mxu0 }
 0x232   : > { %v1417_v47 = vpop.f32.mrb[31].mxu0 }
 0x235   : > { %v1578_v48 = vpop.f32.mrb[32].mxu1 }
 0x236   : > { %v1586_v50 = vadd.f32 %v1578_v48, %v1461_v38  ;;  %v2882_v52 = vpop.f32.mrb[33].mxu1 }
 0x237   : > { %v1537_v53 = vpop.f32.mrb[32].mxu0  ;;  %v1581_v51 = vpop.f32.mrb[34].mxu1 }
 0x238   : > { %v1595_v55 = vadd.f32 %v1591_v49, %v1586_v50  ;;  %v1584_v56 = vadd.f32 %v1537_v53, %v1459_v42  ;;  %v1539_v57 = vpop.f32.mrb[33].mxu0  ;;  %v2883_v58 = vpop.f32.mrb[35].mxu1  ;;  %v2762_v51 = vld [vmem:[%s3496_s5 + $0xc] sm:$0xf] }
 0x239   : > { %v1585_v60 = vadd.f32 %v1539_v57, %v1460_v45  ;;  %v1541_v61 = vpop.f32.mrb[34].mxu0  ;;  %v2758_v45 = vld [vmem:[%s3496_s5 + $0x8] sm:$0xf] }
 0x23a   : > { %v1593_v62 = vadd.f32 %v1591_v49, %v1584_v56  ;;  %v1542_v11 = vpop.f32.mrb[35].mxu0  ;;  %v1598_v5 = vmul.f32 %v3290_v54, %v1595_v55 }
 0x23b   : > { %v1594_v63 = vadd.f32 %v1591_v49, %v1585_v60  ;;  %v2766_v11 = vld [vmem:[%s3496_s5 + $0x10] sm:$0xf] }
 0x23c   : > { %v1596_v6 = vmul.f32 %v3293_v59, %v1593_v62  ;;  %v2791_v2 = vpack.c.bf16 %v1598_v5, %v1598_v5 }
 0x23d   : > { %v1597_v4 = vmul.f32 %v3296_v7, %v1594_v63 }
 0x23e   : > { %1612 = vrot.lane.b32.xlu0 %v2791_v2, %s2998_s11 }
 0x23f   : > { %v2790_v8 = vpack.c.bf16 %v1597_v4, %v1596_v6 }
 0x241   : > { %1610 = vrot.lane.b32.xlu1 %v2790_v8, %s2998_s11 }
 0x2b0   : > { %v1613_v0 = vpop.permute.xlu0 %1612 }
 0x2b3   : > { %v1611_v9 = vpop.permute.xlu1 %1610 }
 0x2b4   : > { %v1614_v12 = vrot.slane %v1611_v9, 4 }
 0x2b6   : > { %v1616_v13 = vsel %vm1615_vm3, %v1614_v12, %v1611_v9  ;;  %v1617_v14 = vsel %vm1615_vm3, %v1614_v12, %v1613_v0  ;;  %v2770_v9 = vld [vmem:[%s3496_s5 + $0x14] sm:$0xf] }
 0x2b7   : > { %1623 = vst.msk [vmem:[%s313_s23] sm:$0xff] %vm3309_vm5, %v1616_v13 }
 0x2b8   : > { %1625 = vst.msk [vmem:[%s313_s23 + $0x8] sm:$0xf] %vm1624_vm6, %v1617_v14 }
 0x2b9   : > { %1627 = vst.msk [vmem:[%s313_s23] sm:$0xf] %vm1626_vm7, %v2984_v1 }
 0x2ba   : > { %1629 = vst.msk [vmem:[%s313_s23 + $0x8] sm:$0xf] %vm1628_vm8, %v2984_v1 }
 0x2c0   : > { %v1630_v15 = vld [vmem:[%s313_s23] sm:$0xff] }
 0x2c1   : > { %v2749_v16 = vcombine.low %v1630_v15, %v1630_v15  ;;  %v2750_v17 = vcombine.high %v1630_v15, %v1630_v15  ;;  %v2975_v18 = vld [vmem:[%s313_s23 + $0x8] ss:$0 sps:$4 sm:$0xff]  }
 0x2c2   : > { %v1756_v29 = vsel %vm1655_vm10, %v2975_v18, 0 }
 0x2c3   : > { %1643 = vrot.lane.b32.xlu1 %v2749_v16, %s2989_s15  ;;  %1645 = vrot.lane.b32.xlu0 %v2750_v17, %s2989_s15  ;;  %v1750_v32 = vsel %vm1655_vm10, %v2749_v16, 0 }
 0x2c7   : > { %1841 = vrot.lane.b32.xlu0 %v2749_v16, %s2990_s16  ;;  %1647 = vrot.lane.b32.xlu1 %v2975_v18, %s2989_s15 }
 0x2cb   : > { %1845 = vrot.lane.b32.xlu0 %v2975_v18, %s2990_s16  ;;  %1843 = vrot.lane.b32.xlu1 %v2750_v17, %s2990_s16 }
 0x2cf   : > { %1949 = vrot.lane.b32.xlu0 %v2750_v17, %s2992_s17  ;;  %1947 = vrot.lane.b32.xlu1 %v2749_v16, %s2992_s17 }
 0x2d3   : > { %2053 = vrot.lane.b32.xlu0 %v2749_v16, %s2993_s18  ;;  %1951 = vrot.lane.b32.xlu1 %v2975_v18, %s2992_s17 }
 0x2d7   : > { %2057 = vrot.lane.b32.xlu0 %v2975_v18, %s2993_s18  ;;  %2055 = vrot.lane.b32.xlu1 %v2750_v17, %s2993_s18 }
 0x2db   : > { %2161 = vrot.lane.b32.xlu0 %v2750_v17, %s2994_s19  ;;  %2159 = vrot.lane.b32.xlu1 %v2749_v16, %s2994_s19 }
 0x2df   : > { %2265 = vrot.lane.b32.xlu0 %v2749_v16, %s2995_s20  ;;  %2163 = vrot.lane.b32.xlu1 %v2975_v18, %s2994_s19  ;;  %s318_s19 = scalar_lea.vmem %s3499_s8, %s2939_s12 }
 0x2e3   : > { %2269 = vrot.lane.b32.xlu0 %v2975_v18, %s2995_s20  ;;  %2267 = vrot.lane.b32.xlu1 %v2750_v17, %s2995_s20 }
 0x2e7   : > { %2373 = vrot.lane.b32.xlu0 %v2750_v17, %s2996_s21  ;;  %2371 = vrot.lane.b32.xlu1 %v2749_v16, %s2996_s21 }
 0x2eb   : > { %2477 = vrot.lane.b32.xlu0 %v2749_v16, %s2997_s22  ;;  %2375 = vrot.lane.b32.xlu1 %v2975_v18, %s2996_s21 }
 0x2ef   : > { %2481 = vrot.lane.b32.xlu0 %v2975_v18, %s2997_s22  ;;  %2479 = vrot.lane.b32.xlu1 %v2750_v17, %s2997_s22 }
 0x2f3   : > { %2584 = vperm.xlu1 %2964, %v2581_v19  }
 0x335   : > { %v1644_v20 = vpop.permute.xlu1 %1643  ;;  %v1646_v21 = vpop.permute.xlu0 %1645 }
 0x336   : > { %v1649_v22 = vsel %vm3512_vm9, %v1644_v20, %v1646_v21  ;;  %vm3521_vm9 = vcmask 883712  }
 0x337   : > { %v1657_v27 = vsel %vm1655_vm10, %v1649_v22, 0 }
 0x339   : > { %v1648_v23 = vpop.permute.xlu1 %1647  ;;  %v1842_v24 = vpop.permute.xlu0 %1841 }
 0x33a   : > { %v1650_v25 = vsel %vm3513_vm15, %v1646_v21, %v1648_v23  ;;  %v1663_v26 = vsel %vm1655_vm10, %v1648_v23, 0  ;;  %vm3522_vm15 = vmmov %vm3521_vm9 }
 0x33b   : > { %2752 = vmatprep.subr.msk.bf16.mxu0 %vm1655_vm10, %v1650_v25  ;;  %2885 = vmatpush3.bf16.msra.mxu1 %v1663_v26 }
 0x33c   : > { %1666 = vmatpush1.bf16.msra.mxu0 %v1657_v27  ;;  %2890 = vmatprep.subr.bf16.mxu1 %v2985_v3 }
 0x33d   : > { %v1844_v30 = vpop.permute.xlu1 %1843  ;;  %2755 = vmatprep.subr.msk.bf16.mxu0 %vm1655_vm10, %v2750_v17  ;;  %v1846_v31 = vpop.permute.xlu0 %1845  ;;  %v2774_v17 = vld [vmem:[%s3496_s5 + $0x18] sm:$0xf] }
 0x33e   : > { %2887 = vmatmul.mubr.msk.bf16.vlgmr.msra.gmra.mrb[36].mxu1 %vm1651_vm4, %v2748_v28  ;;  %v1848_v33 = vsel %vm3514_vm11, %v1844_v30, %v1846_v31  ;;  %v1847_v37 = vsel %vm3516_vm13, %v1842_v24, %v1844_v30  ;;  %v1859_v38 = vsel %vm1655_vm10, %v1846_v31, 0  ;;  %vm3523_vm11 = vcmask 752640   ;;  %v2778_v24 = vld [vmem:[%s3496_s5 + $0x1c] sm:$0xf] }
 0x33f   : > { %2753 = vmatmul.mubr.msk.bf16.vlgmr.msra.gmra.mrb[36].mxu0 %vm1651_vm4, %v2748_v28  ;;  %2891 = vmatpush3.bf16.msra.mxu1 %v1756_v29  ;;  %v1853_v42 = vsel %vm1655_vm10, %v1847_v37, 0  ;;  %vm3524_vm13 = vmmov %vm3523_vm11  ;;  %v2782_v28 = vld [vmem:[%s3496_s5 + $0x20] sm:$0xf] }
 0x340   : > { %1759 = vmatpush1.bf16.msra.mxu0 %v1750_v32  ;;  %2892 = vmatprep.mubr.msk.bf16.mxu1 %vm3515_vm12, %v2985_v3 }
 0x341   : > { %v1948_v34 = vpop.permute.xlu1 %1947  ;;  %2759 = vmatprep.subr.msk.bf16.mxu0 %vm1655_vm10, %v1848_v33  ;;  %v1950_v35 = vpop.permute.xlu0 %1949  ;;  %1790 = vmatprep.mubr.bf16.mxu0 %v2984_v1 }
 0x342   : > { %2896 = vmatprep.subr.bf16.mxu1 %v2985_v3  ;;  %v1953_v46 = vsel %vm3518_vm0, %v1948_v34, %v1950_v35 }
 0x343   : > { %v1959_v49 = vsel %vm1655_vm10, %v1953_v46, 0 }
 0x345   : > { %v1952_v39 = vpop.permute.xlu1 %1951  ;;  %v2054_v40 = vpop.permute.xlu0 %2053 }
 0x346   : > { %v1954_v41 = vsel %vm3517_vm14, %v1950_v35, %v1952_v39  ;;  %2893 = vmatmul.mubr.msk.bf16.vlgmr.msra.gmra.mrb[40].mxu1 %vm1651_vm4, %v1632_v36  ;;  %v1965_v47 = vsel %vm1655_vm10, %v1952_v39, 0  ;;  %vm3525_vm14 = vcmask 744448  }
 0x347   : > { %2756 = vmatmul.mubr.msk.bf16.vlgmr.msra.gmra.mrb[40].mxu0 %vm1651_vm4, %v1632_v36  ;;  %2897 = vmatpush3.bf16.msra.mxu1 %v1859_v38  ;;  %vm3526_vm0 = vmmov %vm3525_vm14 }
 0x348   : > { %1862 = vmatpush1.bf16.msra.mxu0 %v1853_v42  ;;  %2898 = vmatprep.mubr.msk.bf16.mxu1 %vm3515_vm12, %v2985_v3 }
 0x349   : > { %2763 = vmatprep.subr.msk.bf16.mxu0 %vm1655_vm10, %v1954_v41  ;;  %v2056_v43 = vpop.permute.xlu1 %2055  ;;  %v2058_v44 = vpop.permute.xlu0 %2057  ;;  %1893 = vmatprep.mubr.bf16.mxu0 %v2984_v1 }
 0x34a   : > { %2902 = vmatprep.subr.bf16.mxu1 %v2985_v3  ;;  %v2060_v52 = vsel %vm3519_vm1, %v2056_v43, %v2058_v44  ;;  %v2059_v55 = vsel %vm3520_vm2, %v2054_v40, %v2056_v43  ;;  %v2071_v56 = vsel %vm1655_vm10, %v2058_v44, 0  ;;  %vm3527_vm1 = vcmask 736256  }
 0x34b   : > { %v2065_v58 = vsel %vm1655_vm10, %v2059_v55, 0  ;;  %vm3528_vm2 = vmmov %vm3527_vm1 }
 0x34d   : > { %v2160_v48 = vpop.permute.xlu1 %2159  ;;  %v2162_v50 = vpop.permute.xlu0 %2161 }
 0x34e   : > { %2899 = vmatmul.mubr.msk.bf16.vlgmr.msra.gmra.mrb[44].mxu1 %vm1651_vm4, %v2758_v45  ;;  %v2165_v5 = vsel %vm3522_vm15, %v2160_v48, %v2162_v50 }
 0x34f   : > { %2760 = vmatmul.mubr.msk.bf16.vlgmr.msra.gmra.mrb[44].mxu0 %vm1651_vm4, %v2758_v45  ;;  %2903 = vmatpush3.bf16.msra.mxu1 %v1965_v47  ;;  %v2171_v6 = vsel %vm1655_vm10, %v2165_v5, 0 }
 0x350   : > { %1968 = vmatpush1.bf16.msra.mxu0 %v1959_v49  ;;  %2904 = vmatprep.mubr.msk.bf16.mxu1 %vm3515_vm12, %v2985_v3 }
 0x351   : > { %2767 = vmatprep.subr.msk.bf16.mxu0 %vm1655_vm10, %v2060_v52  ;;  %1999 = vmatprep.mubr.bf16.mxu0 %v2984_v1  ;;  %v2164_v53 = vpop.permute.xlu1 %2163  ;;  %v2266_v57 = vpop.permute.xlu0 %2265 }
 0x352   : > { %2908 = vmatprep.subr.bf16.mxu1 %v2985_v3  ;;  %v2166_v60 = vsel %vm3521_vm9, %v2162_v50, %v2164_v53  ;;  %v2177_v63 = vsel %vm1655_vm10, %v2164_v53, 0 }
 0x355   : > { %v2268_v61 = vpop.permute.xlu1 %2267  ;;  %v2270_v62 = vpop.permute.xlu0 %2269 }
 0x356   : > { %2905 = vmatmul.mubr.msk.bf16.vlgmr.msra.gmra.mrb[48].mxu1 %vm1651_vm4, %v2762_v51  ;;  %v2272_v4 = vsel %vm3523_vm11, %v2268_v61, %v2270_v62  ;;  %v2271_v12 = vsel %vm3524_vm13, %v2266_v57, %v2268_v61  ;;  %v2283_v0 = vsel %vm1655_vm10, %v2270_v62, 0 }
 0x357   : > { %2764 = vmatmul.mubr.msk.bf16.vlgmr.msra.gmra.mrb[48].mxu0 %vm1651_vm4, %v2762_v51  ;;  %2909 = vmatpush3.bf16.msra.mxu1 %v2071_v56  ;;  %v2277_v14 = vsel %vm1655_vm10, %v2271_v12, 0 }
 0x358   : > { %2074 = vmatpush1.bf16.msra.mxu0 %v2065_v58  ;;  %2910 = vmatprep.mubr.msk.bf16.mxu1 %vm3515_vm12, %v2985_v3 }
 0x359   : > { %2771 = vmatprep.subr.msk.bf16.mxu0 %vm1655_vm10, %v2166_v60  ;;  %2105 = vmatprep.mubr.bf16.mxu0 %v2984_v1  ;;  %v2372_v2 = vpop.permute.xlu1 %2371  ;;  %v2374_v8 = vpop.permute.xlu0 %2373 }
 0x35a   : > { %2914 = vmatprep.subr.bf16.mxu1 %v2985_v3  ;;  %v2377_v18 = vsel %vm3526_vm0, %v2372_v2, %v2374_v8 }
 0x35b   : > { %v2383_v22 = vsel %vm1655_vm10, %v2377_v18, 0 }
 0x35d   : > { %v2376_v13 = vpop.permute.xlu1 %2375  ;;  %v2478_v15 = vpop.permute.xlu0 %2477 }
 0x35e   : > { %2911 = vmatmul.mubr.msk.bf16.vlgmr.msra.gmra.mrb[52].mxu1 %vm1651_vm4, %v2766_v11  ;;  %v2378_v16 = vsel %vm3525_vm14, %v2374_v8, %v2376_v13  ;;  %v2389_v19 = vsel %vm1655_vm10, %v2376_v13, 0 }
 0x35f   : > { %2768 = vmatmul.mubr.msk.bf16.vlgmr.msra.gmra.mrb[52].mxu0 %vm1651_vm4, %v2766_v11  ;;  %2915 = vmatpush3.bf16.msra.mxu1 %v2177_v63 }
 0x360   : > { %2180 = vmatpush1.bf16.msra.mxu0 %v2171_v6  ;;  %2916 = vmatprep.mubr.msk.bf16.mxu1 %vm3515_vm12, %v2985_v3 }
 0x361   : > { %2775 = vmatprep.subr.msk.bf16.mxu0 %vm1655_vm10, %v2272_v4  ;;  %2211 = vmatprep.mubr.bf16.mxu0 %v2984_v1  ;;  %v2480_v20 = vpop.permute.xlu1 %2479  ;;  %v2482_v21 = vpop.permute.xlu0 %2481 }
 0x362   : > { %2920 = vmatprep.subr.bf16.mxu1 %v2985_v3  ;;  %v2484_v23 = vsel %vm3527_vm1, %v2480_v20, %v2482_v21  ;;  %v2483_v25 = vsel %vm3528_vm2, %v2478_v15, %v2480_v20  ;;  %v2495_v26 = vsel %vm1655_vm10, %v2482_v21, 0 }
 0x363   : > { %v2489_v27 = vsel %vm1655_vm10, %v2483_v25, 0 }
 0x366   : > { %2917 = vmatmul.mubr.msk.bf16.vlgmr.msra.gmra.mrb[56].mxu1 %vm1651_vm4, %v2770_v9 }
 0x367   : > { %2772 = vmatmul.mubr.msk.bf16.vlgmr.msra.gmra.mrb[56].mxu0 %vm1651_vm4, %v2770_v9  ;;  %2921 = vmatpush3.bf16.msra.mxu1 %v2283_v0 }
 0x368   : > { %2286 = vmatpush1.bf16.msra.mxu0 %v2277_v14  ;;  %2922 = vmatprep.mubr.msk.bf16.mxu1 %vm3515_vm12, %v2985_v3 }
 0x369   : > { %2779 = vmatprep.subr.msk.bf16.mxu0 %vm1655_vm10, %v2378_v16  ;;  %2317 = vmatprep.mubr.bf16.mxu0 %v2984_v1 }
 0x36a   : > { %2926 = vmatprep.subr.bf16.mxu1 %v2985_v3 }
 0x36e   : > { %2923 = vmatmul.mubr.msk.bf16.vlgmr.msra.gmra.mrb[60].mxu1 %vm1651_vm4, %v2774_v17 }
 0x36f   : > { %2776 = vmatmul.mubr.msk.bf16.vlgmr.msra.gmra.mrb[60].mxu0 %vm1651_vm4, %v2774_v17  ;;  %2927 = vmatpush3.bf16.msra.mxu1 %v2389_v19 }
 0x370   : > { %2392 = vmatpush1.bf16.msra.mxu0 %v2383_v22  ;;  %2928 = vmatprep.mubr.msk.bf16.mxu1 %vm3515_vm12, %v2985_v3 }
 0x371   : > { %2783 = vmatprep.subr.msk.bf16.mxu0 %vm1655_vm10, %v2484_v23  ;;  %2423 = vmatprep.mubr.bf16.mxu0 %v2984_v1 }
 0x372   : > { %2932 = vmatprep.subr.bf16.mxu1 %v2985_v3 }
 0x376   : > { %2929 = vmatmul.mubr.msk.bf16.vlgmr.msra.gmra.mrb[64].mxu1 %vm1651_vm4, %v2778_v24 }
 0x377   : > { %2780 = vmatmul.mubr.msk.bf16.vlgmr.msra.gmra.mrb[64].mxu0 %vm1651_vm4, %v2778_v24  ;;  %2933 = vmatpush3.bf16.msra.mxu1 %v2495_v26 }
 0x378   : > { %2498 = vmatpush1.bf16.msra.mxu0 %v2489_v27  ;;  %2934 = vmatprep.mubr.msk.bf16.mxu1 %vm3515_vm12, %v2985_v3 }
 0x379   : > { %2529 = vmatprep.mubr.bf16.mxu0 %v2984_v1 }
 0x37e   : > { %2935 = vmatmul.mubr.msk.bf16.vlgmr.msra.gmra.mrb[68].mxu1 %vm1651_vm4, %v2782_v28 }
 0x37f   : > { %2784 = vmatmul.mubr.msk.bf16.vlgmr.msra.gmra.mrb[68].mxu0 %vm1651_vm4, %v2782_v28 }
 0x411   : > { %v1740_v29 = vpop.f32.mrb[36].mxu1 }
 0x412   : > { %v1699_v30 = vpop.f32.mrb[36].mxu0  ;;  %v2888_v31 = vpop.f32.mrb[37].mxu1 }
 0x413   : > { %v1701_v32 = vpop.f32.mrb[37].mxu0  ;;  %v1743_v33 = vpop.f32.mrb[38].mxu1 }
 0x414   : > { %v1703_v34 = vpop.f32.mrb[38].mxu0  ;;  %v2889_v35 = vpop.f32.mrb[39].mxu1 }
 0x415   : > { %v1704_v36 = vpop.f32.mrb[39].mxu0 }
 0x419   : > { %v1833_v37 = vpop.f32.mrb[40].mxu1 }
 0x41a   : > { %v1792_v3 = vpop.f32.mrb[40].mxu0  ;;  %v1834_v38 = vadd.f32 %v1833_v37, %v1740_v29  ;;  %v2894_v39 = vpop.f32.mrb[41].mxu1 }
 0x41b   : > { %v1793_v40 = vadd.f32 %v1792_v3, %v1699_v30  ;;  %v1794_v41 = vpop.f32.mrb[41].mxu0  ;;  %v1836_v42 = vpop.f32.mrb[42].mxu1 }
 0x41c   : > { %v1795_v43 = vadd.f32 %v1794_v41, %v1701_v32  ;;  %v1796_v44 = vpop.f32.mrb[42].mxu0  ;;  %v2895_v45 = vpop.f32.mrb[43].mxu1 }
 0x41d   : > { %v1797_v46 = vpop.f32.mrb[43].mxu0 }
 0x421   : > { %v1936_v47 = vpop.f32.mrb[44].mxu1 }
 0x422   : > { %v1944_v48 = vadd.f32 %v1936_v47, %v1834_v38  ;;  %v1895_v49 = vpop.f32.mrb[44].mxu0  ;;  %v2900_v50 = vpop.f32.mrb[45].mxu1 }
 0x423   : > { %v1942_v52 = vadd.f32 %v1895_v49, %v1793_v40  ;;  %v1897_v53 = vpop.f32.mrb[45].mxu0  ;;  %v1939_v51 = vpop.f32.mrb[46].mxu1 }
 0x424   : > { %v1943_v55 = vadd.f32 %v1897_v53, %v1795_v43  ;;  %v1899_v56 = vpop.f32.mrb[46].mxu0  ;;  %v2901_v57 = vpop.f32.mrb[47].mxu1 }
 0x425   : > { %v1900_v58 = vpop.f32.mrb[47].mxu0  ;;  %v2585_v56 = vpop.permute.xlu1 %2584 }
 0x429   : > { %v2042_v60 = vpop.f32.mrb[48].mxu1 }
 0x42a   : > { %v2050_v61 = vadd.f32 %v2042_v60, %v1944_v48  ;;  %v2001_v62 = vpop.f32.mrb[48].mxu0  ;;  %v2906_v11 = vpop.f32.mrb[49].mxu1 }
 0x42b   : > { %v2048_v5 = vadd.f32 %v2001_v62, %v1942_v52  ;;  %v2003_v63 = vpop.f32.mrb[49].mxu0  ;;  %v2045_v6 = vpop.f32.mrb[50].mxu1 }
 0x42c   : > { %v2049_v2 = vadd.f32 %v2003_v63, %v1943_v55  ;;  %v2005_v4 = vpop.f32.mrb[50].mxu0  ;;  %v2907_v8 = vpop.f32.mrb[51].mxu1 }
 0x42d   : > { %v2006_v9 = vpop.f32.mrb[51].mxu0 }
 0x431   : > { %v2148_v12 = vpop.f32.mrb[52].mxu1 }
 0x432   : > { %v2156_v0 = vadd.f32 %v2148_v12, %v2050_v61  ;;  %v2107_v13 = vpop.f32.mrb[52].mxu0  ;;  %v2912_v14 = vpop.f32.mrb[53].mxu1 }
 0x433   : > { %v2154_v15 = vadd.f32 %v2107_v13, %v2048_v5  ;;  %v2109_v16 = vpop.f32.mrb[53].mxu0  ;;  %v2151_v17 = vpop.f32.mrb[54].mxu1 }
 0x434   : > { %v2155_v18 = vadd.f32 %v2109_v16, %v2049_v2  ;;  %v2111_v19 = vpop.f32.mrb[54].mxu0  ;;  %v2913_v20 = vpop.f32.mrb[55].mxu1 }
 0x435   : > { %v2112_v21 = vpop.f32.mrb[55].mxu0 }
 0x439   : > { %v2254_v22 = vpop.f32.mrb[56].mxu1 }
 0x43a   : > { %v2262_v23 = vadd.f32 %v2254_v22, %v2156_v0  ;;  %v2213_v24 = vpop.f32.mrb[56].mxu0  ;;  %v2918_v25 = vpop.f32.mrb[57].mxu1 }
 0x43b   : > { %v2260_v26 = vadd.f32 %v2213_v24, %v2154_v15  ;;  %v2215_v27 = vpop.f32.mrb[57].mxu0  ;;  %v2257_v28 = vpop.f32.mrb[58].mxu1 }
 0x43c   : > { %v2261_v29 = vadd.f32 %v2215_v27, %v2155_v18  ;;  %v2217_v30 = vpop.f32.mrb[58].mxu0  ;;  %v2919_v31 = vpop.f32.mrb[59].mxu1 }
 0x43d   : > { %v2218_v32 = vpop.f32.mrb[59].mxu0 }
 0x441   : > { %v2360_v33 = vpop.f32.mrb[60].mxu1 }
 0x442   : > { %v2368_v34 = vadd.f32 %v2360_v33, %v2262_v23  ;;  %v2319_v35 = vpop.f32.mrb[60].mxu0  ;;  %v2924_v36 = vpop.f32.mrb[61].mxu1 }
 0x443   : > { %v2366_v37 = vadd.f32 %v2319_v35, %v2260_v26  ;;  %v2321_v3 = vpop.f32.mrb[61].mxu0  ;;  %v2363_v38 = vpop.f32.mrb[62].mxu1 }
 0x444   : > { %v2367_v39 = vadd.f32 %v2321_v3, %v2261_v29  ;;  %v2323_v40 = vpop.f32.mrb[62].mxu0  ;;  %v2925_v41 = vpop.f32.mrb[63].mxu1 }
 0x445   : > { %v2324_v42 = vpop.f32.mrb[63].mxu0 }
 0x449   : > { %v2466_v43 = vpop.f32.mrb[64].mxu1 }
 0x44a   : > { %v2474_v44 = vadd.f32 %v2466_v43, %v2368_v34  ;;  %v2425_v45 = vpop.f32.mrb[64].mxu0  ;;  %v2930_v46 = vpop.f32.mrb[65].mxu1 }
 0x44b   : > { %v2472_v47 = vadd.f32 %v2425_v45, %v2366_v37  ;;  %v2427_v48 = vpop.f32.mrb[65].mxu0  ;;  %v2469_v49 = vpop.f32.mrb[66].mxu1 }
 0x44c   : > { %v2473_v50 = vadd.f32 %v2427_v48, %v2367_v39  ;;  %v2429_v52 = vpop.f32.mrb[66].mxu0  ;;  %v2931_v53 = vpop.f32.mrb[67].mxu1 }
 0x44d   : > { %v2430_v51 = vpop.f32.mrb[67].mxu0 }
 0x451   : > { %v2572_v55 = vpop.f32.mrb[68].mxu1 }
 0x452   : > { %v2580_v57 = vadd.f32 %v2572_v55, %v2474_v44  ;;  %v2531_v58 = vpop.f32.mrb[68].mxu0  ;;  %v2936_v60 = vpop.f32.mrb[69].mxu1 }
 0x453   : > { %v2578_v61 = vadd.f32 %v2531_v58, %v2472_v47  ;;  %v2533_v62 = vpop.f32.mrb[69].mxu0  ;;  %v2575_v11 = vpop.f32.mrb[70].mxu1 }
 0x454   : > { %v2589_v5 = vadd.f32 %v2585_v56, %v2580_v57  ;;  %v2579_v63 = vadd.f32 %v2533_v62, %v2473_v50  ;;  %v2535_v6 = vpop.f32.mrb[70].mxu0  ;;  %v2937_v2 = vpop.f32.mrb[71].mxu1 }
 0x455   : > { %v2587_v4 = vadd.f32 %v2585_v56, %v2578_v61  ;;  %v2536_v8 = vpop.f32.mrb[71].mxu0 }
 0x456   : > { %v2588_v9 = vadd.f32 %v2585_v56, %v2579_v63  ;;  %v2592_v12 = vmul.f32 %v3290_v54, %v2589_v5 }
 0x457   : > { %v2590_v0 = vmul.f32 %v3293_v59, %v2587_v4 }
 0x458   : > { %v2591_v13 = vmul.f32 %v3296_v7, %v2588_v9  ;;  %v2793_v14 = vpack.c.bf16 %v2592_v12, %v2592_v12 }
 0x45a   : > { %2606 = vrot.lane.b32.xlu1 %v2793_v14, %s2998_s11  ;;  %v2792_v15 = vpack.c.bf16 %v2591_v13, %v2590_v0 }
 0x45c   : > { %2604 = vrot.lane.b32.xlu0 %v2792_v15, %s2998_s11 }
 0x4cc   : > { %v2607_v18 = vpop.permute.xlu1 %2606 }
 0x4ce   : > { %v2605_v16 = vpop.permute.xlu0 %2604 }
 0x4cf   : > { %v2608_v17 = vrot.slane %v2605_v16, 4 }
 0x4d1   : > { %v2609_v54 = vsel %vm1615_vm3, %v2608_v17, %v2605_v16  ;;  %v2610_v59 = vsel %vm1615_vm3, %v2608_v17, %v2607_v18 }
 0x4d2   : > { %2613 = vst.msk [vmem:[%s318_s19] sm:$0xff] %vm3309_vm5, %v2609_v54 }
 0x4d3   : > { %2614 = vst.msk [vmem:[%s318_s19 + $0x8] sm:$0xf] %vm1624_vm6, %v2610_v59 }
 0x4d4   : > { %2615 = vst.msk [vmem:[%s318_s19] sm:$0xf] %vm1626_vm7, %v2984_v1 }
 0x4d5   : > { %2616 = vst.msk [vmem:[%s318_s19 + $0x8] sm:$0xf] %vm1628_vm8, %v2984_v1 }
 0x4d6 PF: > { %s19_s27 = sadd.s32 1, %s2982_s27  }
 0x4d7   : > { %p16_p4 = scmp.ge.s32.totalorder %s19_s27, 4  }
 0x4d9   :  { %18 = sbr.rel (!%p16_p4) target bundleno = 1 (0x1), region = 106 }

// kernel: _lambda_.7
= control target key start
LH: loop header
LB: loop body
LE: loop exit
PB: predicated region body
PF: predicated region fallthrough
CT: control target
= control target key end

     0   :  { %s4120_s30 = smov 0   ;;  %s4867_s0 = inlined_call_operand.vmem [shape: bf16[2,8,324], index: 0, kind: input, shape index: {}]   ;;  %s4868_s1 = inlined_call_operand.vmem [shape: bf16[3,3,8,8], index: 1, kind: input, shape index: {}]   ;;  %s4869_s2 = inlined_call_operand.vmem [shape: f32[8,1], index: 2, kind: input, shape index: {}]   ;;  %s4870_s3 = inlined_call_operand.vmem [shape: bf16[3,3,8,16], index: 3, kind: input, shape index: {}]   ;;  %s4871_s4 = inlined_call_operand.vmem [shape: f32[8,1], index: 4, kind: input, shape index: {}]   ;;  %s4872_s5 = inlined_call_operand.vmem [shape: bf16[3,3,8,24], index: 5, kind: input, shape index: {}]   ;;  %s4873_s6 = inlined_call_operand.vmem [shape: f32[8,1], index: 6, kind: input, shape index: {}]   ;;  %s4874_s7 = inlined_call_operand.vmem [shape: bf16[1,1,8,32], index: 7, kind: input, shape index: {}]   ;;  %s4875_s8 = inlined_call_operand.vmem [shape: f32[8,1], index: 8, kind: input, shape index: {}]   ;;  %s4876_s9 = inlined_call_operand.vmem [shape: bf16[2,8,324], index: 9, kind: output, shape index: {}]  }
   0x1 LB: > { %s3647_s10 = sadd.s32 4294967295, %s4056_s30   ;;  %p3651_p0 = scmp.ge.s32.totalorder %s4056_s30, 1  ;;  %s4056_s30 = sphi %s4120_s30, %s19_s30  }
   0x2   : > { %p287_p1 = scmp.lt.s32.totalorder %s4056_s30, 3 }
   0x4   : > { %p288_p2 = pnand %p3651_p0, %p287_p1 }
   0x5   : > { %p323_p3 = scmp.lt.s32.totalorder (!%p288_p2), %s3647_s10, 1  ;;  %v4058_v0 = vmov (!%p288_p2), 0.0   ;;  %vm402_vm0 = vcmask (!%p288_p2), 551936   ;;  %vm4885_vm1 = vmmov (!%p288_p2), 0   ;;  %v4060_v5 = vmov (!%p288_p2), 0   ;;  %s4061_s15 = smov (!%p288_p2), 127  }
   0x6   : > { %291 = sbr.rel (%p288_p2) target bundleno = 2111 (0x83f), region = 56  ;;  %3830 = vmatprep.subr.bf16.mxu1 (!%p288_p2), %v4058_v0  ;;  %3832 = vmatprep.mubr.msk.bf16.mxu1 (!%p288_p2), %vm4885_vm1, %v4058_v0  ;;  %404 = vst [vmem:[#allocation2] sm:$0xf0] (!%p288_p2), %v4060_v5  ;;  %405 = vst [vmem:[#allocation2 + $0x8] sm:$0xf0] (!%p288_p2), %v4060_v5  ;;  %s4062_s16 = smov (!%p288_p2), 126  }
   0x7   : > { %476 = vmatprep.mubr.bf16.mxu0 (!%p288_p2), %v4060_v5  ;;  %408 = vst [vmem:[#allocation2 + $0x18] sm:$0xff] (!%p288_p2), %v4060_v5  ;;  %409 = vst [vmem:[#allocation2 + $0x20] sm:$0xff] (!%p288_p2), %v4060_v5  ;;  %4039 = vset.pattern.permute.xlu0 (!%p288_p2), %v4060_v5  ;;  %s4063_s17 = smov (!%p288_p2), 110   ;;  %s4064_s18 = smov (!%p288_p2), 109   ;;  %v1367_v9 = vld [vmem:[%s4869_s2] sm:$0xff] (!%p288_p2)  ;;  %vm4877_vm2 = vcmask (!%p288_p2), 1043456  }
   0x8   : > { %4040 = vset.pattern.permute.xlu1 (!%p288_p2), %v4060_v5  ;;  %s4065_s19 = smov (!%p288_p2), 108   ;;  %s4066_s20 = smov (!%p288_p2), 92   ;;  %v3660_v13 = vld [vmem:[%s4868_s1 + $0x4] sm:$0xf] (!%p288_p2)  ;;  %vm430_vm3 = vcmask (!%p288_p2), 64512   ;;  %vm427_vm4 = vcmask (!%p288_p2), 1039360  }
   0x9   : > { %s4067_s21 = smov (!%p288_p2), 91   ;;  %s4068_s22 = smov (!%p288_p2), 90   ;;  %vm4884_vm5 = vcmask (!%p288_p2), 1031168   ;;  %v415_v23 = vld [vmem:[%s4868_s1] sm:$0xf] (!%p288_p2)  ;;  %vm4883_vm6 = vcmask (!%p288_p2), 900096  }
   0xa   : > { %v3667_v32 = vld [vmem:[%s4868_s1 + $0x8] sm:$0xf] (!%p288_p2)  ;;  %vm4882_vm7 = vcmask (!%p288_p2), 891904   ;;  %v3671_v40 = vld [vmem:[%s4868_s1 + $0xc] sm:$0xf] (!%p288_p2)  ;;  %vm4881_vm8 = vcmask (!%p288_p2), 883712  }
   0xb   : > { %v3675_v48 = vld [vmem:[%s4868_s1 + $0x10] sm:$0xf] (!%p288_p2)  ;;  %vm4880_vm9 = vcmask (!%p288_p2), 752640   ;;  %v3679_v56 = vld [vmem:[%s4868_s1 + $0x14] sm:$0xf] (!%p288_p2)  ;;  %vm4879_vm10 = vcmask (!%p288_p2), 744448  }
   0xc   : > { %vm4878_vm11 = vcmask (!%p288_p2), 736256   ;;  %s4069_s25 = smov (!%p288_p2), 19  }
   0xd   : > { %s4963_s10 = smov (!%p323_p3, %s3647_s10), 1 }
   0xe   : > { %s4018_s11 = smul.u32 12, %s4963_s10 }
  0x10   : > { %s4137_s14 = scalar_lea.vmem %s4867_s0, %s4018_s11  ;;  %s332_s23 = scalar_lea.vmem %s4876_s9, %s4018_s11 }
  0x11   : > { %v4046_v1 = vld [vmem:[%s4137_s14 + $0x8] ss:$0 sps:$4 sm:$0xff]   ;;  %v387_v2 = vld [vmem:[%s4137_s14] sm:$0xff] }
  0x12   : > { %v3657_v3 = vcombine.low %v387_v2, %v387_v2  ;;  %v3658_v4 = vcombine.high %v387_v2, %v387_v2  ;;  %403 = vst.msk [vmem:[#allocation2 + $0x10] sm:$0xf] %vm402_vm0, %v4046_v1  ;;  %v3683_v1 = vld [vmem:[%s4868_s1 + $0x18] sm:$0xf] }
  0x14   : > { %400 = vst [vmem:[#allocation2] sm:$0xf] %v3657_v3  ;;  %401 = vst [vmem:[#allocation2 + $0x8] sm:$0xf] %v3658_v4 }
  0x19   : > { %v414_v6 = vld [vmem:[#allocation2 + $0x10] sm:$0xf] }
  0x1a   : > { %425 = vrot.lane.b32.xlu1 %v414_v6, %s4061_s15  ;;  %v535_v14 = vsel %vm4877_vm2, %v414_v6, 0 }
  0x1b   : > { %v412_v7 = vld [vmem:[#allocation2] sm:$0xf]  ;;  %v413_v8 = vld [vmem:[#allocation2 + $0x8] sm:$0xf] }
  0x1c   : > { %421 = vrot.lane.b32.xlu0 %v412_v7, %s4061_s15  ;;  %v529_v21 = vsel %vm4877_vm2, %v412_v7, 0 }
  0x1e   : > { %620 = vrot.lane.b32.xlu1 %v412_v7, %s4062_s16 }
  0x20   : > { %423 = vrot.lane.b32.xlu0 %v413_v8, %s4061_s15 }
  0x22   : > { %624 = vrot.lane.b32.xlu1 %v414_v6, %s4062_s16 }
  0x24   : > { %622 = vrot.lane.b32.xlu0 %v413_v8, %s4062_s16 }
  0x26   : > { %729 = vrot.lane.b32.xlu1 %v413_v8, %s4063_s17 }
  0x28   : > { %727 = vrot.lane.b32.xlu0 %v412_v7, %s4063_s17 }
  0x2a   : > { %834 = vrot.lane.b32.xlu1 %v412_v7, %s4064_s18 }
  0x2c   : > { %731 = vrot.lane.b32.xlu0 %v414_v6, %s4063_s17 }
  0x2e   : > { %838 = vrot.lane.b32.xlu1 %v414_v6, %s4064_s18 }
  0x30   : > { %836 = vrot.lane.b32.xlu0 %v413_v8, %s4064_s18 }
  0x32   : > { %943 = vrot.lane.b32.xlu1 %v413_v8, %s4065_s19 }
  0x34   : > { %941 = vrot.lane.b32.xlu0 %v412_v7, %s4065_s19 }
  0x36   : > { %1048 = vrot.lane.b32.xlu1 %v412_v7, %s4066_s20 }
  0x38   : > { %945 = vrot.lane.b32.xlu0 %v414_v6, %s4065_s19 }
  0x3a   : > { %1052 = vrot.lane.b32.xlu1 %v414_v6, %s4066_s20 }
  0x3c   : > { %1050 = vrot.lane.b32.xlu0 %v413_v8, %s4066_s20 }
  0x3e   : > { %1157 = vrot.lane.b32.xlu1 %v413_v8, %s4067_s21 }
  0x40   : > { %1155 = vrot.lane.b32.xlu0 %v412_v7, %s4067_s21 }
  0x42   : > { %1262 = vrot.lane.b32.xlu1 %v412_v7, %s4068_s22 }
  0x44   : > { %1159 = vrot.lane.b32.xlu0 %v414_v6, %s4067_s21 }
  0x46   : > { %1266 = vrot.lane.b32.xlu1 %v414_v6, %s4068_s22 }
  0x48   : > { %1264 = vrot.lane.b32.xlu0 %v413_v8, %s4068_s22 }
  0x4c   : > { %1370 = vperm.xlu0 %4039, %v1367_v9   ;;  %v3687_v9 = vld [vmem:[%s4868_s1 + $0x1c] sm:$0xf] }
  0x8c   : > { %v426_v10 = vpop.permute.xlu1 %425 }
  0x8d   : > { %v442_v12 = vsel %vm4877_vm2, %v426_v10, 0 }
  0x8e   : > { %v422_v11 = vpop.permute.xlu0 %421  ;;  %3831 = vmatpush3.bf16.msra.mxu1 %v442_v12 }
  0x8f   : > { %3836 = vmatprep.subr.bf16.mxu1 %v4058_v0 }
  0x90   : > { %v621_v15 = vpop.permute.xlu1 %620 }
  0x91   : > { %3833 = vmatmul.mubr.msk.bf16.vlgmr.msra.gmra.mrb[0].mxu1 %vm430_vm3, %v3660_v13 }
  0x92   : > { %v424_v16 = vpop.permute.xlu0 %423  ;;  %3837 = vmatpush3.bf16.msra.mxu1 %v535_v14  ;;  %3838 = vmatprep.mubr.msk.bf16.mxu1 %vm4885_vm1, %v4058_v0  ;;  %v3691_v14 = vld [vmem:[%s4868_s1 + $0x20] sm:$0xf] }
  0x93   : > { %v429_v17 = vsel %vm427_vm4, %v424_v16, %v426_v10  ;;  %v428_v18 = vsel %vm427_vm4, %v422_v11, %v424_v16  ;;  %3842 = vmatprep.subr.bf16.mxu1 %v4058_v0 }
  0x94   : > { %3661 = vmatprep.subr.msk.bf16.mxu0 %vm4877_vm2, %v429_v17  ;;  %v436_v19 = vsel %vm4877_vm2, %v428_v18, 0  ;;  %v625_v20 = vpop.permute.xlu1 %624 }
  0x95   : > { %445 = vmatpush1.bf16.msra.mxu0 %v436_v19  ;;  %v639_v25 = vsel %vm4877_vm2, %v625_v20, 0 }
  0x96   : > { %3664 = vmatprep.subr.msk.bf16.mxu0 %vm4877_vm2, %v413_v8  ;;  %v623_v22 = vpop.permute.xlu0 %622 }
  0x97   : > { %v628_v24 = vsel %vm4884_vm5, %v623_v22, %v625_v20  ;;  %v627_v28 = vsel %vm4884_vm5, %v621_v15, %v623_v22 }
  0x98   : > { %3662 = vmatmul.mubr.msk.bf16.vlgmr.msra.gmra.mrb[0].mxu0 %vm430_vm3, %v3660_v13  ;;  %v730_v26 = vpop.permute.xlu1 %729  ;;  %v633_v29 = vsel %vm4877_vm2, %v627_v28, 0 }
  0x99   : > { %538 = vmatpush1.bf16.msra.mxu0 %v529_v21  ;;  %569 = vmatprep.mubr.bf16.mxu0 %v4060_v5 }
  0x9a   : > { %3839 = vmatmul.mubr.msk.bf16.vlgmr.msra.gmra.mrb[4].mxu1 %vm430_vm3, %v415_v23  ;;  %3668 = vmatprep.subr.msk.bf16.mxu0 %vm4877_vm2, %v628_v24  ;;  %v728_v27 = vpop.permute.xlu0 %727 }
  0x9b   : > { %3843 = vmatpush3.bf16.msra.mxu1 %v639_v25  ;;  %3844 = vmatprep.mubr.msk.bf16.mxu1 %vm4885_vm1, %v4058_v0  ;;  %v734_v36 = vsel %vm4883_vm6, %v728_v27, %v730_v26 }
  0x9c   : > { %3848 = vmatprep.subr.bf16.mxu1 %v4058_v0  ;;  %v835_v31 = vpop.permute.xlu1 %834  ;;  %v740_v38 = vsel %vm4877_vm2, %v734_v36, 0 }
  0x9e   : > { %v732_v30 = vpop.permute.xlu0 %731 }
  0x9f   : > { %v735_v33 = vsel %vm4883_vm6, %v730_v26, %v732_v30  ;;  %v746_v34 = vsel %vm4877_vm2, %v732_v30, 0 }
  0xa0   : > { %3665 = vmatmul.mubr.msk.bf16.vlgmr.msra.gmra.mrb[4].mxu0 %vm430_vm3, %v415_v23  ;;  %v839_v37 = vpop.permute.xlu1 %838 }
  0xa1   : > { %642 = vmatpush1.bf16.msra.mxu0 %v633_v29  ;;  %673 = vmatprep.mubr.bf16.mxu0 %v4060_v5  ;;  %v853_v42 = vsel %vm4877_vm2, %v839_v37, 0 }
  0xa2   : > { %3845 = vmatmul.mubr.msk.bf16.vlgmr.msra.gmra.mrb[8].mxu1 %vm430_vm3, %v3667_v32  ;;  %3672 = vmatprep.subr.msk.bf16.mxu0 %vm4877_vm2, %v735_v33  ;;  %v837_v35 = vpop.permute.xlu0 %836 }
  0xa3   : > { %3849 = vmatpush3.bf16.msra.mxu1 %v746_v34  ;;  %3850 = vmatprep.mubr.msk.bf16.mxu1 %vm4885_vm1, %v4058_v0  ;;  %v842_v41 = vsel %vm4882_vm7, %v837_v35, %v839_v37  ;;  %v841_v44 = vsel %vm4882_vm7, %v835_v31, %v837_v35 }
  0xa4   : > { %3854 = vmatprep.subr.bf16.mxu1 %v4058_v0  ;;  %v944_v43 = vpop.permute.xlu1 %943  ;;  %v847_v46 = vsel %vm4877_vm2, %v841_v44, 0 }
  0xa6   : > { %v942_v39 = vpop.permute.xlu0 %941 }
  0xa7   : > { %v948_v52 = vsel %vm4881_vm8, %v942_v39, %v944_v43 }
  0xa8   : > { %3669 = vmatmul.mubr.msk.bf16.vlgmr.msra.gmra.mrb[8].mxu0 %vm430_vm3, %v3667_v32  ;;  %v1049_v47 = vpop.permute.xlu1 %1048  ;;  %v954_v54 = vsel %vm4877_vm2, %v948_v52, 0 }
  0xa9   : > { %749 = vmatpush1.bf16.msra.mxu0 %v740_v38  ;;  %780 = vmatprep.mubr.bf16.mxu0 %v4060_v5  ;;  %v334_v38 = vlaneseq }
  0xaa   : > { %3851 = vmatmul.mubr.msk.bf16.vlgmr.msra.gmra.mrb[12].mxu1 %vm430_vm3, %v3671_v40  ;;  %3676 = vmatprep.subr.msk.bf16.mxu0 %vm4877_vm2, %v842_v41  ;;  %v946_v45 = vpop.permute.xlu0 %945 }
  0xab   : > { %3855 = vmatpush3.bf16.msra.mxu1 %v853_v42  ;;  %3856 = vmatprep.mubr.msk.bf16.mxu1 %vm4885_vm1, %v4058_v0  ;;  %v949_v49 = vsel %vm4881_vm8, %v944_v43, %v946_v45  ;;  %v960_v50 = vsel %vm4877_vm2, %v946_v45, 0  ;;  %v335_v41 = vand.u32 127, %v334_v38 }
  0xac   : > { %3860 = vmatprep.subr.bf16.mxu1 %v4058_v0  ;;  %v1053_v53 = vpop.permute.xlu1 %1052 }
  0xad   : > { %v1067_v58 = vsel %vm4877_vm2, %v1053_v53, 0 }
  0xae   : > { %v1051_v51 = vpop.permute.xlu0 %1050 }
  0xaf   : > { %v1056_v57 = vsel %vm4880_vm9, %v1051_v51, %v1053_v53  ;;  %v1055_v60 = vsel %vm4880_vm9, %v1049_v47, %v1051_v51  ;;  %v337_v51 = vadd.s32 256, %v335_v41 }
  0xb0   : > { %3673 = vmatmul.mubr.msk.bf16.vlgmr.msra.gmra.mrb[12].mxu0 %vm430_vm3, %v3671_v40  ;;  %v1158_v59 = vpop.permute.xlu1 %1157  ;;  %v1061_v62 = vsel %vm4877_vm2, %v1055_v60, 0 }
  0xb1   : > { %856 = vmatpush1.bf16.msra.mxu0 %v847_v46  ;;  %887 = vmatprep.mubr.bf16.mxu0 %v4060_v5 }
  0xb2   : > { %3857 = vmatmul.mubr.msk.bf16.vlgmr.msra.gmra.mrb[16].mxu1 %vm430_vm3, %v3675_v48  ;;  %3680 = vmatprep.subr.msk.bf16.mxu0 %vm4877_vm2, %v949_v49  ;;  %v1156_v55 = vpop.permute.xlu0 %1155 }
  0xb3   : > { %3861 = vmatpush3.bf16.msra.mxu1 %v960_v50  ;;  %3862 = vmatprep.mubr.msk.bf16.mxu1 %vm4885_vm1, %v4058_v0  ;;  %v1162_v4 = vsel %vm4879_vm10, %v1156_v55, %v1158_v59 }
  0xb4   : > { %3866 = vmatprep.subr.bf16.mxu1 %v4058_v0  ;;  %v1263_v63 = vpop.permute.xlu1 %1262  ;;  %v1168_v8 = vsel %vm4877_vm2, %v1162_v4, 0  ;;  %v338_v4 = vadd.s32 19, %v335_v41 }
  0xb6   : > { %v1160_v61 = vpop.permute.xlu0 %1159 }
  0xb7   : > { %v1163_v2 = vsel %vm4879_vm10, %v1158_v59, %v1160_v61  ;;  %v1174_v3 = vsel %vm4877_vm2, %v1160_v61, 0 }
  0xb8   : > { %3677 = vmatmul.mubr.msk.bf16.vlgmr.msra.gmra.mrb[16].mxu0 %vm430_vm3, %v3675_v48  ;;  %v1267_v6 = vpop.permute.xlu1 %1266 }
  0xb9   : > { %963 = vmatpush1.bf16.msra.mxu0 %v954_v54  ;;  %994 = vmatprep.mubr.bf16.mxu0 %v4060_v5  ;;  %v1281_v11 = vsel %vm4877_vm2, %v1267_v6, 0  ;;  %v340_v54 = vadd.s32 19, %v337_v51 }
  0xba   : > { %3863 = vmatmul.mubr.msk.bf16.vlgmr.msra.gmra.mrb[20].mxu1 %vm430_vm3, %v3679_v56  ;;  %3684 = vmatprep.subr.msk.bf16.mxu0 %vm4877_vm2, %v1056_v57  ;;  %v1265_v7 = vpop.permute.xlu0 %1264 }
  0xbb   : > { %3867 = vmatpush3.bf16.msra.mxu1 %v1067_v58  ;;  %3868 = vmatprep.mubr.msk.bf16.mxu1 %vm4885_vm1, %v4058_v0  ;;  %v1270_v10 = vsel %vm4878_vm11, %v1265_v7, %v1267_v6  ;;  %v1269_v12 = vsel %vm4878_vm11, %v1263_v63, %v1265_v7 }
  0xbc   : > { %3872 = vmatprep.subr.bf16.mxu1 %v4058_v0  ;;  %v1275_v13 = vsel %vm4877_vm2, %v1269_v12, 0 }
  0xc0   : > { %3681 = vmatmul.mubr.msk.bf16.vlgmr.msra.gmra.mrb[20].mxu0 %vm430_vm3, %v3679_v56 }
  0xc1   : > { %1070 = vmatpush1.bf16.msra.mxu0 %v1061_v62  ;;  %1101 = vmatprep.mubr.bf16.mxu0 %v4060_v5 }
  0xc2   : > { %3869 = vmatmul.mubr.msk.bf16.vlgmr.msra.gmra.mrb[24].mxu1 %vm430_vm3, %v3683_v1  ;;  %3688 = vmatprep.subr.msk.bf16.mxu0 %vm4877_vm2, %v1163_v2  ;;  %v336_v2 = vadd.s32 128, %v335_v41 }
  0xc3   : > { %3873 = vmatpush3.bf16.msra.mxu1 %v1174_v3  ;;  %3874 = vmatprep.mubr.msk.bf16.mxu1 %vm4885_vm1, %v4058_v0 }
  0xc4   : > { %3878 = vmatprep.subr.bf16.mxu1 %v4058_v0 }
  0xc8   : > { %3685 = vmatmul.mubr.msk.bf16.vlgmr.msra.gmra.mrb[24].mxu0 %vm430_vm3, %v3683_v1  ;;  %v343_v1 = vcvt.s32.f32 %v340_v54 }
  0xc9   : > { %1177 = vmatpush1.bf16.msra.mxu0 %v1168_v8  ;;  %1208 = vmatprep.mubr.bf16.mxu0 %v4060_v5  ;;  %v339_v8 = vadd.s32 19, %v336_v2 }
  0xca   : > { %3875 = vmatmul.mubr.msk.bf16.vlgmr.msra.gmra.mrb[28].mxu1 %vm430_vm3, %v3687_v9  ;;  %3692 = vmatprep.subr.msk.bf16.mxu0 %vm4877_vm2, %v1270_v10  ;;  %v346_v7 = vadd.f32 0.5, %v343_v1 }
  0xcb   : > { %3879 = vmatpush3.bf16.msra.mxu1 %v1281_v11  ;;  %3880 = vmatprep.mubr.msk.bf16.mxu1 %vm4885_vm1, %v4058_v0 }
  0xcc   : > { %3884 = vmatprep.subr.bf16.mxu1 %v4058_v0 }
  0xd0   : > { %3689 = vmatmul.mubr.msk.bf16.vlgmr.msra.gmra.mrb[28].mxu0 %vm430_vm3, %v3687_v9 }
  0xd1   : > { %1284 = vmatpush1.bf16.msra.mxu0 %v1275_v13  ;;  %1315 = vmatprep.mubr.bf16.mxu0 %v4060_v5 }
  0xd2   : > { %3881 = vmatmul.mubr.msk.bf16.vlgmr.msra.gmra.mrb[32].mxu1 %vm430_vm3, %v3691_v14 }
  0xd3   : > { %3886 = vmatprep.mubr.msk.bf16.mxu1 %vm4885_vm1, %v4058_v0 }
  0xd8   : > { %3693 = vmatmul.mubr.msk.bf16.vlgmr.msra.gmra.mrb[32].mxu0 %vm430_vm3, %v3691_v14 }
  0xd9   : > { %1464 = vmatprep.mubr.bf16.mxu0 %v4060_v5 }
 0x164   : > { %v519_v15 = vpop.f32.mrb[0].mxu1 }
 0x165   : > { %v3834_v16 = vpop.f32.mrb[1].mxu1 }
 0x166   : > { %v522_v17 = vpop.f32.mrb[2].mxu1 }
 0x167   : > { %v3835_v18 = vpop.f32.mrb[3].mxu1  ;;  %v341_v17 = vcvt.s32.f32 %v338_v4 }
 0x16b   : > { %v478_v19 = vpop.f32.mrb[0].mxu0 }
 0x16c   : > { %v480_v20 = vpop.f32.mrb[1].mxu0 }
 0x16d   : > { %v482_v21 = vpop.f32.mrb[2].mxu0  ;;  %v612_v22 = vpop.f32.mrb[4].mxu1 }
 0x16e   : > { %v483_v23 = vpop.f32.mrb[3].mxu0  ;;  %v613_v24 = vadd.f32 %v612_v22, %v519_v15  ;;  %v3840_v25 = vpop.f32.mrb[5].mxu1  ;;  %v344_v22 = vadd.f32 0.5, %v341_v17 }
 0x16f   : > { %v615_v26 = vpop.f32.mrb[6].mxu1 }
 0x170   : > { %v3841_v27 = vpop.f32.mrb[7].mxu1 }
 0x173   : > { %v571_v28 = vpop.f32.mrb[4].mxu0 }
 0x174   : > { %v572_v29 = vadd.f32 %v571_v28, %v478_v19  ;;  %v573_v30 = vpop.f32.mrb[5].mxu0  ;;  %v350_v19 = vmul.f32 0.055555556, %v346_v7 }
 0x175   : > { %v574_v31 = vadd.f32 %v573_v30, %v480_v20  ;;  %v575_v32 = vpop.f32.mrb[6].mxu0  ;;  %v716_v33 = vpop.f32.mrb[8].mxu1  ;;  %v342_v20 = vcvt.s32.f32 %v339_v8 }
 0x176   : > { %v576_v34 = vpop.f32.mrb[7].mxu0  ;;  %v724_v35 = vadd.f32 %v716_v33, %v613_v24  ;;  %v3846_v36 = vpop.f32.mrb[9].mxu1  ;;  %v353_v24 = vfloor.f32 %v350_v19 }
 0x177   : > { %v719_v37 = vpop.f32.mrb[10].mxu1  ;;  %v345_v25 = vadd.f32 0.5, %v342_v20  ;;  %v348_v34 = vmul.f32 0.055555556, %v344_v22 }
 0x178   : > { %v3847_v39 = vpop.f32.mrb[11].mxu1  ;;  %v356_v36 = vmul.f32 18.0, %v353_v24  ;;  %vm362_vm12 = vcmp.gt.f32.partialorder %v353_v24, 0.5  ;;  %vm365_vm13 = vcmp.lt.f32.partialorder %v353_v24, 16.5 }
 0x179   : > { %v349_v37 = vmul.f32 0.055555556, %v345_v25  ;;  %v351_v39 = vfloor.f32 %v348_v34  ;;  %vm368_vm14 = vmand %vm362_vm12, %vm365_vm13 }
 0x17a   : > { %v359_v41 = vsub.f32 %v343_v1, %v356_v36 }
 0x17b   : > { %v675_v40 = vpop.f32.mrb[8].mxu0  ;;  %v354_v51 = vmul.f32 18.0, %v351_v39  ;;  %vm360_vm2 = vcmp.gt.f32.partialorder %v351_v39, 0.5  ;;  %vm363_vm11 = vcmp.lt.f32.partialorder %v351_v39, 16.5 }
 0x17c   : > { %v722_v42 = vadd.f32 %v675_v40, %v572_v29  ;;  %v677_v43 = vpop.f32.mrb[9].mxu0  ;;  %vm371_vm15 = vcmp.gt.f32.partialorder %v359_v41, 0.5  ;;  %vm377_vm3 = vcmp.lt.f32.partialorder %v359_v41, 16.5  ;;  %vm366_vm13 = vmand %vm360_vm2, %vm363_vm11 }
 0x17d   : > { %v723_v44 = vadd.f32 %v677_v43, %v574_v31  ;;  %v679_v45 = vpop.f32.mrb[10].mxu0  ;;  %v823_v46 = vpop.f32.mrb[12].mxu1  ;;  %vm4301_vm0 = vmand %vm368_vm14, %vm371_vm15 }
 0x17e   : > { %v680_v47 = vpop.f32.mrb[11].mxu0  ;;  %v831_v48 = vadd.f32 %v823_v46, %v724_v35  ;;  %v3852_v49 = vpop.f32.mrb[13].mxu1  ;;  %vm380_vm12 = vmand %vm4301_vm0, %vm377_vm3  ;;  %vm406_vm0 = vcmask 556036   ;;  %vm4892_vm3 = vcmask 900096  }
 0x17f   : > { %v826_v50 = vpop.f32.mrb[14].mxu1  ;;  %407 = vst.msk [vmem:[#allocation2 + $0x10] sm:$0xf0] %vm406_vm0, %v4060_v5 }
 0x180   : > { %v3853_v52 = vpop.f32.mrb[15].mxu1 }
 0x183   : > { %v782_v53 = vpop.f32.mrb[12].mxu0 }
 0x184   : > { %v829_v55 = vadd.f32 %v782_v53, %v722_v42  ;;  %v784_v56 = vpop.f32.mrb[13].mxu0  ;;  %v352_v42 = vfloor.f32 %v349_v37 }
 0x185   : > { %v830_v57 = vadd.f32 %v784_v56, %v723_v44  ;;  %v786_v58 = vpop.f32.mrb[14].mxu0  ;;  %v930_v59 = vpop.f32.mrb[16].mxu1  ;;  %v357_v56 = vsub.f32 %v341_v17, %v354_v51  ;;  %v1411_v51 = vld [vmem:[%s4870_s3] sm:$0xf] }
 0x186   : > { %v787_v60 = vpop.f32.mrb[15].mxu0  ;;  %v938_v61 = vadd.f32 %v930_v59, %v831_v48  ;;  %v3858_v62 = vpop.f32.mrb[17].mxu1  ;;  %v355_v53 = vmul.f32 18.0, %v352_v42  ;;  %vm361_vm10 = vcmp.gt.f32.partialorder %v352_v42, 0.5  ;;  %vm364_vm9 = vcmp.lt.f32.partialorder %v352_v42, 16.5 }
 0x187   : > { %v933_v63 = vpop.f32.mrb[18].mxu1  ;;  %vm369_vm14 = vcmp.gt.f32.partialorder %v357_v56, 0.5  ;;  %vm367_vm15 = vmand %vm361_vm10, %vm364_vm9  ;;  %vm375_vm6 = vcmp.lt.f32.partialorder %v357_v56, 16.5  ;;  %vm4890_vm10 = vcmask 1031168  }
 0x188   : > { %v3859_v3 = vpop.f32.mrb[19].mxu1  ;;  %v358_v58 = vsub.f32 %v342_v20, %v355_v53  ;;  %vm372_vm7 = vmand %vm366_vm13, %vm369_vm14  ;;  %vm4894_vm13 = vcmask 891904  }
 0x189   : > { %vm378_vm2 = vmand %vm372_vm7, %vm375_vm6  ;;  %vm1406_vm6 = vcmask 400388   ;;  %vm1428_vm7 = vcmask 130048  }
 0x18a   : > { %vm370_vm8 = vcmp.gt.f32.partialorder %v358_v58, 0.5  ;;  %vm376_vm1 = vcmp.lt.f32.partialorder %v358_v58, 16.5  ;;  %vm4891_vm11 = vmmov %vm4890_vm10 }
 0x18b   : > { %v889_v6 = vpop.f32.mrb[16].mxu0  ;;  %vm373_vm5 = vmand %vm367_vm15, %vm370_vm8  ;;  %vm4889_vm8 = vmmov 0   ;;  %vm4896_vm15 = vcmask 883712  }
 0x18c   : > { %v936_v9 = vadd.f32 %v889_v6, %v829_v55  ;;  %v891_v10 = vpop.f32.mrb[17].mxu0  ;;  %vm379_vm9 = vmand %vm373_vm5, %vm376_vm1  ;;  %vm1403_vm1 = vcmask 1047708   ;;  %vm1397_vm5 = vcmask 154624  }
 0x18d   : > { %v937_v11 = vadd.f32 %v891_v10, %v830_v57  ;;  %v893_v12 = vpop.f32.mrb[18].mxu0  ;;  %v1037_v13 = vpop.f32.mrb[20].mxu1  ;;  %v4317_v24 = vsel %vm379_vm9, 1.0, %v4058_v0  ;;  %vm4895_vm14 = vmmov %vm4894_vm13 }
 0x18e   : > { %v894_v14 = vpop.f32.mrb[19].mxu0  ;;  %v1045_v15 = vadd.f32 %v1037_v13, %v938_v61  ;;  %v3864_v16 = vpop.f32.mrb[21].mxu1  ;;  %vm4897_vm0 = vmmov %vm4896_vm15 }
 0x18f   : > { %v1040_v18 = vpop.f32.mrb[22].mxu1  ;;  %v1371_v61 = vpop.permute.xlu0 %1370 }
 0x190   : > { %v3865_v21 = vpop.f32.mrb[23].mxu1 }
 0x191   : > { %v4314_v21 = vsel %vm378_vm2, 1.0, %v4058_v0  ;;  %vm4898_vm2 = vcmask 752640  }
 0x192   : > { %vm4899_vm9 = vmmov %vm4898_vm2 }
 0x193   : > { %v996_v23 = vpop.f32.mrb[20].mxu0 }
 0x194   : > { %v1043_v26 = vadd.f32 %v996_v23, %v936_v9  ;;  %v998_v27 = vpop.f32.mrb[21].mxu0  ;;  %v4309_v9 = vsel %vm380_vm12, 1.0, %v4058_v0  ;;  %vm4893_vm12 = vmmov %vm4892_vm3 }
 0x195   : > { %v1044_v28 = vadd.f32 %v998_v27, %v937_v11  ;;  %v1000_v29 = vpop.f32.mrb[22].mxu0  ;;  %v1144_v30 = vpop.f32.mrb[24].mxu1 }
 0x196   : > { %v1001_v31 = vpop.f32.mrb[23].mxu0  ;;  %v1152_v32 = vadd.f32 %v1144_v30, %v1045_v15  ;;  %v3870_v33 = vpop.f32.mrb[25].mxu1 }
 0x197   : > { %v1147_v35 = vpop.f32.mrb[26].mxu1 }
 0x198   : > { %v3871_v38 = vpop.f32.mrb[27].mxu1 }
 0x19b   : > { %v1103_v40 = vpop.f32.mrb[24].mxu0 }
 0x19c   : > { %v1150_v43 = vadd.f32 %v1103_v40, %v1043_v26  ;;  %v1105_v44 = vpop.f32.mrb[25].mxu0  ;;  %v2297_v40 = vld [vmem:[%s4871_s4] sm:$0xff] }
 0x19d   : > { %v1151_v45 = vadd.f32 %v1105_v44, %v1044_v28  ;;  %v1107_v46 = vpop.f32.mrb[26].mxu0  ;;  %v1251_v47 = vpop.f32.mrb[28].mxu1  ;;  %v3695_v44 = vld [vmem:[%s4870_s3 + $0x4] sm:$0xf] }
 0x19e   : > { %v1108_v48 = vpop.f32.mrb[27].mxu0  ;;  %v1259_v49 = vadd.f32 %v1251_v47, %v1152_v32  ;;  %v3876_v50 = vpop.f32.mrb[29].mxu1 }
 0x19f   : > { %v1254_v52 = vpop.f32.mrb[30].mxu1 }
 0x1a0   : > { %v3877_v54 = vpop.f32.mrb[31].mxu1 }
 0x1a3   : > { %v1210_v57 = vpop.f32.mrb[28].mxu0 }
 0x1a4   : > { %v1257_v59 = vadd.f32 %v1210_v57, %v1150_v43  ;;  %v1212_v60 = vpop.f32.mrb[29].mxu0  ;;  %v3700_v57 = vld [vmem:[%s4870_s3 + $0x8] sm:$0xf] }
 0x1a5   : > { %v1258_v62 = vadd.f32 %v1212_v60, %v1151_v45  ;;  %v1214_v63 = vpop.f32.mrb[30].mxu0  ;;  %v1358_v1 = vpop.f32.mrb[32].mxu1 }
 0x1a6   : > { %v1215_v2 = vpop.f32.mrb[31].mxu0  ;;  %v1366_v3 = vadd.f32 %v1358_v1, %v1259_v49  ;;  %v3882_v4 = vpop.f32.mrb[33].mxu1  ;;  %v3703_v63 = vld [vmem:[%s4870_s3 + $0xc] sm:$0xf] }
 0x1a7   : > { %v1361_v6 = vpop.f32.mrb[34].mxu1 }
 0x1a8   : > { %v1375_v7 = vadd.f32 %v1371_v61, %v1366_v3  ;;  %v3883_v8 = vpop.f32.mrb[35].mxu1  ;;  %v3706_v6 = vld [vmem:[%s4870_s3 + $0x10] sm:$0xf] }
 0x1aa   : > { %v1378_v10 = vmax.f32 %v1375_v7, 0.0 }
 0x1ab   : > { %v1317_v11 = vpop.f32.mrb[32].mxu0 }
 0x1ac   : > { %v1364_v12 = vadd.f32 %v1317_v11, %v1257_v59  ;;  %v1319_v13 = vpop.f32.mrb[33].mxu0  ;;  %v1381_v14 = vmul.f32 %v4309_v9, %v1378_v10 }
 0x1ad   : > { %v1365_v15 = vadd.f32 %v1319_v13, %v1258_v62  ;;  %v1321_v16 = vpop.f32.mrb[34].mxu0  ;;  %v3709_v13 = vld [vmem:[%s4870_s3 + $0x14] sm:$0xf] }
 0x1ae   : > { %v1373_v17 = vadd.f32 %v1371_v61, %v1364_v12  ;;  %v1322_v18 = vpop.f32.mrb[35].mxu0  ;;  %v1384_v19 = vpack.c.bf16 %v1381_v14, %v1381_v14 }
 0x1af   : > { %v1374_v20 = vadd.f32 %v1371_v61, %v1365_v15 }
 0x1b0   : > { %v1376_v22 = vmax.f32 %v1373_v17, 0.0  ;;  %v1390_v23 = vrot.slane %v1384_v19, 4  ;;  %v3712_v19 = vld [vmem:[%s4870_s3 + $0x18] sm:$0xf] }
 0x1b1   : > { %v1377_v25 = vmax.f32 %v1374_v20, 0.0 }
 0x1b2   : > { %1395 = vrot.lane.b32.xlu0 %v1390_v23, %s4069_s25  ;;  %v1379_v26 = vmul.f32 %v4314_v21, %v1376_v22 }
 0x1b3   : > { %v1380_v27 = vmul.f32 %v4317_v24, %v1377_v25 }
 0x1b4   : > { %v1382_v28 = vpack.c.bf16 %v1379_v26, %v1379_v26  ;;  %v3715_v26 = vld [vmem:[%s4870_s3 + $0x1c] sm:$0xf] }
 0x1b5   : > { %v1383_v30 = vpack.c.bf16 %v1380_v27, %v1380_v27 }
 0x1b6   : > { %v1388_v29 = vrot.slane %v1382_v28, 4 }
 0x1b7   : > { %v1389_v31 = vrot.slane %v1383_v30, 4  ;;  %v3718_v30 = vld [vmem:[%s4870_s3 + $0x20] sm:$0xf] }
 0x1b8   : > { %1391 = vrot.lane.b32.xlu1 %v1388_v29, %s4069_s25 }
 0x1bc   : > { %1393 = vrot.lane.b32.xlu1 %v1389_v31, %s4069_s25 }
 0x224   : > { %v1396_v33 = vpop.permute.xlu0 %1395 }
 0x22a   : > { %v1392_v32 = vpop.permute.xlu1 %1391 }
 0x22b   : > { %1404 = vst.msk [vmem:[#allocation2] sm:$0xf0] %vm1403_vm1, %v1392_v32 }
 0x22e   : > { %v1394_v34 = vpop.permute.xlu1 %1393 }
 0x22f   : > { %v1398_v35 = vsel %vm1397_vm5, %v1392_v32, %v1394_v34  ;;  %v1399_v36 = vsel %vm1397_vm5, %v1394_v34, %v1396_v33 }
 0x230   : > { %1405 = vst [vmem:[#allocation2 + $0x8] sm:$0xf0] %v1398_v35  ;;  %1407 = vst.msk [vmem:[#allocation2 + $0x10] sm:$0xf0] %vm1406_vm6, %v1399_v36 }
 0x232   : > { %v4336_v39 = vld [vmem:[#allocation2] sm:$0xff] }
 0x237   : > { %v4328_v37 = vld [vmem:[#allocation2 + $0x10] sm:$0xff]  ;;  %v4330_v38 = vld [vmem:[#allocation2 + $0x8] sm:$0xff] }
 0x238   : > { %1421 = vrot.lane.b32.xlu0 %v4328_v37, %s4061_s15  ;;  %1419 = vrot.lane.b32.xlu1 %v4330_v38, %s4061_s15 }
 0x23c   : > { %1601 = vrot.lane.b32.xlu0 %v4330_v38, %s4062_s16  ;;  %1417 = vrot.lane.b32.xlu1 %v4336_v39, %s4061_s15 }
 0x240   : > { %1599 = vrot.lane.b32.xlu0 %v4336_v39, %s4062_s16  ;;  %1603 = vrot.lane.b32.xlu1 %v4328_v37, %s4062_s16 }
 0x244   : > { %1703 = vrot.lane.b32.xlu0 %v4328_v37, %s4063_s17  ;;  %1701 = vrot.lane.b32.xlu1 %v4330_v38, %s4063_s17 }
 0x248   : > { %1801 = vrot.lane.b32.xlu0 %v4330_v38, %s4064_s18  ;;  %1699 = vrot.lane.b32.xlu1 %v4336_v39, %s4063_s17 }
 0x24c   : > { %1799 = vrot.lane.b32.xlu0 %v4336_v39, %s4064_s18  ;;  %1803 = vrot.lane.b32.xlu1 %v4328_v37, %s4064_s18 }
 0x250   : > { %1903 = vrot.lane.b32.xlu0 %v4328_v37, %s4065_s19  ;;  %1901 = vrot.lane.b32.xlu1 %v4330_v38, %s4065_s19 }
 0x254   : > { %2001 = vrot.lane.b32.xlu0 %v4330_v38, %s4066_s20  ;;  %1899 = vrot.lane.b32.xlu1 %v4336_v39, %s4065_s19 }
 0x258   : > { %1999 = vrot.lane.b32.xlu0 %v4336_v39, %s4066_s20  ;;  %2003 = vrot.lane.b32.xlu1 %v4328_v37, %s4066_s20 }
 0x25c   : > { %2103 = vrot.lane.b32.xlu0 %v4328_v37, %s4067_s21  ;;  %2101 = vrot.lane.b32.xlu1 %v4330_v38, %s4067_s21 }
 0x260   : > { %2201 = vrot.lane.b32.xlu0 %v4330_v38, %s4068_s22  ;;  %2099 = vrot.lane.b32.xlu1 %v4336_v39, %s4067_s21 }
 0x264   : > { %2199 = vrot.lane.b32.xlu0 %v4336_v39, %s4068_s22  ;;  %2203 = vrot.lane.b32.xlu1 %v4328_v37, %s4068_s22 }
 0x268   : > { %2300 = vperm.xlu1 %4040, %v2297_v40  }
 0x2aa   : > { %v1422_v41 = vpop.permute.xlu0 %1421  ;;  %v1420_v42 = vpop.permute.xlu1 %1419 }
 0x2ab   : > { %3885 = vmatpush3.bf16.msra.mxu1 %v1422_v41  ;;  %v1424_v43 = vsel %vm427_vm4, %v1420_v42, %v1422_v41 }
 0x2ac   : > { %1432 = vmatprep.subr.bf16.mxu0 %v1424_v43  ;;  %3890 = vmatprep.subr.bf16.mxu1 %v4058_v0 }
 0x2ae   : > { %3887 = vmatmul.mubr.msk.bf16.vlgmr.msra.gmra.mrb[36].mxu1 %vm1428_vm7, %v3695_v44  ;;  %v1602_v45 = vpop.permute.xlu0 %1601  ;;  %v1418_v46 = vpop.permute.xlu1 %1417 }
 0x2af   : > { %v1423_v47 = vsel %vm427_vm4, %v1418_v46, %v1420_v42  ;;  %3891 = vmatpush3.bf16.msra.mxu1 %v4328_v37  ;;  %3892 = vmatprep.mubr.msk.bf16.mxu1 %vm4889_vm8, %v4058_v0 }
 0x2b0   : > { %1433 = vmatpush1.bf16.msra.mxu0 %v1423_v47  ;;  %3896 = vmatprep.subr.bf16.mxu1 %v4058_v0 }
 0x2b1   : > { %1516 = vmatprep.subr.bf16.mxu0 %v4330_v38 }
 0x2b2   : > { %v1600_v48 = vpop.permute.xlu0 %1599  ;;  %v1604_v49 = vpop.permute.xlu1 %1603 }
 0x2b3   : > { %3696 = vmatmul.mubr.msk.bf16.vlgmr.msra.gmra.mrb[36].mxu0 %vm1428_vm7, %v3695_v44  ;;  %v1606_v50 = vsel %vm4890_vm10, %v1602_v45, %v1604_v49  ;;  %v1605_v55 = vsel %vm4891_vm11, %v1600_v48, %v1602_v45  ;;  %vm4900_vm10 = vcmask 744448  }
 0x2b4   : > { %1517 = vmatpush1.bf16.msra.mxu0 %v4336_v39  ;;  %1548 = vmatprep.mubr.bf16.mxu0 %v4060_v5  ;;  %vm4901_vm11 = vmmov %vm4900_vm10 }
 0x2b5   : > { %1613 = vmatprep.subr.bf16.mxu0 %v1606_v50 }
 0x2b6   : > { %3893 = vmatmul.mubr.msk.bf16.vlgmr.msra.gmra.mrb[40].mxu1 %vm1428_vm7, %v1411_v51  ;;  %v1704_v52 = vpop.permute.xlu0 %1703  ;;  %v1702_v53 = vpop.permute.xlu1 %1701 }
 0x2b7   : > { %3897 = vmatpush3.bf16.msra.mxu1 %v1604_v49  ;;  %3898 = vmatprep.mubr.msk.bf16.mxu1 %vm4889_vm8, %v4058_v0  ;;  %v1706_v58 = vsel %vm4892_vm3, %v1702_v53, %v1704_v52  ;;  %vm4902_vm3 = vcmask 736256  }
 0x2b8   : > { %3902 = vmatprep.subr.bf16.mxu1 %v4058_v0 }
 0x2ba   : > { %v1700_v54 = vpop.permute.xlu1 %1699  ;;  %v1802_v56 = vpop.permute.xlu0 %1801 }
 0x2bb   : > { %3698 = vmatmul.mubr.msk.bf16.vlgmr.msra.gmra.mrb[40].mxu0 %vm1428_vm7, %v1411_v51  ;;  %v1705_v61 = vsel %vm4893_vm12, %v1700_v54, %v1702_v53  ;;  %vm4903_vm12 = vmmov %vm4902_vm3 }
 0x2bc   : > { %1614 = vmatpush1.bf16.msra.mxu0 %v1605_v55  ;;  %1645 = vmatprep.mubr.bf16.mxu0 %v4060_v5 }
 0x2bd   : > { %1713 = vmatprep.subr.bf16.mxu0 %v1706_v58 }
 0x2be   : > { %3899 = vmatmul.mubr.msk.bf16.vlgmr.msra.gmra.mrb[44].mxu1 %vm1428_vm7, %v3700_v57  ;;  %v1804_v59 = vpop.permute.xlu1 %1803  ;;  %v1800_v60 = vpop.permute.xlu0 %1799 }
 0x2bf   : > { %3903 = vmatpush3.bf16.msra.mxu1 %v1704_v52  ;;  %3904 = vmatprep.mubr.msk.bf16.mxu1 %vm4889_vm8, %v4058_v0  ;;  %v1806_v1 = vsel %vm4894_vm13, %v1802_v56, %v1804_v59  ;;  %v1805_v4 = vsel %vm4895_vm14, %v1800_v60, %v1802_v56  ;;  %vm2329_vm13 = vcmask 1043608   ;;  %vm2332_vm14 = vcmask 396288  }
 0x2c0   : > { %3908 = vmatprep.subr.bf16.mxu1 %v4058_v0 }
 0x2c2   : > { %v1902_v62 = vpop.permute.xlu1 %1901  ;;  %v1904_v2 = vpop.permute.xlu0 %1903 }
 0x2c3   : > { %3701 = vmatmul.mubr.msk.bf16.vlgmr.msra.gmra.mrb[44].mxu0 %vm1428_vm7, %v3700_v57  ;;  %v1906_v7 = vsel %vm4896_vm15, %v1902_v62, %v1904_v2  ;;  %vm4904_vm15 = vcmask 1043456  }
 0x2c4   : > { %1714 = vmatpush1.bf16.msra.mxu0 %v1705_v61  ;;  %1745 = vmatprep.mubr.bf16.mxu0 %v4060_v5 }
 0x2c5   : > { %1813 = vmatprep.subr.bf16.mxu0 %v1806_v1 }
 0x2c6   : > { %3905 = vmatmul.mubr.msk.bf16.vlgmr.msra.gmra.mrb[48].mxu1 %vm1428_vm7, %v3703_v63  ;;  %v1900_v3 = vpop.permute.xlu1 %1899  ;;  %v2002_v8 = vpop.permute.xlu0 %2001 }
 0x2c7   : > { %3909 = vmatpush3.bf16.msra.mxu1 %v1804_v59  ;;  %3910 = vmatprep.mubr.msk.bf16.mxu1 %vm4889_vm8, %v4058_v0  ;;  %v1905_v11 = vsel %vm4897_vm0, %v1900_v3, %v1902_v62  ;;  %vm4905_vm0 = vmmov %vm4904_vm15 }
 0x2c8   : > { %3914 = vmatprep.subr.bf16.mxu1 %v4058_v0 }
 0x2ca   : > { %v2004_v10 = vpop.permute.xlu1 %2003  ;;  %v2000_v12 = vpop.permute.xlu0 %1999 }
 0x2cb   : > { %3704 = vmatmul.mubr.msk.bf16.vlgmr.msra.gmra.mrb[48].mxu0 %vm1428_vm7, %v3703_v63  ;;  %v2006_v14 = vsel %vm4898_vm2, %v2002_v8, %v2004_v10  ;;  %v2005_v17 = vsel %vm4899_vm9, %v2000_v12, %v2002_v8  ;;  %vm4906_vm2 = vmmov %vm4905_vm0  ;;  %vm2368_vm9 = vcmask 195584  }
 0x2cc   : > { %1814 = vmatpush1.bf16.msra.mxu0 %v1805_v4  ;;  %1845 = vmatprep.mubr.bf16.mxu0 %v4060_v5 }
 0x2cd   : > { %1913 = vmatprep.subr.bf16.mxu0 %v1906_v7 }
 0x2ce   : > { %3911 = vmatmul.mubr.msk.bf16.vlgmr.msra.gmra.mrb[52].mxu1 %vm1428_vm7, %v3706_v6  ;;  %v2102_v15 = vpop.permute.xlu1 %2101  ;;  %v2104_v16 = vpop.permute.xlu0 %2103 }
 0x2cf   : > { %3915 = vmatpush3.bf16.msra.mxu1 %v1904_v2  ;;  %3916 = vmatprep.mubr.msk.bf16.mxu1 %vm4889_vm8, %v4058_v0  ;;  %v2106_v20 = vsel %vm4900_vm10, %v2102_v15, %v2104_v16  ;;  %vm4908_vm10 = vmmov %vm4905_vm0 }
 0x2d0   : > { %3920 = vmatprep.subr.bf16.mxu1 %v4058_v0 }
 0x2d2   : > { %v2100_v18 = vpop.permute.xlu1 %2099  ;;  %v2202_v23 = vpop.permute.xlu0 %2201 }
 0x2d3   : > { %3707 = vmatmul.mubr.msk.bf16.vlgmr.msra.gmra.mrb[52].mxu0 %vm1428_vm7, %v3706_v6  ;;  %v2105_v25 = vsel %vm4901_vm11, %v2100_v18, %v2102_v15  ;;  %vm4909_vm11 = vmmov %vm4905_vm0 }
 0x2d4   : > { %1914 = vmatpush1.bf16.msra.mxu0 %v1905_v11  ;;  %1945 = vmatprep.mubr.bf16.mxu0 %v4060_v5 }
 0x2d5   : > { %2013 = vmatprep.subr.bf16.mxu0 %v2006_v14 }
 0x2d6   : > { %3917 = vmatmul.mubr.msk.bf16.vlgmr.msra.gmra.mrb[56].mxu1 %vm1428_vm7, %v3709_v13  ;;  %v2204_v22 = vpop.permute.xlu1 %2203  ;;  %v2200_v28 = vpop.permute.xlu0 %2199 }
 0x2d7   : > { %3921 = vmatpush3.bf16.msra.mxu1 %v2004_v10  ;;  %3922 = vmatprep.mubr.msk.bf16.mxu1 %vm4889_vm8, %v4058_v0  ;;  %v2206_v27 = vsel %vm4902_vm3, %v2202_v23, %v2204_v22  ;;  %v2205_v29 = vsel %vm4903_vm12, %v2200_v28, %v2202_v23  ;;  %vm4910_vm3 = vcmask 1031168  }
 0x2d8   : > { %3926 = vmatprep.subr.bf16.mxu1 %v4058_v0  ;;  %vm4911_vm12 = vmmov %vm4910_vm3 }
 0x2db   : > { %3710 = vmatmul.mubr.msk.bf16.vlgmr.msra.gmra.mrb[56].mxu0 %vm1428_vm7, %v3709_v13 }
 0x2dc   : > { %2014 = vmatpush1.bf16.msra.mxu0 %v2005_v17  ;;  %2045 = vmatprep.mubr.bf16.mxu0 %v4060_v5 }
 0x2dd   : > { %2113 = vmatprep.subr.bf16.mxu0 %v2106_v20 }
 0x2de   : > { %3923 = vmatmul.mubr.msk.bf16.vlgmr.msra.gmra.mrb[60].mxu1 %vm1428_vm7, %v3712_v19 }
 0x2df   : > { %3927 = vmatpush3.bf16.msra.mxu1 %v2104_v16  ;;  %3928 = vmatprep.mubr.msk.bf16.mxu1 %vm4889_vm8, %v4058_v0 }
 0x2e0   : > { %3932 = vmatprep.subr.bf16.mxu1 %v4058_v0 }
 0x2e3   : > { %3713 = vmatmul.mubr.msk.bf16.vlgmr.msra.gmra.mrb[60].mxu0 %vm1428_vm7, %v3712_v19 }
 0x2e4   : > { %2114 = vmatpush1.bf16.msra.mxu0 %v2105_v25  ;;  %2145 = vmatprep.mubr.bf16.mxu0 %v4060_v5  ;;  %v4479_v5 = vld [vmem:[#allocation2 + $0x18] sm:$0xff] }
 0x2e5   : > { %2213 = vmatprep.subr.bf16.mxu0 %v2206_v27 }
 0x2e6   : > { %3929 = vmatmul.mubr.msk.bf16.vlgmr.msra.gmra.mrb[64].mxu1 %vm1428_vm7, %v3715_v26 }
 0x2e7   : > { %3933 = vmatpush3.bf16.msra.mxu1 %v2204_v22  ;;  %3934 = vmatprep.mubr.msk.bf16.mxu1 %vm4889_vm8, %v4058_v0 }
 0x2e8   : > { %3938 = vmatprep.subr.bf16.mxu1 %v4058_v0 }
 0x2eb   : > { %3716 = vmatmul.mubr.msk.bf16.vlgmr.msra.gmra.mrb[64].mxu0 %vm1428_vm7, %v3715_v26 }
 0x2ec   : > { %2214 = vmatpush1.bf16.msra.mxu0 %v2205_v29  ;;  %2245 = vmatprep.mubr.bf16.mxu0 %v4479_v5 }
 0x2ee   : > { %3935 = vmatmul.mubr.msk.bf16.vlgmr.msra.gmra.mrb[68].mxu1 %vm1428_vm7, %v3718_v30 }
 0x2ef   : > { %3942 = vmatprep.mubr.msk.bf16.mxu1 %vm4889_vm8, %v4058_v0 }
 0x2f3   : > { %3719 = vmatmul.mubr.msk.bf16.vlgmr.msra.gmra.mrb[68].mxu0 %vm1428_vm7, %v3718_v30  ;;  %vm410_vm7 = vcmask 556032  }
 0x2f4   : > { %2413 = vmatprep.mubr.bf16.mxu0 %v4479_v5  ;;  %411 = vst.msk [vmem:[#allocation2 + $0x28] sm:$0xff] %vm410_vm7, %v4479_v5  ;;  %vm4912_vm7 = vmmov %vm4910_vm3 }
 0x381   : > { %v1507_v31 = vpop.f32.mrb[36].mxu1 }
 0x382   : > { %v3888_v32 = vpop.f32.mrb[37].mxu1 }
 0x383   : > { %v1510_v33 = vpop.f32.mrb[38].mxu1 }
 0x384   : > { %v3889_v34 = vpop.f32.mrb[39].mxu1 }
 0x386   : > { %v1466_v35 = vpop.f32.mrb[36].mxu0 }
 0x387   : > { %v1468_v36 = vpop.f32.mrb[37].mxu0 }
 0x388   : > { %v1470_v40 = vpop.f32.mrb[38].mxu0 }
 0x389   : > { %v1471_v41 = vpop.f32.mrb[39].mxu0  ;;  %v1591_v42 = vpop.f32.mrb[40].mxu1 }
 0x38a   : > { %v1592_v43 = vadd.f32 %v1591_v42, %v1507_v31  ;;  %v3894_v44 = vpop.f32.mrb[41].mxu1 }
 0x38b   : > { %v1594_v45 = vpop.f32.mrb[42].mxu1 }
 0x38c   : > { %v3895_v46 = vpop.f32.mrb[43].mxu1 }
 0x38e   : > { %v1550_v47 = vpop.f32.mrb[40].mxu0 }
 0x38f   : > { %v1551_v48 = vadd.f32 %v1550_v47, %v1466_v35  ;;  %v1552_v49 = vpop.f32.mrb[41].mxu0 }
 0x390   : > { %v1553_v50 = vadd.f32 %v1552_v49, %v1468_v36  ;;  %v1554_v51 = vpop.f32.mrb[42].mxu0 }
 0x391   : > { %v1555_v52 = vpop.f32.mrb[43].mxu0  ;;  %v1688_v53 = vpop.f32.mrb[44].mxu1 }
 0x392   : > { %v1696_v54 = vadd.f32 %v1688_v53, %v1592_v43  ;;  %v3900_v55 = vpop.f32.mrb[45].mxu1 }
 0x393   : > { %v1691_v56 = vpop.f32.mrb[46].mxu1 }
 0x394   : > { %v3901_v57 = vpop.f32.mrb[47].mxu1 }
 0x396   : > { %v1647_v58 = vpop.f32.mrb[44].mxu0 }
 0x397   : > { %v1694_v59 = vadd.f32 %v1647_v58, %v1551_v48  ;;  %v1649_v60 = vpop.f32.mrb[45].mxu0 }
 0x398   : > { %v1695_v61 = vadd.f32 %v1649_v60, %v1553_v50  ;;  %v1651_v62 = vpop.f32.mrb[46].mxu0 }
 0x399   : > { %v1788_v63 = vpop.f32.mrb[48].mxu1  ;;  %v1652_v1 = vpop.f32.mrb[47].mxu0 }
 0x39a   : > { %v1796_v2 = vadd.f32 %v1788_v63, %v1696_v54  ;;  %v3906_v3 = vpop.f32.mrb[49].mxu1 }
 0x39b   : > { %v1791_v4 = vpop.f32.mrb[50].mxu1 }
 0x39c   : > { %v3907_v6 = vpop.f32.mrb[51].mxu1  ;;  %v2301_v4 = vpop.permute.xlu1 %2300 }
 0x39e   : > { %v1747_v7 = vpop.f32.mrb[48].mxu0 }
 0x39f   : > { %v1794_v8 = vadd.f32 %v1747_v7, %v1694_v59  ;;  %v1749_v10 = vpop.f32.mrb[49].mxu0 }
 0x3a0   : > { %v1795_v11 = vadd.f32 %v1749_v10, %v1695_v61  ;;  %v1751_v12 = vpop.f32.mrb[50].mxu0 }
 0x3a1   : > { %v1888_v13 = vpop.f32.mrb[52].mxu1  ;;  %v1752_v14 = vpop.f32.mrb[51].mxu0 }
 0x3a2   : > { %v1896_v15 = vadd.f32 %v1888_v13, %v1796_v2  ;;  %v3912_v16 = vpop.f32.mrb[53].mxu1 }
 0x3a3   : > { %v1891_v17 = vpop.f32.mrb[54].mxu1 }
 0x3a4   : > { %v3913_v18 = vpop.f32.mrb[55].mxu1 }
 0x3a6   : > { %v1847_v19 = vpop.f32.mrb[52].mxu0 }
 0x3a7   : > { %v1894_v20 = vadd.f32 %v1847_v19, %v1794_v8  ;;  %v1849_v22 = vpop.f32.mrb[53].mxu0 }
 0x3a8   : > { %v1895_v23 = vadd.f32 %v1849_v22, %v1795_v11  ;;  %v1851_v25 = vpop.f32.mrb[54].mxu0 }
 0x3a9   : > { %v1988_v26 = vpop.f32.mrb[56].mxu1  ;;  %v1852_v27 = vpop.f32.mrb[55].mxu0 }
 0x3aa   : > { %v1996_v28 = vadd.f32 %v1988_v26, %v1896_v15  ;;  %v3918_v29 = vpop.f32.mrb[57].mxu1 }
 0x3ab   : > { %v1991_v30 = vpop.f32.mrb[58].mxu1 }
 0x3ac   : > { %v3919_v31 = vpop.f32.mrb[59].mxu1 }
 0x3ae   : > { %v1947_v32 = vpop.f32.mrb[56].mxu0 }
 0x3af   : > { %v1994_v33 = vadd.f32 %v1947_v32, %v1894_v20  ;;  %v1949_v34 = vpop.f32.mrb[57].mxu0 }
 0x3b0   : > { %v1995_v35 = vadd.f32 %v1949_v34, %v1895_v23  ;;  %v1951_v36 = vpop.f32.mrb[58].mxu0 }
 0x3b1   : > { %v2088_v40 = vpop.f32.mrb[60].mxu1  ;;  %v1952_v41 = vpop.f32.mrb[59].mxu0 }
 0x3b2   : > { %v2096_v42 = vadd.f32 %v2088_v40, %v1996_v28  ;;  %v3924_v43 = vpop.f32.mrb[61].mxu1 }
 0x3b3   : > { %v2091_v44 = vpop.f32.mrb[62].mxu1 }
 0x3b4   : > { %v3925_v45 = vpop.f32.mrb[63].mxu1  ;;  %v3374_v44 = vld [vmem:[%s4873_s6] sm:$0xff] }
 0x3b6   : > { %v2047_v46 = vpop.f32.mrb[60].mxu0 }
 0x3b7   : > { %v2094_v47 = vadd.f32 %v2047_v46, %v1994_v33  ;;  %v2049_v48 = vpop.f32.mrb[61].mxu0 }
 0x3b8   : > { %v2095_v49 = vadd.f32 %v2049_v48, %v1995_v35  ;;  %v2051_v50 = vpop.f32.mrb[62].mxu0 }
 0x3b9   : > { %v2188_v51 = vpop.f32.mrb[64].mxu1  ;;  %v2052_v52 = vpop.f32.mrb[63].mxu0 }
 0x3ba   : > { %v2196_v53 = vadd.f32 %v2188_v51, %v2096_v42  ;;  %v3930_v54 = vpop.f32.mrb[65].mxu1 }
 0x3bb   : > { %v2191_v55 = vpop.f32.mrb[66].mxu1 }
 0x3bc   : > { %v3931_v56 = vpop.f32.mrb[67].mxu1 }
 0x3be   : > { %v2147_v57 = vpop.f32.mrb[64].mxu0 }
 0x3bf   : > { %v2194_v58 = vadd.f32 %v2147_v57, %v2094_v47  ;;  %v2149_v59 = vpop.f32.mrb[65].mxu0 }
 0x3c0   : > { %v2195_v60 = vadd.f32 %v2149_v59, %v2095_v49  ;;  %v2151_v61 = vpop.f32.mrb[66].mxu0 }
 0x3c1   : > { %v2288_v62 = vpop.f32.mrb[68].mxu1  ;;  %v2152_v63 = vpop.f32.mrb[67].mxu0 }
 0x3c2   : > { %v2296_v1 = vadd.f32 %v2288_v62, %v2196_v53  ;;  %v3936_v2 = vpop.f32.mrb[69].mxu1 }
 0x3c3   : > { %v2291_v3 = vpop.f32.mrb[70].mxu1  ;;  %v3721_v2 = vld [vmem:[%s4872_s5 + $0x4] sm:$0xf] }
 0x3c4   : > { %v3937_v6 = vpop.f32.mrb[71].mxu1  ;;  %v2305_v8 = vadd.f32 %v2301_v4, %v2296_v1 }
 0x3c6   : > { %v2247_v7 = vpop.f32.mrb[68].mxu0  ;;  %v2308_v17 = vmax.f32 %v2305_v8, 0.0 }
 0x3c7   : > { %v2294_v10 = vadd.f32 %v2247_v7, %v2194_v58  ;;  %v2249_v11 = vpop.f32.mrb[69].mxu0 }
 0x3c8   : > { %v2295_v12 = vadd.f32 %v2249_v11, %v2195_v60  ;;  %v2251_v13 = vpop.f32.mrb[70].mxu0  ;;  %v2311_v25 = vmul.f32 %v4309_v9, %v2308_v17 }
 0x3c9   : > { %v2303_v14 = vadd.f32 %v2301_v4, %v2294_v10  ;;  %v2252_v15 = vpop.f32.mrb[71].mxu0 }
 0x3ca   : > { %v2304_v16 = vadd.f32 %v2301_v4, %v2295_v12  ;;  %v2314_v27 = vpack.c.bf16 %v2311_v25, %v2311_v25 }
 0x3cb   : > { %v2306_v18 = vmax.f32 %v2303_v14, 0.0 }
 0x3cc   : > { %v2307_v19 = vmax.f32 %v2304_v16, 0.0 }
 0x3cd   : > { %v2309_v20 = vmul.f32 %v4314_v21, %v2306_v18 }
 0x3ce   : > { %v2310_v22 = vmul.f32 %v4317_v24, %v2307_v19  ;;  %v3728_v19 = vld [vmem:[%s4872_s5 + $0x8] sm:$0xf] }
 0x3cf   : > { %v2312_v23 = vpack.c.bf16 %v2309_v20, %v2309_v20 }
 0x3d0   : > { %v2313_v26 = vpack.c.bf16 %v2310_v22, %v2310_v22 }
 0x3d1   : > { %2318 = vrot.lane.b32.xlu0 %v2312_v23, %s4069_s25 }
 0x3d2   : > { %2320 = vrot.lane.b32.xlu1 %v2313_v26, %s4069_s25 }
 0x3d5   : > { %2322 = vrot.lane.b32.xlu0 %v2314_v27, %s4069_s25 }
 0x3d6   : > { %2351 = vrot.lane.b32.xlu1 %v4330_v38, %s4061_s15 }
 0x3d9   : > { %2353 = vrot.lane.b32.xlu0 %v4328_v37, %s4061_s15 }
 0x3da   : > { %2349 = vrot.lane.b32.xlu1 %v4336_v39, %s4061_s15 }
 0x3dd   : > { %2561 = vrot.lane.b32.xlu0 %v4328_v37, %s4062_s16 }
 0x3de   : > { %2559 = vrot.lane.b32.xlu1 %v4330_v38, %s4062_s16 }
 0x3e1   : > { %2678 = vrot.lane.b32.xlu0 %v4328_v37, %s4063_s17 }
 0x3e2   : > { %2557 = vrot.lane.b32.xlu1 %v4336_v39, %s4062_s16 }
 0x3e5   : > { %2795 = vrot.lane.b32.xlu0 %v4328_v37, %s4064_s18 }
 0x3e6   : > { %2676 = vrot.lane.b32.xlu1 %v4330_v38, %s4063_s17 }
 0x3ea   : > { %2674 = vrot.lane.b32.xlu1 %v4336_v39, %s4063_s17 }
 0x3ee   : > { %2793 = vrot.lane.b32.xlu1 %v4330_v38, %s4064_s18 }
 0x443   : > { %v2319_v28 = vpop.permute.xlu0 %2318 }
 0x444   : > { %2330 = vst.msk [vmem:[#allocation2 + $0x18] sm:$0xf] %vm2329_vm13, %v2319_v28  ;;  %v2321_v29 = vpop.permute.xlu1 %2320 }
 0x445   : > { %v2324_v30 = vsel %vm1397_vm5, %v2319_v28, %v2321_v29 }
 0x446   : > { %2331 = vst [vmem:[#allocation2 + $0x20] sm:$0xf] %v2324_v30 }
 0x447   : > { %v2323_v31 = vpop.permute.xlu0 %2322 }
 0x448   : > { %v2325_v32 = vsel %vm1397_vm5, %v2321_v29, %v2323_v31  ;;  %v2352_v33 = vpop.permute.xlu1 %2351 }
 0x449   : > { %2333 = vst.msk [vmem:[#allocation2 + $0x28] sm:$0xf] %vm2332_vm14, %v2325_v32  ;;  %v3732_v32 = vld [vmem:[%s4872_s5 + $0xc] sm:$0xf] }
 0x44b   : > { %v2354_v34 = vpop.permute.xlu0 %2353  ;;  %v4520_v35 = vld [vmem:[#allocation2 + $0x18] sm:$0xf] }
 0x44c   : > { %v2350_v36 = vpop.permute.xlu1 %2349  ;;  %2355 = vrot.lane.b32.xlu0 %v4520_v35, %s4061_s15  ;;  %3939 = vmatpush3.bf16.msra.mxu1 %v2354_v34  ;;  %v2362_v40 = vsel %vm427_vm4, %v2352_v33, %v2354_v34 }
 0x44d   : > { %v2361_v41 = vsel %vm427_vm4, %v2350_v36, %v2352_v33  ;;  %2381 = vmatprep.subr.bf16.mxu0 %v2362_v40  ;;  %v4526_v42 = vld [vmem:[#allocation2 + $0x20] sm:$0xf]  ;;  %3940 = vmatprep.subr.bf16.mxu1 %v4058_v0 }
 0x44e   : > { %2357 = vrot.lane.b32.xlu1 %v4526_v42, %s4061_s15  ;;  %2382 = vmatpush1.bf16.msra.mxu0 %v2361_v41 }
 0x44f   : > { %v2562_v47 = vpop.permute.xlu0 %2561 }
 0x450   : > { %2563 = vrot.lane.b32.xlu0 %v4520_v35, %s4062_s16  ;;  %v4539_v43 = vld [vmem:[#allocation2 + $0x28] sm:$0xf]  ;;  %v2560_v45 = vpop.permute.xlu1 %2559 }
 0x451   : > { %v2570_v8 = vsel %vm4910_vm3, %v2560_v45, %v2562_v47 }
 0x452   : > { %2791 = vrot.lane.b32.xlu1 %v4336_v39, %s4064_s18 }
 0x453   : > { %v4608_v49 = vpop.permute.xlu0 %2678 }
 0x454   : > { %2680 = vrot.lane.b32.xlu0 %v4520_v35, %s4063_s17  ;;  %v2558_v46 = vpop.permute.xlu1 %2557 }
 0x455   : > { %v2569_v11 = vsel %vm4911_vm12, %v2558_v46, %v2560_v45  ;;  %v3736_v46 = vld [vmem:[%s4872_s5 + $0x10] sm:$0xf] }
 0x456   : > { %2910 = vrot.lane.b32.xlu1 %v4330_v38, %s4065_s19 }
 0x457   : > { %v4612_v51 = vpop.permute.xlu0 %2795 }
 0x458   : > { %2359 = vrot.lane.b32.xlu0 %v4539_v43, %s4061_s15  ;;  %v4606_v48 = vpop.permute.xlu1 %2676 }
 0x45a   : > { %2908 = vrot.lane.b32.xlu1 %v4336_v39, %s4065_s19 }
 0x45c   : > { %2797 = vrot.lane.b32.xlu0 %v4520_v35, %s4064_s18  ;;  %v4610_v50 = vpop.permute.xlu1 %2674 }
 0x45e   : > { %2565 = vrot.lane.b32.xlu1 %v4526_v42, %s4062_s16 }
 0x460   : > { %2912 = vrot.lane.b32.xlu0 %v4328_v37, %s4065_s19  ;;  %v4614_v52 = vpop.permute.xlu1 %2793 }
 0x462   : > { %3027 = vrot.lane.b32.xlu1 %v4330_v38, %s4066_s20 }
 0x464   : > { %2914 = vrot.lane.b32.xlu0 %v4520_v35, %s4065_s19 }
 0x466   : > { %2682 = vrot.lane.b32.xlu1 %v4526_v42, %s4063_s17 }
 0x468   : > { %2567 = vrot.lane.b32.xlu0 %v4539_v43, %s4062_s16 }
 0x46a   : > { %3025 = vrot.lane.b32.xlu1 %v4336_v39, %s4066_s20 }
 0x46c   : > { %3029 = vrot.lane.b32.xlu0 %v4328_v37, %s4066_s20 }
 0x46e   : > { %2799 = vrot.lane.b32.xlu1 %v4526_v42, %s4064_s18 }
 0x470   : > { %2684 = vrot.lane.b32.xlu0 %v4539_v43, %s4063_s17 }
 0x472   : > { %3144 = vrot.lane.b32.xlu1 %v4330_v38, %s4067_s21 }
 0x474   : > { %3031 = vrot.lane.b32.xlu0 %v4520_v35, %s4066_s20 }
 0x476   : > { %2916 = vrot.lane.b32.xlu1 %v4526_v42, %s4065_s19 }
 0x478   : > { %2801 = vrot.lane.b32.xlu0 %v4539_v43, %s4064_s18 }
 0x47a   : > { %3142 = vrot.lane.b32.xlu1 %v4336_v39, %s4067_s21 }
 0x47c   : > { %3146 = vrot.lane.b32.xlu0 %v4328_v37, %s4067_s21 }
 0x47e   : > { %3033 = vrot.lane.b32.xlu1 %v4526_v42, %s4066_s20 }
 0x480   : > { %2918 = vrot.lane.b32.xlu0 %v4539_v43, %s4065_s19 }
 0x482   : > { %3261 = vrot.lane.b32.xlu1 %v4330_v38, %s4068_s22 }
 0x484   : > { %3148 = vrot.lane.b32.xlu0 %v4520_v35, %s4067_s21 }
 0x486   : > { %3150 = vrot.lane.b32.xlu1 %v4526_v42, %s4067_s21 }
 0x488   : > { %3035 = vrot.lane.b32.xlu0 %v4539_v43, %s4066_s20 }
 0x48a   : > { %3259 = vrot.lane.b32.xlu1 %v4336_v39, %s4068_s22 }
 0x48c   : > { %3263 = vrot.lane.b32.xlu0 %v4328_v37, %s4068_s22 }
 0x48e   : > { %3267 = vrot.lane.b32.xlu1 %v4526_v42, %s4068_s22 }
 0x490   : > { %3152 = vrot.lane.b32.xlu0 %v4539_v43, %s4067_s21 }
 0x492   : > { %3377 = vperm.xlu1 %4040, %v3374_v44  }
 0x494   : > { %3265 = vrot.lane.b32.xlu0 %v4520_v35, %s4068_s22 }
 0x498   : > { %3269 = vrot.lane.b32.xlu0 %v4539_v43, %s4068_s22 }
 0x4be   : > { %v2356_v53 = vpop.permute.xlu0 %2355 }
 0x4c0   : > { %v2358_v54 = vpop.permute.xlu1 %2357 }
 0x4c1   : > { %v2363_v59 = vsel %vm427_vm4, %v2356_v53, %v2358_v54 }
 0x4c2   : > { %v2564_v55 = vpop.permute.xlu0 %2563  ;;  %v2373_v63 = vsel %vm4905_vm0, %v2363_v59, 0 }
 0x4c4   : > { %v4616_v56 = vpop.permute.xlu1 %2791 }
 0x4c6   : > { %v4618_v57 = vpop.permute.xlu0 %2680 }
 0x4c8   : > { %v4620_v58 = vpop.permute.xlu1 %2910 }
 0x4ca   : > { %v2360_v60 = vpop.permute.xlu0 %2359 }
 0x4cb   : > { %v2364_v61 = vsel %vm427_vm4, %v2358_v54, %v2360_v60  ;;  %v2379_v62 = vsel %vm4904_vm15, %v2360_v60, 0  ;;  %vm4907_vm4 = vmmov %vm4905_vm0 }
 0x4cc   : > { %v4626_v1 = vpop.permute.xlu1 %2908  ;;  %3722 = vmatprep.subr.msk.bf16.mxu0 %vm4906_vm2, %v2364_v61  ;;  %3941 = vmatpush3.bf16.msra.mxu1 %v2379_v62  ;;  %vm4913_vm15 = vmmov %vm4910_vm3 }
 0x4cd   : > { %2384 = vmatpush1.bf16.msra.mxu0 %v2373_v63  ;;  %3946 = vmatprep.subr.bf16.mxu1 %v4058_v0  ;;  %vm4914_vm2 = vmmov %vm4905_vm0 }
 0x4ce   : > { %2474 = vmatprep.subr.bf16.mxu0 %v4330_v38  ;;  %v4634_v3 = vpop.permute.xlu0 %2797  ;;  %v2472_v38 = vsel %vm4908_vm10, %v4539_v43, 0  ;;  %vm4916_vm10 = vcmask 900096  }
 0x4cf   : > { %3943 = vmatmul.mubr.msk.bf16.vlgmr.msra.gmra.mrb[72].mxu1 %vm2368_vm9, %v3721_v2  ;;  %v2687_v20 = vsel %vm4916_vm10, %v4606_v48, %v4608_v49  ;;  %vm4918_vm3 = vmmov %vm4916_vm10 }
 0x4d0   : > { %v2566_v4 = vpop.permute.xlu1 %2565  ;;  %3723 = vmatmul.mubr.msk.bf16.vlgmr.msra.gmra.mrb[72].mxu0 %vm2368_vm9, %v3721_v2  ;;  %3947 = vmatpush3.bf16.msra.mxu1 %v4328_v37  ;;  %v2466_v37 = vsel %vm4909_vm11, %v4520_v35, 0  ;;  %vm4917_vm11 = vmmov %vm4916_vm10 }
 0x4d1   : > { %2475 = vmatpush1.bf16.msra.mxu0 %v4336_v39  ;;  %3948 = vmatprep.subr.bf16.mxu1 %v4058_v0  ;;  %v2340_v39 = vld [vmem:[%s4872_s5] sm:$0xf]  ;;  %v2571_v13 = vsel %vm4912_vm7, %v2564_v55, %v2566_v4  ;;  %v2686_v23 = vsel %vm4917_vm11, %v4610_v50, %v4606_v48  ;;  %vm4919_vm12 = vmmov %vm4918_vm3 }
 0x4d2   : > { %3725 = vmatprep.subr.msk.bf16.mxu0 %vm4907_vm4, %v4526_v42  ;;  %v4643_v6 = vpop.permute.xlu0 %2912  ;;  %3950 = vmatprep.mubr.msk.bf16.mxu1 %vm4889_vm8, %v4058_v0  ;;  %v2580_v17 = vsel %vm4914_vm2, %v2571_v13, 0  ;;  %vm4915_vm4 = vmmov %vm4905_vm0  ;;  %vm4922_vm2 = vcmask 891904   ;;  %v3748_v13 = vld [vmem:[%s4872_s5 + $0x1c] sm:$0xf] }
 0x4d3   : > { %2506 = vmatprep.mubr.bf16.mxu0 %v4479_v5  ;;  %vm4920_vm7 = vmmov %vm4905_vm0  ;;  %v2804_v33 = vsel %vm4922_vm2, %v4614_v52, %v4612_v51 }
 0x4d4   : > { %v4650_v7 = vpop.permute.xlu1 %3027  ;;  %3949 = vmatpush3.bf16.msra.mxu1 %v2472_v38  ;;  %vm4924_vm10 = vmmov %vm4922_vm2 }
 0x4d5   : > { %2477 = vmatpush1.bf16.msra.mxu0 %v2466_v37  ;;  %3954 = vmatprep.subr.bf16.mxu1 %v4058_v0  ;;  %vm4925_vm11 = vmmov %vm4922_vm2 }
 0x4d6   : > { %2588 = vmatprep.subr.bf16.mxu0 %v2570_v8  ;;  %v4659_v10 = vpop.permute.xlu0 %2914 }
 0x4d7   : > { %3951 = vmatmul.mubr.msk.bf16.vlgmr.msra.gmra.mrb[76].mxu1 %vm2368_vm9, %v2340_v39 }
 0x4d8   : > { %v2683_v12 = vpop.permute.xlu1 %2682  ;;  %3726 = vmatmul.mubr.msk.bf16.vlgmr.msra.gmra.mrb[76].mxu0 %vm2368_vm9, %v2340_v39  ;;  %3955 = vmatpush3.bf16.msra.mxu1 %v2562_v47 }
 0x4d9   : > { %2589 = vmatpush1.bf16.msra.mxu0 %v2569_v11  ;;  %3956 = vmatprep.subr.bf16.mxu1 %v4058_v0  ;;  %v2688_v26 = vsel %vm4918_vm3, %v4618_v57, %v2683_v12  ;;  %vm4926_vm3 = vmmov %vm4905_vm0 }
 0x4da   : > { %v2568_v14 = vpop.permute.xlu0 %2567  ;;  %3958 = vmatprep.mubr.msk.bf16.mxu1 %vm4889_vm8, %v4058_v0  ;;  %2620 = vmatprep.mubr.bf16.mxu0 %v4479_v5 }
 0x4db   : > { %v2572_v15 = vsel %vm4913_vm15, %v2566_v4, %v2568_v14  ;;  %v2586_v16 = vsel %vm4905_vm0, %v2568_v14, 0  ;;  %vm4921_vm15 = vmmov %vm4905_vm0  ;;  %v3744_v4 = vld [vmem:[%s4872_s5 + $0x18] sm:$0xf] }
 0x4dc   : > { %v4672_v18 = vpop.permute.xlu1 %3025  ;;  %3729 = vmatprep.subr.msk.bf16.mxu0 %vm4915_vm4, %v2572_v15  ;;  %3957 = vmatpush3.bf16.msra.mxu1 %v2586_v16  ;;  %v2697_v30 = vsel %vm4921_vm15, %v2688_v26, 0  ;;  %vm4923_vm4 = vmmov %vm4922_vm2  ;;  %vm4929_vm15 = vcmask 883712  }
 0x4dd   : > { %2591 = vmatpush1.bf16.msra.mxu0 %v2580_v17  ;;  %3962 = vmatprep.subr.bf16.mxu1 %v4058_v0  ;;  %v2803_v35 = vsel %vm4923_vm4, %v4616_v56, %v4614_v52  ;;  %v2921_v47 = vsel %vm4929_vm15, %v4620_v58, %v4643_v6  ;;  %v3740_v56 = vld [vmem:[%s4872_s5 + $0x14] sm:$0xf] }
 0x4de   : > { %2705 = vmatprep.subr.bf16.mxu0 %v2687_v20  ;;  %v4682_v22 = vpop.permute.xlu0 %3029 }
 0x4df   : > { %3959 = vmatmul.mubr.msk.bf16.vlgmr.msra.gmra.mrb[80].mxu1 %vm2368_vm9, %v3728_v19 }
 0x4e0   : > { %v2800_v25 = vpop.permute.xlu1 %2799  ;;  %3730 = vmatmul.mubr.msk.bf16.vlgmr.msra.gmra.mrb[80].mxu0 %vm2368_vm9, %v3728_v19  ;;  %3963 = vmatpush3.bf16.msra.mxu1 %v4608_v49 }
 0x4e1   : > { %2706 = vmatpush1.bf16.msra.mxu0 %v2686_v23  ;;  %3964 = vmatprep.subr.bf16.mxu1 %v4058_v0  ;;  %v2805_v40 = vsel %vm4924_vm10, %v4634_v3, %v2800_v25  ;;  %vm4933_vm10 = vmmov %vm4926_vm3 }
 0x4e2   : > { %v2685_v27 = vpop.permute.xlu0 %2684  ;;  %3966 = vmatprep.mubr.msk.bf16.mxu1 %vm4889_vm8, %v4058_v0  ;;  %2737 = vmatprep.mubr.bf16.mxu0 %v4479_v5 }
 0x4e3   : > { %v2689_v28 = vsel %vm4919_vm12, %v2683_v12, %v2685_v27  ;;  %v2703_v29 = vsel %vm4920_vm7, %v2685_v27, 0  ;;  %vm4927_vm12 = vmmov %vm4905_vm0 }
 0x4e4   : > { %v4699_v31 = vpop.permute.xlu1 %3144  ;;  %3733 = vmatprep.subr.msk.bf16.mxu0 %vm4905_vm0, %v2689_v28  ;;  %3965 = vmatpush3.bf16.msra.mxu1 %v2703_v29  ;;  %v2814_v44 = vsel %vm4927_vm12, %v2805_v40, 0  ;;  %vm4928_vm7 = vmmov %vm4905_vm0  ;;  %vm4935_vm12 = vcmask 752640  }
 0x4e5   : > { %2708 = vmatpush1.bf16.msra.mxu0 %v2697_v30  ;;  %3970 = vmatprep.subr.bf16.mxu1 %v4058_v0  ;;  %vm4930_vm0 = vmmov %vm4929_vm15  ;;  %v3038_v57 = vsel %vm4935_vm12, %v4650_v7, %v4682_v22 }
 0x4e6   : > { %2822 = vmatprep.subr.bf16.mxu0 %v2804_v33  ;;  %v3032_v34 = vpop.permute.xlu0 %3031  ;;  %v2920_v49 = vsel %vm4930_vm0, %v4626_v1, %v4620_v58  ;;  %vm4931_vm2 = vmmov %vm4930_vm0 }
 0x4e7   : > { %3967 = vmatmul.mubr.msk.bf16.vlgmr.msra.gmra.mrb[84].mxu1 %vm2368_vm9, %v3732_v32  ;;  %vm4932_vm4 = vmmov %vm4930_vm0 }
 0x4e8   : > { %v2917_v36 = vpop.permute.xlu1 %2916  ;;  %3734 = vmatmul.mubr.msk.bf16.vlgmr.msra.gmra.mrb[84].mxu0 %vm2368_vm9, %v3732_v32  ;;  %3971 = vmatpush3.bf16.msra.mxu1 %v4612_v51 }
 0x4e9   : > { %2823 = vmatpush1.bf16.msra.mxu0 %v2803_v35  ;;  %3972 = vmatprep.subr.bf16.mxu1 %v4058_v0  ;;  %v2922_v51 = vsel %vm4931_vm2, %v4659_v10, %v2917_v36  ;;  %vm4939_vm2 = vmmov %vm4926_vm3 }
 0x4ea   : > { %v2802_v41 = vpop.permute.xlu0 %2801  ;;  %3974 = vmatprep.mubr.msk.bf16.mxu1 %vm4889_vm8, %v4058_v0  ;;  %2854 = vmatprep.mubr.bf16.mxu0 %v4479_v5 }
 0x4eb   : > { %v2806_v42 = vsel %vm4925_vm11, %v2800_v25, %v2802_v41  ;;  %v2820_v43 = vsel %vm4926_vm3, %v2802_v41, 0  ;;  %vm4934_vm11 = vmmov %vm4926_vm3  ;;  %v3752_v25 = vld [vmem:[%s4872_s5 + $0x20] sm:$0xf] }
 0x4ec   : > { %v3143_v45 = vpop.permute.xlu1 %3142  ;;  %3737 = vmatprep.subr.msk.bf16.mxu0 %vm4928_vm7, %v2806_v42  ;;  %3973 = vmatpush3.bf16.msra.mxu1 %v2820_v43  ;;  %v2931_v55 = vsel %vm4934_vm11, %v2922_v51, 0  ;;  %vm4936_vm7 = vmmov %vm4935_vm12  ;;  %vm4942_vm11 = vcmask 744448  }
 0x4ed   : > { %2825 = vmatpush1.bf16.msra.mxu0 %v2814_v44  ;;  %3978 = vmatprep.subr.bf16.mxu1 %v4058_v0  ;;  %v3037_v60 = vsel %vm4936_vm7, %v4672_v18, %v4650_v7  ;;  %vm4937_vm15 = vmmov %vm4936_vm7 }
 0x4ee   : > { %2939 = vmatprep.subr.bf16.mxu0 %v2921_v47  ;;  %v3147_v48 = vpop.permute.xlu0 %3146  ;;  %vm4938_vm0 = vmmov %vm4936_vm7 }
 0x4ef   : > { %3975 = vmatmul.mubr.msk.bf16.vlgmr.msra.gmra.mrb[88].mxu1 %vm2368_vm9, %v3736_v46 }
 0x4f0   : > { %v3034_v50 = vpop.permute.xlu1 %3033  ;;  %3738 = vmatmul.mubr.msk.bf16.vlgmr.msra.gmra.mrb[88].mxu0 %vm2368_vm9, %v3736_v46  ;;  %3979 = vmatpush3.bf16.msra.mxu1 %v4643_v6  ;;  %v3155_v6 = vsel %vm4942_vm11, %v4699_v31, %v3147_v48 }
 0x4f1   : > { %2940 = vmatpush1.bf16.msra.mxu0 %v2920_v49  ;;  %3980 = vmatprep.subr.bf16.mxu1 %v4058_v0  ;;  %v3039_v61 = vsel %vm4937_vm15, %v3032_v34, %v3034_v50  ;;  %vm4946_vm15 = vmmov %vm4939_vm2 }
 0x4f2   : > { %v2919_v52 = vpop.permute.xlu0 %2918  ;;  %3982 = vmatprep.mubr.msk.bf16.mxu1 %vm4889_vm8, %v4058_v0  ;;  %2971 = vmatprep.mubr.bf16.mxu0 %v4479_v5 }
 0x4f3   : > { %v2923_v53 = vsel %vm4932_vm4, %v2917_v36, %v2919_v52  ;;  %v2937_v54 = vsel %vm4933_vm10, %v2919_v52, 0  ;;  %vm4940_vm4 = vmmov %vm4939_vm2 }
 0x4f4   : > { %3741 = vmatprep.subr.msk.bf16.mxu0 %vm4926_vm3, %v2923_v53  ;;  %3981 = vmatpush3.bf16.msra.mxu1 %v2937_v54  ;;  %v3262_v58 = vpop.permute.xlu1 %3261  ;;  %v3048_v2 = vsel %vm4940_vm4, %v3039_v61, 0  ;;  %vm4941_vm10 = vmmov %vm4939_vm2  ;;  %vm4949_vm4 = vcmask 736256  }
 0x4f5   : > { %2942 = vmatpush1.bf16.msra.mxu0 %v2931_v55  ;;  %3986 = vmatprep.subr.bf16.mxu1 %v4058_v0  ;;  %vm4943_vm3 = vmmov %vm4942_vm11 }
 0x4f6   : > { %3056 = vmatprep.subr.bf16.mxu0 %v3038_v57  ;;  %v3149_v59 = vpop.permute.xlu0 %3148  ;;  %v3154_v7 = vsel %vm4943_vm3, %v3143_v45, %v4699_v31  ;;  %vm4944_vm12 = vmmov %vm4943_vm3 }
 0x4f7   : > { %3983 = vmatmul.mubr.msk.bf16.vlgmr.msra.gmra.mrb[92].mxu1 %vm2368_vm9, %v3740_v56  ;;  %vm4945_vm7 = vmmov %vm4943_vm3 }
 0x4f8   : > { %3742 = vmatmul.mubr.msk.bf16.vlgmr.msra.gmra.mrb[92].mxu0 %vm2368_vm9, %v3740_v56  ;;  %3987 = vmatpush3.bf16.msra.mxu1 %v4682_v22  ;;  %v3151_v3 = vpop.permute.xlu1 %3150  ;;  %vm4951_vm11 = vmmov %vm4949_vm4 }
 0x4f9   : > { %3057 = vmatpush1.bf16.msra.mxu0 %v3037_v60  ;;  %3988 = vmatprep.subr.bf16.mxu1 %v4058_v0  ;;  %v3156_v37 = vsel %vm4944_vm12, %v3149_v59, %v3151_v3  ;;  %vm4952_vm3 = vmmov %vm4949_vm4 }
 0x4fa   : > { %v3036_v62 = vpop.permute.xlu0 %3035  ;;  %3990 = vmatprep.mubr.msk.bf16.mxu1 %vm4889_vm8, %v4058_v0  ;;  %3088 = vmatprep.mubr.bf16.mxu0 %v4479_v5 }
 0x4fb   : > { %v3040_v63 = vsel %vm4938_vm0, %v3034_v50, %v3036_v62  ;;  %v3054_v1 = vsel %vm4939_vm2, %v3036_v62, 0  ;;  %vm4947_vm0 = vmmov %vm4939_vm2 }
 0x4fc   : > { %3745 = vmatprep.subr.msk.bf16.mxu0 %vm4941_vm10, %v3040_v63  ;;  %3989 = vmatpush3.bf16.msra.mxu1 %v3054_v1  ;;  %v3260_v39 = vpop.permute.xlu1 %3259  ;;  %v3165_v12 = vsel %vm4947_vm0, %v3156_v37, 0  ;;  %vm4948_vm2 = vmmov %vm4947_vm0 }
 0x4fd   : > { %3059 = vmatpush1.bf16.msra.mxu0 %v3048_v2  ;;  %3994 = vmatprep.subr.bf16.mxu1 %v4058_v0  ;;  %vm4950_vm10 = vmmov %vm4949_vm4 }
 0x4fe   : > { %3173 = vmatprep.subr.bf16.mxu0 %v3155_v6  ;;  %v3264_v38 = vpop.permute.xlu0 %3263  ;;  %v3271_v16 = vsel %vm4950_vm10, %v3260_v39, %v3262_v58  ;;  %vm4953_vm12 = vmmov %vm4947_vm0  ;;  %vm3584_vm10 = vcmask 1047556  }
 0x4ff   : > { %3991 = vmatmul.mubr.msk.bf16.vlgmr.msra.gmra.mrb[96].mxu1 %vm2368_vm9, %v3744_v4  ;;  %v3272_v14 = vsel %vm4949_vm4, %v3262_v58, %v3264_v38 }
 0x500   : > { %3746 = vmatmul.mubr.msk.bf16.vlgmr.msra.gmra.mrb[96].mxu0 %vm2368_vm9, %v3744_v4  ;;  %3995 = vmatpush3.bf16.msra.mxu1 %v3147_v48  ;;  %v3268_v17 = vpop.permute.xlu1 %3267 }
 0x501   : > { %3174 = vmatpush1.bf16.msra.mxu0 %v3154_v7  ;;  %3996 = vmatprep.subr.bf16.mxu1 %v4058_v0 }
 0x502   : > { %v3153_v8 = vpop.permute.xlu0 %3152  ;;  %3998 = vmatprep.mubr.msk.bf16.mxu1 %vm4889_vm8, %v4058_v0  ;;  %3205 = vmatprep.mubr.bf16.mxu0 %v4479_v5 }
 0x503   : > { %v3157_v10 = vsel %vm4945_vm7, %v3151_v3, %v3153_v8  ;;  %v3171_v11 = vsel %vm4946_vm15, %v3153_v8, 0  ;;  %vm4954_vm7 = vmmov %vm4947_vm0 }
 0x504   : > { %3749 = vmatprep.subr.msk.bf16.mxu0 %vm4948_vm2, %v3157_v10  ;;  %3997 = vmatpush3.bf16.msra.mxu1 %v3171_v11  ;;  %vm4955_vm15 = vmmov %vm4947_vm0 }
 0x505   : > { %3176 = vmatpush1.bf16.msra.mxu0 %v3165_v12  ;;  %4002 = vmatprep.subr.bf16.mxu1 %v4058_v0 }
 0x506   : > { %3290 = vmatprep.subr.bf16.mxu0 %v3272_v14  ;;  %v3266_v15 = vpop.permute.xlu0 %3265 }
 0x507   : > { %3999 = vmatmul.mubr.msk.bf16.vlgmr.msra.gmra.mrb[100].mxu1 %vm2368_vm9, %v3748_v13  ;;  %v3273_v18 = vsel %vm4951_vm11, %v3266_v15, %v3268_v17  ;;  %vm3585_vm11 = vmor %vm3584_vm10, %vm2329_vm13 }
 0x508   : > { %3750 = vmatmul.mubr.msk.bf16.vlgmr.msra.gmra.mrb[100].mxu0 %vm2368_vm9, %v3748_v13  ;;  %4003 = vmatpush3.bf16.msra.mxu1 %v3264_v38  ;;  %v3282_v23 = vsel %vm4954_vm7, %v3273_v18, 0 }
 0x509   : > { %3291 = vmatpush1.bf16.msra.mxu0 %v3271_v16  ;;  %4004 = vmatprep.subr.bf16.mxu1 %v4058_v0 }
 0x50a   : > { %v3270_v19 = vpop.permute.xlu0 %3269  ;;  %4006 = vmatprep.mubr.msk.bf16.mxu1 %vm4889_vm8, %v4058_v0  ;;  %3322 = vmatprep.mubr.bf16.mxu0 %v4479_v5 }
 0x50b   : > { %v3274_v20 = vsel %vm4952_vm3, %v3268_v17, %v3270_v19  ;;  %v3288_v22 = vsel %vm4953_vm12, %v3270_v19, 0  ;;  %vm3588_vm3 = vcmask 150528   ;;  %vm3590_vm12 = vcmask 552328  }
 0x50c   : > { %3753 = vmatprep.subr.msk.bf16.mxu0 %vm4955_vm15, %v3274_v20  ;;  %4005 = vmatpush3.bf16.msra.mxu1 %v3288_v22 }
 0x50d   : > { %3293 = vmatpush1.bf16.msra.mxu0 %v3282_v23  ;;  %4010 = vmatprep.subr.bf16.mxu1 %v4058_v0 }
 0x50f   : > { %4007 = vmatmul.mubr.msk.bf16.vlgmr.msra.gmra.mrb[104].mxu1 %vm2368_vm9, %v3752_v25 }
 0x510   : > { %3754 = vmatmul.mubr.msk.bf16.vlgmr.msra.gmra.mrb[104].mxu0 %vm2368_vm9, %v3752_v25  ;;  %4014 = vmatprep.mubr.msk.bf16.mxu1 %vm4889_vm8, %v4058_v0  ;;  %vm4956_vm8 = vcmask 891904  }
 0x511   : > { %3494 = vmatprep.mubr.bf16.mxu0 %v4479_v5  ;;  %vm4957_vm9 = vmmov %vm4956_vm8 }
 0x5a2   : > { %v2456_v26 = vpop.f32.mrb[72].mxu1 }
 0x5a3   : > { %v2415_v27 = vpop.f32.mrb[72].mxu0  ;;  %v3944_v28 = vpop.f32.mrb[73].mxu1 }
 0x5a4   : > { %v2417_v29 = vpop.f32.mrb[73].mxu0  ;;  %v2459_v30 = vpop.f32.mrb[74].mxu1 }
 0x5a5   : > { %v2419_v31 = vpop.f32.mrb[74].mxu0  ;;  %v3945_v32 = vpop.f32.mrb[75].mxu1 }
 0x5a6   : > { %v2420_v33 = vpop.f32.mrb[75].mxu0 }
 0x5aa   : > { %v2549_v34 = vpop.f32.mrb[76].mxu1 }
 0x5ab   : > { %v2508_v35 = vpop.f32.mrb[76].mxu0  ;;  %v2550_v36 = vadd.f32 %v2549_v34, %v2456_v26  ;;  %v3952_v40 = vpop.f32.mrb[77].mxu1 }
 0x5ac   : > { %v2509_v41 = vadd.f32 %v2508_v35, %v2415_v27  ;;  %v2510_v42 = vpop.f32.mrb[77].mxu0  ;;  %v2552_v43 = vpop.f32.mrb[78].mxu1 }
 0x5ad   : > { %v2511_v44 = vadd.f32 %v2510_v42, %v2417_v29  ;;  %v2512_v45 = vpop.f32.mrb[78].mxu0  ;;  %v3953_v46 = vpop.f32.mrb[79].mxu1 }
 0x5ae   : > { %v2513_v47 = vpop.f32.mrb[79].mxu0 }
 0x5b2   : > { %v2663_v48 = vpop.f32.mrb[80].mxu1 }
 0x5b3   : > { %v2671_v49 = vadd.f32 %v2663_v48, %v2550_v36  ;;  %v2622_v50 = vpop.f32.mrb[80].mxu0  ;;  %v3960_v51 = vpop.f32.mrb[81].mxu1 }
 0x5b4   : > { %v2669_v52 = vadd.f32 %v2622_v50, %v2509_v41  ;;  %v2624_v53 = vpop.f32.mrb[81].mxu0  ;;  %v2666_v54 = vpop.f32.mrb[82].mxu1 }
 0x5b5   : > { %v2670_v55 = vadd.f32 %v2624_v53, %v2511_v44  ;;  %v2626_v56 = vpop.f32.mrb[82].mxu0  ;;  %v3961_v57 = vpop.f32.mrb[83].mxu1 }
 0x5b6   : > { %v2627_v58 = vpop.f32.mrb[83].mxu0 }
 0x5ba   : > { %v2780_v59 = vpop.f32.mrb[84].mxu1 }
 0x5bb   : > { %v2788_v60 = vadd.f32 %v2780_v59, %v2671_v49  ;;  %v2739_v61 = vpop.f32.mrb[84].mxu0  ;;  %v3968_v62 = vpop.f32.mrb[85].mxu1 }
 0x5bc   : > { %v2786_v63 = vadd.f32 %v2739_v61, %v2669_v52  ;;  %v2741_v1 = vpop.f32.mrb[85].mxu0  ;;  %v2783_v2 = vpop.f32.mrb[86].mxu1 }
 0x5bd   : > { %v2787_v3 = vadd.f32 %v2741_v1, %v2670_v55  ;;  %v2743_v4 = vpop.f32.mrb[86].mxu0  ;;  %v3969_v6 = vpop.f32.mrb[87].mxu1 }
 0x5be   : > { %v2744_v38 = vpop.f32.mrb[87].mxu0  ;;  %v3378_v55 = vpop.permute.xlu1 %3377 }
 0x5c2   : > { %v2897_v7 = vpop.f32.mrb[88].mxu1 }
 0x5c3   : > { %v2905_v37 = vadd.f32 %v2897_v7, %v2788_v60  ;;  %v2856_v39 = vpop.f32.mrb[88].mxu0  ;;  %v3976_v8 = vpop.f32.mrb[89].mxu1 }
 0x5c4   : > { %v2903_v10 = vadd.f32 %v2856_v39, %v2786_v63  ;;  %v2858_v11 = vpop.f32.mrb[89].mxu0  ;;  %v2900_v12 = vpop.f32.mrb[90].mxu1 }
 0x5c5   : > { %v2904_v13 = vadd.f32 %v2858_v11, %v2787_v3  ;;  %v2860_v14 = vpop.f32.mrb[90].mxu0  ;;  %v3977_v15 = vpop.f32.mrb[91].mxu1 }
 0x5c6   : > { %v2861_v16 = vpop.f32.mrb[91].mxu0 }
 0x5ca   : > { %v3014_v17 = vpop.f32.mrb[92].mxu1 }
 0x5cb   : > { %v3022_v18 = vadd.f32 %v3014_v17, %v2905_v37  ;;  %v2973_v19 = vpop.f32.mrb[92].mxu0  ;;  %v3984_v20 = vpop.f32.mrb[93].mxu1 }
 0x5cc   : > { %v3020_v22 = vadd.f32 %v2973_v19, %v2903_v10  ;;  %v2975_v23 = vpop.f32.mrb[93].mxu0  ;;  %v3017_v25 = vpop.f32.mrb[94].mxu1  ;;  %v3419_v19 = vld [vmem:[#allocation2 + $0x10] sm:$0xff]  ;;  %v3417_v20 = vld [vmem:[#allocation2] sm:$0xff] }
 0x5cd   : > { %v3021_v26 = vadd.f32 %v2975_v23, %v2904_v13  ;;  %v2977_v27 = vpop.f32.mrb[94].mxu0  ;;  %v3985_v28 = vpop.f32.mrb[95].mxu1 }
 0x5ce   : > { %v2978_v29 = vpop.f32.mrb[95].mxu0 }
 0x5d2   : > { %v3131_v30 = vpop.f32.mrb[96].mxu1 }
 0x5d3   : > { %v3139_v31 = vadd.f32 %v3131_v30, %v3022_v18  ;;  %v3090_v32 = vpop.f32.mrb[96].mxu0  ;;  %v3992_v33 = vpop.f32.mrb[97].mxu1  ;;  %v3418_v18 = vld [vmem:[#allocation2 + $0x8] sm:$0xff] }
 0x5d4   : > { %v3137_v34 = vadd.f32 %v3090_v32, %v3020_v22  ;;  %v3092_v35 = vpop.f32.mrb[97].mxu0  ;;  %v3134_v36 = vpop.f32.mrb[98].mxu1 }
 0x5d5   : > { %v3138_v40 = vadd.f32 %v3092_v35, %v3021_v26  ;;  %v3094_v41 = vpop.f32.mrb[98].mxu0  ;;  %v3993_v42 = vpop.f32.mrb[99].mxu1  ;;  %v3424_v36 = vld [vmem:[%s4875_s8] sm:$0xff] }
 0x5d6   : > { %v3095_v43 = vpop.f32.mrb[99].mxu0  ;;  %v3413_v41 = vld [vmem:[%s4137_s14 + $0x8] sm:$0xf] }
 0x5da   : > { %v3248_v44 = vpop.f32.mrb[100].mxu1 }
 0x5db   : > { %v3256_v45 = vadd.f32 %v3248_v44, %v3139_v31  ;;  %v3207_v46 = vpop.f32.mrb[100].mxu0  ;;  %v4000_v47 = vpop.f32.mrb[101].mxu1  ;;  %v3416_v44 = vunpack.c.l.bf16 %v3413_v41 }
 0x5dc   : > { %v3254_v48 = vadd.f32 %v3207_v46, %v3137_v34  ;;  %v3209_v49 = vpop.f32.mrb[101].mxu0  ;;  %v3251_v50 = vpop.f32.mrb[102].mxu1 }
 0x5dd   : > { %v3255_v51 = vadd.f32 %v3209_v49, %v3138_v40  ;;  %v3211_v52 = vpop.f32.mrb[102].mxu0  ;;  %v4001_v53 = vpop.f32.mrb[103].mxu1  ;;  %v3412_v40 = vld [vmem:[%s4137_s14] sm:$0xff] }
 0x5de   : > { %v3212_v54 = vpop.f32.mrb[103].mxu0  ;;  %v3414_v42 = vunpack.c.l.bf16 %v3412_v40  ;;  %v3415_v43 = vunpack.c.h.bf16 %v3412_v40  ;;  %v3423_v49 = vld [vmem:[%s4874_s7] sm:$0xf] }
 0x5e2   : > { %v3365_v56 = vpop.f32.mrb[104].mxu1 }
 0x5e3   : > { %v3373_v57 = vadd.f32 %v3365_v56, %v3256_v45  ;;  %v3324_v58 = vpop.f32.mrb[104].mxu0  ;;  %v4008_v59 = vpop.f32.mrb[105].mxu1 }
 0x5e4   : > { %v3371_v60 = vadd.f32 %v3324_v58, %v3254_v48  ;;  %v3326_v61 = vpop.f32.mrb[105].mxu0  ;;  %v3368_v62 = vpop.f32.mrb[106].mxu1 }
 0x5e5   : > { %v3382_v63 = vadd.f32 %v3378_v55, %v3373_v57  ;;  %v3372_v1 = vadd.f32 %v3326_v61, %v3255_v51  ;;  %v3328_v2 = vpop.f32.mrb[106].mxu0  ;;  %v4009_v3 = vpop.f32.mrb[107].mxu1 }
 0x5e6   : > { %v3380_v4 = vadd.f32 %v3378_v55, %v3371_v60  ;;  %v3329_v6 = vpop.f32.mrb[107].mxu0 }
 0x5e7   : > { %v3385_v38 = vmax.f32 %v3382_v63, 0.0  ;;  %v3381_v7 = vadd.f32 %v3378_v55, %v3372_v1 }
 0x5e8   : > { %v3383_v37 = vmax.f32 %v3380_v4, 0.0 }
 0x5e9   : > { %v3384_v39 = vmax.f32 %v3381_v7, 0.0  ;;  %v3388_v8 = vmul.f32 %v4309_v9, %v3385_v38 }
 0x5ea   : > { %v3386_v10 = vmul.f32 %v4314_v21, %v3383_v37 }
 0x5eb   : > { %v3387_v11 = vmul.f32 %v4317_v24, %v3384_v39  ;;  %v3391_v14 = vpack.c.bf16 %v3388_v8, %v3388_v8 }
 0x5ec   : > { %v3389_v12 = vpack.c.bf16 %v3386_v10, %v3386_v10 }
 0x5ed   : > { %v3390_v13 = vpack.c.bf16 %v3387_v11, %v3387_v11  ;;  %v3397_v17 = vrot.slane %v3391_v14, 4 }
 0x5ee   : > { %v3395_v15 = vrot.slane %v3389_v12, 4 }
 0x5ef   : > { %v3396_v16 = vrot.slane %v3390_v13, 4 }
 0x5f0   : > { %3398 = vrot.lane.b32.xlu0 %v3395_v15, %s4069_s25 }
 0x5f1   : > { %3400 = vrot.lane.b32.xlu1 %v3396_v16, %s4069_s25 }
 0x5f4   : > { %3402 = vrot.lane.b32.xlu0 %v3397_v17, %s4069_s25 }
 0x5f5   : > { %3438 = vrot.lane.b32.xlu1 %v3418_v18, %s4064_s18 }
 0x5f8   : > { %3440 = vrot.lane.b32.xlu0 %v3419_v19, %s4064_s18 }
 0x5f9   : > { %3436 = vrot.lane.b32.xlu1 %v3417_v20, %s4064_s18 }
 0x662   : > { %v3399_v22 = vpop.permute.xlu0 %3398 }
 0x663   : > { %3409 = vst.msk [vmem:[#allocation2 + $0x18] sm:$0xf0] %vm1403_vm1, %v3399_v22  ;;  %v3401_v23 = vpop.permute.xlu1 %3400  ;;  %vm4958_vm1 = vmmov %vm4956_vm8 }
 0x664   : > { %v3404_v25 = vsel %vm1397_vm5, %v3399_v22, %v3401_v23  ;;  %vm4959_vm0 = vmmov %vm4958_vm1 }
 0x665   : > { %3410 = vst [vmem:[#allocation2 + $0x20] sm:$0xf0] %v3404_v25  ;;  %vm4960_vm2 = vmmov %vm4959_vm0 }
 0x666   : > { %v3403_v26 = vpop.permute.xlu0 %3402  ;;  %vm4961_vm4 = vmmov %vm4959_vm0 }
 0x667   : > { %v3405_v27 = vsel %vm1397_vm5, %v3401_v23, %v3403_v26  ;;  %v3439_v28 = vpop.permute.xlu1 %3438 }
 0x668   : > { %3411 = vst.msk [vmem:[#allocation2 + $0x28] sm:$0xf0] %vm1406_vm6, %v3405_v27  ;;  %vm3458_vm6 = vcmask 261120  }
 0x66a   : > { %v3441_v29 = vpop.permute.xlu0 %3440  ;;  %v3420_v35 = vld [vmem:[#allocation2 + $0x18] sm:$0xff] }
 0x66b   : > { %4011 = vmatpush3.bf16.msra.mxu1 %v3441_v29  ;;  %v3437_v30 = vpop.permute.xlu1 %3436  ;;  %v3449_v31 = vsel %vm4956_vm8, %v3439_v28, %v3441_v29 }
 0x66c   : > { %v3448_v32 = vsel %vm4957_vm9, %v3437_v30, %v3439_v28  ;;  %3462 = vmatprep.subr.bf16.mxu0 %v3449_v31  ;;  %v3421_v33 = vld [vmem:[#allocation2 + $0x20] sm:$0xff]  ;;  %4012 = vmatprep.subr.bf16.mxu1 %v4058_v0  ;;  %v4041_v0 = vpack.i.bf16 %v3415_v43, %v3414_v42 }
 0x66d   : > { %3444 = vrot.lane.b32.xlu0 %v3421_v33, %s4064_s18  ;;  %3463 = vmatpush1.bf16.msra.mxu0 %v3448_v32 }
 0x66f   : > { %v3422_v34 = vld [vmem:[#allocation2 + $0x28] sm:$0xff] }
 0x670   : > { %3446 = vrot.lane.b32.xlu1 %v3422_v34, %s4064_s18 }
 0x671   : > { %3442 = vrot.lane.b32.xlu0 %v3420_v35, %s4064_s18 }
 0x674   : > { %3427 = vperm.xlu1 %4040, %v3424_v36  }
 0x675   : > { %4042 = vrot.lane.b32.xlu0 %v4041_v0, %s4064_s18 }
 0x678   : > { %3550 = vrot.lane.b32.xlu1 %v3416_v44, %s4064_s18 }
 0x6df   : > { %v3445_v45 = vpop.permute.xlu0 %3444 }
 0x6e2   : > { %v3447_v46 = vpop.permute.xlu1 %3446 }
 0x6e3   : > { %v3443_v47 = vpop.permute.xlu0 %3442  ;;  %4013 = vmatpush3.bf16.msra.mxu1 %v3447_v46  ;;  %v3451_v48 = vsel %vm4958_vm1, %v3445_v45, %v3447_v46 }
 0x6e4   : > { %v3450_v50 = vsel %vm4959_vm0, %v3443_v47, %v3445_v45  ;;  %3464 = vmatprep.subr.bf16.mxu0 %v3451_v48 }
 0x6e5   : > { %3465 = vmatpush1.bf16.msra.mxu0 %v3450_v50 }
 0x6e6   : > { %4015 = vmatmul.mubr.msk.bf16.vlgmr.msra.gmra.mrb[108].mxu1 %vm3458_vm6, %v3423_v49 }
 0x6e7   : > { %v4043_v51 = vpop.permute.xlu0 %4042 }
 0x6e8   : > { %3756 = vmatmul.mubr.msk.bf16.vlgmr.msra.gmra.mrb[108].mxu0 %vm3458_vm6, %v3423_v49  ;;  %v4045_v53 = vunpack.i.h.bf16 %v4043_v51  ;;  %v4044_v54 = vunpack.i.l.bf16 %v4043_v51 }
 0x6ea   : > { %v3553_v60 = vsel %vm4960_vm2, %v4044_v54, %v4045_v53 }
 0x6f3   : > { %v3428_v52 = vpop.permute.xlu1 %3427 }
 0x6f7   : > { %v3551_v56 = vpop.permute.xlu1 %3550 }
 0x6f8   : > { %v3554_v62 = vsel %vm4961_vm4, %v4045_v53, %v3551_v56 }
 0x7b9   : > { %v3537_v55 = vpop.f32.mrb[108].mxu1 }
 0x7ba   : > { %v3538_v57 = vadd.f32 %v3537_v55, %v3428_v52  ;;  %v4016_v58 = vpop.f32.mrb[109].mxu1 }
 0x7bb   : > { %v3496_v59 = vpop.f32.mrb[108].mxu0  ;;  %v3540_v61 = vpop.f32.mrb[110].mxu1 }
 0x7bc   : > { %v3560_v63 = vadd.f32 %v3551_v56, %v3538_v57  ;;  %v3497_v1 = vadd.f32 %v3496_v59, %v3428_v52  ;;  %v3498_v2 = vpop.f32.mrb[109].mxu0  ;;  %v4017_v3 = vpop.f32.mrb[111].mxu1 }
 0x7bd   : > { %v3499_v4 = vadd.f32 %v3498_v2, %v3428_v52  ;;  %v3500_v6 = vpop.f32.mrb[110].mxu0 }
 0x7be   : > { %v3563_v38 = vmul.f32 %v4309_v9, %v3560_v63  ;;  %v3558_v7 = vadd.f32 %v3553_v60, %v3497_v1  ;;  %v3501_v37 = vpop.f32.mrb[111].mxu0 }
 0x7bf   : > { %v3559_v39 = vadd.f32 %v3554_v62, %v3499_v4 }
 0x7c0   : > { %v3763_v8 = vpack.c.bf16 %v3563_v38, %v3563_v38  ;;  %v3561_v10 = vmul.f32 %v4314_v21, %v3558_v7 }
 0x7c1   : > { %v3562_v11 = vmul.f32 %v4317_v24, %v3559_v39 }
 0x7c2   : > { %3577 = vrot.lane.b32.xlu1 %v3763_v8, %s4069_s25 }
 0x7c3   : > { %v3762_v12 = vpack.c.bf16 %v3562_v11, %v3561_v10 }
 0x7c5   : > { %3575 = vrot.lane.b32.xlu0 %v3762_v12, %s4069_s25 }
 0x834   : > { %v3578_v14 = vpop.permute.xlu1 %3577 }
 0x837   : > { %v3576_v13 = vpop.permute.xlu0 %3575 }
 0x838   : > { %v3579_v9 = vrot.slane %v3576_v13, 4 }
 0x83a   : > { %v3580_v21 = vsel %vm1397_vm5, %v3579_v9, %v3576_v13  ;;  %v3581_v24 = vsel %vm1397_vm5, %v3579_v9, %v3578_v14 }
 0x83b   : > { %3586 = vst.msk [vmem:[%s332_s23] sm:$0xff] %vm3585_vm11, %v3580_v21 }
 0x83c   : > { %3587 = vst.msk [vmem:[%s332_s23 + $0x8] sm:$0xf] %vm2332_vm14, %v3581_v24 }
 0x83d   : > { %3589 = vst.msk [vmem:[%s332_s23] sm:$0xf] %vm3588_vm3, %v4479_v5 }
 0x83e   : > { %3591 = vst.msk [vmem:[%s332_s23 + $0x8] sm:$0xf] %vm3590_vm12, %v4479_v5 }
 0x83f PF: > { %s19_s30 = sadd.s32 1, %s4056_s30  }
 0x840   : > { %p16_p4 = scmp.ge.s32.totalorder %s19_s30, 4  }
 0x842   :  { %18 = sbr.rel (!%p16_p4) target bundleno = 1 (0x1), region = 110 }

// kernel: _lambda_.11
= control target key start
LH: loop header
LB: loop body
LE: loop exit
PB: predicated region body
PF: predicated region fallthrough
CT: control target
= control target key end

     0   :  { %s3308_s18 = smov 0   ;;  %s4159_s0 = inlined_call_operand.vmem [shape: bf16[2,8,1156], index: 0, kind: input, shape index: {}]   ;;  %s4160_s1 = inlined_call_operand.vmem [shape: bf16[3,3,3,8], index: 1, kind: input, shape index: {}]   ;;  %s4161_s2 = inlined_call_operand.vmem [shape: f32[3,1], index: 2, kind: input, shape index: {}]   ;;  %s4162_s3 = inlined_call_operand.vmem [shape: f32[3,1], index: 3, kind: input, shape index: {}]   ;;  %s4163_s4 = inlined_call_operand.vmem [shape: f32[3,1], index: 4, kind: input, shape index: {}]   ;;  %s4164_s5 = inlined_call_operand.vmem [shape: f32[2,3,1156], index: 5, kind: output, shape index: {}]  }
   0x1 LB: > { %s3026_s19 = sadd.s32 4294967295, %s3264_s18   ;;  %p3030_p0 = scmp.ge.s32.totalorder %s3264_s18, 1  ;;  %s3264_s18 = sphi %s3308_s18, %s15_s18  }
   0x2   : > { %p187_p1 = scmp.lt.s32.totalorder %s3264_s18, 3 }
   0x4   : > { %p188_p2 = pnand %p3030_p0, %p187_p1 }
   0x5   : > { %p215_p3 = scmp.lt.s32.totalorder (!%p188_p2), %s3026_s19, 1  ;;  %v3266_v0 = vmov (!%p188_p2), 0   ;;  %s3267_s24 = smov (!%p188_p2), 127   ;;  %vm430_vm0 = vcmask (!%p188_p2), 1039360   ;;  %vm4165_vm1 = vcmask (!%p188_p2), 1043456   ;;  %vm439_vm2 = vcmask (!%p188_p2), 64512  }
   0x6   : > { %191 = sbr.rel (%p188_p2) target bundleno = 663 (0x297), region = 40  ;;  %503 = vmatprep.mubr.bf16.mxu0 (!%p188_p2), %v3266_v0  ;;  %544 = vmatprep.mubr.bf16.mxu1 (!%p188_p2), %v3266_v0  ;;  %s3268_s25 = smov (!%p188_p2), 126   ;;  %v3042_v24 = vld [vmem:[%s4160_s1 + $0x2] sm:$0x3] (!%p188_p2)  ;;  %v3274_v37 = vmov (!%p188_p2), 0.0   ;;  %vm3276_vm3 = vmmov (!%p188_p2), 0  }
   0x7   : > { %3245 = vset.pattern.permute.xlu1 (!%p188_p2), %v3266_v0  ;;  %3246 = vset.pattern.permute.xlu0 (!%p188_p2), %v3266_v0  ;;  %s3269_s26 = smov (!%p188_p2), 94   ;;  %s3270_s27 = smov (!%p188_p2), 93   ;;  %v386_v48 = vld [vmem:[%s4160_s1] sm:$0x3] (!%p188_p2)  ;;  %vm929_vm4 = vcmask (!%p188_p2), 1031168   ;;  %vm1201_vm5 = vcmask (!%p188_p2), 769024  }
   0x8   : > { %s3271_s28 = smov (!%p188_p2), 92   ;;  %s3272_s29 = smov (!%p188_p2), 60   ;;  %vm1473_vm6 = vcmask (!%p188_p2), 760832   ;;  %vm1745_vm7 = vcmask (!%p188_p2), 752640   ;;  %vm2049_vm8 = vcmask (!%p188_p2), 490496   ;;  %vm2324_vm9 = vcmask (!%p188_p2), 482304  }
   0x9   : > { %s3273_s30 = smov (!%p188_p2), 59   ;;  %s3275_s8 = smov (!%p188_p2), 58   ;;  %vm2599_vm10 = vcmask (!%p188_p2), 474112  }
   0xa   : > { %s3277_s9 = smov (!%p188_p2), 35  }
   0xd   : > { %s4216_s19 = smov (!%p215_p3, %s3026_s19), 1 }
   0xe   : > { %s3224_s20 = smul.u32 40, %s4216_s19 }
  0x10   : > { %s3326_s23 = scalar_lea.vmem %s4159_s0, %s3224_s20  ;;  %s224_s12 = scalar_lea.vmem %s4164_s5, %s3224_s20 }
  0x11   : > { %v382_v1 = vld [vmem:[%s3326_s23 + $0x8] sm:$0xff]  ;;  %v381_v2 = vld [vmem:[%s3326_s23] sm:$0xff]  ;;  %v383_v7 = vld [vmem:[%s3326_s23 + $0x10] sm:$0xff] }
  0x12   : > { %v3332_v3 = vcombine.low %v382_v1, %v382_v1  ;;  %v3334_v4 = vcombine.low %v381_v2, %v381_v2  ;;  %v3338_v5 = vcombine.high %v382_v1, %v382_v1  ;;  %v3340_v6 = vcombine.high %v381_v2, %v381_v2  ;;  %v384_v10 = vld [vmem:[%s3326_s23 + $0x18] sm:$0xff]  ;;  %v3359_v13 = vld [vmem:[%s3326_s23 + $0x20] ss:$0 sps:$4 sm:$0xff]  }
  0x13   : > { %v3345_v8 = vcombine.high %v383_v7, %v383_v7  ;;  %v3347_v9 = vcombine.low %v383_v7, %v383_v7  ;;  %v3352_v11 = vcombine.high %v384_v10, %v384_v10  ;;  %v3354_v12 = vcombine.low %v384_v10, %v384_v10  ;;  %v2001_v14 = vld [vmem:[%s3326_s23 + $0x20] sm:$0xff] }
  0x14   : > { %416 = vrot.lane.b32.xlu1 %v3332_v3, %s3267_s24  ;;  %412 = vrot.lane.b32.xlu0 %v3334_v4, %s3267_s24  ;;  %v3406_v15 = vcombine.low %v2001_v14, %v2001_v14  ;;  %v3410_v16 = vcombine.high %v2001_v14, %v2001_v14  ;;  %v679_v42 = vsel %vm4165_vm1, %v3334_v4, 0  ;;  %v685_v45 = vsel %vm4165_vm1, %v3332_v3, 0 }
  0x15   : > { %v691_v49 = vsel %vm4165_vm1, %v3347_v9, 0  ;;  %v697_v52 = vsel %vm4165_vm1, %v3354_v12, 0  ;;  %v703_v56 = vsel %vm4165_vm1, %v3359_v13, 0 }
  0x18   : > { %418 = vrot.lane.b32.xlu1 %v3338_v5, %s3267_s24  ;;  %414 = vrot.lane.b32.xlu0 %v3340_v6, %s3267_s24 }
  0x1c   : > { %422 = vrot.lane.b32.xlu1 %v3345_v8, %s3267_s24  ;;  %420 = vrot.lane.b32.xlu0 %v3347_v9, %s3267_s24 }
  0x20   : > { %426 = vrot.lane.b32.xlu1 %v3352_v11, %s3267_s24  ;;  %424 = vrot.lane.b32.xlu0 %v3354_v12, %s3267_s24 }
  0x24   : > { %428 = vrot.lane.b32.xlu0 %v3359_v13, %s3267_s24  ;;  %911 = vrot.lane.b32.xlu1 %v3334_v4, %s3268_s25 }
  0x28   : > { %915 = vrot.lane.b32.xlu1 %v3332_v3, %s3268_s25  ;;  %913 = vrot.lane.b32.xlu0 %v3340_v6, %s3268_s25 }
  0x2c   : > { %919 = vrot.lane.b32.xlu1 %v3347_v9, %s3268_s25  ;;  %917 = vrot.lane.b32.xlu0 %v3338_v5, %s3268_s25 }
  0x30   : > { %923 = vrot.lane.b32.xlu1 %v3354_v12, %s3268_s25  ;;  %921 = vrot.lane.b32.xlu0 %v3345_v8, %s3268_s25 }
  0x34   : > { %927 = vrot.lane.b32.xlu1 %v3359_v13, %s3268_s25  ;;  %925 = vrot.lane.b32.xlu0 %v3352_v11, %s3268_s25 }
  0x38   : > { %1183 = vrot.lane.b32.xlu0 %v3334_v4, %s3269_s26  ;;  %1185 = vrot.lane.b32.xlu1 %v3340_v6, %s3269_s26 }
  0x3c   : > { %1187 = vrot.lane.b32.xlu0 %v3332_v3, %s3269_s26  ;;  %1189 = vrot.lane.b32.xlu1 %v3338_v5, %s3269_s26 }
  0x40   : > { %1191 = vrot.lane.b32.xlu0 %v3347_v9, %s3269_s26  ;;  %1193 = vrot.lane.b32.xlu1 %v3345_v8, %s3269_s26 }
  0x44   : > { %1195 = vrot.lane.b32.xlu0 %v3354_v12, %s3269_s26  ;;  %1197 = vrot.lane.b32.xlu1 %v3352_v11, %s3269_s26 }
  0x48   : > { %1199 = vrot.lane.b32.xlu0 %v3359_v13, %s3269_s26  ;;  %1455 = vrot.lane.b32.xlu1 %v3334_v4, %s3270_s27 }
  0x4c   : > { %1459 = vrot.lane.b32.xlu1 %v3332_v3, %s3270_s27  ;;  %1457 = vrot.lane.b32.xlu0 %v3340_v6, %s3270_s27 }
  0x50   : > { %1463 = vrot.lane.b32.xlu1 %v3347_v9, %s3270_s27  ;;  %1461 = vrot.lane.b32.xlu0 %v3338_v5, %s3270_s27 }
  0x54   : > { %1467 = vrot.lane.b32.xlu1 %v3354_v12, %s3270_s27  ;;  %1465 = vrot.lane.b32.xlu0 %v3345_v8, %s3270_s27 }
  0x58   : > { %1471 = vrot.lane.b32.xlu1 %v3359_v13, %s3270_s27  ;;  %1469 = vrot.lane.b32.xlu0 %v3352_v11, %s3270_s27 }
  0x5c   : > { %1727 = vrot.lane.b32.xlu0 %v3334_v4, %s3271_s28  ;;  %1729 = vrot.lane.b32.xlu1 %v3340_v6, %s3271_s28 }
  0x60   : > { %1731 = vrot.lane.b32.xlu0 %v3332_v3, %s3271_s28  ;;  %1733 = vrot.lane.b32.xlu1 %v3338_v5, %s3271_s28 }
  0x64   : > { %1735 = vrot.lane.b32.xlu0 %v3347_v9, %s3271_s28  ;;  %1737 = vrot.lane.b32.xlu1 %v3345_v8, %s3271_s28 }
  0x68   : > { %1739 = vrot.lane.b32.xlu0 %v3354_v12, %s3271_s28  ;;  %1741 = vrot.lane.b32.xlu1 %v3352_v11, %s3271_s28 }
  0x6c   : > { %1743 = vrot.lane.b32.xlu0 %v3359_v13, %s3271_s28  ;;  %2029 = vrot.lane.b32.xlu1 %v3334_v4, %s3272_s29 }
  0x70   : > { %2033 = vrot.lane.b32.xlu1 %v3332_v3, %s3272_s29  ;;  %2031 = vrot.lane.b32.xlu0 %v3340_v6, %s3272_s29 }
  0x74   : > { %2037 = vrot.lane.b32.xlu1 %v3347_v9, %s3272_s29  ;;  %2035 = vrot.lane.b32.xlu0 %v3338_v5, %s3272_s29 }
  0x78   : > { %2041 = vrot.lane.b32.xlu1 %v3354_v12, %s3272_s29  ;;  %2039 = vrot.lane.b32.xlu0 %v3345_v8, %s3272_s29 }
  0x7c   : > { %2045 = vrot.lane.b32.xlu1 %v3406_v15, %s3272_s29  ;;  %2043 = vrot.lane.b32.xlu0 %v3352_v11, %s3272_s29 }
  0x80   : > { %2304 = vrot.lane.b32.xlu1 %v3334_v4, %s3273_s30  ;;  %2047 = vrot.lane.b32.xlu0 %v3410_v16, %s3272_s29 }
  0x84   : > { %2308 = vrot.lane.b32.xlu1 %v3332_v3, %s3273_s30  ;;  %2306 = vrot.lane.b32.xlu0 %v3340_v6, %s3273_s30 }
  0x86   : > { %v417_v17 = vpop.permute.xlu1 %416  ;;  %v413_v18 = vpop.permute.xlu0 %412 }
  0x88   : > { %2312 = vrot.lane.b32.xlu1 %v3347_v9, %s3273_s30  ;;  %2310 = vrot.lane.b32.xlu0 %v3338_v5, %s3273_s30 }
  0x8a   : > { %v419_v19 = vpop.permute.xlu1 %418  ;;  %v415_v20 = vpop.permute.xlu0 %414 }
  0x8b   : > { %v432_v21 = vsel %vm430_vm0, %v415_v20, %v417_v17  ;;  %v431_v22 = vsel %vm430_vm0, %v413_v18, %v415_v20  ;;  %v433_v25 = vsel %vm430_vm0, %v417_v17, %v419_v19 }
  0x8c   : > { %3052 = vmatprep.subr.msk.bf16.mxu0 %vm4165_vm1, %v432_v21  ;;  %v445_v23 = vsel %vm4165_vm1, %v431_v22, 0  ;;  %2316 = vrot.lane.b32.xlu1 %v3354_v12, %s3273_s30  ;;  %v451_v29 = vsel %vm4165_vm1, %v433_v25, 0 }
  0x8d   : > { %472 = vmatpush1.bf16.msra.mxu0 %v445_v23  ;;  %2314 = vrot.lane.b32.xlu0 %v3345_v8, %s3273_s30 }
  0x8e   : > { %v423_v26 = vpop.permute.xlu1 %422  ;;  %v421_v27 = vpop.permute.xlu0 %420 }
  0x8f   : > { %v434_v28 = vsel %vm430_vm0, %v419_v19, %v421_v27  ;;  %v435_v30 = vsel %vm430_vm0, %v421_v27, %v423_v26 }
  0x90   : > { %3053 = vmatmul.mubr.msk.bf16.vlgmr.msra.gmra.mrb[0].mxu0 %vm439_vm2, %v3042_v24  ;;  %3054 = vmatprep.subr.msk.bf16.mxu1 %vm4165_vm1, %v434_v28  ;;  %v457_v34 = vsel %vm4165_vm1, %v435_v30, 0 }
  0x91   : > { %513 = vmatpush1.bf16.msra.mxu1 %v451_v29  ;;  %585 = vmatprep.mubr.bf16.mxu0 %v3266_v0 }
  0x92   : > { %v427_v31 = vpop.permute.xlu1 %426  ;;  %v425_v32 = vpop.permute.xlu0 %424  ;;  %2320 = vrot.lane.b32.xlu1 %v3406_v15, %s3273_s30  ;;  %2318 = vrot.lane.b32.xlu0 %v3352_v11, %s3273_s30 }
  0x93   : > { %v436_v33 = vsel %vm430_vm0, %v423_v26, %v425_v32  ;;  %v437_v35 = vsel %vm430_vm0, %v425_v32, %v427_v31  ;;  %v3080_v32 = vld [vmem:[%s4160_s1 + $0x6] sm:$0x3] }
  0x94   : > { %3055 = vmatmul.mubr.msk.bf16.vlgmr.msra.gmra.mrb[0].mxu1 %vm439_vm2, %v3042_v24  ;;  %3056 = vmatprep.subr.msk.bf16.mxu0 %vm4165_vm1, %v436_v33  ;;  %v463_v41 = vsel %vm4165_vm1, %v437_v35, 0 }
  0x95   : > { %554 = vmatpush1.bf16.msra.mxu0 %v457_v34  ;;  %626 = vmatprep.mubr.bf16.mxu1 %v3266_v0 }
  0x96   : > { %v429_v36 = vpop.permute.xlu0 %428  ;;  %3170 = vmatprep.subr.bf16.mxu0 %v3274_v37  ;;  %v912_v38 = vpop.permute.xlu1 %911  ;;  %2579 = vrot.lane.b32.xlu1 %v3334_v4, %s3275_s8 }
  0x97   : > { %v438_v39 = vsel %vm430_vm0, %v427_v31, %v429_v36  ;;  %v469_v40 = vsel %vm4165_vm1, %v429_v36, 0  ;;  %2322 = vrot.lane.b32.xlu0 %v3410_v16, %s3273_s30 }
  0x98   : > { %3057 = vmatmul.mubr.msk.bf16.vlgmr.msra.gmra.mrb[4].mxu0 %vm439_vm2, %v3042_v24  ;;  %3058 = vmatprep.subr.msk.bf16.mxu1 %vm4165_vm1, %v438_v39 }
  0x99   : > { %595 = vmatpush1.bf16.msra.mxu1 %v463_v41  ;;  %3171 = vmatpush3.bf16.msra.mxu0 %v469_v40 }
  0x9a   : > { %3172 = vmatprep.mubr.msk.bf16.mxu0 %vm3276_vm3, %v3274_v37  ;;  %3061 = vmatprep.subr.msk.bf16.mxu1 %vm4165_vm1, %v3340_v6  ;;  %v916_v43 = vpop.permute.xlu1 %915  ;;  %v914_v44 = vpop.permute.xlu0 %913 }
  0x9b   : > { %3063 = vmatprep.subr.msk.bf16.mxu0 %vm4165_vm1, %v3338_v5  ;;  %2583 = vrot.lane.b32.xlu1 %v3332_v3, %s3275_s8  ;;  %v931_v55 = vsel %vm929_vm4, %v914_v44, %v916_v43  ;;  %v930_v59 = vsel %vm929_vm4, %v912_v38, %v914_v44 }
  0x9c   : > { %3059 = vmatmul.mubr.msk.bf16.vlgmr.msra.gmra.mrb[4].mxu1 %vm439_vm2, %v3042_v24  ;;  %2581 = vrot.lane.b32.xlu0 %v3340_v6, %s3275_s8  ;;  %v942_v61 = vsel %vm4165_vm1, %v930_v59, 0 }
  0x9d   : > { %706 = vmatpush1.bf16.msra.mxu1 %v679_v42  ;;  %737 = vmatprep.mubr.bf16.mxu1 %v3266_v0 }
  0x9e   : > { %3065 = vmatprep.subr.msk.bf16.mxu1 %vm4165_vm1, %v3345_v8  ;;  %v920_v46 = vpop.permute.xlu1 %919  ;;  %v918_v47 = vpop.permute.xlu0 %917 }
  0x9f   : > { %2587 = vrot.lane.b32.xlu1 %v3347_v9, %s3275_s8  ;;  %v933_v60 = vsel %vm929_vm4, %v918_v47, %v920_v46  ;;  %v932_v1 = vsel %vm929_vm4, %v916_v43, %v918_v47 }
  0xa0   : > { %3173 = vmatmul.mubr.msk.bf16.vlgmr.msra.gmra.mrb[8].mxu0 %vm439_vm2, %v3042_v24  ;;  %2585 = vrot.lane.b32.xlu0 %v3338_v5, %s3275_s8  ;;  %v948_v3 = vsel %vm4165_vm1, %v932_v1, 0 }
  0xa1   : > { %747 = vmatpush1.bf16.msra.mxu0 %v685_v45  ;;  %778 = vmatprep.mubr.bf16.mxu0 %v3266_v0 }
  0xa2   : > { %3067 = vmatprep.subr.msk.bf16.mxu0 %vm4165_vm1, %v3352_v11  ;;  %v924_v50 = vpop.permute.xlu1 %923  ;;  %v922_v51 = vpop.permute.xlu0 %921 }
  0xa3   : > { %2591 = vrot.lane.b32.xlu1 %v3354_v12, %s3275_s8  ;;  %v935_v2 = vsel %vm929_vm4, %v922_v51, %v924_v50  ;;  %v934_v6 = vsel %vm929_vm4, %v920_v46, %v922_v51 }
  0xa4   : > { %3062 = vmatmul.mubr.msk.bf16.vlgmr.msra.gmra.mrb[8].mxu1 %vm439_vm2, %v386_v48  ;;  %2589 = vrot.lane.b32.xlu0 %v3345_v8, %s3275_s8  ;;  %v3070_v8 = vld [vmem:[%s4160_s1 + $0x4] sm:$0x3]  ;;  %v954_v9 = vsel %vm4165_vm1, %v934_v6, 0 }
  0xa5   : > { %788 = vmatpush1.bf16.msra.mxu1 %v691_v49  ;;  %819 = vmatprep.mubr.bf16.mxu1 %v3266_v0 }
  0xa6   : > { %3176 = vmatprep.subr.bf16.mxu1 %v3274_v37  ;;  %v928_v53 = vpop.permute.xlu1 %927  ;;  %v926_v54 = vpop.permute.xlu0 %925 }
  0xa7   : > { %2595 = vrot.lane.b32.xlu1 %v3406_v15, %s3275_s8  ;;  %v937_v7 = vsel %vm929_vm4, %v926_v54, %v928_v53  ;;  %v936_v12 = vsel %vm929_vm4, %v924_v50, %v926_v54  ;;  %v966_v17 = vsel %vm4165_vm1, %v928_v53, 0 }
  0xa8   : > { %3064 = vmatmul.mubr.msk.bf16.vlgmr.msra.gmra.mrb[12].mxu0 %vm439_vm2, %v386_v48  ;;  %2593 = vrot.lane.b32.xlu0 %v3352_v11, %s3275_s8  ;;  %v960_v13 = vsel %vm4165_vm1, %v936_v12, 0 }
  0xa9   : > { %829 = vmatpush1.bf16.msra.mxu0 %v697_v52  ;;  %860 = vmatprep.mubr.bf16.mxu0 %v3266_v0 }
  0xaa   : > { %3071 = vmatprep.subr.msk.bf16.mxu0 %vm4165_vm1, %v931_v55  ;;  %v1184_v57 = vpop.permute.xlu0 %1183  ;;  %v1186_v58 = vpop.permute.xlu1 %1185 }
  0xab   : > { %v1202_v20 = vsel %vm1201_vm5, %v1184_v57, %v1186_v58  ;;  %v3090_v57 = vld [vmem:[%s4160_s1 + $0x8] sm:$0x3] }
  0xac   : > { %3066 = vmatmul.mubr.msk.bf16.vlgmr.msra.gmra.mrb[12].mxu1 %vm439_vm2, %v386_v48  ;;  %2597 = vrot.lane.b32.xlu0 %v3410_v16, %s3275_s8  ;;  %v1214_v22 = vsel %vm4165_vm1, %v1202_v20, 0 }
  0xad   : > { %3177 = vmatpush3.bf16.msra.mxu1 %v703_v56  ;;  %3178 = vmatprep.mubr.msk.bf16.mxu1 %vm3276_vm3, %v3274_v37 }
  0xae   : > { %3073 = vmatprep.subr.msk.bf16.mxu1 %vm4165_vm1, %v933_v60  ;;  %v1188_v62 = vpop.permute.xlu0 %1187  ;;  %v1190_v63 = vpop.permute.xlu1 %1189 }
  0xaf   : > { %v1203_v16 = vsel %vm1201_vm5, %v1186_v58, %v1188_v62  ;;  %v1204_v25 = vsel %vm1201_vm5, %v1188_v62, %v1190_v63 }
  0xb0   : > { %3068 = vmatmul.mubr.msk.bf16.vlgmr.msra.gmra.mrb[16].mxu0 %vm439_vm2, %v386_v48  ;;  %v1220_v27 = vsel %vm4165_vm1, %v1204_v25, 0 }
  0xb1   : > { %969 = vmatpush1.bf16.msra.mxu0 %v942_v61  ;;  %1000 = vmatprep.mubr.bf16.mxu0 %v3266_v0 }
  0xb2   : > { %3075 = vmatprep.subr.msk.bf16.mxu0 %vm4165_vm1, %v935_v2  ;;  %v1192_v4 = vpop.permute.xlu0 %1191  ;;  %v1194_v5 = vpop.permute.xlu1 %1193 }
  0xb3   : > { %v1205_v21 = vsel %vm1201_vm5, %v1190_v63, %v1192_v4  ;;  %v1206_v30 = vsel %vm1201_vm5, %v1192_v4, %v1194_v5 }
  0xb4   : > { %3179 = vmatmul.mubr.msk.bf16.vlgmr.msra.gmra.mrb[16].mxu1 %vm439_vm2, %v386_v48  ;;  %v1226_v33 = vsel %vm4165_vm1, %v1206_v30, 0 }
  0xb5   : > { %1010 = vmatpush1.bf16.msra.mxu1 %v948_v3  ;;  %1041 = vmatprep.mubr.bf16.mxu1 %v3266_v0 }
  0xb6   : > { %3077 = vmatprep.subr.msk.bf16.mxu1 %vm4165_vm1, %v937_v7  ;;  %v1196_v10 = vpop.permute.xlu0 %1195  ;;  %v1198_v11 = vpop.permute.xlu1 %1197 }
  0xb7   : > { %v1207_v26 = vsel %vm1201_vm5, %v1194_v5, %v1196_v10  ;;  %v1208_v36 = vsel %vm1201_vm5, %v1196_v10, %v1198_v11 }
  0xb8   : > { %3072 = vmatmul.mubr.msk.bf16.vlgmr.msra.gmra.mrb[20].mxu0 %vm439_vm2, %v3070_v8  ;;  %v1232_v38 = vsel %vm4165_vm1, %v1208_v36, 0 }
  0xb9   : > { %1051 = vmatpush1.bf16.msra.mxu0 %v954_v9  ;;  %1082 = vmatprep.mubr.bf16.mxu0 %v3266_v0 }
  0xba   : > { %3182 = vmatprep.subr.bf16.mxu0 %v3274_v37  ;;  %v1200_v14 = vpop.permute.xlu0 %1199  ;;  %v1456_v15 = vpop.permute.xlu1 %1455 }
  0xbb   : > { %v1209_v31 = vsel %vm1201_vm5, %v1198_v11, %v1200_v14  ;;  %v1238_v42 = vsel %vm4165_vm1, %v1200_v14, 0 }
  0xbc   : > { %3074 = vmatmul.mubr.msk.bf16.vlgmr.msra.gmra.mrb[20].mxu1 %vm439_vm2, %v3070_v8 }
  0xbd   : > { %1092 = vmatpush1.bf16.msra.mxu1 %v960_v13  ;;  %1123 = vmatprep.mubr.bf16.mxu1 %v3266_v0 }
  0xbe   : > { %3081 = vmatprep.subr.msk.bf16.mxu1 %vm4165_vm1, %v1203_v16  ;;  %v1460_v18 = vpop.permute.xlu1 %1459  ;;  %v1458_v19 = vpop.permute.xlu0 %1457 }
  0xbf   : > { %v1475_v41 = vsel %vm1473_vm6, %v1458_v19, %v1460_v18  ;;  %v1474_v45 = vsel %vm1473_vm6, %v1456_v15, %v1458_v19 }
  0xc0   : > { %3076 = vmatmul.mubr.msk.bf16.vlgmr.msra.gmra.mrb[24].mxu0 %vm439_vm2, %v3070_v8  ;;  %v1486_v47 = vsel %vm4165_vm1, %v1474_v45, 0  ;;  %v2876_v45 = vld [vmem:[%s4162_s3] sm:$0x7] }
  0xc1   : > { %3183 = vmatpush3.bf16.msra.mxu0 %v966_v17  ;;  %3184 = vmatprep.mubr.msk.bf16.mxu0 %vm3276_vm3, %v3274_v37 }
  0xc2   : > { %3083 = vmatprep.subr.msk.bf16.mxu0 %vm4165_vm1, %v1205_v21  ;;  %v1464_v23 = vpop.permute.xlu1 %1463  ;;  %v1462_v24 = vpop.permute.xlu0 %1461  ;;  %2879 = vperm.xlu0 %3246, %v2876_v45  }
  0xc3   : > { %v1477_v46 = vsel %vm1473_vm6, %v1462_v24, %v1464_v23  ;;  %v1476_v50 = vsel %vm1473_vm6, %v1460_v18, %v1462_v24  ;;  %v3100_v18 = vld [vmem:[%s4160_s1 + $0xa] sm:$0x3] }
  0xc4   : > { %3078 = vmatmul.mubr.msk.bf16.vlgmr.msra.gmra.mrb[24].mxu1 %vm439_vm2, %v3070_v8  ;;  %v1492_v52 = vsel %vm4165_vm1, %v1476_v50, 0 }
  0xc5   : > { %1241 = vmatpush1.bf16.msra.mxu1 %v1214_v22  ;;  %1272 = vmatprep.mubr.bf16.mxu1 %v3266_v0 }
  0xc6   : > { %3085 = vmatprep.subr.msk.bf16.mxu1 %vm4165_vm1, %v1207_v26  ;;  %v1468_v28 = vpop.permute.xlu1 %1467  ;;  %v1466_v29 = vpop.permute.xlu0 %1465 }
  0xc7   : > { %v1479_v51 = vsel %vm1473_vm6, %v1466_v29, %v1468_v28  ;;  %v1478_v55 = vsel %vm1473_vm6, %v1464_v23, %v1466_v29 }
  0xc8   : > { %3185 = vmatmul.mubr.msk.bf16.vlgmr.msra.gmra.mrb[28].mxu0 %vm439_vm2, %v3070_v8  ;;  %v1498_v58 = vsel %vm4165_vm1, %v1478_v55, 0 }
  0xc9   : > { %1282 = vmatpush1.bf16.msra.mxu0 %v1220_v27  ;;  %1313 = vmatprep.mubr.bf16.mxu0 %v3266_v0 }
  0xca   : > { %3087 = vmatprep.subr.msk.bf16.mxu0 %vm4165_vm1, %v1209_v31  ;;  %v1472_v34 = vpop.permute.xlu1 %1471  ;;  %v1470_v35 = vpop.permute.xlu0 %1469 }
  0xcb   : > { %v1481_v56 = vsel %vm1473_vm6, %v1470_v35, %v1472_v34  ;;  %v1480_v61 = vsel %vm1473_vm6, %v1468_v28, %v1470_v35  ;;  %v1510_v3 = vsel %vm4165_vm1, %v1472_v34, 0 }
  0xcc   : > { %3082 = vmatmul.mubr.msk.bf16.vlgmr.msra.gmra.mrb[28].mxu1 %vm439_vm2, %v3080_v32  ;;  %v1504_v62 = vsel %vm4165_vm1, %v1480_v61, 0 }
  0xcd   : > { %1323 = vmatpush1.bf16.msra.mxu1 %v1226_v33  ;;  %1354 = vmatprep.mubr.bf16.mxu1 %v3266_v0 }
  0xce   : > { %3188 = vmatprep.subr.bf16.mxu1 %v3274_v37  ;;  %v1728_v39 = vpop.permute.xlu0 %1727  ;;  %v1730_v40 = vpop.permute.xlu1 %1729 }
  0xcf   : > { %v1746_v6 = vsel %vm1745_vm7, %v1728_v39, %v1730_v40 }
  0xd0   : > { %3084 = vmatmul.mubr.msk.bf16.vlgmr.msra.gmra.mrb[32].mxu0 %vm439_vm2, %v3080_v32  ;;  %v1758_v8 = vsel %vm4165_vm1, %v1746_v6, 0 }
  0xd1   : > { %1364 = vmatpush1.bf16.msra.mxu0 %v1232_v38  ;;  %1395 = vmatprep.mubr.bf16.mxu0 %v3266_v0 }
  0xd2   : > { %3091 = vmatprep.subr.msk.bf16.mxu0 %vm4165_vm1, %v1475_v41  ;;  %v1732_v43 = vpop.permute.xlu0 %1731  ;;  %v1734_v44 = vpop.permute.xlu1 %1733  ;;  %v3110_v41 = vld [vmem:[%s4160_s1 + $0xc] sm:$0x3] }
  0xd3   : > { %v1747_v2 = vsel %vm1745_vm7, %v1730_v40, %v1732_v43  ;;  %v1748_v11 = vsel %vm1745_vm7, %v1732_v43, %v1734_v44 }
  0xd4   : > { %3086 = vmatmul.mubr.msk.bf16.vlgmr.msra.gmra.mrb[32].mxu1 %vm439_vm2, %v3080_v32  ;;  %v1764_v13 = vsel %vm4165_vm1, %v1748_v11, 0 }
  0xd5   : > { %3189 = vmatpush3.bf16.msra.mxu1 %v1238_v42  ;;  %3190 = vmatprep.mubr.msk.bf16.mxu1 %vm3276_vm3, %v3274_v37  ;;  %v2852_v42 = vld [vmem:[%s4161_s2] sm:$0x7] }
  0xd6   : > { %3093 = vmatprep.subr.msk.bf16.mxu1 %vm4165_vm1, %v1477_v46  ;;  %v1736_v48 = vpop.permute.xlu0 %1735  ;;  %v1738_v49 = vpop.permute.xlu1 %1737  ;;  %2855 = vperm.xlu1 %3245, %v2852_v42  }
  0xd7   : > { %v1749_v7 = vsel %vm1745_vm7, %v1734_v44, %v1736_v48  ;;  %v1750_v16 = vsel %vm1745_vm7, %v1736_v48, %v1738_v49 }
  0xd8   : > { %3088 = vmatmul.mubr.msk.bf16.vlgmr.msra.gmra.mrb[36].mxu0 %vm439_vm2, %v3080_v32  ;;  %v1770_v19 = vsel %vm4165_vm1, %v1750_v16, 0 }
  0xd9   : > { %1513 = vmatpush1.bf16.msra.mxu0 %v1486_v47  ;;  %1544 = vmatprep.mubr.bf16.mxu0 %v3266_v0 }
  0xda   : > { %3095 = vmatprep.subr.msk.bf16.mxu0 %vm4165_vm1, %v1479_v51  ;;  %v1740_v53 = vpop.permute.xlu0 %1739  ;;  %v1742_v54 = vpop.permute.xlu1 %1741  ;;  %v2891_v51 = vld [vmem:[%s4163_s4] sm:$0x7] }
  0xdb   : > { %v1751_v12 = vsel %vm1745_vm7, %v1738_v49, %v1740_v53  ;;  %v1752_v22 = vsel %vm1745_vm7, %v1740_v53, %v1742_v54  ;;  %2894 = vperm.xlu1 %3245, %v2891_v51  }
  0xdc   : > { %3191 = vmatmul.mubr.msk.bf16.vlgmr.msra.gmra.mrb[36].mxu1 %vm439_vm2, %v3080_v32  ;;  %v1776_v23 = vsel %vm4165_vm1, %v1752_v22, 0 }
  0xdd   : > { %1554 = vmatpush1.bf16.msra.mxu1 %v1492_v52  ;;  %1585 = vmatprep.mubr.bf16.mxu1 %v3266_v0 }
  0xde   : > { %3097 = vmatprep.subr.msk.bf16.mxu1 %vm4165_vm1, %v1481_v56  ;;  %v1744_v59 = vpop.permute.xlu0 %1743  ;;  %v2030_v60 = vpop.permute.xlu1 %2029 }
  0xdf   : > { %v1753_v17 = vsel %vm1745_vm7, %v1742_v54, %v1744_v59  ;;  %v1782_v27 = vsel %vm4165_vm1, %v1744_v59, 0 }
  0xe0   : > { %3092 = vmatmul.mubr.msk.bf16.vlgmr.msra.gmra.mrb[40].mxu0 %vm439_vm2, %v3090_v57 }
  0xe1   : > { %1595 = vmatpush1.bf16.msra.mxu0 %v1498_v58  ;;  %1626 = vmatprep.mubr.bf16.mxu0 %v3266_v0 }
  0xe2   : > { %3194 = vmatprep.subr.bf16.mxu0 %v3274_v37  ;;  %v3604_v63 = vpop.permute.xlu1 %2033  ;;  %v2032_v1 = vpop.permute.xlu0 %2031 }
  0xe3   : > { %v2051_v24 = vsel %vm2049_vm8, %v2032_v1, %v3604_v63  ;;  %v2050_v28 = vsel %vm2049_vm8, %v2030_v60, %v2032_v1 }
  0xe4   : > { %3094 = vmatmul.mubr.msk.bf16.vlgmr.msra.gmra.mrb[40].mxu1 %vm439_vm2, %v3090_v57  ;;  %v2063_v30 = vsel %vm4165_vm1, %v2050_v28, 0 }
  0xe5   : > { %1636 = vmatpush1.bf16.msra.mxu1 %v1504_v62  ;;  %1667 = vmatprep.mubr.bf16.mxu1 %v3266_v0 }
  0xe6   : > { %3101 = vmatprep.subr.msk.bf16.mxu1 %vm4165_vm1, %v1747_v2  ;;  %v2038_v4 = vpop.permute.xlu1 %2037  ;;  %v2036_v5 = vpop.permute.xlu0 %2035  ;;  %v3130_v2 = vld [vmem:[%s4160_s1 + $0xe] sm:$0x3] }
  0xe7   : > { %v2053_v29 = vsel %vm2049_vm8, %v2036_v5, %v2038_v4  ;;  %v2052_v33 = vsel %vm2049_vm8, %v3604_v63, %v2036_v5 }
  0xe8   : > { %3096 = vmatmul.mubr.msk.bf16.vlgmr.msra.gmra.mrb[44].mxu0 %vm439_vm2, %v3090_v57  ;;  %v2069_v35 = vsel %vm4165_vm1, %v2052_v33, 0 }
  0xe9   : > { %3195 = vmatpush3.bf16.msra.mxu0 %v1510_v3  ;;  %3196 = vmatprep.mubr.msk.bf16.mxu0 %vm3276_vm3, %v3274_v37 }
  0xea   : > { %3103 = vmatprep.subr.msk.bf16.mxu0 %vm4165_vm1, %v1749_v7  ;;  %v3618_v9 = vpop.permute.xlu1 %2041  ;;  %v2040_v10 = vpop.permute.xlu0 %2039 }
  0xeb   : > { %v2055_v34 = vsel %vm2049_vm8, %v2040_v10, %v3618_v9  ;;  %v2054_v36 = vsel %vm2049_vm8, %v2038_v4, %v2040_v10 }
  0xec   : > { %3098 = vmatmul.mubr.msk.bf16.vlgmr.msra.gmra.mrb[44].mxu1 %vm439_vm2, %v3090_v57  ;;  %v2075_v43 = vsel %vm4165_vm1, %v2054_v36, 0 }
  0xed   : > { %1785 = vmatpush1.bf16.msra.mxu1 %v1758_v8  ;;  %1816 = vmatprep.mubr.bf16.mxu1 %v3266_v0 }
  0xee   : > { %3105 = vmatprep.subr.msk.bf16.mxu1 %vm4165_vm1, %v1751_v12  ;;  %v3626_v14 = vpop.permute.xlu1 %2045  ;;  %v2044_v15 = vpop.permute.xlu0 %2043 }
  0xef   : > { %v2057_v38 = vsel %vm2049_vm8, %v2044_v15, %v3626_v14  ;;  %v2056_v44 = vsel %vm2049_vm8, %v3618_v9, %v2044_v15 }
  0xf0   : > { %3197 = vmatmul.mubr.msk.bf16.vlgmr.msra.gmra.mrb[48].mxu0 %vm439_vm2, %v3090_v57  ;;  %v2081_v46 = vsel %vm4165_vm1, %v2056_v44, 0 }
  0xf1   : > { %1826 = vmatpush1.bf16.msra.mxu0 %v1764_v13  ;;  %1857 = vmatprep.mubr.bf16.mxu0 %v3266_v0 }
  0xf2   : > { %3107 = vmatprep.subr.msk.bf16.mxu0 %vm4165_vm1, %v1753_v17  ;;  %v3637_v20 = vpop.permute.xlu1 %2304  ;;  %v2048_v21 = vpop.permute.xlu0 %2047 }
  0xf3   : > { %v2058_v49 = vsel %vm2049_vm8, %v3626_v14, %v2048_v21 }
  0xf4   : > { %3102 = vmatmul.mubr.msk.bf16.vlgmr.msra.gmra.mrb[48].mxu1 %vm439_vm2, %v3100_v18  ;;  %v2087_v52 = vsel %vm4165_vm1, %v2058_v49, 0 }
  0xf5   : > { %1867 = vmatpush1.bf16.msra.mxu1 %v1770_v19  ;;  %1898 = vmatprep.mubr.bf16.mxu1 %v3266_v0 }
  0xf6   : > { %3200 = vmatprep.subr.bf16.mxu1 %v3274_v37  ;;  %v3647_v25 = vpop.permute.xlu1 %2308  ;;  %v2307_v26 = vpop.permute.xlu0 %2306 }
  0xf7   : > { %v2326_v50 = vsel %vm2324_vm9, %v2307_v26, %v3647_v25  ;;  %v2325_v53 = vsel %vm2324_vm9, %v3637_v20, %v2307_v26 }
  0xf8   : > { %3104 = vmatmul.mubr.msk.bf16.vlgmr.msra.gmra.mrb[52].mxu0 %vm439_vm2, %v3100_v18  ;;  %v2338_v57 = vsel %vm4165_vm1, %v2325_v53, 0 }
  0xf9   : > { %1908 = vmatpush1.bf16.msra.mxu0 %v1776_v23  ;;  %1939 = vmatprep.mubr.bf16.mxu0 %v3266_v0  ;;  %v3140_v23 = vld [vmem:[%s4160_s1 + $0x10] sm:$0x3] }
  0xfa   : > { %3121 = vmatprep.subr.msk.bf16.mxu0 %vm4165_vm1, %v2051_v24  ;;  %v2313_v31 = vpop.permute.xlu1 %2312  ;;  %v2311_v32 = vpop.permute.xlu0 %2310 }
  0xfb   : > { %v2328_v54 = vsel %vm2324_vm9, %v2311_v32, %v2313_v31  ;;  %v2327_v58 = vsel %vm2324_vm9, %v3647_v25, %v2311_v32 }
  0xfc   : > { %3106 = vmatmul.mubr.msk.bf16.vlgmr.msra.gmra.mrb[52].mxu1 %vm439_vm2, %v3100_v18  ;;  %v2344_v60 = vsel %vm4165_vm1, %v2327_v58, 0 }
  0xfd   : > { %3201 = vmatpush3.bf16.msra.mxu1 %v1782_v27  ;;  %3202 = vmatprep.mubr.msk.bf16.mxu1 %vm3276_vm3, %v3274_v37 }
  0xfe   : > { %3123 = vmatprep.subr.msk.bf16.mxu1 %vm4165_vm1, %v2053_v29  ;;  %v2317_v39 = vpop.permute.xlu1 %2316 }
  0xff   : > { %v2315_v40 = vpop.permute.xlu0 %2314 }
 0x100   : > { %3108 = vmatmul.mubr.msk.bf16.vlgmr.msra.gmra.mrb[56].mxu0 %vm439_vm2, %v3100_v18  ;;  %v2330_v59 = vsel %vm2324_vm9, %v2315_v40, %v2317_v39  ;;  %v2329_v63 = vsel %vm2324_vm9, %v2313_v31, %v2315_v40 }
 0x101   : > { %2090 = vmatpush1.bf16.msra.mxu0 %v2063_v30  ;;  %2121 = vmatprep.mubr.bf16.mxu0 %v3266_v0  ;;  %v2350_v3 = vsel %vm4165_vm1, %v2329_v63, 0 }
 0x102   : > { %3125 = vmatprep.subr.msk.bf16.mxu0 %vm4165_vm1, %v2055_v34 }
 0x104   : > { %3203 = vmatmul.mubr.msk.bf16.vlgmr.msra.gmra.mrb[56].mxu1 %vm439_vm2, %v3100_v18  ;;  %v2321_v47 = vpop.permute.xlu1 %2320  ;;  %v2319_v48 = vpop.permute.xlu0 %2318 }
 0x105   : > { %2131 = vmatpush1.bf16.msra.mxu1 %v2069_v35  ;;  %2162 = vmatprep.mubr.bf16.mxu1 %v3266_v0  ;;  %v2332_v1 = vsel %vm2324_vm9, %v2319_v48, %v2321_v47  ;;  %v2331_v4 = vsel %vm2324_vm9, %v2317_v39, %v2319_v48 }
 0x106   : > { %3127 = vmatprep.subr.msk.bf16.mxu1 %vm4165_vm1, %v2057_v38  ;;  %v2356_v7 = vsel %vm4165_vm1, %v2331_v4, 0 }
 0x108   : > { %3122 = vmatmul.mubr.msk.bf16.vlgmr.msra.gmra.mrb[60].mxu0 %vm439_vm2, %v3110_v41  ;;  %v2580_v55 = vpop.permute.xlu1 %2579 }
 0x109   : > { %2172 = vmatpush1.bf16.msra.mxu0 %v2075_v43  ;;  %2203 = vmatprep.mubr.bf16.mxu0 %v3266_v0  ;;  %v2323_v56 = vpop.permute.xlu0 %2322 }
 0x10a   : > { %3206 = vmatprep.subr.bf16.mxu0 %v3274_v37  ;;  %v2333_v8 = vsel %vm2324_vm9, %v2321_v47, %v2323_v56 }
 0x10b   : > { %v2362_v10 = vsel %vm4165_vm1, %v2333_v8, 0 }
 0x10c   : > { %3124 = vmatmul.mubr.msk.bf16.vlgmr.msra.gmra.mrb[60].mxu1 %vm439_vm2, %v3110_v41 }
 0x10d   : > { %2213 = vmatpush1.bf16.msra.mxu1 %v2081_v46  ;;  %2244 = vmatprep.mubr.bf16.mxu1 %v3266_v0  ;;  %v2584_v61 = vpop.permute.xlu1 %2583 }
 0x10e   : > { %3131 = vmatprep.subr.msk.bf16.mxu1 %vm4165_vm1, %v2326_v50  ;;  %v2582_v62 = vpop.permute.xlu0 %2581 }
 0x10f   : > { %v2601_v9 = vsel %vm2599_vm10, %v2582_v62, %v2584_v61  ;;  %v2600_v13 = vsel %vm2599_vm10, %v2580_v55, %v2582_v62 }
 0x110   : > { %3126 = vmatmul.mubr.msk.bf16.vlgmr.msra.gmra.mrb[64].mxu0 %vm439_vm2, %v3110_v41  ;;  %v2613_v15 = vsel %vm4165_vm1, %v2600_v13, 0 }
 0x111   : > { %3207 = vmatpush3.bf16.msra.mxu0 %v2087_v52  ;;  %3208 = vmatprep.mubr.msk.bf16.mxu0 %vm3276_vm3, %v3274_v37  ;;  %v2588_v5 = vpop.permute.xlu1 %2587 }
 0x112   : > { %3133 = vmatprep.subr.msk.bf16.mxu0 %vm4165_vm1, %v2328_v54  ;;  %v2586_v6 = vpop.permute.xlu0 %2585 }
 0x113   : > { %v2603_v14 = vsel %vm2599_vm10, %v2586_v6, %v2588_v5  ;;  %v2602_v16 = vsel %vm2599_vm10, %v2584_v61, %v2586_v6 }
 0x114   : > { %3128 = vmatmul.mubr.msk.bf16.vlgmr.msra.gmra.mrb[64].mxu1 %vm439_vm2, %v3110_v41  ;;  %v2619_v20 = vsel %vm4165_vm1, %v2602_v16, 0 }
 0x115   : > { %2365 = vmatpush1.bf16.msra.mxu1 %v2338_v57  ;;  %2396 = vmatprep.mubr.bf16.mxu1 %v3266_v0  ;;  %v2592_v11 = vpop.permute.xlu1 %2591 }
 0x116   : > { %3135 = vmatprep.subr.msk.bf16.mxu1 %vm4165_vm1, %v2330_v59  ;;  %v2590_v12 = vpop.permute.xlu0 %2589 }
 0x117   : > { %v2605_v17 = vsel %vm2599_vm10, %v2590_v12, %v2592_v11  ;;  %v2604_v21 = vsel %vm2599_vm10, %v2588_v5, %v2590_v12 }
 0x118   : > { %3209 = vmatmul.mubr.msk.bf16.vlgmr.msra.gmra.mrb[68].mxu0 %vm439_vm2, %v3110_v41  ;;  %v2625_v24 = vsel %vm4165_vm1, %v2604_v21, 0 }
 0x119   : > { %2406 = vmatpush1.bf16.msra.mxu0 %v2344_v60  ;;  %2437 = vmatprep.mubr.bf16.mxu0 %v3266_v0  ;;  %v2596_v18 = vpop.permute.xlu1 %2595 }
 0x11a   : > { %3137 = vmatprep.subr.msk.bf16.mxu0 %vm4165_vm1, %v2332_v1  ;;  %v2594_v19 = vpop.permute.xlu0 %2593 }
 0x11b   : > { %v2607_v22 = vsel %vm2599_vm10, %v2594_v19, %v2596_v18  ;;  %v2606_v25 = vsel %vm2599_vm10, %v2592_v11, %v2594_v19 }
 0x11c   : > { %3132 = vmatmul.mubr.msk.bf16.vlgmr.msra.gmra.mrb[68].mxu1 %vm439_vm2, %v3130_v2  ;;  %v2631_v27 = vsel %vm4165_vm1, %v2606_v25, 0 }
 0x11d   : > { %2447 = vmatpush1.bf16.msra.mxu1 %v2350_v3  ;;  %2478 = vmatprep.mubr.bf16.mxu1 %v3266_v0 }
 0x11e   : > { %3212 = vmatprep.subr.bf16.mxu1 %v3274_v37  ;;  %v2598_v26 = vpop.permute.xlu0 %2597 }
 0x11f   : > { %v2608_v28 = vsel %vm2599_vm10, %v2596_v18, %v2598_v26 }
 0x120   : > { %3134 = vmatmul.mubr.msk.bf16.vlgmr.msra.gmra.mrb[72].mxu0 %vm439_vm2, %v3130_v2  ;;  %v2637_v29 = vsel %vm4165_vm1, %v2608_v28, 0 }
 0x121   : > { %2488 = vmatpush1.bf16.msra.mxu0 %v2356_v7  ;;  %2519 = vmatprep.mubr.bf16.mxu0 %v3266_v0 }
 0x122   : > { %3141 = vmatprep.subr.msk.bf16.mxu0 %vm4165_vm1, %v2601_v9 }
 0x124   : > { %3136 = vmatmul.mubr.msk.bf16.vlgmr.msra.gmra.mrb[72].mxu1 %vm439_vm2, %v3130_v2 }
 0x125   : > { %3213 = vmatpush3.bf16.msra.mxu1 %v2362_v10  ;;  %3214 = vmatprep.mubr.msk.bf16.mxu1 %vm3276_vm3, %v3274_v37 }
 0x126   : > { %3143 = vmatprep.subr.msk.bf16.mxu1 %vm4165_vm1, %v2603_v14 }
 0x128   : > { %3138 = vmatmul.mubr.msk.bf16.vlgmr.msra.gmra.mrb[76].mxu0 %vm439_vm2, %v3130_v2 }
 0x129   : > { %2640 = vmatpush1.bf16.msra.mxu0 %v2613_v15  ;;  %2671 = vmatprep.mubr.bf16.mxu0 %v3266_v0 }
 0x12a   : > { %3145 = vmatprep.subr.msk.bf16.mxu0 %vm4165_vm1, %v2605_v17 }
 0x12c   : > { %3215 = vmatmul.mubr.msk.bf16.vlgmr.msra.gmra.mrb[76].mxu1 %vm439_vm2, %v3130_v2 }
 0x12d   : > { %2681 = vmatpush1.bf16.msra.mxu1 %v2619_v20  ;;  %2712 = vmatprep.mubr.bf16.mxu1 %v3266_v0 }
 0x12e   : > { %3147 = vmatprep.subr.msk.bf16.mxu1 %vm4165_vm1, %v2607_v22 }
 0x130   : > { %3142 = vmatmul.mubr.msk.bf16.vlgmr.msra.gmra.mrb[80].mxu0 %vm439_vm2, %v3140_v23 }
 0x131   : > { %2722 = vmatpush1.bf16.msra.mxu0 %v2625_v24  ;;  %2753 = vmatprep.mubr.bf16.mxu0 %v3266_v0 }
 0x132   : > { %3218 = vmatprep.subr.bf16.mxu0 %v3274_v37 }
 0x134   : > { %3144 = vmatmul.mubr.msk.bf16.vlgmr.msra.gmra.mrb[80].mxu1 %vm439_vm2, %v3140_v23 }
 0x135   : > { %2763 = vmatpush1.bf16.msra.mxu1 %v2631_v27  ;;  %2794 = vmatprep.mubr.bf16.mxu1 %v3266_v0 }
 0x138   : > { %3146 = vmatmul.mubr.msk.bf16.vlgmr.msra.gmra.mrb[84].mxu0 %vm439_vm2, %v3140_v23 }
 0x139   : > { %3219 = vmatpush3.bf16.msra.mxu0 %v2637_v29  ;;  %3220 = vmatprep.mubr.msk.bf16.mxu0 %vm3276_vm3, %v3274_v37 }
 0x13c   : > { %3148 = vmatmul.mubr.msk.bf16.vlgmr.msra.gmra.mrb[84].mxu1 %vm439_vm2, %v3140_v23 }
 0x140   : > { %3221 = vmatmul.mubr.msk.bf16.vlgmr.msra.gmra.mrb[88].mxu0 %vm439_vm2, %v3140_v23 }
 0x163   : > { %v505_v30 = vpop.f32.mrb[0].mxu0 }
 0x164   : > { %v507_v31 = vpop.f32.mrb[1].mxu0 }
 0x165   : > { %v509_v32 = vpop.f32.mrb[2].mxu0 }
 0x166   : > { %v510_v33 = vpop.f32.mrb[3].mxu0 }
 0x167   : > { %v546_v34 = vpop.f32.mrb[0].mxu1 }
 0x168   : > { %v548_v35 = vpop.f32.mrb[1].mxu1 }
 0x169   : > { %v550_v36 = vpop.f32.mrb[2].mxu1 }
 0x16a   : > { %v551_v0 = vpop.f32.mrb[3].mxu1 }
 0x16b   : > { %v587_v38 = vpop.f32.mrb[4].mxu0 }
 0x16c   : > { %v589_v39 = vpop.f32.mrb[5].mxu0 }
 0x16d   : > { %v591_v40 = vpop.f32.mrb[6].mxu0 }
 0x16e   : > { %v592_v41 = vpop.f32.mrb[7].mxu0 }
 0x16f   : > { %v628_v42 = vpop.f32.mrb[4].mxu1 }
 0x170   : > { %v630_v43 = vpop.f32.mrb[5].mxu1 }
 0x171   : > { %v632_v44 = vpop.f32.mrb[6].mxu1 }
 0x172   : > { %v633_v45 = vpop.f32.mrb[7].mxu1 }
 0x173   : > { %v669_v46 = vpop.f32.mrb[8].mxu0 }
 0x174   : > { %v3174_v47 = vpop.f32.mrb[9].mxu0 }
 0x175   : > { %v672_v48 = vpop.f32.mrb[10].mxu0 }
 0x176   : > { %v3175_v49 = vpop.f32.mrb[11].mxu0 }
 0x177   : > { %v739_v50 = vpop.f32.mrb[8].mxu1 }
 0x178   : > { %v740_v51 = vadd.f32 %v739_v50, %v505_v30  ;;  %v741_v52 = vpop.f32.mrb[9].mxu1 }
 0x179   : > { %v742_v53 = vadd.f32 %v741_v52, %v507_v31  ;;  %v743_v54 = vpop.f32.mrb[10].mxu1 }
 0x17a   : > { %v744_v55 = vpop.f32.mrb[11].mxu1 }
 0x17b   : > { %v780_v56 = vpop.f32.mrb[12].mxu0 }
 0x17c   : > { %v781_v57 = vadd.f32 %v780_v56, %v546_v34  ;;  %v782_v58 = vpop.f32.mrb[13].mxu0 }
 0x17d   : > { %v783_v59 = vadd.f32 %v782_v58, %v548_v35  ;;  %v784_v60 = vpop.f32.mrb[14].mxu0 }
 0x17e   : > { %v785_v61 = vpop.f32.mrb[15].mxu0 }
 0x17f   : > { %v821_v62 = vpop.f32.mrb[12].mxu1 }
 0x180   : > { %v822_v63 = vadd.f32 %v821_v62, %v587_v38  ;;  %v823_v1 = vpop.f32.mrb[13].mxu1 }
 0x181   : > { %v824_v2 = vadd.f32 %v823_v1, %v589_v39  ;;  %v825_v3 = vpop.f32.mrb[14].mxu1 }
 0x182   : > { %v826_v4 = vpop.f32.mrb[15].mxu1 }
 0x183   : > { %v862_v5 = vpop.f32.mrb[16].mxu0 }
 0x184   : > { %v863_v6 = vadd.f32 %v862_v5, %v628_v42  ;;  %v864_v7 = vpop.f32.mrb[17].mxu0 }
 0x185   : > { %v865_v8 = vadd.f32 %v864_v7, %v630_v43  ;;  %v866_v9 = vpop.f32.mrb[18].mxu0 }
 0x186   : > { %v867_v10 = vpop.f32.mrb[19].mxu0 }
 0x187   : > { %v903_v11 = vpop.f32.mrb[16].mxu1 }
 0x188   : > { %v904_v12 = vadd.f32 %v903_v11, %v669_v46  ;;  %v3180_v13 = vpop.f32.mrb[17].mxu1 }
 0x189   : > { %v906_v14 = vpop.f32.mrb[18].mxu1 }
 0x18a   : > { %v3181_v15 = vpop.f32.mrb[19].mxu1 }
 0x18b   : > { %v1002_v16 = vpop.f32.mrb[20].mxu0 }
 0x18c   : > { %v1172_v17 = vadd.f32 %v1002_v16, %v740_v51  ;;  %v1004_v18 = vpop.f32.mrb[21].mxu0 }
 0x18d   : > { %v1173_v19 = vadd.f32 %v1004_v18, %v742_v53  ;;  %v1006_v20 = vpop.f32.mrb[22].mxu0 }
 0x18e   : > { %v1007_v21 = vpop.f32.mrb[23].mxu0 }
 0x18f   : > { %v1043_v22 = vpop.f32.mrb[20].mxu1 }
 0x190   : > { %v1174_v23 = vadd.f32 %v1043_v22, %v781_v57  ;;  %v1045_v24 = vpop.f32.mrb[21].mxu1 }
 0x191   : > { %v1175_v25 = vadd.f32 %v1045_v24, %v783_v59  ;;  %v1047_v26 = vpop.f32.mrb[22].mxu1 }
 0x192   : > { %v1048_v27 = vpop.f32.mrb[23].mxu1 }
 0x193   : > { %v1084_v28 = vpop.f32.mrb[24].mxu0 }
 0x194   : > { %v1176_v29 = vadd.f32 %v1084_v28, %v822_v63  ;;  %v1086_v30 = vpop.f32.mrb[25].mxu0 }
 0x195   : > { %v1177_v31 = vadd.f32 %v1086_v30, %v824_v2  ;;  %v1088_v32 = vpop.f32.mrb[26].mxu0 }
 0x196   : > { %v1089_v33 = vpop.f32.mrb[27].mxu0 }
 0x197   : > { %v1125_v34 = vpop.f32.mrb[24].mxu1 }
 0x198   : > { %v1178_v35 = vadd.f32 %v1125_v34, %v863_v6  ;;  %v1127_v36 = vpop.f32.mrb[25].mxu1 }
 0x199   : > { %v1179_v0 = vadd.f32 %v1127_v36, %v865_v8  ;;  %v1129_v38 = vpop.f32.mrb[26].mxu1 }
 0x19a   : > { %v1130_v39 = vpop.f32.mrb[27].mxu1 }
 0x19b   : > { %v1166_v40 = vpop.f32.mrb[28].mxu0 }
 0x19c   : > { %v1180_v41 = vadd.f32 %v1166_v40, %v904_v12  ;;  %v3186_v42 = vpop.f32.mrb[29].mxu0 }
 0x19d   : > { %v1169_v43 = vpop.f32.mrb[30].mxu0 }
 0x19e   : > { %v3187_v44 = vpop.f32.mrb[31].mxu0 }
 0x19f   : > { %v1274_v45 = vpop.f32.mrb[28].mxu1 }
 0x1a0   : > { %v1444_v46 = vadd.f32 %v1274_v45, %v1172_v17  ;;  %v1276_v47 = vpop.f32.mrb[29].mxu1 }
 0x1a1   : > { %v1445_v48 = vadd.f32 %v1276_v47, %v1173_v19  ;;  %v1278_v49 = vpop.f32.mrb[30].mxu1 }
 0x1a2   : > { %v1279_v50 = vpop.f32.mrb[31].mxu1 }
 0x1a3   : > { %v1315_v51 = vpop.f32.mrb[32].mxu0 }
 0x1a4   : > { %v1446_v52 = vadd.f32 %v1315_v51, %v1174_v23  ;;  %v1317_v53 = vpop.f32.mrb[33].mxu0 }
 0x1a5   : > { %v1447_v54 = vadd.f32 %v1317_v53, %v1175_v25  ;;  %v1319_v55 = vpop.f32.mrb[34].mxu0 }
 0x1a6   : > { %v1320_v56 = vpop.f32.mrb[35].mxu0  ;;  %v226_v55 = vlaneseq }
 0x1a7   : > { %v1356_v57 = vpop.f32.mrb[32].mxu1 }
 0x1a8   : > { %v1448_v58 = vadd.f32 %v1356_v57, %v1176_v29  ;;  %v1358_v59 = vpop.f32.mrb[33].mxu1 }
 0x1a9   : > { %v1449_v60 = vadd.f32 %v1358_v59, %v1177_v31  ;;  %v1360_v61 = vpop.f32.mrb[34].mxu1 }
 0x1aa   : > { %v1361_v62 = vpop.f32.mrb[35].mxu1 }
 0x1ab   : > { %v1397_v63 = vpop.f32.mrb[36].mxu0  ;;  %v3771_v62 = vand.u32 127, %v226_v55 }
 0x1ac   : > { %v1450_v1 = vadd.f32 %v1397_v63, %v1178_v35  ;;  %v1399_v2 = vpop.f32.mrb[37].mxu0 }
 0x1ad   : > { %v1451_v3 = vadd.f32 %v1399_v2, %v1179_v0  ;;  %v1401_v4 = vpop.f32.mrb[38].mxu0 }
 0x1ae   : > { %v1402_v5 = vpop.f32.mrb[39].mxu0 }
 0x1af   : > { %v1438_v6 = vpop.f32.mrb[36].mxu1  ;;  %v230_v5 = vadd.s32 384, %v3771_v62 }
 0x1b0   : > { %v1452_v7 = vadd.f32 %v1438_v6, %v1180_v41  ;;  %v3192_v8 = vpop.f32.mrb[37].mxu1 }
 0x1b1   : > { %v1441_v9 = vpop.f32.mrb[38].mxu1 }
 0x1b2   : > { %v3193_v10 = vpop.f32.mrb[39].mxu1 }
 0x1b3   : > { %v1546_v11 = vpop.f32.mrb[40].mxu0 }
 0x1b4   : > { %v1716_v12 = vadd.f32 %v1546_v11, %v1444_v46  ;;  %v1548_v13 = vpop.f32.mrb[41].mxu0 }
 0x1b5   : > { %v1717_v14 = vadd.f32 %v1548_v13, %v1445_v48  ;;  %v1550_v15 = vpop.f32.mrb[42].mxu0  ;;  %v231_v13 = vadd.s32 512, %v3771_v62 }
 0x1b6   : > { %v1551_v16 = vpop.f32.mrb[43].mxu0 }
 0x1b7   : > { %v1587_v17 = vpop.f32.mrb[40].mxu1 }
 0x1b8   : > { %v1718_v18 = vadd.f32 %v1587_v17, %v1446_v52  ;;  %v1589_v19 = vpop.f32.mrb[41].mxu1 }
 0x1b9   : > { %v1719_v20 = vadd.f32 %v1589_v19, %v1447_v54  ;;  %v1591_v21 = vpop.f32.mrb[42].mxu1  ;;  %v3786_v19 = vadd.s32 35, %v3771_v62 }
 0x1ba   : > { %v1592_v22 = vpop.f32.mrb[43].mxu1 }
 0x1bb   : > { %v1628_v23 = vpop.f32.mrb[44].mxu0 }
 0x1bc   : > { %v1720_v24 = vadd.f32 %v1628_v23, %v1448_v58  ;;  %v1630_v25 = vpop.f32.mrb[45].mxu0 }
 0x1bd   : > { %v1721_v26 = vadd.f32 %v1630_v25, %v1449_v60  ;;  %v1632_v27 = vpop.f32.mrb[46].mxu0 }
 0x1be   : > { %v1633_v28 = vpop.f32.mrb[47].mxu0 }
 0x1bf   : > { %v1669_v29 = vpop.f32.mrb[44].mxu1 }
 0x1c0   : > { %v1722_v30 = vadd.f32 %v1669_v29, %v1450_v1  ;;  %v1671_v31 = vpop.f32.mrb[45].mxu1 }
 0x1c1   : > { %v1723_v32 = vadd.f32 %v1671_v31, %v1451_v3  ;;  %v1673_v33 = vpop.f32.mrb[46].mxu1  ;;  %v229_v3 = vadd.s32 256, %v3771_v62 }
 0x1c2   : > { %v1674_v34 = vpop.f32.mrb[47].mxu1  ;;  %v232_v33 = vadd.s32 640, %v3771_v62 }
 0x1c3   : > { %v1710_v35 = vpop.f32.mrb[48].mxu0  ;;  %v3775_v10 = vadd.s32 35, %v229_v3 }
 0x1c4   : > { %v1724_v36 = vadd.f32 %v1710_v35, %v1452_v7  ;;  %v3198_v0 = vpop.f32.mrb[49].mxu0 }
 0x1c5   : > { %v1713_v38 = vpop.f32.mrb[50].mxu0  ;;  %v247_v21 = vcvt.s32.f32 %v3775_v10 }
 0x1c6   : > { %v3199_v39 = vpop.f32.mrb[51].mxu0 }
 0x1c7   : > { %v1818_v40 = vpop.f32.mrb[48].mxu1 }
 0x1c8   : > { %v1988_v41 = vadd.f32 %v1818_v40, %v1716_v12  ;;  %v1820_v42 = vpop.f32.mrb[49].mxu1  ;;  %v3777_v12 = vadd.s32 35, %v230_v5 }
 0x1c9   : > { %v1989_v43 = vadd.f32 %v1820_v42, %v1717_v14  ;;  %v1822_v44 = vpop.f32.mrb[50].mxu1 }
 0x1ca   : > { %v1823_v45 = vpop.f32.mrb[51].mxu1  ;;  %v248_v23 = vcvt.s32.f32 %v3777_v12 }
 0x1cb   : > { %v1859_v46 = vpop.f32.mrb[52].mxu0  ;;  %v3812_v45 = vadd.s32 35, %v232_v33 }
 0x1cc   : > { %v1990_v47 = vadd.f32 %v1859_v46, %v1718_v18  ;;  %v1861_v48 = vpop.f32.mrb[53].mxu0  ;;  %v228_v18 = vadd.s32 128, %v3771_v62  ;;  %v257_v35 = vadd.f32 0.5, %v248_v23 }
 0x1cd   : > { %v1991_v49 = vadd.f32 %v1861_v48, %v1719_v20  ;;  %v1863_v50 = vpop.f32.mrb[54].mxu0 }
 0x1ce   : > { %v1864_v51 = vpop.f32.mrb[55].mxu0  ;;  %v3796_v29 = vadd.s32 35, %v228_v18 }
 0x1cf   : > { %v1900_v52 = vpop.f32.mrb[52].mxu1 }
 0x1d0   : > { %v1992_v53 = vadd.f32 %v1900_v52, %v1720_v24  ;;  %v1902_v54 = vpop.f32.mrb[53].mxu1  ;;  %v3790_v24 = vadd.s32 35, %v231_v13  ;;  %v234_v52 = vadd.s32 896, %v3771_v62 }
 0x1d1   : > { %v1993_v56 = vadd.f32 %v1902_v54, %v1721_v26  ;;  %v1904_v57 = vpop.f32.mrb[54].mxu1 }
 0x1d2   : > { %v1905_v58 = vpop.f32.mrb[55].mxu1  ;;  %v3829_v5 = vadd.s32 35, %v234_v52 }
 0x1d3   : > { %v1941_v59 = vpop.f32.mrb[56].mxu0 }
 0x1d4   : > { %v1994_v60 = vadd.f32 %v1941_v59, %v1722_v30  ;;  %v1943_v61 = vpop.f32.mrb[57].mxu0  ;;  %v245_v30 = vcvt.s32.f32 %v3786_v19  ;;  %v250_v59 = vcvt.s32.f32 %v3812_v45 }
 0x1d5   : > { %v1995_v63 = vadd.f32 %v1943_v61, %v1723_v32  ;;  %v1945_v1 = vpop.f32.mrb[58].mxu0  ;;  %v256_v32 = vadd.f32 0.5, %v247_v21 }
 0x1d6   : > { %v1946_v2 = vpop.f32.mrb[59].mxu0  ;;  %v254_v42 = vadd.f32 0.5, %v245_v30 }
 0x1d7   : > { %v1982_v4 = vpop.f32.mrb[56].mxu1  ;;  %v266_v44 = vmul.f32 0.029411765, %v256_v32 }
 0x1d8   : > { %v1996_v6 = vadd.f32 %v1982_v4, %v1724_v36  ;;  %v3204_v7 = vpop.f32.mrb[57].mxu1  ;;  %v249_v36 = vcvt.s32.f32 %v3790_v24 }
 0x1d9   : > { %v1985_v8 = vpop.f32.mrb[58].mxu1  ;;  %v275_v58 = vfloor.f32 %v266_v44 }
 0x1da   : > { %v3205_v9 = vpop.f32.mrb[59].mxu1  ;;  %v258_v48 = vadd.f32 0.5, %v249_v36 }
 0x1db   : > { %v2123_v11 = vpop.f32.mrb[60].mxu0  ;;  %v284_v13 = vmul.f32 34.0, %v275_v58  ;;  %vm302_vm11 = vcmp.gt.f32.partialorder %v275_v58, 0.5  ;;  %vm311_vm12 = vcmp.lt.f32.partialorder %v275_v58, 32.5 }
 0x1dc   : > { %v3780_v14 = vadd.f32 %v2123_v11, %v1988_v41  ;;  %v2125_v15 = vpop.f32.mrb[61].mxu0  ;;  %v246_v41 = vcvt.s32.f32 %v3796_v29  ;;  %v268_v2 = vmul.f32 0.029411765, %v258_v48  ;;  %vm3866_vm15 = vmand %vm302_vm11, %vm311_vm12 }
 0x1dd   : > { %v3782_v16 = vadd.f32 %v2125_v15, %v1989_v43  ;;  %v2127_v17 = vpop.f32.mrb[62].mxu0  ;;  %v259_v15 = vadd.f32 0.5, %v250_v59 }
 0x1de   : > { %v2128_v20 = vpop.f32.mrb[63].mxu0  ;;  %v255_v55 = vadd.f32 0.5, %v246_v41 }
 0x1df   : > { %v2164_v22 = vpop.f32.mrb[60].mxu1  ;;  %v277_v20 = vfloor.f32 %v268_v2 }
 0x1e0   : > { %v3792_v25 = vadd.f32 %v2164_v22, %v1990_v47  ;;  %v2166_v26 = vpop.f32.mrb[61].mxu1  ;;  %v267_v47 = vmul.f32 0.029411765, %v257_v35  ;;  %v265_v8 = vmul.f32 0.029411765, %v255_v55 }
 0x1e1   : > { %v3794_v27 = vadd.f32 %v2166_v26, %v1991_v49  ;;  %v2168_v28 = vpop.f32.mrb[62].mxu1  ;;  %v233_v49 = vadd.s32 768, %v3771_v62  ;;  %vm304_vm5 = vcmp.gt.f32.partialorder %v277_v20, 0.5  ;;  %vm313_vm6 = vcmp.lt.f32.partialorder %v277_v20, 32.5 }
 0x1e2   : > { %v2169_v31 = vpop.f32.mrb[63].mxu1  ;;  %v276_v1 = vfloor.f32 %v267_v47  ;;  %v274_v33 = vfloor.f32 %v265_v8 }
 0x1e3   : > { %v2205_v34 = vpop.f32.mrb[64].mxu0  ;;  %v3825_v3 = vadd.s32 35, %v233_v49 }
 0x1e4   : > { %v3805_v0 = vadd.f32 %v2205_v34, %v1992_v53  ;;  %v2207_v38 = vpop.f32.mrb[65].mxu0  ;;  %v285_v18 = vmul.f32 34.0, %v276_v1  ;;  %vm303_vm13 = vcmp.gt.f32.partialorder %v276_v1, 0.5  ;;  %vm312_vm14 = vcmp.lt.f32.partialorder %v276_v1, 32.5 }
 0x1e5   : > { %v3807_v39 = vadd.f32 %v2207_v38, %v1993_v56  ;;  %v2209_v40 = vpop.f32.mrb[66].mxu0  ;;  %v264_v56 = vmul.f32 0.029411765, %v254_v42  ;;  %v293_v38 = vsub.f32 %v247_v21, %v284_v13  ;;  %vm3873_vm3 = vmand %vm303_vm13, %vm312_vm14  ;;  %vm301_vm11 = vcmp.gt.f32.partialorder %v274_v33, 0.5 }
 0x1e6   : > { %v2210_v43 = vpop.f32.mrb[67].mxu0  ;;  %v3851_v42 = vsub.f32 %v248_v23, %v285_v18  ;;  %v283_v23 = vmul.f32 34.0, %v274_v33  ;;  %vm310_vm12 = vcmp.lt.f32.partialorder %v274_v33, 32.5  ;;  %vm3910_vm13 = vmand %vm304_vm5, %vm313_vm6 }
 0x1e7   : > { %v2246_v46 = vpop.f32.mrb[64].mxu1  ;;  %v3832_v9 = vfloor.f32 %v264_v56  ;;  %v286_v43 = vmul.f32 34.0, %v277_v20  ;;  %vm329_vm0 = vcmp.gt.f32.partialorder %v293_v38, 0.5  ;;  %vm347_vm2 = vcmp.lt.f32.partialorder %v293_v38, 32.5 }
 0x1e8   : > { %v3817_v50 = vadd.f32 %v2246_v46, %v1994_v60  ;;  %v2248_v51 = vpop.f32.mrb[65].mxu1  ;;  %vm330_vm4 = vcmp.gt.f32.partialorder %v3851_v42, 0.5  ;;  %vm3893_vm7 = vmand %vm3866_vm15, %vm329_vm0 }
 0x1e9   : > { %v3820_v53 = vadd.f32 %v2248_v51, %v1995_v63  ;;  %v2250_v54 = vpop.f32.mrb[66].mxu1  ;;  %v235_v63 = vadd.s32 1024, %v3771_v62  ;;  %v252_v62 = vcvt.s32.f32 %v3829_v5  ;;  %v282_v34 = vmul.f32 34.0, %v3832_v9  ;;  %vm3905_vm10 = vmand %vm3873_vm3, %vm330_vm4 }
 0x1ea   : > { %v2251_v57 = vpop.f32.mrb[67].mxu1  ;;  %v3880_v54 = vsub.f32 %v249_v36, %v286_v43  ;;  %v292_v36 = vsub.f32 %v246_v41, %v283_v23  ;;  %vm300_vm8 = vcmp.gt.f32.partialorder %v3832_v9, 0.5  ;;  %vm309_vm9 = vcmp.lt.f32.partialorder %v3832_v9, 32.5  ;;  %vm3921_vm15 = vmand %vm3893_vm7, %vm347_vm2 }
 0x1eb   : > { %v2287_v61 = vpop.f32.mrb[68].mxu0  ;;  %v3841_v28 = vadd.s32 35, %v235_v63  ;;  %v261_v10 = vadd.f32 0.5, %v252_v62  ;;  %v291_v51 = vsub.f32 %v245_v30, %v282_v34  ;;  %vm318_vm0 = vmand %vm300_vm8, %vm309_vm9  ;;  %v4010_v49 = vsel %vm3921_vm15, 1.0, %v3274_v37 }
 0x1ec   : > { %v3827_v60 = vadd.f32 %v2287_v61, %v1996_v6  ;;  %v3210_v4 = vpop.f32.mrb[69].mxu0  ;;  %v251_v6 = vcvt.s32.f32 %v3825_v3  ;;  %vm331_vm14 = vcmp.gt.f32.partialorder %v3880_v54, 0.5  ;;  %vm3934_vm4 = vmand %vm301_vm11, %vm310_vm12  ;;  %vm328_vm2 = vcmp.gt.f32.partialorder %v292_v36, 0.5 }
 0x1ed   : > { %v2290_v7 = vpop.f32.mrb[70].mxu0  ;;  %v253_v21 = vcvt.s32.f32 %v3841_v28  ;;  %v271_v19 = vmul.f32 0.029411765, %v261_v10  ;;  %vm327_vm3 = vcmp.gt.f32.partialorder %v291_v51, 0.5  ;;  %vm3942_vm5 = vmand %vm3910_vm13, %vm331_vm14  ;;  %vm345_vm9 = vcmp.lt.f32.partialorder %v291_v51, 32.5  ;;  %v4012_v51 = vpop.permute.xlu0 %2879 }
 0x1ee   : > { %v3211_v11 = vpop.f32.mrb[71].mxu0  ;;  %vm336_vm8 = vmand %vm318_vm0, %vm327_vm3  ;;  %vm346_vm12 = vcmp.lt.f32.partialorder %v292_v36, 32.5  ;;  %vm348_vm13 = vcmp.lt.f32.partialorder %v3851_v42, 32.5  ;;  %vm349_vm0 = vcmp.lt.f32.partialorder %v3880_v54, 32.5 }
 0x1ef   : > { %v2398_v17 = vpop.f32.mrb[68].mxu1  ;;  %v262_v30 = vadd.f32 0.5, %v253_v21  ;;  %v280_v8 = vfloor.f32 %v271_v19  ;;  %vm337_vm11 = vmand %vm3934_vm4, %vm328_vm2 }
 0x1f0   : > { %v3838_v22 = vadd.f32 %v2398_v17, %v3780_v14  ;;  %v2400_v26 = vpop.f32.mrb[69].mxu1  ;;  %v269_v14 = vmul.f32 0.029411765, %v259_v15  ;;  %vm3962_vm3 = vmand %vm336_vm8, %vm345_vm9 }
 0x1f1   : > { %v3844_v31 = vadd.f32 %v2400_v26, %v3782_v16  ;;  %v2402_v32 = vpop.f32.mrb[70].mxu1  ;;  %v260_v16 = vadd.f32 0.5, %v251_v6  ;;  %v272_v11 = vmul.f32 0.029411765, %v262_v30  ;;  %v289_v33 = vmul.f32 34.0, %v280_v8  ;;  %vm3970_vm1 = vmand %vm337_vm11, %vm346_vm12 }
 0x1f2   : > { %v2403_v35 = vpop.f32.mrb[71].mxu1  ;;  %vm3989_vm8 = vmand %vm3942_vm5, %vm349_vm0  ;;  %vm316_vm9 = vcmp.lt.f32.partialorder %v280_v8, 32.5  ;;  %v3033_v5 = vsel %vm3962_vm3, 1.0, %v3274_v37  ;;  %v3034_v23 = vsel %vm3970_vm1, 1.0, %v3274_v37 }
 0x1f3   : > { %v2439_v40 = vpop.f32.mrb[72].mxu0  ;;  %v270_v55 = vmul.f32 0.029411765, %v260_v16  ;;  %v3951_v34 = vfloor.f32 %v272_v11  ;;  %v298_v10 = vsub.f32 %v252_v62, %v289_v33  ;;  %v3037_v9 = vsel %vm3989_vm8, 1.0, %v3274_v37 }
 0x1f4   : > { %v3856_v44 = vadd.f32 %v2439_v40, %v3792_v25  ;;  %v2441_v46 = vpop.f32.mrb[73].mxu0  ;;  %v278_v25 = vfloor.f32 %v269_v14  ;;  %v3966_v14 = vpop.permute.xlu1 %2855 }
 0x1f5   : > { %v3862_v47 = vadd.f32 %v2441_v46, %v3794_v27  ;;  %v2443_v12 = vpop.f32.mrb[74].mxu0  ;;  %v279_v2 = vfloor.f32 %v270_v55  ;;  %v290_v3 = vmul.f32 34.0, %v3951_v34  ;;  %vm334_vm15 = vcmp.gt.f32.partialorder %v298_v10, 0.5 }
 0x1f6   : > { %v2444_v48 = vpop.f32.mrb[75].mxu0  ;;  %v287_v41 = vmul.f32 34.0, %v278_v25  ;;  %vm305_vm6 = vcmp.gt.f32.partialorder %v278_v25, 0.5  ;;  %vm314_vm7 = vcmp.lt.f32.partialorder %v278_v25, 32.5  ;;  %vm308_vm0 = vcmp.gt.f32.partialorder %v3951_v34, 0.5 }
 0x1f7   : > { %v2480_v52 = vpop.f32.mrb[72].mxu1  ;;  %v288_v20 = vmul.f32 34.0, %v279_v2  ;;  %vm3957_vm14 = vmand %vm305_vm6, %vm314_vm7  ;;  %vm306_vm2 = vcmp.gt.f32.partialorder %v279_v2, 0.5  ;;  %vm315_vm7 = vcmp.lt.f32.partialorder %v279_v2, 32.5  ;;  %v299_v19 = vsub.f32 %v253_v21, %v290_v3 }
 0x1f8   : > { %v3883_v56 = vadd.f32 %v2480_v52, %v3805_v0  ;;  %v2482_v57 = vpop.f32.mrb[73].mxu1  ;;  %v296_v18 = vsub.f32 %v250_v59, %v287_v41  ;;  %vm3977_vm6 = vmand %vm3905_vm10, %vm348_vm13  ;;  %vm307_vm10 = vcmp.gt.f32.partialorder %v280_v8, 0.5  ;;  %v4031_v24 = vpop.permute.xlu1 %2894  ;;  %vm317_vm3 = vcmp.lt.f32.partialorder %v3951_v34, 32.5 }
 0x1f9   : > { %v3888_v58 = vadd.f32 %v2482_v57, %v3807_v39  ;;  %v2484_v61 = vpop.f32.mrb[74].mxu1  ;;  %v297_v40 = vsub.f32 %v251_v6, %v288_v20  ;;  %vm4016_vm5 = vmand %vm306_vm2, %vm315_vm7  ;;  %v3036_v21 = vsel %vm3977_vm6, 1.0, %v3274_v37  ;;  %vm352_vm6 = vcmp.lt.f32.partialorder %v298_v10, 32.5 }
 0x1fa   : > { %v2485_v0 = vpop.f32.mrb[75].mxu1  ;;  %vm332_vm4 = vcmp.gt.f32.partialorder %v296_v18, 0.5  ;;  %vm350_vm12 = vcmp.lt.f32.partialorder %v296_v18, 32.5  ;;  %vm4024_vm1 = vmand %vm307_vm10, %vm316_vm9  ;;  %vm335_vm9 = vcmp.gt.f32.partialorder %v299_v19, 0.5 }
 0x1fb   : > { %v2521_v1 = vpop.f32.mrb[76].mxu0  ;;  %vm3999_vm11 = vmand %vm3957_vm14, %vm332_vm4  ;;  %vm333_vm13 = vcmp.gt.f32.partialorder %v297_v40, 0.5  ;;  %vm351_vm2 = vcmp.lt.f32.partialorder %v297_v40, 32.5 }
 0x1fc   : > { %v3916_v4 = vadd.f32 %v2521_v1, %v3817_v50  ;;  %v2523_v63 = vpop.f32.mrb[77].mxu0  ;;  %vm4036_vm14 = vmand %vm3999_vm11, %vm350_vm12 }
 0x1fd   : > { %v3930_v13 = vadd.f32 %v2523_v63, %v3820_v53  ;;  %v2525_v50 = vpop.f32.mrb[78].mxu0  ;;  %vm4049_vm4 = vmand %vm4016_vm5, %vm333_vm13  ;;  %v3038_v33 = vsel %vm4036_vm14, 1.0, %v3274_v37  ;;  %vm353_vm5 = vcmp.lt.f32.partialorder %v299_v19, 32.5  ;;  %vm2942_vm14 = vcmask 285696  }
 0x1fe   : > { %v2526_v17 = vpop.f32.mrb[79].mxu0  ;;  %vm4058_vm7 = vmand %vm4024_vm1, %vm334_vm15  ;;  %vm2956_vm1 = vcmask 1042712   ;;  %vm2957_vm15 = vcmask 1046532  }
 0x1ff   : > { %v2562_v53 = vpop.f32.mrb[76].mxu1  ;;  %vm4069_vm10 = vmand %vm308_vm0, %vm317_vm3  ;;  %vm2965_vm3 = vcmask 280576  }
 0x200   : > { %v3949_v26 = vadd.f32 %v2562_v53, %v3827_v60  ;;  %v3216_v32 = vpop.f32.mrb[77].mxu1  ;;  %vm4081_vm11 = vmand %vm4049_vm4, %vm351_vm2  ;;  %vm4212_vm4 = vcmask 1043456  }
 0x201   : > { %v2565_v35 = vpop.f32.mrb[78].mxu1  ;;  %vm4093_vm8 = vmand %vm4058_vm7, %vm352_vm6  ;;  %vm2967_vm7 = vcmask 1043208   ;;  %vm2968_vm6 = vcmask 30724  }
 0x202   : > { %v3217_v59 = vpop.f32.mrb[79].mxu1  ;;  %vm4102_vm12 = vmand %vm4069_vm10, %vm335_vm9  ;;  %vm2963_vm10 = vcmask 788480  }
 0x203   : > { %v2673_v38 = vpop.f32.mrb[80].mxu0  ;;  %vm362_vm13 = vmand %vm4102_vm12, %vm353_vm5 }
 0x204   : > { %v2843_v43 = vadd.f32 %v2673_v38, %v3838_v22  ;;  %v2675_v16 = vpop.f32.mrb[81].mxu0  ;;  %vm2958_vm0 = vmor %vm2957_vm15, %vm2956_vm1 }
 0x205   : > { %v2844_v6 = vadd.f32 %v2675_v16, %v3844_v31  ;;  %v2677_v12 = vpop.f32.mrb[82].mxu0  ;;  %v3039_v16 = vsel %vm4081_vm11, 1.0, %v3274_v37  ;;  %vm4213_vm2 = vmmov %vm4212_vm4 }
 0x206   : > { %v2678_v62 = vpop.f32.mrb[83].mxu0  ;;  %v2858_v48 = vadd.f32 %v3966_v14, %v2843_v43  ;;  %vm2969_vm9 = vmor %vm2968_vm6, %vm2967_vm7 }
 0x207   : > { %v2714_v25 = vpop.f32.mrb[80].mxu1  ;;  %v2859_v27 = vadd.f32 %v3966_v14, %v2844_v6  ;;  %vm4214_vm11 = vmmov %vm4213_vm2 }
 0x208   : > { %v2845_v54 = vadd.f32 %v2714_v25, %v3856_v44  ;;  %v2716_v55 = vpop.f32.mrb[81].mxu1  ;;  %v2867_v30 = vmul.f32 %v3033_v5, %v2858_v48  ;;  %v3040_v48 = vsel %vm4093_vm8, 1.0, %v3274_v37 }
 0x209   : > { %v2846_v61 = vadd.f32 %v2716_v55, %v3862_v47  ;;  %v2718_v36 = vpop.f32.mrb[82].mxu1  ;;  %v2868_v0 = vmul.f32 %v3034_v23, %v2859_v27 }
 0x20a   : > { %v2860_v28 = vadd.f32 %v3966_v14, %v2845_v54  ;;  %v2719_v47 = vpop.f32.mrb[83].mxu1  ;;  %v2882_v1 = vmul.f32 %v4012_v51, %v2867_v30  ;;  %v3041_v36 = vsel %vm362_vm13, 1.0, %v3274_v37 }
 0x20b   : > { %v2861_v29 = vadd.f32 %v3966_v14, %v2846_v61  ;;  %v2755_v41 = vpop.f32.mrb[84].mxu0  ;;  %v2883_v63 = vmul.f32 %v4012_v51, %v2868_v0 }
 0x20c   : > { %v2869_v7 = vmul.f32 %v4010_v49, %v2860_v28  ;;  %v2847_v8 = vadd.f32 %v2755_v41, %v3883_v56  ;;  %v2757_v11 = vpop.f32.mrb[85].mxu0  ;;  %v2897_v15 = vadd.f32 %v4031_v24, %v2882_v1 }
 0x20d   : > { %v2870_v17 = vmul.f32 %v3036_v21, %v2861_v29  ;;  %v2848_v53 = vadd.f32 %v2757_v11, %v3888_v58  ;;  %v2759_v18 = vpop.f32.mrb[86].mxu0  ;;  %v2898_v20 = vadd.f32 %v4031_v24, %v2883_v63 }
 0x20e   : > { %v2862_v32 = vadd.f32 %v3966_v14, %v2847_v8  ;;  %v2760_v34 = vpop.f32.mrb[87].mxu0  ;;  %v2906_v35 = vmul.f32 %v3033_v5, %v2897_v15  ;;  %v2884_v45 = vmul.f32 %v4012_v51, %v2869_v7 }
 0x20f   : > { %v2863_v59 = vadd.f32 %v3966_v14, %v2848_v53  ;;  %v2796_v60 = vpop.f32.mrb[84].mxu1  ;;  %v2907_v40 = vmul.f32 %v3034_v23, %v2898_v20  ;;  %v2885_v42 = vmul.f32 %v4012_v51, %v2870_v17 }
 0x210   : > { %v2871_v43 = vmul.f32 %v3037_v9, %v2862_v32  ;;  %v2849_v46 = vadd.f32 %v2796_v60, %v3916_v4  ;;  %v2798_v10 = vpop.f32.mrb[85].mxu1  ;;  %v2899_v3 = vadd.f32 %v4031_v24, %v2884_v45 }
 0x211   : > { %v2872_v6 = vmul.f32 %v3038_v33, %v2863_v59  ;;  %v2850_v12 = vadd.f32 %v2798_v10, %v3930_v13  ;;  %v2800_v22 = vpop.f32.mrb[86].mxu1  ;;  %v2924_v5 = vcombine.low %v2906_v35, %v2907_v40  ;;  %v2900_v62 = vadd.f32 %v4031_v24, %v2885_v42 }
 0x212   : > { %v2886_v31 = vmul.f32 %v4012_v51, %v2871_v43  ;;  %v2864_v23 = vadd.f32 %v3966_v14, %v2849_v46  ;;  %v2801_v4 = vpop.f32.mrb[87].mxu1  ;;  %v2908_v25 = vmul.f32 %v4010_v49, %v2899_v3 }
 0x213   : > { %v2887_v13 = vmul.f32 %v4012_v51, %v2872_v6  ;;  %v2865_v52 = vadd.f32 %v3966_v14, %v2850_v12  ;;  %v2837_v27 = vpop.f32.mrb[88].mxu0  ;;  %2928 = vrot.lane.b32.xlu1 %v2924_v5, %s3277_s9  ;;  %v2909_v54 = vmul.f32 %v3036_v21, %v2900_v62 }
 0x214   : > { %v2873_v55 = vmul.f32 %v3039_v16, %v2864_v23  ;;  %v2851_v57 = vadd.f32 %v2837_v27, %v3949_v26  ;;  %v3222_v30 = vpop.f32.mrb[89].mxu0  ;;  %v2901_v19 = vadd.f32 %v4031_v24, %v2886_v31 }
 0x215   : > { %v2874_v61 = vmul.f32 %v3040_v48, %v2865_v52  ;;  %v2925_v44 = vcombine.low %v2908_v25, %v2909_v54  ;;  %v2840_v49 = vpop.f32.mrb[90].mxu0  ;;  %v2902_v0 = vadd.f32 %v4031_v24, %v2887_v13 }
 0x216   : > { %v2888_v28 = vmul.f32 %v4012_v51, %v2873_v55  ;;  %v2866_v47 = vadd.f32 %v3966_v14, %v2851_v57  ;;  %v3223_v39 = vpop.f32.mrb[91].mxu0  ;;  %v2910_v1 = vmul.f32 %v3037_v9, %v2901_v19 }
 0x217   : > { %v2889_v21 = vmul.f32 %v4012_v51, %v2874_v61  ;;  %2930 = vrot.lane.b32.xlu0 %v2925_v44, %s3277_s9  ;;  %v2911_v26 = vmul.f32 %v3038_v33, %v2902_v0 }
 0x218   : > { %v2875_v29 = vmul.f32 %v3041_v36, %v2866_v47  ;;  %v2903_v41 = vadd.f32 %v4031_v24, %v2888_v28 }
 0x219   : > { %v2926_v2 = vcombine.low %v2910_v1, %v2911_v26  ;;  %v2904_v63 = vadd.f32 %v4031_v24, %v2889_v21 }
 0x21a   : > { %v2890_v7 = vmul.f32 %v4012_v51, %v2875_v29  ;;  %v2912_v8 = vmul.f32 %v3039_v16, %v2903_v41 }
 0x21b   : > { %2932 = vrot.lane.b32.xlu1 %v2926_v2, %s3277_s9  ;;  %v2913_v14 = vmul.f32 %v3040_v48, %v2904_v63 }
 0x21c   : > { %v2905_v11 = vadd.f32 %v4031_v24, %v2890_v7 }
 0x21d   : > { %v2927_v50 = vcombine.low %v2912_v8, %v2913_v14 }
 0x21e   : > { %v2914_v15 = vmul.f32 %v3041_v36, %v2905_v11 }
 0x21f   : > { %2934 = vrot.lane.b32.xlu0 %v2927_v50, %s3277_s9 }
 0x220   : > { %2936 = vrot.lane.b32.xlu1 %v2914_v15, %s3277_s9 }
 0x285   : > { %v2929_v17 = vpop.permute.xlu1 %2928 }
 0x286   : > { %v2938_v51 = vrot.slane %v2929_v17, 4 }
 0x288   : > { %v2943_v24 = vsel %vm2942_vm14, %v2938_v51, %v2929_v17 }
 0x289   : > { %2959 = vst.msk [vmem:[%s224_s12] sm:$0x77] %vm2958_vm0, %v2943_v24  ;;  %v2931_v9 = vpop.permute.xlu0 %2930 }
 0x28a   : > { %2966 = vst.msk [vmem:[%s224_s12] sm:$0x7] %vm2965_vm3, %v3274_v37  ;;  %v2939_v53 = vrot.slane %v2931_v9, 4 }
 0x28c   : > { %v2944_v56 = vsel %vm4212_vm4, %v2938_v51, %v2939_v53 }
 0x28d   : > { %v2945_v18 = vsel %vm2942_vm14, %v2944_v56, %v2931_v9  ;;  %v2933_v20 = vpop.permute.xlu1 %2932 }
 0x28e   : > { %2960 = vst [vmem:[%s224_s12 + $0x8] sm:$0x77] %v2945_v18  ;;  %v2940_v32 = vrot.slane %v2933_v20, 4 }
 0x290   : > { %v2946_v33 = vsel %vm4213_vm2, %v2939_v53, %v2940_v32 }
 0x291   : > { %v2947_v58 = vsel %vm2942_vm14, %v2946_v33, %v2933_v20  ;;  %v2935_v34 = vpop.permute.xlu0 %2934 }
 0x292   : > { %2961 = vst [vmem:[%s224_s12 + $0x10] sm:$0x77] %v2947_v58  ;;  %v2941_v35 = vrot.slane %v2935_v34, 4  ;;  %v2937_v45 = vpop.permute.xlu1 %2936 }
 0x294   : > { %v2948_v59 = vsel %vm4214_vm11, %v2940_v32, %v2941_v35  ;;  %v2950_v60 = vsel %vm2942_vm14, %v2941_v35, %v2937_v45 }
 0x295   : > { %v2949_v38 = vsel %vm2942_vm14, %v2948_v59, %v2935_v34  ;;  %2964 = vst.msk [vmem:[%s224_s12 + $0x20] sm:$0x7] %vm2963_vm10, %v2950_v60 }
 0x296   : > { %2962 = vst [vmem:[%s224_s12 + $0x18] sm:$0x77] %v2949_v38  ;;  %2970 = vst.msk [vmem:[%s224_s12 + $0x20] sm:$0x77] %vm2969_vm9, %v3274_v37 }
 0x297 PF: > { %s15_s18 = sadd.s32 1, %s3264_s18  }
 0x298   : > { %p12_p4 = scmp.ge.s32.totalorder %s15_s18, 4  }
 0x29a   :  { %14 = sbr.rel (!%p12_p4) target bundleno = 1 (0x1), region = 78 }

</bundles_post_ra>
